<compile_context>
chip_gen: v7x
topology: tpu7x:2x2x1
jax: 0.10.0
libtpu: 0.0.40
codegen_flags: <defaults>
</compile_context>

<pallas_src>
import math

import jax
import jax.numpy as jnp
from jax.experimental import pallas as pl
from jax.experimental.pallas import tpu as pltpu

# ---------- small synthetic DINOv2 config (dinov2-base structure, scaled) ----
IMG = 16            # image H = W            (dinov2-base: 224 / 518)
IN_CH = 3           # RGB channels
PATCH = 4           # patch size             (dinov2-base: 14)
HIDDEN = 64         # hidden size            (dinov2-base: 768)
NUM_HEADS = 4       # attention heads        (dinov2-base: 12)
HEAD_DIM = HIDDEN // NUM_HEADS
MLP_DIM = 4 * HIDDEN
NUM_LAYERS = 2      # transformer blocks     (dinov2-base: 12)
OUTPUT_DIM = 32     # final fc output dim    (module default: 512)
OUT_PAD = 128       # lane-dense output width (sliced back to OUTPUT_DIM outside)
LN_EPS = 1e-6
N_PATCH = (IMG // PATCH) ** 2
SEQ = N_PATCH + 1                 # +1 for the cls token (= 17)
SEQ_PAD = 32                      # tokens padded to a sublane multiple
BT = 4                            # batch elements fused per grid step
M_SLAB = BT * SEQ_PAD             # = 128 matmul rows per grid step
CPP = IN_CH * PATCH * PATCH       # im2col column width (= 48)

_NEG_INF = -1e30


# ----------------------------- in-kernel helpers ------------------------------
def _ln(x, g, b):
    mu = jnp.mean(x, axis=-1, keepdims=True)
    var = jnp.mean(jnp.square(x - mu), axis=-1, keepdims=True)
    return (x - mu) * jax.lax.rsqrt(var + LN_EPS) * g + b


def _gelu_exact(x):
    # exact-erf GELU via Abramowitz-Stegun 7.1.26 (|err| < 1.5e-7); only
    # exp/mul/add/select -> guaranteed Mosaic lowering.
    # TODO(synk): switch to tanh-approx GELU if VALU ever becomes the binding slot.
    a1, a2, a3, a4, a5 = (0.254829592, -0.284496736, 1.421413741,
                          -1.453152027, 1.061405429)
    p = 0.3275911
    z = x * (1.0 / math.sqrt(2.0))
    az = jnp.abs(z)
    t = 1.0 / (1.0 + p * az)
    poly = t * (a1 + t * (a2 + t * (a3 + t * (a4 + t * a5))))
    erf_abs = 1.0 - poly * jnp.exp(-az * az)
    erf_z = jnp.where(z >= 0, erf_abs, -erf_abs)
    return 0.5 * x * (1.0 + erf_z)


# ------------------------------- fused kernel ---------------------------------
def _encoder_kernel(cols_ref, biaspos_ref, pw_ref,
                    ln1g_ref, ln1b_ref, wqkv_ref, bqkv_ref, wo_ref, bo_ref, ls1_ref,
                    ln2g_ref, ln2b_ref, w1_ref, b1_ref, w2_ref, b2_ref, ls2_ref,
                    lnfg_ref, lnfb_ref, fcw_ref, fcb_ref,
                    out_ref, tok_ref):
    f32, bf16 = jnp.float32, jnp.bfloat16
    layer = pl.program_id(1)

    # ---- patch embed + cls + pos: one MXU pass, only at the first layer step ----
    # cols row 0 (cls) and rows >= SEQ are zero; biaspos row 0 = cls + pos0,
    # rows 1..SEQ-1 = pos + conv bias, pad rows = 0 (masked as keys below).
    @pl.when(layer == 0)
    def _():
        tok_ref[...] = jnp.dot(cols_ref[0].astype(bf16), pw_ref[...],
                               preferred_element_type=f32) + biaspos_ref[...]

    tok = tok_ref[...]                                     # (M_SLAB, HIDDEN) f32

    # -------------------------- attention sub-block ------------------------------
    h = _ln(tok, ln1g_ref[0], ln1b_ref[0])
    qkv = jnp.dot(h.astype(bf16), wqkv_ref[0],
                  preferred_element_type=f32) + bqkv_ref[0]        # (M_SLAB, 3H)
    qkv3 = qkv.reshape(BT, SEQ_PAD, 3 * HIDDEN)            # layout-preserving split

    # additive key-padding mask (pad key columns -> -inf before softmax)
    key_valid = jax.lax.broadcasted_iota(jnp.int32, (BT, SEQ_PAD, SEQ_PAD), 2) < SEQ
    scale = 1.0 / math.sqrt(HEAD_DIM)

    ctx_heads = []
    for hd in range(NUM_HEADS):                            # heads sliced on lane axis
        lo = hd * HEAD_DIM
        q = (qkv3[:, :, lo:lo + HEAD_DIM] * scale).astype(bf16)
        k = qkv3[:, :, HIDDEN + lo:HIDDEN + lo + HEAD_DIM].astype(bf16)
        v = qkv3[:, :, 2 * HIDDEN + lo:2 * HIDDEN + lo + HEAD_DIM].astype(bf16)
        s = jnp.einsum('bqd,bkd->bqk', q, k, preferred_element_type=f32)
        s = jnp.where(key_valid, s, _NEG_INF)
        m = jnp.max(s, axis=-1, keepdims=True)
        p = jnp.exp(s - m)
        p = p / jnp.sum(p, axis=-1, keepdims=True)          # exact softmax division
        ctx_heads.append(jnp.einsum('bqk,bkd->bqd', p.astype(bf16), v,
                                    preferred_element_type=f32))
    # fused out-projection: one K=HIDDEN matmul on the concatenated contexts
    ctx = jnp.concatenate(ctx_heads, axis=-1).reshape(M_SLAB, HIDDEN)
    attn = jnp.dot(ctx.astype(bf16), wo_ref[0],
                   preferred_element_type=f32) + bo_ref[0]
    tok = tok + attn * ls1_ref[0]                           # layer_scale1 + residual

    # ----------------------------- MLP sub-block ---------------------------------
    h = _ln(tok, ln2g_ref[0], ln2b_ref[0])
    h = jnp.dot(h.astype(bf16), w1_ref[0], preferred_element_type=f32) + b1_ref[0]
    h = _gelu_exact(h)
    h = jnp.dot(h.astype(bf16), w2_ref[0], preferred_element_type=f32) + b2_ref[0]
    tok = tok + h * ls2_ref[0]                              # layer_scale2 + residual
    tok_ref[...] = tok

    # ---- final LN -> cls rows -> fc, only at the last layer step ----------------
    @pl.when(layer == NUM_LAYERS - 1)
    def _():
        t = _ln(tok, lnfg_ref[...], lnfb_ref[...])          # (M_SLAB, HIDDEN)
        # one-hot selection matmul extracts the BT cls rows (rows b*SEQ_PAD)
        rows = jax.lax.broadcasted_iota(jnp.int32, (BT, M_SLAB), 1)
        tgt = jax.lax.broadcasted_iota(jnp.int32, (BT, M_SLAB), 0) * SEQ_PAD
        sel = (rows == tgt).astype(f32)
        cls = jnp.dot(sel, t, preferred_element_type=f32)   # (BT, HIDDEN)
        out_ref[0] = jnp.dot(cls.astype(jnp.bfloat16), fcw_ref[...],
                             preferred_element_type=f32) + fcb_ref[...]


# ------------------------------- model glue ------------------------------------
def dinov2_vision_encoder(x, p):
    """Equivalent of DINOv2VisionEncoder.forward: fc(dino_vit(x).last_hidden_state[:,0,:])."""
    B = x.shape[0]
    HP = IMG // PATCH
    NB = pl.cdiv(B, BT)
    B_pad = NB * BT

    # im2col for Conv2d(kernel == stride == PATCH): (B,C,H,W) -> (B, N_PATCH, C*P*P)
    cols = x.reshape(B, IN_CH, HP, PATCH, HP, PATCH)
    cols = cols.transpose(0, 2, 4, 1, 3, 5).reshape(B, N_PATCH, CPP).astype(jnp.float32)
    # pad batch to a multiple of BT and tokens to SEQ_PAD; flatten (BT, SEQ_PAD) -> M_SLAB
    cols = jnp.zeros((B_pad, N_PATCH, CPP), jnp.float32).at[:B].set(cols)
    cols_full = jnp.zeros((NB, BT, SEQ_PAD, CPP), jnp.float32)
    cols_full = cols_full.at[:, :, 1:1 + N_PATCH, :].set(cols.reshape(NB, BT, N_PATCH, CPP))
    cols_slab = cols_full.reshape(NB, M_SLAB, CPP)

    biaspos = jnp.tile(p['bias_pos'], (BT, 1))              # (M_SLAB, HIDDEN)

    layer_ws = [p['ln1_g'], p['ln1_b'], p['wqkv'], p['bqkv'], p['wo'], p['bo'], p['ls1'],
                p['ln2_g'], p['ln2_b'], p['w1'], p['b1'], p['w2'], p['b2'], p['ls2']]
    final_ws = [p['lnf_g'], p['lnf_b'], p['fc_w'], p['fc_b']]

    def full_spec(a):                                       # whole-array, VMEM-resident
        nd = a.ndim
        return pl.BlockSpec(a.shape, lambda b, l, nd=nd: (0,) * nd)

    def layer_spec(a):                                      # streamed layer-by-layer
        nd = a.ndim
        return pl.BlockSpec((1,) + a.shape[1:],
                            lambda b, l, nd=nd: (l,) + (0,) * (nd - 1))

    out = pl.pallas_call(
        _encoder_kernel,
        out_shape=jax.ShapeDtypeStruct((NB, BT, OUT_PAD), jnp.float32),
        grid=(NB, NUM_LAYERS),
        in_specs=[pl.BlockSpec((1, M_SLAB, CPP), lambda b, l: (b, 0, 0)),
                  full_spec(biaspos), full_spec(p['patch_w'])]
                 + [layer_spec(a) for a in layer_ws]
                 + [full_spec(a) for a in final_ws],
        out_specs=pl.BlockSpec((1, BT, OUT_PAD), lambda b, l: (b, 0, 0)),
        scratch_shapes=[pltpu.VMEM((M_SLAB, HIDDEN), jnp.float32)],   # token carry
        compiler_params=pltpu.CompilerParams(
            dimension_semantics=("parallel", "arbitrary")),  # batch-tiles across TCs
    )(cols_slab, biaspos, p['patch_w'], *layer_ws, *final_ws)

    return out.reshape(B_pad, OUT_PAD)[:B, :OUTPUT_DIM]


# --------------------------- deterministic params ------------------------------
def init_params(key):
    ks = iter(jax.random.split(key, 256))

    def normal(shape, std=0.02):
        return std * jax.random.normal(next(ks), shape, dtype=jnp.float32)

    params = {
        'patch_w': normal((HIDDEN, IN_CH, PATCH, PATCH)),   # torch Conv2d layout
        'patch_b': jnp.zeros((HIDDEN,), jnp.float32),
        'cls': normal((1, 1, HIDDEN)),
        'pos': normal((1, SEQ, HIDDEN)),
        'ln_f_g': jnp.ones((HIDDEN,), jnp.float32),
        'ln_f_b': jnp.zeros((HIDDEN,), jnp.float32),
        'fc_w': normal((HIDDEN, OUTPUT_DIM)),
        'fc_b': jnp.zeros((OUTPUT_DIM,), jnp.float32),
        'blocks': [],
    }
    for _ in range(NUM_LAYERS):
        params['blocks'].append({
            'ln1_g': jnp.ones((HIDDEN,), jnp.float32),
            'ln1_b': jnp.zeros((HIDDEN,), jnp.float32),
            'wq': normal((HIDDEN, HIDDEN)), 'bq': jnp.zeros((HIDDEN,), jnp.float32),
            'wk': normal((HIDDEN, HIDDEN)), 'bk': jnp.zeros((HIDDEN,), jnp.float32),
            'wv': normal((HIDDEN, HIDDEN)), 'bv': jnp.zeros((HIDDEN,), jnp.float32),
            'wo': normal((HIDDEN, HIDDEN)), 'bo': jnp.zeros((HIDDEN,), jnp.float32),
            'ls1': jnp.ones((HIDDEN,), jnp.float32),         # layerscale_value = 1.0
            'ln2_g': jnp.ones((HIDDEN,), jnp.float32),
            'ln2_b': jnp.zeros((HIDDEN,), jnp.float32),
            'w1': normal((HIDDEN, MLP_DIM)), 'b1': jnp.zeros((MLP_DIM,), jnp.float32),
            'w2': normal((MLP_DIM, HIDDEN)), 'b2': jnp.zeros((HIDDEN,), jnp.float32),
            'ls2': jnp.ones((HIDDEN,), jnp.float32),
        })
    return params


def pack_params(params):
    """Pack torch-like per-block params into stacked / fused tensors for the kernel."""
    blocks = params['blocks']
    bf16 = jnp.bfloat16

    def stk_vec(key):
        return jnp.stack([b[key][None, :] for b in blocks])          # (L, 1, N) f32

    def stk_mat(key):
        return jnp.stack([b[key] for b in blocks]).astype(bf16)      # (L, K, N) bf16

    pos = params['pos'][0]          # (SEQ, HIDDEN)
    cls = params['cls'][0, 0]       # (HIDDEN,)
    bias_pos = jnp.zeros((SEQ_PAD, HIDDEN), jnp.float32)
    bias_pos = bias_pos.at[0].set(cls + pos[0])
    bias_pos = bias_pos.at[1:SEQ].set(pos[1:] + params['patch_b'][None, :])

    # lane-dense (128-wide) fc weights; extra lanes are zero and sliced off outside
    fc_w = jnp.zeros((HIDDEN, OUT_PAD), jnp.float32).at[:, :OUTPUT_DIM].set(params['fc_w'])
    fc_b = jnp.zeros((OUT_PAD,), jnp.float32).at[:OUTPUT_DIM].set(params['fc_b'])

    return dict(
        # torch conv weight (D, C, P, P) flattened over (C, kh, kw) -> (C*P*P, D)
        patch_w=params['patch_w'].reshape(HIDDEN, CPP).T.astype(bf16),
        bias_pos=bias_pos,
        ln1_g=stk_vec('ln1_g'), ln1_b=stk_vec('ln1_b'),
        wqkv=jnp.stack([jnp.concatenate([b['wq'], b['wk'], b['wv']], axis=1)
                        for b in blocks]).astype(bf16),               # (L, H, 3H)
        bqkv=jnp.stack([jnp.concatenate([b['bq'], b['bk'], b['bv']])[None, :]
                        for b in blocks]),                            # (L, 1, 3H) f32
        wo=stk_mat('wo'), bo=stk_vec('bo'), ls1=stk_vec('ls1'),
        ln2_g=stk_vec('ln2_g'), ln2_b=stk_vec('ln2_b'),
        w1=stk_mat('w1'), b1=stk_vec('b1'),
        w2=stk_mat('w2'), b2=stk_vec('b2'), ls2=stk_vec('ls2'),
        lnf_g=params['ln_f_g'][None, :], lnf_b=params['ln_f_b'][None, :],
        fc_w=fc_w.astype(bf16), fc_b=fc_b[None, :],
    )


if __name__ == "__main__":
    root = jax.random.PRNGKey(0)
    k_x, k_p = jax.random.split(root)
    x = jax.random.normal(k_x, (2, IN_CH, IMG, IMG), dtype=jnp.float32)  # NCHW
    params = init_params(k_p)
    packed = pack_params(params)

    fwd = jax.jit(dinov2_vision_encoder)
    out = fwd(x, packed)
    out = jax.block_until_ready(out)
    assert out.shape == (2, OUTPUT_DIM) and out.dtype == jnp.float32
    assert bool(jnp.all(jnp.isfinite(out)))
    print("KERNEL_OK")
</pallas_src>

<mosaic_0001>
module attributes {stable_mosaic.version = 11 : i64} {
  func.func @_encoder_kernel(%arg0: i32, %arg1: i32, %arg2: memref<1x128x48xf32, #tpu.memory_space<vmem>>, %arg3: memref<128x64xf32, #tpu.memory_space<vmem>>, %arg4: memref<48x64xbf16, #tpu.memory_space<vmem>>, %arg5: memref<1x1x64xf32, #tpu.memory_space<vmem>>, %arg6: memref<1x1x64xf32, #tpu.memory_space<vmem>>, %arg7: memref<1x64x192xbf16, #tpu.memory_space<vmem>>, %arg8: memref<1x1x192xf32, #tpu.memory_space<vmem>>, %arg9: memref<1x64x64xbf16, #tpu.memory_space<vmem>>, %arg10: memref<1x1x64xf32, #tpu.memory_space<vmem>>, %arg11: memref<1x1x64xf32, #tpu.memory_space<vmem>>, %arg12: memref<1x1x64xf32, #tpu.memory_space<vmem>>, %arg13: memref<1x1x64xf32, #tpu.memory_space<vmem>>, %arg14: memref<1x64x256xbf16, #tpu.memory_space<vmem>>, %arg15: memref<1x1x256xf32, #tpu.memory_space<vmem>>, %arg16: memref<1x256x64xbf16, #tpu.memory_space<vmem>>, %arg17: memref<1x1x64xf32, #tpu.memory_space<vmem>>, %arg18: memref<1x1x64xf32, #tpu.memory_space<vmem>>, %arg19: memref<1x64xf32, #tpu.memory_space<vmem>>, %arg20: memref<1x64xf32, #tpu.memory_space<vmem>>, %arg21: memref<64x128xbf16, #tpu.memory_space<vmem>>, %arg22: memref<1x128xf32, #tpu.memory_space<vmem>>, %arg23: memref<1x4x128xf32, #tpu.memory_space<vmem>>, %arg24: memref<128x64xf32, #tpu.memory_space<vmem>>) attributes {dimension_semantics = [#tpu.dimension_semantics<parallel>, #tpu.dimension_semantics<arbitrary>], iteration_bounds = array<i64: 1, 2>, scalar_prefetch = 0 : i64, scratch_operands = 1 : i64, tpu.core_type = #tpu.core_type<tc>, window_params = [{transform_indices = @transform_0, window_bounds = array<i64: 1, 128, 48>}, {pipeline_mode = #tpu.pipeline_mode<synchronous>, transform_indices = @transform_1, window_bounds = array<i64: 128, 64>}, {pipeline_mode = #tpu.pipeline_mode<synchronous>, transform_indices = @transform_2, window_bounds = array<i64: 48, 64>}, {transform_indices = @transform_3, window_bounds = array<i64: 1, 1, 64>}, {transform_indices = @transform_4, window_bounds = array<i64: 1, 1, 64>}, {transform_indices = @transform_5, window_bounds = array<i64: 1, 64, 192>}, {transform_indices = @transform_6, window_bounds = array<i64: 1, 1, 192>}, {transform_indices = @transform_7, window_bounds = array<i64: 1, 64, 64>}, {transform_indices = @transform_8, window_bounds = array<i64: 1, 1, 64>}, {transform_indices = @transform_9, window_bounds = array<i64: 1, 1, 64>}, {transform_indices = @transform_10, window_bounds = array<i64: 1, 1, 64>}, {transform_indices = @transform_11, window_bounds = array<i64: 1, 1, 64>}, {transform_indices = @transform_12, window_bounds = array<i64: 1, 64, 256>}, {transform_indices = @transform_13, window_bounds = array<i64: 1, 1, 256>}, {transform_indices = @transform_14, window_bounds = array<i64: 1, 256, 64>}, {transform_indices = @transform_15, window_bounds = array<i64: 1, 1, 64>}, {transform_indices = @transform_16, window_bounds = array<i64: 1, 1, 64>}, {pipeline_mode = #tpu.pipeline_mode<synchronous>, transform_indices = @transform_17, window_bounds = array<i64: 1, 64>}, {pipeline_mode = #tpu.pipeline_mode<synchronous>, transform_indices = @transform_18, window_bounds = array<i64: 1, 64>}, {pipeline_mode = #tpu.pipeline_mode<synchronous>, transform_indices = @transform_19, window_bounds = array<i64: 64, 128>}, {pipeline_mode = #tpu.pipeline_mode<synchronous>, transform_indices = @transform_20, window_bounds = array<i64: 1, 128>}, {transform_indices = @transform_21, window_bounds = array<i64: 1, 4, 128>}]} {
    %c0_i32 = arith.constant 0 : i32
    %0 = arith.cmpi eq, %arg1, %c0_i32 : i32
    %1 = arith.extui %0 : i1 to i32
    %c0_i32_0 = arith.constant 0 : i32
    %2 = arith.cmpi ne, %1, %c0_i32_0 : i32
    scf.if %2 {
      %c0_99 = arith.constant 0 : index
      %c0_100 = arith.constant 0 : index
      %c0_101 = arith.constant 0 : index
      %236 = vector.load %arg2[%c0_99, %c0_100, %c0_101] : memref<1x128x48xf32, #tpu.memory_space<vmem>>, vector<1x128x48xf32>
      %237 = vector.shape_cast %236 : vector<1x128x48xf32> to vector<128x48xf32>
      %238 = arith.truncf %237 : vector<128x48xf32> to vector<128x48xbf16>
      %c0_102 = arith.constant 0 : index
      %c0_103 = arith.constant 0 : index
      %239 = vector.load %arg4[%c0_102, %c0_103] : memref<48x64xbf16, #tpu.memory_space<vmem>>, vector<48x64xbf16>
      %cst_104 = arith.constant dense<0.000000e+00> : vector<128x64xf32>
      %240 = tpu.matmul %238, %239, %cst_104 {dimension_numbers = #tpu.dot_dimension_numbers<[1], [0], [0], [1], [0, 0, 1, 1], [], []>} : vector<128x48xbf16>, vector<48x64xbf16>, vector<128x64xf32> -> vector<128x64xf32>
      %c0_105 = arith.constant 0 : index
      %c0_106 = arith.constant 0 : index
      %241 = vector.load %arg3[%c0_105, %c0_106] : memref<128x64xf32, #tpu.memory_space<vmem>>, vector<128x64xf32>
      %242 = arith.addf %240, %241 : vector<128x64xf32>
      %c0_107 = arith.constant 0 : index
      %c0_108 = arith.constant 0 : index
      %243 = vector.load %arg24[%c0_107, %c0_108] : memref<128x64xf32, #tpu.memory_space<vmem>>, vector<128x64xf32>
      tpu.vector_store %arg24[%c0_107, %c0_108], %242 {strides = array<i32>} : memref<128x64xf32, #tpu.memory_space<vmem>>, vector<128x64xf32>,
    } else {
    }
    %c0 = arith.constant 0 : index
    %c0_1 = arith.constant 0 : index
    %3 = vector.load %arg24[%c0, %c0_1] : memref<128x64xf32, #tpu.memory_space<vmem>>, vector<128x64xf32>
    %c0_2 = arith.constant 0 : index
    %c0_3 = arith.constant 0 : index
    %c0_4 = arith.constant 0 : index
    %4 = vector.load %arg5[%c0_2, %c0_3, %c0_4] : memref<1x1x64xf32, #tpu.memory_space<vmem>>, vector<1x1x64xf32>
    %5 = vector.shape_cast %4 : vector<1x1x64xf32> to vector<1x64xf32>
    %c0_5 = arith.constant 0 : index
    %c0_6 = arith.constant 0 : index
    %c0_7 = arith.constant 0 : index
    %6 = vector.load %arg6[%c0_5, %c0_6, %c0_7] : memref<1x1x64xf32, #tpu.memory_space<vmem>>, vector<1x1x64xf32>
    %7 = vector.shape_cast %6 : vector<1x1x64xf32> to vector<1x64xf32>
    %cst = arith.constant dense<0.000000e+00> : vector<128xf32>
    %8 = vector.multi_reduction <add>, %3, %cst [1] : vector<128x64xf32> to vector<128xf32>
    %9 = vector.shape_cast %8 : vector<128xf32> to vector<128x1xf32>
    %cst_8 = arith.constant 6.400000e+01 : f32
    %10 = vector.broadcast %cst_8 : f32 to vector<128x1xf32>
    %11 = arith.divf %9, %10 : vector<128x1xf32>
    %12 = vector.broadcast %11 : vector<128x1xf32> to vector<128x64xf32>
    %13 = arith.subf %3, %12 : vector<128x64xf32>
    %14 = arith.mulf %13, %13 : vector<128x64xf32>
    %cst_9 = arith.constant dense<0.000000e+00> : vector<128xf32>
    %15 = vector.multi_reduction <add>, %14, %cst_9 [1] : vector<128x64xf32> to vector<128xf32>
    %16 = vector.shape_cast %15 : vector<128xf32> to vector<128x1xf32>
    %cst_10 = arith.constant 6.400000e+01 : f32
    %17 = vector.broadcast %cst_10 : f32 to vector<128x1xf32>
    %18 = arith.divf %16, %17 : vector<128x1xf32>
    %19 = vector.broadcast %11 : vector<128x1xf32> to vector<128x64xf32>
    %20 = arith.subf %3, %19 : vector<128x64xf32>
    %cst_11 = arith.constant 9.99999997E-7 : f32
    %21 = vector.broadcast %cst_11 : f32 to vector<128x1xf32>
    %22 = arith.addf %18, %21 : vector<128x1xf32>
    %23 = math.rsqrt %22 : vector<128x1xf32>
    %24 = vector.broadcast %23 : vector<128x1xf32> to vector<128x64xf32>
    %25 = arith.mulf %20, %24 : vector<128x64xf32>
    %26 = vector.broadcast %5 : vector<1x64xf32> to vector<128x64xf32>
    %27 = arith.mulf %25, %26 : vector<128x64xf32>
    %28 = vector.broadcast %7 : vector<1x64xf32> to vector<128x64xf32>
    %29 = arith.addf %27, %28 : vector<128x64xf32>
    %30 = arith.truncf %29 : vector<128x64xf32> to vector<128x64xbf16>
    %c0_12 = arith.constant 0 : index
    %c0_13 = arith.constant 0 : index
    %c0_14 = arith.constant 0 : index
    %31 = vector.load %arg7[%c0_12, %c0_13, %c0_14] : memref<1x64x192xbf16, #tpu.memory_space<vmem>>, vector<1x64x192xbf16>
    %32 = vector.shape_cast %31 : vector<1x64x192xbf16> to vector<64x192xbf16>
    %cst_15 = arith.constant dense<0.000000e+00> : vector<128x192xf32>
    %33 = tpu.matmul %30, %32, %cst_15 {dimension_numbers = #tpu.dot_dimension_numbers<[1], [0], [0], [1], [0, 0, 1, 1], [], []>} : vector<128x64xbf16>, vector<64x192xbf16>, vector<128x192xf32> -> vector<128x192xf32>
    %c0_16 = arith.constant 0 : index
    %c0_17 = arith.constant 0 : index
    %c0_18 = arith.constant 0 : index
    %34 = vector.load %arg8[%c0_16, %c0_17, %c0_18] : memref<1x1x192xf32, #tpu.memory_space<vmem>>, vector<1x1x192xf32>
    %35 = vector.shape_cast %34 : vector<1x1x192xf32> to vector<1x192xf32>
    %36 = vector.broadcast %35 : vector<1x192xf32> to vector<128x192xf32>
    %37 = arith.addf %33, %36 : vector<128x192xf32>
    %38 = vector.shape_cast %37 : vector<128x192xf32> to vector<4x32x192xf32>
    %39 = tpu.iota {dimensions = array<i32: 2>} : vector<4x32x32xi32>
    %c17_i32 = arith.constant 17 : i32
    %40 = vector.broadcast %c17_i32 : i32 to vector<4x32x32xi32>
    %41 = arith.cmpi slt, %39, %40 : vector<4x32x32xi32>
    %42 = vector.extract_strided_slice %38 {offsets = [0, 0, 0], sizes = [4, 32, 16], strides = [1, 1, 1]} : vector<4x32x192xf32> to vector<4x32x16xf32>
    %cst_19 = arith.constant 2.500000e-01 : f32
    %43 = vector.broadcast %cst_19 : f32 to vector<4x32x16xf32>
    %44 = arith.mulf %42, %43 : vector<4x32x16xf32>
    %45 = arith.truncf %44 : vector<4x32x16xf32> to vector<4x32x16xbf16>
    %46 = vector.extract_strided_slice %38 {offsets = [0, 0, 64], sizes = [4, 32, 16], strides = [1, 1, 1]} : vector<4x32x192xf32> to vector<4x32x16xf32>
    %47 = arith.truncf %46 : vector<4x32x16xf32> to vector<4x32x16xbf16>
    %48 = vector.extract_strided_slice %38 {offsets = [0, 0, 128], sizes = [4, 32, 16], strides = [1, 1, 1]} : vector<4x32x192xf32> to vector<4x32x16xf32>
    %49 = arith.truncf %48 : vector<4x32x16xf32> to vector<4x32x16xbf16>
    "tpu.trace_start"() <{level = 10 : i32, message = "bqd,bkd->bqk"}> : () -> ()
    %cst_20 = arith.constant dense<0.000000e+00> : vector<4x32x32xf32>
    %50 = tpu.matmul %45, %47, %cst_20 {dimension_numbers = #tpu.dot_dimension_numbers<[2], [2], [1], [1], [0, 0, 0, 1, 1, 1], [0], [0]>} : vector<4x32x16xbf16>, vector<4x32x16xbf16>, vector<4x32x32xf32> -> vector<4x32x32xf32>
    %cst_21 = arith.constant -1.000000e+30 : f32
    "tpu.trace_stop"() : () -> ()
    %51 = vector.broadcast %cst_21 : f32 to vector<4x32x32xf32>
    %52 = arith.select %41, %50, %51 : vector<4x32x32xi1>, vector<4x32x32xf32>
    %cst_22 = arith.constant dense<0xFF800000> : vector<4x32xf32>
    %53 = vector.multi_reduction <maximumf>, %52, %cst_22 [2] : vector<4x32x32xf32> to vector<4x32xf32>
    %54 = vector.shape_cast %53 : vector<4x32xf32> to vector<4x32x1xf32>
    %55 = vector.broadcast %54 : vector<4x32x1xf32> to vector<4x32x32xf32>
    %56 = arith.subf %52, %55 : vector<4x32x32xf32>
    %57 = math.exp %56 : vector<4x32x32xf32>
    %cst_23 = arith.constant dense<0.000000e+00> : vector<4x32xf32>
    %58 = vector.multi_reduction <add>, %57, %cst_23 [2] : vector<4x32x32xf32> to vector<4x32xf32>
    %59 = vector.shape_cast %58 : vector<4x32xf32> to vector<4x32x1xf32>
    %60 = vector.broadcast %59 : vector<4x32x1xf32> to vector<4x32x32xf32>
    %61 = arith.divf %57, %60 : vector<4x32x32xf32>
    %62 = arith.truncf %61 : vector<4x32x32xf32> to vector<4x32x32xbf16>
    "tpu.trace_start"() <{level = 10 : i32, message = "bqk,bkd->bqd"}> : () -> ()
    %cst_24 = arith.constant dense<0.000000e+00> : vector<4x32x16xf32>
    %63 = tpu.matmul %62, %49, %cst_24 {dimension_numbers = #tpu.dot_dimension_numbers<[2], [1], [1], [2], [0, 0, 0, 1, 1, 2], [0], [0]>} : vector<4x32x32xbf16>, vector<4x32x16xbf16>, vector<4x32x16xf32> -> vector<4x32x16xf32>
    "tpu.trace_stop"() : () -> ()
    %64 = vector.extract_strided_slice %38 {offsets = [0, 0, 16], sizes = [4, 32, 16], strides = [1, 1, 1]} : vector<4x32x192xf32> to vector<4x32x16xf32>
    %cst_25 = arith.constant 2.500000e-01 : f32
    %65 = vector.broadcast %cst_25 : f32 to vector<4x32x16xf32>
    %66 = arith.mulf %64, %65 : vector<4x32x16xf32>
    %67 = arith.truncf %66 : vector<4x32x16xf32> to vector<4x32x16xbf16>
    %68 = vector.extract_strided_slice %38 {offsets = [0, 0, 80], sizes = [4, 32, 16], strides = [1, 1, 1]} : vector<4x32x192xf32> to vector<4x32x16xf32>
    %69 = arith.truncf %68 : vector<4x32x16xf32> to vector<4x32x16xbf16>
    %70 = vector.extract_strided_slice %38 {offsets = [0, 0, 144], sizes = [4, 32, 16], strides = [1, 1, 1]} : vector<4x32x192xf32> to vector<4x32x16xf32>
    %71 = arith.truncf %70 : vector<4x32x16xf32> to vector<4x32x16xbf16>
    "tpu.trace_start"() <{level = 10 : i32, message = "bqd,bkd->bqk"}> : () -> ()
    %cst_26 = arith.constant dense<0.000000e+00> : vector<4x32x32xf32>
    %72 = tpu.matmul %67, %69, %cst_26 {dimension_numbers = #tpu.dot_dimension_numbers<[2], [2], [1], [1], [0, 0, 0, 1, 1, 1], [0], [0]>} : vector<4x32x16xbf16>, vector<4x32x16xbf16>, vector<4x32x32xf32> -> vector<4x32x32xf32>
    %cst_27 = arith.constant -1.000000e+30 : f32
    "tpu.trace_stop"() : () -> ()
    %73 = vector.broadcast %cst_27 : f32 to vector<4x32x32xf32>
    %74 = arith.select %41, %72, %73 : vector<4x32x32xi1>, vector<4x32x32xf32>
    %cst_28 = arith.constant dense<0xFF800000> : vector<4x32xf32>
    %75 = vector.multi_reduction <maximumf>, %74, %cst_28 [2] : vector<4x32x32xf32> to vector<4x32xf32>
    %76 = vector.shape_cast %75 : vector<4x32xf32> to vector<4x32x1xf32>
    %77 = vector.broadcast %76 : vector<4x32x1xf32> to vector<4x32x32xf32>
    %78 = arith.subf %74, %77 : vector<4x32x32xf32>
    %79 = math.exp %78 : vector<4x32x32xf32>
    %cst_29 = arith.constant dense<0.000000e+00> : vector<4x32xf32>
    %80 = vector.multi_reduction <add>, %79, %cst_29 [2] : vector<4x32x32xf32> to vector<4x32xf32>
    %81 = vector.shape_cast %80 : vector<4x32xf32> to vector<4x32x1xf32>
    %82 = vector.broadcast %81 : vector<4x32x1xf32> to vector<4x32x32xf32>
    %83 = arith.divf %79, %82 : vector<4x32x32xf32>
    %84 = arith.truncf %83 : vector<4x32x32xf32> to vector<4x32x32xbf16>
    "tpu.trace_start"() <{level = 10 : i32, message = "bqk,bkd->bqd"}> : () -> ()
    %cst_30 = arith.constant dense<0.000000e+00> : vector<4x32x16xf32>
    %85 = tpu.matmul %84, %71, %cst_30 {dimension_numbers = #tpu.dot_dimension_numbers<[2], [1], [1], [2], [0, 0, 0, 1, 1, 2], [0], [0]>} : vector<4x32x32xbf16>, vector<4x32x16xbf16>, vector<4x32x16xf32> -> vector<4x32x16xf32>
    "tpu.trace_stop"() : () -> ()
    %86 = vector.extract_strided_slice %38 {offsets = [0, 0, 32], sizes = [4, 32, 16], strides = [1, 1, 1]} : vector<4x32x192xf32> to vector<4x32x16xf32>
    %cst_31 = arith.constant 2.500000e-01 : f32
    %87 = vector.broadcast %cst_31 : f32 to vector<4x32x16xf32>
    %88 = arith.mulf %86, %87 : vector<4x32x16xf32>
    %89 = arith.truncf %88 : vector<4x32x16xf32> to vector<4x32x16xbf16>
    %90 = vector.extract_strided_slice %38 {offsets = [0, 0, 96], sizes = [4, 32, 16], strides = [1, 1, 1]} : vector<4x32x192xf32> to vector<4x32x16xf32>
    %91 = arith.truncf %90 : vector<4x32x16xf32> to vector<4x32x16xbf16>
    %92 = vector.extract_strided_slice %38 {offsets = [0, 0, 160], sizes = [4, 32, 16], strides = [1, 1, 1]} : vector<4x32x192xf32> to vector<4x32x16xf32>
    %93 = arith.truncf %92 : vector<4x32x16xf32> to vector<4x32x16xbf16>
    "tpu.trace_start"() <{level = 10 : i32, message = "bqd,bkd->bqk"}> : () -> ()
    %cst_32 = arith.constant dense<0.000000e+00> : vector<4x32x32xf32>
    %94 = tpu.matmul %89, %91, %cst_32 {dimension_numbers = #tpu.dot_dimension_numbers<[2], [2], [1], [1], [0, 0, 0, 1, 1, 1], [0], [0]>} : vector<4x32x16xbf16>, vector<4x32x16xbf16>, vector<4x32x32xf32> -> vector<4x32x32xf32>
    %cst_33 = arith.constant -1.000000e+30 : f32
    "tpu.trace_stop"() : () -> ()
    %95 = vector.broadcast %cst_33 : f32 to vector<4x32x32xf32>
    %96 = arith.select %41, %94, %95 : vector<4x32x32xi1>, vector<4x32x32xf32>
    %cst_34 = arith.constant dense<0xFF800000> : vector<4x32xf32>
    %97 = vector.multi_reduction <maximumf>, %96, %cst_34 [2] : vector<4x32x32xf32> to vector<4x32xf32>
    %98 = vector.shape_cast %97 : vector<4x32xf32> to vector<4x32x1xf32>
    %99 = vector.broadcast %98 : vector<4x32x1xf32> to vector<4x32x32xf32>
    %100 = arith.subf %96, %99 : vector<4x32x32xf32>
    %101 = math.exp %100 : vector<4x32x32xf32>
    %cst_35 = arith.constant dense<0.000000e+00> : vector<4x32xf32>
    %102 = vector.multi_reduction <add>, %101, %cst_35 [2] : vector<4x32x32xf32> to vector<4x32xf32>
    %103 = vector.shape_cast %102 : vector<4x32xf32> to vector<4x32x1xf32>
    %104 = vector.broadcast %103 : vector<4x32x1xf32> to vector<4x32x32xf32>
    %105 = arith.divf %101, %104 : vector<4x32x32xf32>
    %106 = arith.truncf %105 : vector<4x32x32xf32> to vector<4x32x32xbf16>
    "tpu.trace_start"() <{level = 10 : i32, message = "bqk,bkd->bqd"}> : () -> ()
    %cst_36 = arith.constant dense<0.000000e+00> : vector<4x32x16xf32>
    %107 = tpu.matmul %106, %93, %cst_36 {dimension_numbers = #tpu.dot_dimension_numbers<[2], [1], [1], [2], [0, 0, 0, 1, 1, 2], [0], [0]>} : vector<4x32x32xbf16>, vector<4x32x16xbf16>, vector<4x32x16xf32> -> vector<4x32x16xf32>
    "tpu.trace_stop"() : () -> ()
    %108 = vector.extract_strided_slice %38 {offsets = [0, 0, 48], sizes = [4, 32, 16], strides = [1, 1, 1]} : vector<4x32x192xf32> to vector<4x32x16xf32>
    %cst_37 = arith.constant 2.500000e-01 : f32
    %109 = vector.broadcast %cst_37 : f32 to vector<4x32x16xf32>
    %110 = arith.mulf %108, %109 : vector<4x32x16xf32>
    %111 = arith.truncf %110 : vector<4x32x16xf32> to vector<4x32x16xbf16>
    %112 = vector.extract_strided_slice %38 {offsets = [0, 0, 112], sizes = [4, 32, 16], strides = [1, 1, 1]} : vector<4x32x192xf32> to vector<4x32x16xf32>
    %113 = arith.truncf %112 : vector<4x32x16xf32> to vector<4x32x16xbf16>
    %114 = vector.extract_strided_slice %38 {offsets = [0, 0, 176], sizes = [4, 32, 16], strides = [1, 1, 1]} : vector<4x32x192xf32> to vector<4x32x16xf32>
    %115 = arith.truncf %114 : vector<4x32x16xf32> to vector<4x32x16xbf16>
    "tpu.trace_start"() <{level = 10 : i32, message = "bqd,bkd->bqk"}> : () -> ()
    %cst_38 = arith.constant dense<0.000000e+00> : vector<4x32x32xf32>
    %116 = tpu.matmul %111, %113, %cst_38 {dimension_numbers = #tpu.dot_dimension_numbers<[2], [2], [1], [1], [0, 0, 0, 1, 1, 1], [0], [0]>} : vector<4x32x16xbf16>, vector<4x32x16xbf16>, vector<4x32x32xf32> -> vector<4x32x32xf32>
    %cst_39 = arith.constant -1.000000e+30 : f32
    "tpu.trace_stop"() : () -> ()
    %117 = vector.broadcast %cst_39 : f32 to vector<4x32x32xf32>
    %118 = arith.select %41, %116, %117 : vector<4x32x32xi1>, vector<4x32x32xf32>
    %cst_40 = arith.constant dense<0xFF800000> : vector<4x32xf32>
    %119 = vector.multi_reduction <maximumf>, %118, %cst_40 [2] : vector<4x32x32xf32> to vector<4x32xf32>
    %120 = vector.shape_cast %119 : vector<4x32xf32> to vector<4x32x1xf32>
    %121 = vector.broadcast %120 : vector<4x32x1xf32> to vector<4x32x32xf32>
    %122 = arith.subf %118, %121 : vector<4x32x32xf32>
    %123 = math.exp %122 : vector<4x32x32xf32>
    %cst_41 = arith.constant dense<0.000000e+00> : vector<4x32xf32>
    %124 = vector.multi_reduction <add>, %123, %cst_41 [2] : vector<4x32x32xf32> to vector<4x32xf32>
    %125 = vector.shape_cast %124 : vector<4x32xf32> to vector<4x32x1xf32>
    %126 = vector.broadcast %125 : vector<4x32x1xf32> to vector<4x32x32xf32>
    %127 = arith.divf %123, %126 : vector<4x32x32xf32>
    %128 = arith.truncf %127 : vector<4x32x32xf32> to vector<4x32x32xbf16>
    "tpu.trace_start"() <{level = 10 : i32, message = "bqk,bkd->bqd"}> : () -> ()
    %cst_42 = arith.constant dense<0.000000e+00> : vector<4x32x16xf32>
    %129 = tpu.matmul %128, %115, %cst_42 {dimension_numbers = #tpu.dot_dimension_numbers<[2], [1], [1], [2], [0, 0, 0, 1, 1, 2], [0], [0]>} : vector<4x32x32xbf16>, vector<4x32x16xbf16>, vector<4x32x16xf32> -> vector<4x32x16xf32>
    "tpu.trace_stop"() : () -> ()
    %130 = tpu.concatenate %63, %85, %107, %129 in 2 : vector<4x32x16xf32>, vector<4x32x16xf32>, vector<4x32x16xf32>, vector<4x32x16xf32> -> vector<4x32x64xf32>
    %131 = vector.shape_cast %130 : vector<4x32x64xf32> to vector<128x64xf32>
    %132 = arith.truncf %131 : vector<128x64xf32> to vector<128x64xbf16>
    %c0_43 = arith.constant 0 : index
    %c0_44 = arith.constant 0 : index
    %c0_45 = arith.constant 0 : index
    %133 = vector.load %arg9[%c0_43, %c0_44, %c0_45] : memref<1x64x64xbf16, #tpu.memory_space<vmem>>, vector<1x64x64xbf16>
    %134 = vector.shape_cast %133 : vector<1x64x64xbf16> to vector<64x64xbf16>
    %cst_46 = arith.constant dense<0.000000e+00> : vector<128x64xf32>
    %135 = tpu.matmul %132, %134, %cst_46 {dimension_numbers = #tpu.dot_dimension_numbers<[1], [0], [0], [1], [0, 0, 1, 1], [], []>} : vector<128x64xbf16>, vector<64x64xbf16>, vector<128x64xf32> -> vector<128x64xf32>
    %c0_47 = arith.constant 0 : index
    %c0_48 = arith.constant 0 : index
    %c0_49 = arith.constant 0 : index
    %136 = vector.load %arg10[%c0_47, %c0_48, %c0_49] : memref<1x1x64xf32, #tpu.memory_space<vmem>>, vector<1x1x64xf32>
    %137 = vector.shape_cast %136 : vector<1x1x64xf32> to vector<1x64xf32>
    %138 = vector.broadcast %137 : vector<1x64xf32> to vector<128x64xf32>
    %139 = arith.addf %135, %138 : vector<128x64xf32>
    %c0_50 = arith.constant 0 : index
    %c0_51 = arith.constant 0 : index
    %c0_52 = arith.constant 0 : index
    %140 = vector.load %arg11[%c0_50, %c0_51, %c0_52] : memref<1x1x64xf32, #tpu.memory_space<vmem>>, vector<1x1x64xf32>
    %141 = vector.shape_cast %140 : vector<1x1x64xf32> to vector<1x64xf32>
    %142 = vector.broadcast %141 : vector<1x64xf32> to vector<128x64xf32>
    %143 = arith.mulf %139, %142 : vector<128x64xf32>
    %144 = arith.addf %3, %143 : vector<128x64xf32>
    %c0_53 = arith.constant 0 : index
    %c0_54 = arith.constant 0 : index
    %c0_55 = arith.constant 0 : index
    %145 = vector.load %arg12[%c0_53, %c0_54, %c0_55] : memref<1x1x64xf32, #tpu.memory_space<vmem>>, vector<1x1x64xf32>
    %146 = vector.shape_cast %145 : vector<1x1x64xf32> to vector<1x64xf32>
    %c0_56 = arith.constant 0 : index
    %c0_57 = arith.constant 0 : index
    %c0_58 = arith.constant 0 : index
    %147 = vector.load %arg13[%c0_56, %c0_57, %c0_58] : memref<1x1x64xf32, #tpu.memory_space<vmem>>, vector<1x1x64xf32>
    %148 = vector.shape_cast %147 : vector<1x1x64xf32> to vector<1x64xf32>
    %cst_59 = arith.constant dense<0.000000e+00> : vector<128xf32>
    %149 = vector.multi_reduction <add>, %144, %cst_59 [1] : vector<128x64xf32> to vector<128xf32>
    %150 = vector.shape_cast %149 : vector<128xf32> to vector<128x1xf32>
    %cst_60 = arith.constant 6.400000e+01 : f32
    %151 = vector.broadcast %cst_60 : f32 to vector<128x1xf32>
    %152 = arith.divf %150, %151 : vector<128x1xf32>
    %153 = vector.broadcast %152 : vector<128x1xf32> to vector<128x64xf32>
    %154 = arith.subf %144, %153 : vector<128x64xf32>
    %155 = arith.mulf %154, %154 : vector<128x64xf32>
    %cst_61 = arith.constant dense<0.000000e+00> : vector<128xf32>
    %156 = vector.multi_reduction <add>, %155, %cst_61 [1] : vector<128x64xf32> to vector<128xf32>
    %157 = vector.shape_cast %156 : vector<128xf32> to vector<128x1xf32>
    %cst_62 = arith.constant 6.400000e+01 : f32
    %158 = vector.broadcast %cst_62 : f32 to vector<128x1xf32>
    %159 = arith.divf %157, %158 : vector<128x1xf32>
    %160 = vector.broadcast %152 : vector<128x1xf32> to vector<128x64xf32>
    %161 = arith.subf %144, %160 : vector<128x64xf32>
    %cst_63 = arith.constant 9.99999997E-7 : f32
    %162 = vector.broadcast %cst_63 : f32 to vector<128x1xf32>
    %163 = arith.addf %159, %162 : vector<128x1xf32>
    %164 = math.rsqrt %163 : vector<128x1xf32>
    %165 = vector.broadcast %164 : vector<128x1xf32> to vector<128x64xf32>
    %166 = arith.mulf %161, %165 : vector<128x64xf32>
    %167 = vector.broadcast %146 : vector<1x64xf32> to vector<128x64xf32>
    %168 = arith.mulf %166, %167 : vector<128x64xf32>
    %169 = vector.broadcast %148 : vector<1x64xf32> to vector<128x64xf32>
    %170 = arith.addf %168, %169 : vector<128x64xf32>
    %171 = arith.truncf %170 : vector<128x64xf32> to vector<128x64xbf16>
    %c0_64 = arith.constant 0 : index
    %c0_65 = arith.constant 0 : index
    %c0_66 = arith.constant 0 : index
    %172 = vector.load %arg14[%c0_64, %c0_65, %c0_66] : memref<1x64x256xbf16, #tpu.memory_space<vmem>>, vector<1x64x256xbf16>
    %173 = vector.shape_cast %172 : vector<1x64x256xbf16> to vector<64x256xbf16>
    %cst_67 = arith.constant dense<0.000000e+00> : vector<128x256xf32>
    %174 = tpu.matmul %171, %173, %cst_67 {dimension_numbers = #tpu.dot_dimension_numbers<[1], [0], [0], [1], [0, 0, 1, 1], [], []>} : vector<128x64xbf16>, vector<64x256xbf16>, vector<128x256xf32> -> vector<128x256xf32>
    %c0_68 = arith.constant 0 : index
    %c0_69 = arith.constant 0 : index
    %c0_70 = arith.constant 0 : index
    %175 = vector.load %arg15[%c0_68, %c0_69, %c0_70] : memref<1x1x256xf32, #tpu.memory_space<vmem>>, vector<1x1x256xf32>
    %176 = vector.shape_cast %175 : vector<1x1x256xf32> to vector<1x256xf32>
    %177 = vector.broadcast %176 : vector<1x256xf32> to vector<128x256xf32>
    %178 = arith.addf %174, %177 : vector<128x256xf32>
    %cst_71 = arith.constant 0.707106769 : f32
    %179 = vector.broadcast %cst_71 : f32 to vector<128x256xf32>
    %180 = arith.mulf %178, %179 : vector<128x256xf32>
    %181 = math.absf %180 : vector<128x256xf32>
    %cst_72 = arith.constant 0.327591091 : f32
    %182 = vector.broadcast %cst_72 : f32 to vector<128x256xf32>
    %183 = arith.mulf %182, %181 : vector<128x256xf32>
    %cst_73 = arith.constant 1.000000e+00 : f32
    %184 = vector.broadcast %cst_73 : f32 to vector<128x256xf32>
    %185 = arith.addf %184, %183 : vector<128x256xf32>
    %cst_74 = arith.constant 1.000000e+00 : f32
    %186 = vector.broadcast %cst_74 : f32 to vector<128x256xf32>
    %187 = arith.divf %186, %185 : vector<128x256xf32>
    %cst_75 = arith.constant 1.06140542 : f32
    %188 = vector.broadcast %cst_75 : f32 to vector<128x256xf32>
    %189 = arith.mulf %187, %188 : vector<128x256xf32>
    %cst_76 = arith.constant -1.45315206 : f32
    %190 = vector.broadcast %cst_76 : f32 to vector<128x256xf32>
    %191 = arith.addf %190, %189 : vector<128x256xf32>
    %192 = arith.mulf %187, %191 : vector<128x256xf32>
    %cst_77 = arith.constant 1.42141378 : f32
    %193 = vector.broadcast %cst_77 : f32 to vector<128x256xf32>
    %194 = arith.addf %193, %192 : vector<128x256xf32>
    %195 = arith.mulf %187, %194 : vector<128x256xf32>
    %cst_78 = arith.constant -0.284496725 : f32
    %196 = vector.broadcast %cst_78 : f32 to vector<128x256xf32>
    %197 = arith.addf %196, %195 : vector<128x256xf32>
    %198 = arith.mulf %187, %197 : vector<128x256xf32>
    %cst_79 = arith.constant 0.254829586 : f32
    %199 = vector.broadcast %cst_79 : f32 to vector<128x256xf32>
    %200 = arith.addf %199, %198 : vector<128x256xf32>
    %201 = arith.mulf %187, %200 : vector<128x256xf32>
    %cst_80 = arith.constant 0.000000e+00 : f32
    %202 = vector.broadcast %cst_80 : f32 to vector<128x256xf32>
    %203 = arith.subf %202, %181 : vector<128x256xf32>
    %204 = arith.mulf %203, %181 : vector<128x256xf32>
    %205 = math.exp %204 : vector<128x256xf32>
    %206 = arith.mulf %201, %205 : vector<128x256xf32>
    %cst_81 = arith.constant 1.000000e+00 : f32
    %207 = vector.broadcast %cst_81 : f32 to vector<128x256xf32>
    %208 = arith.subf %207, %206 : vector<128x256xf32>
    %cst_82 = arith.constant 0.000000e+00 : f32
    %209 = vector.broadcast %cst_82 : f32 to vector<128x256xf32>
    %210 = arith.cmpf oge, %180, %209 : vector<128x256xf32>
    %cst_83 = arith.constant 0.000000e+00 : f32
    %211 = vector.broadcast %cst_83 : f32 to vector<128x256xf32>
    %212 = arith.subf %211, %208 : vector<128x256xf32>
    %213 = arith.select %210, %208, %212 : vector<128x256xi1>, vector<128x256xf32>
    %cst_84 = arith.constant 5.000000e-01 : f32
    %214 = vector.broadcast %cst_84 : f32 to vector<128x256xf32>
    %215 = arith.mulf %214, %178 : vector<128x256xf32>
    %cst_85 = arith.constant 1.000000e+00 : f32
    %216 = vector.broadcast %cst_85 : f32 to vector<128x256xf32>
    %217 = arith.addf %216, %213 : vector<128x256xf32>
    %218 = arith.mulf %215, %217 : vector<128x256xf32>
    %219 = arith.truncf %218 : vector<128x256xf32> to vector<128x256xbf16>
    %c0_86 = arith.constant 0 : index
    %c0_87 = arith.constant 0 : index
    %c0_88 = arith.constant 0 : index
    %220 = vector.load %arg16[%c0_86, %c0_87, %c0_88] : memref<1x256x64xbf16, #tpu.memory_space<vmem>>, vector<1x256x64xbf16>
    %221 = vector.shape_cast %220 : vector<1x256x64xbf16> to vector<256x64xbf16>
    %cst_89 = arith.constant dense<0.000000e+00> : vector<128x64xf32>
    %222 = tpu.matmul %219, %221, %cst_89 {dimension_numbers = #tpu.dot_dimension_numbers<[1], [0], [0], [1], [0, 0, 1, 1], [], []>} : vector<128x256xbf16>, vector<256x64xbf16>, vector<128x64xf32> -> vector<128x64xf32>
    %c0_90 = arith.constant 0 : index
    %c0_91 = arith.constant 0 : index
    %c0_92 = arith.constant 0 : index
    %223 = vector.load %arg17[%c0_90, %c0_91, %c0_92] : memref<1x1x64xf32, #tpu.memory_space<vmem>>, vector<1x1x64xf32>
    %224 = vector.shape_cast %223 : vector<1x1x64xf32> to vector<1x64xf32>
    %225 = vector.broadcast %224 : vector<1x64xf32> to vector<128x64xf32>
    %226 = arith.addf %222, %225 : vector<128x64xf32>
    %c0_93 = arith.constant 0 : index
    %c0_94 = arith.constant 0 : index
    %c0_95 = arith.constant 0 : index
    %227 = vector.load %arg18[%c0_93, %c0_94, %c0_95] : memref<1x1x64xf32, #tpu.memory_space<vmem>>, vector<1x1x64xf32>
    %228 = vector.shape_cast %227 : vector<1x1x64xf32> to vector<1x64xf32>
    %229 = vector.broadcast %228 : vector<1x64xf32> to vector<128x64xf32>
    %230 = arith.mulf %226, %229 : vector<128x64xf32>
    %231 = arith.addf %144, %230 : vector<128x64xf32>
    %c0_96 = arith.constant 0 : index
    %c0_97 = arith.constant 0 : index
    %232 = vector.load %arg24[%c0_96, %c0_97] : memref<128x64xf32, #tpu.memory_space<vmem>>, vector<128x64xf32>
    tpu.vector_store %arg24[%c0_96, %c0_97], %231 {strides = array<i32>} : memref<128x64xf32, #tpu.memory_space<vmem>>, vector<128x64xf32>,
    %c1_i32 = arith.constant 1 : i32
    %233 = arith.cmpi eq, %arg1, %c1_i32 : i32
    %234 = arith.extui %233 : i1 to i32
    %c0_i32_98 = arith.constant 0 : i32
    %235 = arith.cmpi ne, %234, %c0_i32_98 : i32
    scf.if %235 {
      %c0_99 = arith.constant 0 : index
      %c0_100 = arith.constant 0 : index
      %236 = vector.load %arg19[%c0_99, %c0_100] : memref<1x64xf32, #tpu.memory_space<vmem>>, vector<1x64xf32>
      %c0_101 = arith.constant 0 : index
      %c0_102 = arith.constant 0 : index
      %237 = vector.load %arg20[%c0_101, %c0_102] : memref<1x64xf32, #tpu.memory_space<vmem>>, vector<1x64xf32>
      %cst_103 = arith.constant dense<0.000000e+00> : vector<128xf32>
      %238 = vector.multi_reduction <add>, %231, %cst_103 [1] : vector<128x64xf32> to vector<128xf32>
      %239 = vector.shape_cast %238 : vector<128xf32> to vector<128x1xf32>
      %cst_104 = arith.constant 6.400000e+01 : f32
      %240 = vector.broadcast %cst_104 : f32 to vector<128x1xf32>
      %241 = arith.divf %239, %240 : vector<128x1xf32>
      %242 = vector.broadcast %241 : vector<128x1xf32> to vector<128x64xf32>
      %243 = arith.subf %231, %242 : vector<128x64xf32>
      %244 = arith.mulf %243, %243 : vector<128x64xf32>
      %cst_105 = arith.constant dense<0.000000e+00> : vector<128xf32>
      %245 = vector.multi_reduction <add>, %244, %cst_105 [1] : vector<128x64xf32> to vector<128xf32>
      %246 = vector.shape_cast %245 : vector<128xf32> to vector<128x1xf32>
      %cst_106 = arith.constant 6.400000e+01 : f32
      %247 = vector.broadcast %cst_106 : f32 to vector<128x1xf32>
      %248 = arith.divf %246, %247 : vector<128x1xf32>
      %249 = vector.broadcast %241 : vector<128x1xf32> to vector<128x64xf32>
      %250 = arith.subf %231, %249 : vector<128x64xf32>
      %cst_107 = arith.constant 9.99999997E-7 : f32
      %251 = vector.broadcast %cst_107 : f32 to vector<128x1xf32>
      %252 = arith.addf %248, %251 : vector<128x1xf32>
      %253 = math.rsqrt %252 : vector<128x1xf32>
      %254 = vector.broadcast %253 : vector<128x1xf32> to vector<128x64xf32>
      %255 = arith.mulf %250, %254 : vector<128x64xf32>
      %256 = vector.broadcast %236 : vector<1x64xf32> to vector<128x64xf32>
      %257 = arith.mulf %255, %256 : vector<128x64xf32>
      %258 = vector.broadcast %237 : vector<1x64xf32> to vector<128x64xf32>
      %259 = arith.addf %257, %258 : vector<128x64xf32>
      %260 = tpu.iota {dimensions = array<i32: 1>} : vector<4x128xi32>
      %261 = tpu.iota {dimensions = array<i32: 0>} : vector<4x128xi32>
      %c32_i32 = arith.constant 32 : i32
      %262 = vector.broadcast %c32_i32 : i32 to vector<4x128xi32>
      %263 = arith.muli %261, %262 : vector<4x128xi32>
      %264 = arith.cmpi eq, %260, %263 : vector<4x128xi32>
      %265 = arith.extui %264 : vector<4x128xi1> to vector<4x128xi32>
      %266 = arith.sitofp %265 : vector<4x128xi32> to vector<4x128xf32>
      %cst_108 = arith.constant dense<0.000000e+00> : vector<4x64xf32>
      %267 = tpu.matmul %266, %259, %cst_108 {dimension_numbers = #tpu.dot_dimension_numbers<[1], [0], [0], [1], [0, 0, 1, 1], [], []>} : vector<4x128xf32>, vector<128x64xf32>, vector<4x64xf32> -> vector<4x64xf32>
      %268 = arith.truncf %267 : vector<4x64xf32> to vector<4x64xbf16>
      %c0_109 = arith.constant 0 : index
      %c0_110 = arith.constant 0 : index
      %269 = vector.load %arg21[%c0_109, %c0_110] : memref<64x128xbf16, #tpu.memory_space<vmem>>, vector<64x128xbf16>
      %cst_111 = arith.constant dense<0.000000e+00> : vector<4x128xf32>
      %270 = tpu.matmul %268, %269, %cst_111 {dimension_numbers = #tpu.dot_dimension_numbers<[1], [0], [0], [1], [0, 0, 1, 1], [], []>} : vector<4x64xbf16>, vector<64x128xbf16>, vector<4x128xf32> -> vector<4x128xf32>
      %c0_112 = arith.constant 0 : index
      %c0_113 = arith.constant 0 : index
      %271 = vector.load %arg22[%c0_112, %c0_113] : memref<1x128xf32, #tpu.memory_space<vmem>>, vector<1x128xf32>
      %272 = vector.broadcast %271 : vector<1x128xf32> to vector<4x128xf32>
      %273 = arith.addf %270, %272 : vector<4x128xf32>
      %c0_114 = arith.constant 0 : index
      %c0_115 = arith.constant 0 : index
      %c0_116 = arith.constant 0 : index
      %274 = vector.load %arg23[%c0_114, %c0_115, %c0_116] : memref<1x4x128xf32, #tpu.memory_space<vmem>>, vector<1x4x128xf32>
      %275 = vector.shape_cast %274 : vector<1x4x128xf32> to vector<4x128xf32>
      %276 = vector.shape_cast %273 : vector<4x128xf32> to vector<1x4x128xf32>
      tpu.vector_store %arg23[%c0_114, %c0_115, %c0_116], %276 {strides = array<i32>} : memref<1x4x128xf32, #tpu.memory_space<vmem>>, vector<1x4x128xf32>,
    } else {
    }
    return
  }
  func.func @transform_0(%arg0: i32, %arg1: i32) -> (i32, i32, i32) {
    %c0_i32 = arith.constant 0 : i32
    %c0_i32_0 = arith.constant 0 : i32
    %c0_i32_1 = arith.constant 0 : i32
    return %arg0, %c0_i32, %c0_i32_0 : i32, i32, i32
  }
  func.func @transform_1(%arg0: i32, %arg1: i32) -> (i32, i32) {
    %c0_i32 = arith.constant 0 : i32
    %c0_i32_0 = arith.constant 0 : i32
    %c0_i32_1 = arith.constant 0 : i32
    return %c0_i32, %c0_i32_0 : i32, i32
  }
  func.func @transform_2(%arg0: i32, %arg1: i32) -> (i32, i32) {
    %c0_i32 = arith.constant 0 : i32
    %c0_i32_0 = arith.constant 0 : i32
    %c0_i32_1 = arith.constant 0 : i32
    return %c0_i32, %c0_i32_0 : i32, i32
  }
  func.func @transform_3(%arg0: i32, %arg1: i32) -> (i32, i32, i32) {
    %c0_i32 = arith.constant 0 : i32
    %c0_i32_0 = arith.constant 0 : i32
    %c0_i32_1 = arith.constant 0 : i32
    return %arg1, %c0_i32, %c0_i32_0 : i32, i32, i32
  }
  func.func @transform_4(%arg0: i32, %arg1: i32) -> (i32, i32, i32) {
    %c0_i32 = arith.constant 0 : i32
    %c0_i32_0 = arith.constant 0 : i32
    %c0_i32_1 = arith.constant 0 : i32
    return %arg1, %c0_i32, %c0_i32_0 : i32, i32, i32
  }
  func.func @transform_5(%arg0: i32, %arg1: i32) -> (i32, i32, i32) {
    %c0_i32 = arith.constant 0 : i32
    %c0_i32_0 = arith.constant 0 : i32
    %c0_i32_1 = arith.constant 0 : i32
    return %arg1, %c0_i32, %c0_i32_0 : i32, i32, i32
  }
  func.func @transform_6(%arg0: i32, %arg1: i32) -> (i32, i32, i32) {
    %c0_i32 = arith.constant 0 : i32
    %c0_i32_0 = arith.constant 0 : i32
    %c0_i32_1 = arith.constant 0 : i32
    return %arg1, %c0_i32, %c0_i32_0 : i32, i32, i32
  }
  func.func @transform_7(%arg0: i32, %arg1: i32) -> (i32, i32, i32) {
    %c0_i32 = arith.constant 0 : i32
    %c0_i32_0 = arith.constant 0 : i32
    %c0_i32_1 = arith.constant 0 : i32
    return %arg1, %c0_i32, %c0_i32_0 : i32, i32, i32
  }
  func.func @transform_8(%arg0: i32, %arg1: i32) -> (i32, i32, i32) {
    %c0_i32 = arith.constant 0 : i32
    %c0_i32_0 = arith.constant 0 : i32
    %c0_i32_1 = arith.constant 0 : i32
    return %arg1, %c0_i32, %c0_i32_0 : i32, i32, i32
  }
  func.func @transform_9(%arg0: i32, %arg1: i32) -> (i32, i32, i32) {
    %c0_i32 = arith.constant 0 : i32
    %c0_i32_0 = arith.constant 0 : i32
    %c0_i32_1 = arith.constant 0 : i32
    return %arg1, %c0_i32, %c0_i32_0 : i32, i32, i32
  }
  func.func @transform_10(%arg0: i32, %arg1: i32) -> (i32, i32, i32) {
    %c0_i32 = arith.constant 0 : i32
    %c0_i32_0 = arith.constant 0 : i32
    %c0_i32_1 = arith.constant 0 : i32
    return %arg1, %c0_i32, %c0_i32_0 : i32, i32, i32
  }
  func.func @transform_11(%arg0: i32, %arg1: i32) -> (i32, i32, i32) {
    %c0_i32 = arith.constant 0 : i32
    %c0_i32_0 = arith.constant 0 : i32
    %c0_i32_1 = arith.constant 0 : i32
    return %arg1, %c0_i32, %c0_i32_0 : i32, i32, i32
  }
  func.func @transform_12(%arg0: i32, %arg1: i32) -> (i32, i32, i32) {
    %c0_i32 = arith.constant 0 : i32
    %c0_i32_0 = arith.constant 0 : i32
    %c0_i32_1 = arith.constant 0 : i32
    return %arg1, %c0_i32, %c0_i32_0 : i32, i32, i32
  }
  func.func @transform_13(%arg0: i32, %arg1: i32) -> (i32, i32, i32) {
    %c0_i32 = arith.constant 0 : i32
    %c0_i32_0 = arith.constant 0 : i32
    %c0_i32_1 = arith.constant 0 : i32
    return %arg1, %c0_i32, %c0_i32_0 : i32, i32, i32
  }
  func.func @transform_14(%arg0: i32, %arg1: i32) -> (i32, i32, i32) {
    %c0_i32 = arith.constant 0 : i32
    %c0_i32_0 = arith.constant 0 : i32
    %c0_i32_1 = arith.constant 0 : i32
    return %arg1, %c0_i32, %c0_i32_0 : i32, i32, i32
  }
  func.func @transform_15(%arg0: i32, %arg1: i32) -> (i32, i32, i32) {
    %c0_i32 = arith.constant 0 : i32
    %c0_i32_0 = arith.constant 0 : i32
    %c0_i32_1 = arith.constant 0 : i32
    return %arg1, %c0_i32, %c0_i32_0 : i32, i32, i32
  }
  func.func @transform_16(%arg0: i32, %arg1: i32) -> (i32, i32, i32) {
    %c0_i32 = arith.constant 0 : i32
    %c0_i32_0 = arith.constant 0 : i32
    %c0_i32_1 = arith.constant 0 : i32
    return %arg1, %c0_i32, %c0_i32_0 : i32, i32, i32
  }
  func.func @transform_17(%arg0: i32, %arg1: i32) -> (i32, i32) {
    %c0_i32 = arith.constant 0 : i32
    %c0_i32_0 = arith.constant 0 : i32
    %c0_i32_1 = arith.constant 0 : i32
    return %c0_i32, %c0_i32_0 : i32, i32
  }
  func.func @transform_18(%arg0: i32, %arg1: i32) -> (i32, i32) {
    %c0_i32 = arith.constant 0 : i32
    %c0_i32_0 = arith.constant 0 : i32
    %c0_i32_1 = arith.constant 0 : i32
    return %c0_i32, %c0_i32_0 : i32, i32
  }
  func.func @transform_19(%arg0: i32, %arg1: i32) -> (i32, i32) {
    %c0_i32 = arith.constant 0 : i32
    %c0_i32_0 = arith.constant 0 : i32
    %c0_i32_1 = arith.constant 0 : i32
    return %c0_i32, %c0_i32_0 : i32, i32
  }
  func.func @transform_20(%arg0: i32, %arg1: i32) -> (i32, i32) {
    %c0_i32 = arith.constant 0 : i32
    %c0_i32_0 = arith.constant 0 : i32
    %c0_i32_1 = arith.constant 0 : i32
    return %c0_i32, %c0_i32_0 : i32, i32
  }
  func.func @transform_21(%arg0: i32, %arg1: i32) -> (i32, i32, i32) {
    %c0_i32 = arith.constant 0 : i32
    %c0_i32_0 = arith.constant 0 : i32
    %c0_i32_1 = arith.constant 0 : i32
    return %arg0, %c0_i32, %c0_i32_0 : i32, i32, i32
  }
}

</mosaic_0001>

<bundles_post_ra>
// kernel: dinov2_vision_encoder.1
= control target key start
LH: loop header
LB: loop body
LE: loop exit
PB: predicated region body
PF: predicated region fallthrough
CT: control target
= control target key end

     0   :  { %s8861_s25 = smov 0   ;;  %s8863_s26 = smov 0   ;;  %s12297_s0 = inlined_call_operand.vmem [shape: f32[1,128,48], index: 0, kind: input, shape index: {}]   ;;  %s12298_s1 = inlined_call_operand.vmem [shape: f32[128,64], index: 1, kind: input, shape index: {}]   ;;  %s12299_s2 = inlined_call_operand.vmem [shape: bf16[48,64], index: 2, kind: input, shape index: {}]   ;;  %s12300_s3 = inlined_call_operand.vmem [shape: f32[2,1,64], index: 3, kind: input, shape index: {}]   ;;  %s12301_s4 = inlined_call_operand.vmem [shape: f32[2,1,64], index: 4, kind: input, shape index: {}]   ;;  %s12302_s5 = inlined_call_operand.vmem [shape: bf16[2,64,192], index: 5, kind: input, shape index: {}]   ;;  %s12303_s6 = inlined_call_operand.vmem [shape: f32[2,1,192], index: 6, kind: input, shape index: {}]   ;;  %s12304_s7 = inlined_call_operand.vmem [shape: bf16[2,64,64], index: 7, kind: input, shape index: {}]   ;;  %s12305_s8 = inlined_call_operand.vmem [shape: f32[2,1,64], index: 8, kind: input, shape index: {}]   ;;  %s12306_s9 = inlined_call_operand.vmem [shape: f32[2,1,64], index: 9, kind: input, shape index: {}]   ;;  %s12307_s10 = inlined_call_operand.vmem [shape: f32[2,1,64], index: 10, kind: input, shape index: {}]   ;;  %s12308_s11 = inlined_call_operand.vmem [shape: f32[2,1,64], index: 11, kind: input, shape index: {}]   ;;  %s12309_s12 = inlined_call_operand.vmem [shape: bf16[2,64,256], index: 12, kind: input, shape index: {}]   ;;  %s12310_s13 = inlined_call_operand.vmem [shape: f32[2,1,256], index: 13, kind: input, shape index: {}]   ;;  %s12311_s14 = inlined_call_operand.vmem [shape: bf16[2,256,64], index: 14, kind: input, shape index: {}]   ;;  %s12312_s15 = inlined_call_operand.vmem [shape: f32[2,1,64], index: 15, kind: input, shape index: {}]   ;;  %s12313_s16 = inlined_call_operand.vmem [shape: f32[2,1,64], index: 16, kind: input, shape index: {}]   ;;  %s12314_s17 = inlined_call_operand.vmem [shape: f32[1,64], index: 17, kind: input, shape index: {}]   ;;  %s12315_s18 = inlined_call_operand.vmem [shape: f32[1,64], index: 18, kind: input, shape index: {}]   ;;  %s12316_s19 = inlined_call_operand.vmem [shape: bf16[64,128], index: 19, kind: input, shape index: {}]   ;;  %s12317_s20 = inlined_call_operand.vmem [shape: f32[1,128], index: 20, kind: input, shape index: {}]   ;;  %s12318_s21 = inlined_call_operand.vmem [shape: f32[1,4,128], index: 21, kind: output, shape index: {}]  }
   0x1   :  { %12362 = sst [smem:[#allocation35_spill]] %s12297_s0 }
   0x2   :  { %12363 = sst [smem:[#allocation36_spill]] %s12298_s1 }
   0x3   :  { %12364 = sst [smem:[#allocation37_spill]] %s12299_s2  ;;  %s8859_s2 = smov 0  }
   0x4   :  { %12365 = sst [smem:[#allocation38_spill]] %s12300_s3 }
   0x5   :  { %12366 = sst [smem:[#allocation39_spill]] %s12301_s4 }
   0x6   :  { %12367 = sst [smem:[#allocation40_spill]] %s12302_s5 }
   0x7   :  { %12368 = sst [smem:[#allocation41_spill]] %s12303_s6 }
   0x8   :  { %12369 = sst [smem:[#allocation42_spill]] %s12314_s17 }
   0x9   :  { %12370 = sst [smem:[#allocation43_spill]] %s12315_s18 }
   0xa   :  { %12371 = sst [smem:[#allocation44_spill]] %s12316_s19 }
   0xb   :  { %12372 = sst [smem:[#allocation45_spill]] %s12317_s20 }
   0xc   :  { %12373 = sst [smem:[#allocation46_spill]] %s12318_s21 }
   0xd LB: > { %12374 = sst [smem:[#allocation3_spill]] %s8731_s25  ;;  %s40_s27 = sadd.s32 1, %s8731_s25  ;;  %s8735_s26 = sphi %s8863_s26, %s31_s26   ;;  %s8731_s25 = sphi %s8861_s25, %s12526_s25   ;;  %s8727_s2 = sphi %s8859_s2, %s12525_s2  }
   0xe   : > { %12375 = sst [smem:[#allocation4_spill]] %s8735_s26  ;;  %p7189_p0 = scmp.ge.s32.totalorder %s8735_s26, 1 }
   0xf   : > { %p41_p1 = scmp.ge.s32.totalorder %s40_s27, 2  ;;  %p721_p2 = scmp.lt.s32.totalorder %s8735_s26, 3 }
  0x11   : > { %s12528_s27 = smov (%p41_p1, %s40_s27), 0  ;;  %p722_p3 = pnand %p7189_p0, %p721_p2 }
  0x12   : > { %12376 = sst [smem:[#allocation5_spill]] %s12528_s27 }
  0x13   : > { %725 = sbr.rel (%p722_p3) target bundleno = 5748 (0x1674), region = 104 }
  0x1a   : > { %p837_p4 = scmp.lt.s32.totalorder %s8727_s2, 1  ;;  %s12379_s29 = sld [smem:[#allocation40_spill]] }
  0x1b   : > { %s12381_s6 = sld [smem:[#allocation41_spill]]  ;;  %p7200_p5 = scmp.ne.s32.totalorder %s8727_s2, 0 }
  0x1c   : > { %s8881_s3 = scalar_select %p837_p4, %s8727_s2, 1 }
  0x1d   : > { %s12383_s17 = sld [smem:[#allocation37_spill]] (!%p7200_p5)  ;;  %vm962_vm0 = vcmask (!%p7200_p5), 392192   ;;  %vm1084_vm1 = vcmask (!%p7200_p5), 523264  }
  0x1e   : > { %s7358_s1 = sshll.u32 %s8881_s3, 6  ;;  %s7192_s24 = sshll.u32 %s8881_s3, 1 }
  0x1f   : > { %s7359_s18 = sshll.u32 %s8881_s3, 5  ;;  %s859_s4 = scalar_lea.vmem %s12305_s8, %s8881_s3 }
  0x20   : > { %s8896_s25 = scalar_lea.vmem %s12379_s29, %s7358_s1  ;;  %s8911_s22 = scalar_lea.vmem %s12304_s7, %s7359_s18 }
  0x21   : > { %12380 = sst [smem:[#allocation6_spill]] %s8896_s25  ;;  %s8901_s20 = scalar_lea.vmem %s12381_s6, %s7192_s24 }
  0x22   : > { %12382 = sst [smem:[#allocation7_spill]] %s8901_s20  ;;  %s8928_s0 = scalar_lea.vmem %s12309_s12, %s7358_s1 }
  0x23   : > { %s8933_s5 = scalar_lea.vmem %s12310_s13, %s7192_s24  ;;  %s7361_s19 = sshll.u32 %s8881_s3, 7  ;;  %v8046_v0 = vld [vmem:[%s12383_s17] sm:$0xff] (!%p7200_p5)   ;;  %v8047_v1 = vld [vmem:[%s12383_s17 + $0x8] sm:$0xff] (!%p7200_p5)   ;;  %v8048_v5 = vld [vmem:[%s12383_s17 + $0x10] sm:$0xff] (!%p7200_p5)  }
  0x24   : > { %s885_s28 = scalar_lea.vmem %s12312_s15, %s8881_s3  ;;  %s8943_s6 = scalar_lea.vmem %s12311_s14, %s7361_s19  ;;  %7599 = vmatprep.subr.bf16.mxu0 (!%p7200_p5), %v8046_v0  ;;  %7972 = vmatprep.subr.bf16.mxu1 (!%p7200_p5), %v8046_v0 }
  0x25   : > { %897 = sbr.rel (%p7200_p5) target bundleno = 274 (0x112), region = 108  ;;  %7600 = vmatpush3.bf16.msra.mxu0 (!%p7200_p5), %v8046_v0  ;;  %7975 = vmatpush3.bf16.msra.mxu1 (!%p7200_p5), %v8046_v0  ;;  %s12384_s19 = sld [smem:[#allocation35_spill]] (!%p7200_p5) }
  0x26   : > { %7601 = vmatprep.subr.bf16.mxu0 (!%p7200_p5), %v8047_v1  ;;  %7973 = vmatprep.subr.bf16.mxu1 (!%p7200_p5), %v8047_v1  ;;  %s12385_s1 = sld [smem:[#allocation36_spill]] (!%p7200_p5) }
  0x29   : > { %7602 = vmatpush3.bf16.msra.mxu0 (!%p7200_p5), %v8047_v1  ;;  %7976 = vmatpush3.bf16.msra.mxu1 (!%p7200_p5), %v8047_v1 }
  0x2a   : > { %7603 = vmatprep.subr.bf16.mxu0 (!%p7200_p5), %v8048_v5  ;;  %7974 = vmatprep.subr.bf16.mxu1 (!%p7200_p5), %v8048_v5 }
  0x2b   : > { %v898_v2 = vld [vmem:[%s12384_s19] sm:$0xff] (!%p7200_p5)  ;;  %v899_v3 = vld [vmem:[%s12384_s19 + $0x8] sm:$0xff] (!%p7200_p5)  ;;  %v900_v9 = vld [vmem:[%s12384_s19 + $0x10] sm:$0xff] (!%p7200_p5) }
  0x2c   : > { %v906_v4 = vld [vmem:[%s12384_s19 + $0x40] sm:$0xff]  ;;  %v914_v6 = vpack.c.bf16 %v899_v3, %v898_v2  ;;  %v907_v7 = vld [vmem:[%s12384_s19 + $0x48] sm:$0xff]  ;;  %v901_v10 = vld [vmem:[%s12384_s19 + $0x18] sm:$0xff] }
  0x2d   : > { %v918_v8 = vpack.c.bf16 %v907_v7, %v906_v4  ;;  %v908_v11 = vld [vmem:[%s12384_s19 + $0x50] sm:$0xff]  ;;  %v909_v12 = vld [vmem:[%s12384_s19 + $0x58] sm:$0xff]  ;;  %v902_v13 = vld [vmem:[%s12384_s19 + $0x20] sm:$0xff]  ;;  %v915_v17 = vpack.c.bf16 %v901_v10, %v900_v9  ;;  %7604 = vmatpush3.bf16.msra.mxu0 %v8048_v5  ;;  %7977 = vmatpush3.bf16.msra.mxu1 %v8048_v5 }
  0x2e   : > { %7605 = vmatprep.mubr.msk.bf16.mxu0 %vm962_vm0, %v914_v6  ;;  %v903_v14 = vld [vmem:[%s12384_s19 + $0x28] sm:$0xff]  ;;  %v910_v15 = vld [vmem:[%s12384_s19 + $0x60] sm:$0xff]  ;;  %v919_v18 = vpack.c.bf16 %v909_v12, %v908_v11  ;;  %v904_v21 = vld [vmem:[%s12384_s19 + $0x30] sm:$0xff] }
  0x2f   : > { %v911_v16 = vld [vmem:[%s12384_s19 + $0x68] sm:$0xff]  ;;  %7613 = vmatprep.mubr.msk.bf16.mxu1 %vm962_vm0, %v918_v8  ;;  %v916_v19 = vpack.c.bf16 %v903_v14, %v902_v13  ;;  %v905_v22 = vld [vmem:[%s12384_s19 + $0x38] sm:$0xff]  ;;  %v912_v23 = vld [vmem:[%s12384_s19 + $0x70] sm:$0xff] }
  0x30   : > { %v920_v20 = vpack.c.bf16 %v911_v16, %v910_v15  ;;  %7606 = vmatmul.mubr.msk.bf16.vlgmr.msra.gmra.mrb[0].mxu0 %vm962_vm0, %v915_v17  ;;  %7614 = vmatmul.mubr.msk.bf16.vlgmr.msra.gmra.mrb[0].mxu1 %vm962_vm0, %v919_v18  ;;  %v913_v24 = vld [vmem:[%s12384_s19 + $0x78] sm:$0xff]  ;;  %v917_v25 = vpack.c.bf16 %v905_v22, %v904_v21  ;;  %v930_v27 = vld [vmem:[%s12385_s1 + $0x10] sm:$0xff]  ;;  %v928_v29 = vld [vmem:[%s12385_s1] sm:$0xff] }
  0x31   : > { %7609 = vmatprep.mubr.msk.bf16.mxu0 %vm962_vm0, %v916_v19  ;;  %v921_v26 = vpack.c.bf16 %v913_v24, %v912_v23  ;;  %v938_v28 = vld [vmem:[%s12385_s1 + $0x50] sm:$0xff]  ;;  %v936_v30 = vld [vmem:[%s12385_s1 + $0x40] sm:$0xff]  ;;  %v931_v33 = vld [vmem:[%s12385_s1 + $0x18] sm:$0xff] }
  0x32   : > { %7617 = vmatprep.mubr.msk.bf16.mxu1 %vm962_vm0, %v920_v20  ;;  %v939_v34 = vld [vmem:[%s12385_s1 + $0x58] sm:$0xff]  ;;  %v929_v39 = vld [vmem:[%s12385_s1 + $0x8] sm:$0xff]  ;;  %v934_v51 = vld [vmem:[%s12385_s1 + $0x30] sm:$0xff] }
  0x33   : > { %v937_v40 = vld [vmem:[%s12385_s1 + $0x48] sm:$0xff]  ;;  %v942_v52 = vld [vmem:[%s12385_s1 + $0x70] sm:$0xff]  ;;  %v932_v53 = vld [vmem:[%s12385_s1 + $0x20] sm:$0xff] }
  0x34   : > { %v940_v54 = vld [vmem:[%s12385_s1 + $0x60] sm:$0xff]  ;;  %v935_v57 = vld [vmem:[%s12385_s1 + $0x38] sm:$0xff]  ;;  %v933_v63 = vld [vmem:[%s12385_s1 + $0x28] sm:$0xff] }
  0x35   : > { %v943_v58 = vld [vmem:[%s12385_s1 + $0x78] sm:$0xff]  ;;  %v941_v0 = vld [vmem:[%s12385_s1 + $0x68] sm:$0xff] }
  0x38   : > { %7610 = vmatmul.mubr.msk.bf16.gmra.mrb[4].mxu0 %vm962_vm0, %v917_v25  ;;  %7618 = vmatmul.mubr.msk.bf16.gmra.mrb[4].mxu1 %vm962_vm0, %v921_v26 }
 0x103   : > { %v7607_v31 = vpop.f32.mrb[0].mxu0  ;;  %v7615_v32 = vpop.f32.mrb[0].mxu1 }
 0x104   : > { %v1030_v35 = vadd.f32 %v7607_v31, %v930_v27  ;;  %v1062_v36 = vadd.f32 %v7615_v32, %v938_v28  ;;  %v1021_v37 = vpop.f32.mrb[1].mxu0  ;;  %v1053_v38 = vpop.f32.mrb[1].mxu1 }
 0x105   : > { %v1022_v41 = vadd.f32 %v1021_v37, %v928_v29  ;;  %v1054_v42 = vadd.f32 %v1053_v38, %v936_v30  ;;  %v7608_v43 = vpop.f32.mrb[2].mxu0  ;;  %v7616_v44 = vpop.f32.mrb[2].mxu1 }
 0x106   : > { %1087 = vst.msk [vmem:[#allocation2 + $0x10] sm:$0xff] %vm1084_vm1, %v1030_v35  ;;  %1095 = vst.msk [vmem:[#allocation2 + $0x50] sm:$0xff] %vm1084_vm1, %v1062_v36  ;;  %v1033_v45 = vadd.f32 %v7608_v43, %v931_v33  ;;  %v1065_v46 = vadd.f32 %v7616_v44, %v939_v34  ;;  %v1024_v47 = vpop.f32.mrb[3].mxu0  ;;  %v1056_v48 = vpop.f32.mrb[3].mxu1 }
 0x107   : > { %1085 = vst.msk [vmem:[#allocation2] sm:$0xff] %vm1084_vm1, %v1022_v41  ;;  %1093 = vst.msk [vmem:[#allocation2 + $0x40] sm:$0xff] %vm1084_vm1, %v1054_v42  ;;  %v1025_v49 = vadd.f32 %v1024_v47, %v929_v39  ;;  %v1057_v50 = vadd.f32 %v1056_v48, %v937_v40 }
 0x108   : > { %1088 = vst.msk [vmem:[#allocation2 + $0x18] sm:$0xff] %vm1084_vm1, %v1033_v45  ;;  %1096 = vst.msk [vmem:[#allocation2 + $0x58] sm:$0xff] %vm1084_vm1, %v1065_v46 }
 0x109   : > { %1086 = vst.msk [vmem:[#allocation2 + $0x8] sm:$0xff] %vm1084_vm1, %v1025_v49  ;;  %1094 = vst.msk [vmem:[#allocation2 + $0x48] sm:$0xff] %vm1084_vm1, %v1057_v50 }
 0x10b   : > { %v7611_v55 = vpop.f32.mrb[4].mxu0  ;;  %v7619_v56 = vpop.f32.mrb[4].mxu1 }
 0x10c   : > { %v1046_v59 = vadd.f32 %v7611_v55, %v934_v51  ;;  %v1078_v60 = vadd.f32 %v7619_v56, %v942_v52  ;;  %v1037_v61 = vpop.f32.mrb[5].mxu0  ;;  %v1069_v62 = vpop.f32.mrb[5].mxu1 }
 0x10d   : > { %v1038_v1 = vadd.f32 %v1037_v61, %v932_v53  ;;  %v1070_v2 = vadd.f32 %v1069_v62, %v940_v54  ;;  %v7612_v3 = vpop.f32.mrb[6].mxu0  ;;  %v7620_v4 = vpop.f32.mrb[6].mxu1 }
 0x10e   : > { %1091 = vst.msk [vmem:[#allocation2 + $0x30] sm:$0xff] %vm1084_vm1, %v1046_v59  ;;  %1099 = vst.msk [vmem:[#allocation2 + $0x70] sm:$0xff] %vm1084_vm1, %v1078_v60  ;;  %v1049_v5 = vadd.f32 %v7612_v3, %v935_v57  ;;  %v1081_v6 = vadd.f32 %v7620_v4, %v943_v58  ;;  %v1040_v7 = vpop.f32.mrb[7].mxu0  ;;  %v1072_v8 = vpop.f32.mrb[7].mxu1 }
 0x10f   : > { %1089 = vst.msk [vmem:[#allocation2 + $0x20] sm:$0xff] %vm1084_vm1, %v1038_v1  ;;  %1097 = vst.msk [vmem:[#allocation2 + $0x60] sm:$0xff] %vm1084_vm1, %v1070_v2  ;;  %v1041_v9 = vadd.f32 %v1040_v7, %v933_v63  ;;  %v1073_v10 = vadd.f32 %v1072_v8, %v941_v0 }
 0x110   : > { %1092 = vst.msk [vmem:[#allocation2 + $0x38] sm:$0xff] %vm1084_vm1, %v1049_v5  ;;  %1100 = vst.msk [vmem:[#allocation2 + $0x78] sm:$0xff] %vm1084_vm1, %v1081_v6 }
 0x111   : > { %1090 = vst.msk [vmem:[#allocation2 + $0x28] sm:$0xff] %vm1084_vm1, %v1041_v9  ;;  %1098 = vst.msk [vmem:[#allocation2 + $0x68] sm:$0xff] %vm1084_vm1, %v1073_v10 }
 0x112 PF: > { %v1101_v11 = vld [vmem:[#allocation2] sm:$0xff]  ;;  %vm1119_vm2 = vcmask 523264   ;;  %v1103_v12 = vld [vmem:[#allocation2 + $0x10] sm:$0xff]  ;;  %v1102_v13 = vld [vmem:[#allocation2 + $0x8] sm:$0xff]  ;;  %s12386_s24 = sld [smem:[#allocation6_spill]]  ;;  %s12387_s27 = sld [smem:[#allocation38_spill]] }
 0x113   : > { %v1120_v14 = vsel %vm1119_vm2, %v1101_v11, 0.0  ;;  %v1126_v15 = vsel %vm1119_vm2, %v1103_v12, 0.0  ;;  %v1104_v16 = vld [vmem:[#allocation2 + $0x18] sm:$0xff]  ;;  %v1123_v17 = vsel %vm1119_vm2, %v1102_v13, 0.0  ;;  %v9087_v23 = vld [vmem:[#allocation2 + $0x40] sm:$0xff]  ;;  %v9089_v24 = vld [vmem:[#allocation2 + $0x48] sm:$0xff] }
 0x114   : > { %1121 = vadd.xlane.f32.xlu0 %v1120_v14  ;;  %1127 = vadd.xlane.f32.xlu1 %v1126_v15  ;;  %v1129_v18 = vsel %vm1119_vm2, %v1104_v16, 0.0  ;;  %v9093_v27 = vld [vmem:[#allocation2 + $0x50] sm:$0xff]  ;;  %v9095_v28 = vld [vmem:[#allocation2 + $0x58] sm:$0xff]  ;;  %v1144_v33 = vsel %vm1119_vm2, %v9087_v23, 0.0  ;;  %v1147_v34 = vsel %vm1119_vm2, %v9089_v24, 0.0  ;;  %s12389_s23 = sld [smem:[#allocation39_spill]] }
 0x115   : > { %v9083_v21 = vld [vmem:[#allocation2 + $0x30] sm:$0xff]  ;;  %v1150_v35 = vsel %vm1119_vm2, %v9093_v27, 0.0  ;;  %v1153_v36 = vsel %vm1119_vm2, %v9095_v28, 0.0  ;;  %s12391_s26 = sld [smem:[#allocation7_spill]]  ;;  %vm1627_vm3 = vcmask 130048   ;;  %vm1906_vm5 = vcmask 261120  }
 0x116   : > { %v1105_v19 = vld [vmem:[#allocation2 + $0x20] sm:$0xff]  ;;  %v1138_v31 = vsel %vm1119_vm2, %v9083_v21, 0.0  ;;  %v9117_v39 = vld [vmem:[#allocation2 + $0x70] sm:$0xff]  ;;  %s8739_s30 = smov 48   ;;  %s8740_s18 = smov 112   ;;  %vm4711_vm6 = vcmask 392192  }
 0x117   : > { %v9085_v22 = vld [vmem:[#allocation2 + $0x38] sm:$0xff]  ;;  %v1132_v25 = vsel %vm1119_vm2, %v1105_v19, 0.0  ;;  %v9097_v29 = vld [vmem:[#allocation2 + $0x60] sm:$0xff]  ;;  %v1162_v41 = vsel %vm1119_vm2, %v9117_v39, 0.0  ;;  %s8743_s21 = smov 16   ;;  %s8744_s20 = smov 80  }
 0x118   : > { %v1106_v20 = vld [vmem:[#allocation2 + $0x28] sm:$0xff]  ;;  %1124 = vadd.xlane.f32.xlu0 %v1123_v17  ;;  %1130 = vadd.xlane.f32.xlu1 %v1129_v18  ;;  %v1141_v32 = vsel %vm1119_vm2, %v9085_v22, 0.0  ;;  %v1156_v37 = vsel %vm1119_vm2, %v9097_v29, 0.0  ;;  %v9119_v40 = vld [vmem:[#allocation2 + $0x78] sm:$0xff]  ;;  %s12388_s25 = scalar_lea.vmem %s12387_s27, %s8881_s3  ;;  %s8741_s27 = smov 32  }
 0x119   : > { %v1135_v26 = vsel %vm1119_vm2, %v1106_v20, 0.0  ;;  %v9099_v30 = vld [vmem:[#allocation2 + $0x68] sm:$0xff]  ;;  %v1165_v42 = vsel %vm1119_vm2, %v9119_v40, 0.0  ;;  %p7344_p6 = scmp.ne.s32.totalorder %s8727_s2, 1 }
 0x11a   : > { %v1159_v38 = vsel %vm1119_vm2, %v9099_v30, 0.0  ;;  %s12390_s29 = scalar_lea.vmem %s12389_s23, %s8881_s3  ;;  %s12523_s23 = sld [smem:[#allocation46_spill]] (!%p7344_p6) }
 0x11c   : > { %1133 = vadd.xlane.f32.xlu0 %v1132_v25  ;;  %1136 = vadd.xlane.f32.xlu1 %v1135_v26 }
 0x120   : > { %1139 = vadd.xlane.f32.xlu0 %v1138_v31  ;;  %1142 = vadd.xlane.f32.xlu1 %v1141_v32 }
 0x124   : > { %1145 = vadd.xlane.f32.xlu0 %v1144_v33  ;;  %1148 = vadd.xlane.f32.xlu1 %v1147_v34 }
 0x128   : > { %1151 = vadd.xlane.f32.xlu0 %v1150_v35  ;;  %1154 = vadd.xlane.f32.xlu1 %v1153_v36 }
 0x12c   : > { %1157 = vadd.xlane.f32.xlu0 %v1156_v37  ;;  %1160 = vadd.xlane.f32.xlu1 %v1159_v38 }
 0x130   : > { %1163 = vadd.xlane.f32.xlu0 %v1162_v41  ;;  %1166 = vadd.xlane.f32.xlu1 %v1165_v42 }
 0x1a1   : > { %v1122_v43 = vpop.xlane.xlu0 %1121  ;;  %v1128_v44 = vpop.xlane.xlu1 %1127 }
 0x1a2   : > { %v1169_v45 = vmul.f32 0.015625, %v1122_v43  ;;  %v1171_v46 = vmul.f32 0.015625, %v1128_v44 }
 0x1a4   : > { %v9125_v47 = vsub.f32 %v1101_v11, %v1169_v45  ;;  %v9127_v48 = vsub.f32 %v1103_v12, %v1171_v46 }
 0x1a5   : > { %v1125_v49 = vpop.xlane.xlu0 %1124  ;;  %v1131_v50 = vpop.xlane.xlu1 %1130 }
 0x1a6   : > { %v1170_v51 = vmul.f32 0.015625, %v1125_v49  ;;  %v1172_v52 = vmul.f32 0.015625, %v1131_v50  ;;  %v1201_v53 = vmul.f32 %v9125_v47, %v9125_v47  ;;  %v1203_v54 = vmul.f32 %v9127_v48, %v9127_v48 }
 0x1a8   : > { %v9133_v55 = vsub.f32 %v1102_v13, %v1170_v51  ;;  %v9135_v56 = vsub.f32 %v1104_v16, %v1172_v52  ;;  %v1217_v57 = vsel %vm1119_vm2, %v1201_v53, 0.0  ;;  %v1223_v60 = vsel %vm1119_vm2, %v1203_v54, 0.0 }
 0x1a9   : > { %1218 = vadd.xlane.f32.xlu0 %v1217_v57  ;;  %v1134_v58 = vpop.xlane.xlu0 %1133  ;;  %v1137_v59 = vpop.xlane.xlu1 %1136 }
 0x1aa   : > { %v1173_v61 = vmul.f32 0.015625, %v1134_v58  ;;  %v1174_v62 = vmul.f32 0.015625, %v1137_v59  ;;  %v1202_v63 = vmul.f32 %v9133_v55, %v9133_v55  ;;  %v1204_v0 = vmul.f32 %v9135_v56, %v9135_v56 }
 0x1ac   : > { %v9143_v1 = vsub.f32 %v1105_v19, %v1173_v61  ;;  %v9145_v2 = vsub.f32 %v1106_v20, %v1174_v62  ;;  %v1220_v3 = vsel %vm1119_vm2, %v1202_v63, 0.0  ;;  %v1226_v6 = vsel %vm1119_vm2, %v1204_v0, 0.0  ;;  %v8171_v63 = vld [vmem:[%s12386_s24] ss:$8 sps:$4 sm:$0xff]   ;;  %v8172_v0 = vld [vmem:[%s12386_s24 + $0x14] ss:$8 sps:$4 sm:$0xff]  }
 0x1ad   : > { %1224 = vadd.xlane.f32.xlu0 %v1223_v60  ;;  %1221 = vadd.xlane.f32.xlu1 %v1220_v3  ;;  %v1140_v4 = vpop.xlane.xlu0 %1139  ;;  %v1143_v5 = vpop.xlane.xlu1 %1142  ;;  %v8169_v60 = vld [vmem:[%s12386_s24 + $0x4] ss:$8 sps:$4 sm:$0xff]  }
 0x1ae   : > { %v1175_v7 = vmul.f32 0.015625, %v1140_v4  ;;  %v1176_v8 = vmul.f32 0.015625, %v1143_v5  ;;  %v1205_v9 = vmul.f32 %v9143_v1, %v9143_v1  ;;  %v1206_v10 = vmul.f32 %v9145_v2, %v9145_v2  ;;  %1465 = vmatprep.subr.bf16.mxu0 %v8169_v60  ;;  %v8174_v4 = vld [vmem:[%s12386_s24 + $0x10] ss:$8 sps:$4 sm:$0xff]   ;;  %v8175_v5 = vld [vmem:[%s12386_s24 + $0x24] ss:$8 sps:$4 sm:$0xff]  }
 0x1af   : > { %1466 = vmatpush1.bf16.msra.mxu0 %v8171_v63 }
 0x1b0   : > { %v9154_v11 = vsub.f32 %v9083_v21, %v1175_v7  ;;  %v9157_v12 = vsub.f32 %v9085_v22, %v1176_v8  ;;  %v1229_v13 = vsel %vm1119_vm2, %v1205_v9, 0.0  ;;  %v1232_v16 = vsel %vm1119_vm2, %v1206_v10, 0.0  ;;  %1467 = vmatprep.subr.bf16.mxu0 %v8172_v0  ;;  %v8178_v7 = vld [vmem:[%s12386_s24 + $0x34] ss:$8 sps:$4 sm:$0xff]   ;;  %v8180_v8 = vld [vmem:[%s12386_s24 + $0x30] ss:$8 sps:$4 sm:$0xff]  }
 0x1b1   : > { %1227 = vadd.xlane.f32.xlu1 %v1226_v6  ;;  %1230 = vadd.xlane.f32.xlu0 %v1229_v13  ;;  %v1146_v14 = vpop.xlane.xlu0 %1145  ;;  %v1149_v15 = vpop.xlane.xlu1 %1148  ;;  %v8177_v6 = vld [vmem:[%s12386_s24 + $0x20] ss:$8 sps:$4 sm:$0xff]   ;;  %v12328_v9 = vmov 0   ;;  %s8738_s24 = smov 64  }
 0x1b2   : > { %v1177_v17 = vmul.f32 0.015625, %v1146_v14  ;;  %v1178_v18 = vmul.f32 0.015625, %v1149_v15  ;;  %v1207_v19 = vmul.f32 %v9154_v11, %v9154_v11  ;;  %v1208_v20 = vmul.f32 %v9157_v12, %v9157_v12  ;;  %1497 = vmatprep.mubr.bf16.mxu0 %v12328_v9 }
 0x1b3   : > { %1468 = vmatpush1.bf16.msra.mxu0 %v8174_v4 }
 0x1b4   : > { %v9166_v21 = vsub.f32 %v9087_v23, %v1177_v17  ;;  %v9169_v22 = vsub.f32 %v9089_v24, %v1178_v18  ;;  %v1235_v25 = vsel %vm1119_vm2, %v1207_v19, 0.0  ;;  %v1238_v32 = vsel %vm1119_vm2, %v1208_v20, 0.0  ;;  %1469 = vmatprep.subr.bf16.mxu0 %v8175_v5 }
 0x1b5   : > { %1233 = vadd.xlane.f32.xlu1 %v1232_v16  ;;  %1236 = vadd.xlane.f32.xlu0 %v1235_v25  ;;  %v1152_v26 = vpop.xlane.xlu0 %1151  ;;  %v1155_v31 = vpop.xlane.xlu1 %1154 }
 0x1b6   : > { %v1179_v33 = vmul.f32 0.015625, %v1152_v26  ;;  %v1180_v34 = vmul.f32 0.015625, %v1155_v31  ;;  %v1209_v35 = vmul.f32 %v9166_v21, %v9166_v21  ;;  %v1210_v23 = vmul.f32 %v9169_v22, %v9169_v22 }
 0x1b7   : > { %1470 = vmatpush1.bf16.msra.mxu0 %v8177_v6 }
 0x1b8   : > { %v9178_v36 = vsub.f32 %v9093_v27, %v1179_v33  ;;  %v9181_v24 = vsub.f32 %v9095_v28, %v1180_v34  ;;  %v1241_v37 = vsel %vm1119_vm2, %v1209_v35, 0.0  ;;  %v1244_v42 = vsel %vm1119_vm2, %v1210_v23, 0.0  ;;  %1471 = vmatprep.subr.bf16.mxu0 %v8178_v7 }
 0x1b9   : > { %1239 = vadd.xlane.f32.xlu1 %v1238_v32  ;;  %1242 = vadd.xlane.f32.xlu0 %v1241_v37  ;;  %v1158_v38 = vpop.xlane.xlu0 %1157  ;;  %v1161_v41 = vpop.xlane.xlu1 %1160 }
 0x1ba   : > { %v1181_v43 = vmul.f32 0.015625, %v1158_v38  ;;  %v1182_v44 = vmul.f32 0.015625, %v1161_v41  ;;  %v1211_v45 = vmul.f32 %v9178_v36, %v9178_v36  ;;  %v1212_v27 = vmul.f32 %v9181_v24, %v9181_v24 }
 0x1bb   : > { %1472 = vmatpush1.bf16.msra.mxu0 %v8180_v8 }
 0x1bc   : > { %v9190_v46 = vsub.f32 %v9097_v29, %v1181_v43  ;;  %v9193_v28 = vsub.f32 %v9099_v30, %v1182_v44  ;;  %v1247_v49 = vsel %vm1119_vm2, %v1211_v45, 0.0  ;;  %v1250_v52 = vsel %vm1119_vm2, %v1212_v27, 0.0  ;;  %v9230_v45 = vld [vmem:[%s12388_s25] ss:$0 sm:$0xff]  ;;  %s8742_s25 = smov 96  }
 0x1bd   : > { %1245 = vadd.xlane.f32.xlu1 %v1244_v42  ;;  %1248 = vadd.xlane.f32.xlu0 %v1247_v49  ;;  %v1164_v50 = vpop.xlane.xlu0 %1163  ;;  %v1167_v51 = vpop.xlane.xlu1 %1166 }
 0x1be   : > { %v1183_v53 = vmul.f32 0.015625, %v1164_v50  ;;  %v1184_v54 = vmul.f32 0.015625, %v1167_v51  ;;  %v1213_v57 = vmul.f32 %v9190_v46, %v9190_v46  ;;  %v1214_v29 = vmul.f32 %v9193_v28, %v9193_v28 }
 0x1c0   : > { %v9202_v30 = vsub.f32 %v9117_v39, %v1183_v53  ;;  %v9205_v58 = vsub.f32 %v9119_v40, %v1184_v54  ;;  %v1253_v59 = vsel %vm1119_vm2, %v1213_v57, 0.0  ;;  %v1256_v61 = vsel %vm1119_vm2, %v1214_v29, 0.0 }
 0x1c1   : > { %1251 = vadd.xlane.f32.xlu1 %v1250_v52  ;;  %1254 = vadd.xlane.f32.xlu0 %v1253_v59 }
 0x1c2   : > { %v1215_v62 = vmul.f32 %v9202_v30, %v9202_v30  ;;  %v1216_v39 = vmul.f32 %v9205_v58, %v9205_v58 }
 0x1c4   : > { %v1259_v40 = vsel %vm1119_vm2, %v1215_v62, 0.0  ;;  %v1262_v3 = vsel %vm1119_vm2, %v1216_v39, 0.0 }
 0x1c5   : > { %1257 = vadd.xlane.f32.xlu1 %v1256_v61  ;;  %1260 = vadd.xlane.f32.xlu0 %v1259_v40 }
 0x1c9   : > { %1263 = vadd.xlane.f32.xlu1 %v1262_v3 }
 0x236   : > { %v1219_v10 = vpop.xlane.xlu0 %1218 }
 0x237   : > { %v1265_v13 = vmul.f32 0.015625, %v1219_v10 }
 0x239   : > { %v1281_v14 = vadd.f32 1e-06, %v1265_v13 }
 0x23a   : > { %v1222_v15 = vpop.xlane.xlu1 %1221  ;;  %v1225_v16 = vpop.xlane.xlu0 %1224 }
 0x23b   : > { %8213 = vrsqrt.f32 %v1281_v14  ;;  %v1266_v17 = vmul.f32 0.015625, %v1222_v15  ;;  %v1267_v18 = vmul.f32 0.015625, %v1225_v16 }
 0x23d   : > { %v1282_v19 = vadd.f32 1e-06, %v1266_v17  ;;  %v1283_v20 = vadd.f32 1e-06, %v1267_v18 }
 0x23e   : > { %v1228_v25 = vpop.xlane.xlu1 %1227  ;;  %v1231_v26 = vpop.xlane.xlu0 %1230 }
 0x23f   : > { %8215 = vrsqrt.f32 %v1282_v19  ;;  %v1268_v31 = vmul.f32 0.015625, %v1228_v25  ;;  %v1269_v33 = vmul.f32 0.015625, %v1231_v26 }
 0x240   : > { %8217 = vrsqrt.f32 %v1283_v20 }
 0x241   : > { %v1284_v32 = vadd.f32 1e-06, %v1268_v31  ;;  %v1285_v37 = vadd.f32 1e-06, %v1269_v33 }
 0x242   : > { %v1234_v34 = vpop.xlane.xlu1 %1233  ;;  %v1237_v41 = vpop.xlane.xlu0 %1236 }
 0x243   : > { %8219 = vrsqrt.f32 %v1284_v32  ;;  %v1270_v35 = vmul.f32 0.015625, %v1234_v34  ;;  %v1271_v49 = vmul.f32 0.015625, %v1237_v41 }
 0x245   : > { %v8214_v23 = vpop.eup %8213  ;;  %v1286_v38 = vadd.f32 1e-06, %v1270_v35  ;;  %v1287_v59 = vadd.f32 1e-06, %v1271_v49 }
 0x246   : > { %v1240_v42 = vpop.xlane.xlu1 %1239  ;;  %v1313_v43 = vmul.f32 %v8214_v23, %v9125_v47  ;;  %v9239_v47 = vld [vmem:[%s12390_s29] ss:$0 sm:$0xff]  ;;  %v1243_v60 = vpop.xlane.xlu0 %1242 }
 0x247   : > { %8221 = vrsqrt.f32 %v1286_v38  ;;  %v1272_v44 = vmul.f32 0.015625, %v1240_v42  ;;  %v1273_v4 = vmul.f32 0.015625, %v1243_v60 }
 0x248   : > { %8223 = vrsqrt.f32 %v1285_v37  ;;  %v1335_v51 = vmul.f32 %v9230_v45, %v1313_v43 }
 0x249   : > { %v8216_v27 = vpop.eup %8215  ;;  %v1288_v53 = vadd.f32 1e-06, %v1272_v44  ;;  %v1289_v10 = vadd.f32 1e-06, %v1273_v4 }
 0x24a   : > { %v1314_v50 = vmul.f32 %v8216_v27, %v9133_v55  ;;  %v8218_v52 = vpop.eup %8217  ;;  %v1246_v54 = vpop.xlane.xlu1 %1245  ;;  %v1357_v61 = vadd.f32 %v9239_v47, %v1335_v51 }
 0x24b   : > { %v1315_v62 = vmul.f32 %v8218_v52, %v9127_v48  ;;  %8225 = vrsqrt.f32 %v1288_v53  ;;  %v1274_v63 = vmul.f32 0.015625, %v1246_v54  ;;  %v1249_v13 = vpop.xlane.xlu0 %1248 }
 0x24c   : > { %v1336_v57 = vmul.f32 %v9230_v45, %v1314_v50  ;;  %8227 = vrsqrt.f32 %v1287_v59  ;;  %v1275_v20 = vmul.f32 0.015625, %v1249_v13 }
 0x24d   : > { %v8220_v29 = vpop.eup %8219  ;;  %v1337_v5 = vmul.f32 %v9230_v45, %v1315_v62  ;;  %v1290_v7 = vadd.f32 1e-06, %v1274_v63 }
 0x24e   : > { %v1358_v55 = vadd.f32 %v9239_v47, %v1336_v57  ;;  %v1316_v39 = vmul.f32 %v8220_v29, %v9135_v56  ;;  %v1252_v8 = vpop.xlane.xlu1 %1251  ;;  %v1291_v33 = vadd.f32 1e-06, %v1275_v20 }
 0x24f   : > { %v1359_v14 = vadd.f32 %v9239_v47, %v1337_v5  ;;  %8229 = vrsqrt.f32 %v1290_v7  ;;  %v1276_v16 = vmul.f32 0.015625, %v1252_v8  ;;  %v1255_v34 = vpop.xlane.xlu0 %1254 }
 0x250   : > { %v1373_v40 = vpack.c.bf16 %v1358_v55, %v1357_v61  ;;  %v1338_v0 = vmul.f32 %v9230_v45, %v1316_v39  ;;  %8231 = vrsqrt.f32 %v1289_v10  ;;  %v1277_v43 = vmul.f32 0.015625, %v1255_v34 }
 0x251   : > { %v8222_v3 = vpop.eup %8221 }
 0x252   : > { %7222 = vmatmul.mubr.msk.bf16.vlgmr.msra.gmra.mrb[0].mxu0 %vm1119_vm2, %v1373_v40  ;;  %v8224_v6 = vpop.eup %8223  ;;  %v1360_v48 = vadd.f32 %v9239_v47, %v1338_v0  ;;  %v1318_v56 = vmul.f32 %v8222_v3, %v9145_v2  ;;  %v1292_v2 = vadd.f32 1e-06, %v1276_v16  ;;  %v1258_v31 = vpop.xlane.xlu1 %1257  ;;  %v1293_v51 = vadd.f32 1e-06, %v1277_v43 }
 0x253   : > { %1507 = vmatprep.mubr.bf16.mxu0 %v12328_v9  ;;  %v1317_v15 = vmul.f32 %v8224_v6, %v9143_v1  ;;  %v1278_v37 = vmul.f32 0.015625, %v1258_v31  ;;  %v1261_v52 = vpop.xlane.xlu0 %1260 }
 0x254   : > { %v1374_v17 = vpack.c.bf16 %v1360_v48, %v1359_v14  ;;  %v1340_v18 = vmul.f32 %v9230_v45, %v1318_v56  ;;  %8233 = vrsqrt.f32 %v1292_v2  ;;  %v1279_v61 = vmul.f32 0.015625, %v1261_v52 }
 0x255   : > { %v8226_v19 = vpop.eup %8225  ;;  %v1339_v25 = vmul.f32 %v9230_v45, %v1317_v15  ;;  %8235 = vrsqrt.f32 %v1291_v33 }
 0x256   : > { %v8228_v26 = vpop.eup %8227  ;;  %v1362_v32 = vadd.f32 %v9239_v47, %v1340_v18  ;;  %v1320_v1 = vmul.f32 %v8226_v19, %v9157_v12  ;;  %v1294_v12 = vadd.f32 1e-06, %v1278_v37  ;;  %v1264_v49 = vpop.xlane.xlu1 %1263  ;;  %v1295_v63 = vadd.f32 1e-06, %v1279_v61 }
 0x257   : > { %v1361_v35 = vadd.f32 %v9239_v47, %v1339_v25  ;;  %v1319_v23 = vmul.f32 %v8228_v26, %v9154_v11  ;;  %v1280_v57 = vmul.f32 0.015625, %v1264_v49 }
 0x258   : > { %v1342_v41 = vmul.f32 %v9230_v45, %v1320_v1  ;;  %8237 = vrsqrt.f32 %v1294_v12 }
 0x259   : > { %v1375_v38 = vpack.c.bf16 %v1362_v32, %v1361_v35  ;;  %v8230_v42 = vpop.eup %8229  ;;  %v1341_v44 = vmul.f32 %v9230_v45, %v1319_v23  ;;  %8239 = vrsqrt.f32 %v1293_v51  ;;  %v1389_v32 = vld [vmem:[%s12391_s26] sm:$0x3] }
 0x25a   : > { %7223 = vmatmul.mubr.msk.bf16.gmra.mrb[4].mxu0 %vm1119_vm2, %v1374_v17  ;;  %v8232_v27 = vpop.eup %8231  ;;  %v1364_v50 = vadd.f32 %v9239_v47, %v1342_v41  ;;  %v1322_v11 = vmul.f32 %v8230_v42, %v9169_v22  ;;  %v1296_v22 = vadd.f32 1e-06, %v1280_v57 }
 0x25b   : > { %1517 = vmatprep.mubr.bf16.mxu0 %v12328_v9  ;;  %v1363_v53 = vadd.f32 %v9239_v47, %v1341_v44  ;;  %v1321_v54 = vmul.f32 %v8232_v27, %v9166_v21 }
 0x25c   : > { %v1344_v59 = vmul.f32 %v9230_v45, %v1322_v11  ;;  %8241 = vrsqrt.f32 %v1296_v22 }
 0x25d   : > { %v1376_v29 = vpack.c.bf16 %v1364_v50, %v1363_v53  ;;  %v1343_v55 = vmul.f32 %v9230_v45, %v1321_v54  ;;  %8243 = vrsqrt.f32 %v1295_v63 }
 0x25e   : > { %v8234_v60 = vpop.eup %8233  ;;  %v1366_v39 = vadd.f32 %v9239_v47, %v1344_v59 }
 0x25f   : > { %v8236_v62 = vpop.eup %8235  ;;  %v1324_v21 = vmul.f32 %v8234_v60, %v9181_v24  ;;  %v1365_v40 = vadd.f32 %v9239_v47, %v1343_v55 }
 0x260   : > { %v1323_v0 = vmul.f32 %v8236_v62, %v9178_v36 }
 0x261   : > { %v1377_v3 = vpack.c.bf16 %v1366_v39, %v1365_v40  ;;  %v1346_v4 = vmul.f32 %v9230_v45, %v1324_v21 }
 0x262   : > { %7224 = vmatmul.mubr.msk.bf16.gmra.mrb[8].mxu0 %vm1119_vm2, %v1375_v38  ;;  %v8238_v5 = vpop.eup %8237  ;;  %v1345_v6 = vmul.f32 %v9230_v45, %v1323_v0 }
 0x263   : > { %1527 = vmatprep.mubr.bf16.mxu0 %v12328_v9  ;;  %v8240_v7 = vpop.eup %8239  ;;  %v1368_v24 = vadd.f32 %v9239_v47, %v1346_v4  ;;  %v1326_v8 = vmul.f32 %v8238_v5, %v9193_v28 }
 0x264   : > { %v1367_v48 = vadd.f32 %v9239_v47, %v1345_v6  ;;  %v1325_v36 = vmul.f32 %v8240_v7, %v9190_v46 }
 0x265   : > { %v1348_v10 = vmul.f32 %v9230_v45, %v1326_v8 }
 0x266   : > { %v1378_v56 = vpack.c.bf16 %v1368_v24, %v1367_v48  ;;  %v8242_v13 = vpop.eup %8241  ;;  %v1347_v14 = vmul.f32 %v9230_v45, %v1325_v36 }
 0x267   : > { %v8244_v15 = vpop.eup %8243  ;;  %v1370_v16 = vadd.f32 %v9239_v47, %v1348_v10  ;;  %v1328_v28 = vmul.f32 %v8242_v13, %v9205_v58  ;;  %v1391_v58 = vlaneseq }
 0x268   : > { %v1369_v17 = vadd.f32 %v9239_v47, %v1347_v14  ;;  %v1327_v46 = vmul.f32 %v8244_v15, %v9202_v30 }
 0x269   : > { %v1350_v19 = vmul.f32 %v9230_v45, %v1328_v28  ;;  %v9302_v31 = vshrl.u32 %v1391_v58, 7 }
 0x26a   : > { %7225 = vmatmul.mubr.msk.bf16.gmra.mrb[12].mxu0 %vm1119_vm2, %v1376_v29  ;;  %v1379_v18 = vpack.c.bf16 %v1370_v16, %v1369_v17  ;;  %v1349_v20 = vmul.f32 %v9230_v45, %v1327_v46 }
 0x26b   : > { %1537 = vmatprep.mubr.bf16.mxu0 %v12328_v9  ;;  %v1372_v25 = vadd.f32 %v9239_v47, %v1350_v19  ;;  %12392 = vst [vmem:[#allocation8_spill] sm:$0xff] %v9302_v31  ;;  %v12327_v30 = vsub.s32 0, %v9302_v31  ;;  %v12326_v1 = vsub.s32 1, %v9302_v31 }
 0x26c   : > { %v1371_v26 = vadd.f32 %v9239_v47, %v1349_v20 }
 0x26d   : > { %v9309_v45 = vrot.slane %v1389_v32, %v12327_v30  ;;  %v9313_v47 = vrot.slane %v1389_v32, %v12326_v1 }
 0x26e   : > { %v1380_v2 = vpack.c.bf16 %v1372_v25, %v1371_v26 }
 0x272   : > { %7226 = vmatmul.mubr.msk.bf16.gmra.mrb[16].mxu0 %vm1119_vm2, %v1377_v3 }
 0x273   : > { %1547 = vmatprep.mubr.bf16.mxu0 %v12328_v9 }
 0x27a   : > { %7227 = vmatmul.mubr.msk.bf16.gmra.mrb[20].mxu0 %vm1119_vm2, %v1378_v56 }
 0x27b   : > { %1557 = vmatprep.mubr.bf16.mxu0 %v12328_v9 }
 0x282   : > { %7228 = vmatmul.mubr.msk.bf16.gmra.mrb[24].mxu0 %vm1119_vm2, %v1379_v18 }
 0x283   : > { %1567 = vmatprep.mubr.bf16.mxu0 %v12328_v9 }
 0x28a   : > { %7229 = vmatmul.mubr.msk.bf16.gmra.mrb[28].mxu0 %vm1119_vm2, %v1380_v2 }
 0x325   : > { %v1499_v33 = vpop.f32.mrb[0].mxu0 }
 0x326   : > { %v1500_v34 = vadd.f32 %v1499_v33, %v9309_v45  ;;  %v1501_v35 = vpop.f32.mrb[1].mxu0 }
 0x327   : > { %v1503_v23 = vpop.f32.mrb[2].mxu0  ;;  %v1502_v41 = vadd.f32 %v1501_v35, %v9313_v47 }
 0x328   : > { %v1504_v37 = vadd.f32 %v1503_v23, %v9309_v45  ;;  %v1505_v38 = vpop.f32.mrb[3].mxu0  ;;  %v1581_v43 = vmul.f32 0.25, %v1500_v34 }
 0x329   : > { %v1506_v42 = vadd.f32 %v1505_v38, %v9313_v47 }
 0x32a   : > { %v1582_v44 = vmul.f32 0.25, %v1504_v37  ;;  %v9319_v27 = vpack.c.bf16 %v1504_v37, %v1500_v34 }
 0x32b   : > { %v9321_v12 = vpack.c.bf16 %v1506_v42, %v1502_v41 }
 0x32c   : > { %v9323_v49 = vpack.c.bf16 %v1582_v44, %v1581_v43  ;;  %1623 = vrot.lane.b32.xlu1 %v9319_v27, %s8738_s24 }
 0x32d   : > { %v1509_v50 = vpop.f32.mrb[4].mxu0 }
 0x32e   : > { %v1510_v11 = vadd.f32 %v1509_v50, %v9309_v45  ;;  %v1511_v51 = vpop.f32.mrb[5].mxu0  ;;  %7625 = vmatprep.mubr.msk.bf16.mxu0 %vm1627_vm3, %v9323_v49 }
 0x32f   : > { %v1513_v52 = vpop.f32.mrb[6].mxu0  ;;  %v1512_v57 = vadd.f32 %v1511_v51, %v9313_v47 }
 0x330   : > { %v1514_v53 = vadd.f32 %v1513_v52, %v9309_v45  ;;  %v1515_v54 = vpop.f32.mrb[7].mxu0  ;;  %v1583_v59 = vmul.f32 0.25, %v1510_v11 }
 0x331   : > { %v1516_v29 = vadd.f32 %v1515_v54, %v9313_v47 }
 0x332   : > { %v1584_v60 = vmul.f32 0.25, %v1514_v53  ;;  %v9333_v61 = vpack.c.bf16 %v1514_v53, %v1510_v11 }
 0x333   : > { %v9335_v55 = vpack.c.bf16 %v1516_v29, %v1512_v57 }
 0x334   : > { %v9337_v62 = vpack.c.bf16 %v1584_v60, %v1583_v59 }
 0x335   : > { %v1519_v22 = vpop.f32.mrb[8].mxu0 }
 0x336   : > { %v1520_v39 = vadd.f32 %v1519_v22, %v9309_v45  ;;  %v1521_v21 = vpop.f32.mrb[9].mxu0 }
 0x337   : > { %v1523_v63 = vpop.f32.mrb[10].mxu0  ;;  %v1522_v3 = vadd.f32 %v1521_v21, %v9313_v47 }
 0x338   : > { %v1524_v40 = vadd.f32 %v1523_v63, %v9309_v45  ;;  %v1525_v0 = vpop.f32.mrb[11].mxu0  ;;  %v1585_v5 = vmul.f32 0.25, %v1520_v39 }
 0x339   : > { %v1526_v4 = vadd.f32 %v1525_v0, %v9313_v47 }
 0x33a   : > { %v1586_v6 = vmul.f32 0.25, %v1524_v40  ;;  %v9343_v7 = vpack.c.bf16 %v1524_v40, %v1520_v39 }
 0x33b   : > { %v9345_v24 = vpack.c.bf16 %v1526_v4, %v1522_v3 }
 0x33c   : > { %v9347_v8 = vpack.c.bf16 %v1586_v6, %v1585_v5  ;;  %1691 = vrot.lane.b32.xlu0 %v9343_v7, %s8738_s24 }
 0x33d   : > { %v1529_v48 = vpop.f32.mrb[12].mxu0 }
 0x33e   : > { %v1530_v36 = vadd.f32 %v1529_v48, %v9309_v45  ;;  %v1531_v56 = vpop.f32.mrb[13].mxu0  ;;  %7633 = vmatprep.mubr.msk.bf16.mxu1 %vm1627_vm3, %v9347_v8 }
 0x33f   : > { %v1533_v10 = vpop.f32.mrb[14].mxu0  ;;  %v1532_v15 = vadd.f32 %v1531_v56, %v9313_v47 }
 0x340   : > { %v1534_v13 = vadd.f32 %v1533_v10, %v9309_v45  ;;  %v1535_v14 = vpop.f32.mrb[15].mxu0  ;;  %v1587_v28 = vmul.f32 0.25, %v1530_v36 }
 0x341   : > { %v1536_v16 = vadd.f32 %v1535_v14, %v9313_v47 }
 0x342   : > { %v1588_v17 = vmul.f32 0.25, %v1534_v13  ;;  %v9357_v46 = vpack.c.bf16 %v1534_v13, %v1530_v36 }
 0x343   : > { %v9359_v18 = vpack.c.bf16 %v1536_v16, %v1532_v15 }
 0x344   : > { %v9361_v19 = vpack.c.bf16 %v1588_v17, %v1587_v28  ;;  %1693 = vrot.lane.b32.xlu1 %v9357_v46, %s8738_s24 }
 0x345   : > { %v1539_v20 = vpop.f32.mrb[16].mxu0 }
 0x346   : > { %v1540_v25 = vadd.f32 %v1539_v20, %v9309_v45  ;;  %v1541_v26 = vpop.f32.mrb[17].mxu0 }
 0x347   : > { %v1543_v2 = vpop.f32.mrb[18].mxu0  ;;  %v1542_v34 = vadd.f32 %v1541_v26, %v9313_v47 }
 0x348   : > { %v1544_v32 = vadd.f32 %v1543_v2, %v9309_v45  ;;  %1625 = vrot.lane.b32.xlu1 %v9333_v61, %s8738_s24  ;;  %v1545_v33 = vpop.f32.mrb[19].mxu0  ;;  %v1589_v23 = vmul.f32 0.25, %v1540_v25 }
 0x349   : > { %v1546_v35 = vadd.f32 %v1545_v33, %v9313_v47 }
 0x34a   : > { %v1590_v37 = vmul.f32 0.25, %v1544_v32  ;;  %v9371_v38 = vpack.c.bf16 %v1544_v32, %v1540_v25 }
 0x34b   : > { %v9373_v41 = vpack.c.bf16 %v1546_v35, %v1542_v34 }
 0x34c   : > { %v9375_v42 = vpack.c.bf16 %v1590_v37, %v1589_v23  ;;  %1758 = vrot.lane.b32.xlu0 %v9371_v38, %s8738_s24 }
 0x34d   : > { %v1549_v43 = vpop.f32.mrb[20].mxu0 }
 0x34e   : > { %v1550_v44 = vadd.f32 %v1549_v43, %v9309_v45  ;;  %v1551_v50 = vpop.f32.mrb[21].mxu0 }
 0x34f   : > { %v1552_v11 = vadd.f32 %v1551_v50, %v9313_v47  ;;  %v1553_v51 = vpop.f32.mrb[22].mxu0 }
 0x350   : > { %v1554_v52 = vadd.f32 %v1553_v51, %v9309_v45  ;;  %v1555_v53 = vpop.f32.mrb[23].mxu0  ;;  %v1591_v57 = vmul.f32 0.25, %v1550_v44 }
 0x351   : > { %v1556_v54 = vadd.f32 %v1555_v53, %v9313_v47 }
 0x352   : > { %v1592_v29 = vmul.f32 0.25, %v1554_v52  ;;  %v9383_v59 = vpack.c.bf16 %v1554_v52, %v1550_v44 }
 0x353   : > { %v9385_v60 = vpack.c.bf16 %v1556_v54, %v1552_v11 }
 0x354   : > { %v9387_v22 = vpack.c.bf16 %v1592_v29, %v1591_v57  ;;  %1760 = vrot.lane.b32.xlu1 %v9383_v59, %s8738_s24 }
 0x355   : > { %v1559_v39 = vpop.f32.mrb[24].mxu0 }
 0x356   : > { %v1560_v21 = vadd.f32 %v1559_v39, %v9309_v45  ;;  %v1561_v63 = vpop.f32.mrb[25].mxu0 }
 0x357   : > { %v1563_v40 = vpop.f32.mrb[26].mxu0  ;;  %v1562_v4 = vadd.f32 %v1561_v63, %v9313_v47 }
 0x358   : > { %v1564_v0 = vadd.f32 %v1563_v40, %v9309_v45  ;;  %v1565_v3 = vpop.f32.mrb[27].mxu0  ;;  %v1593_v6 = vmul.f32 0.25, %v1560_v21 }
 0x359   : > { %v1566_v5 = vadd.f32 %v1565_v3, %v9313_v47 }
 0x35a   : > { %v1594_v48 = vmul.f32 0.25, %v1564_v0  ;;  %v9395_v36 = vpack.c.bf16 %v1564_v0, %v1560_v21  ;;  %v9454_v21 = vand.u32 127, %v1391_v58 }
 0x35b   : > { %v9397_v56 = vpack.c.bf16 %v1566_v5, %v1562_v4 }
 0x35c   : > { %v9399_v10 = vpack.c.bf16 %v1594_v48, %v1593_v6  ;;  %1825 = vrot.lane.b32.xlu0 %v9395_v36, %s8738_s24  ;;  %12393 = vst [vmem:[#allocation9_spill] sm:$0xff] %v9454_v21  ;;  %vm1580_vm4 = vcmp.lt.s32.totalorder %v9454_v21, 17 }
 0x35d   : > { %v1569_v13 = vpop.f32.mrb[28].mxu0 }
 0x35e   : > { %v1570_v14 = vadd.f32 %v1569_v13, %v9309_v45  ;;  %v1571_v15 = vpop.f32.mrb[29].mxu0 }
 0x35f   : > { %v1572_v16 = vadd.f32 %v1571_v15, %v9313_v47  ;;  %v1573_v28 = vpop.f32.mrb[30].mxu0 }
 0x360   : > { %v1574_v17 = vadd.f32 %v1573_v28, %v9309_v45  ;;  %v1575_v20 = vpop.f32.mrb[31].mxu0  ;;  %v1595_v26 = vmul.f32 0.25, %v1570_v14 }
 0x361   : > { %v1576_v25 = vadd.f32 %v1575_v20, %v9313_v47 }
 0x362   : > { %v1596_v2 = vmul.f32 0.25, %v1574_v17  ;;  %v9407_v32 = vpack.c.bf16 %v1574_v17, %v1570_v14 }
 0x363   : > { %v9409_v33 = vpack.c.bf16 %v1576_v25, %v1572_v16 }
 0x364   : > { %v9411_v34 = vpack.c.bf16 %v1596_v2, %v1595_v26  ;;  %1827 = vrot.lane.b32.xlu1 %v9407_v32, %s8738_s24  ;;  %s12456_s24 = scalar_lea.vmem %s12306_s9, %s8881_s3 }
 0x39e   : > { %v1624_v35 = vpop.permute.xlu1 %1623 }
 0x39f   : > { %7978 = vmatprep.subr.msk.bf16.mxu0 %vm1627_vm3, %v1624_v35  ;;  %v1635_v23 = vsel %vm1627_vm3, %v1624_v35, 0 }
 0x3a0   : > { %7622 = vmatpush3.bf16.xpose.msra.mxu0 %v1635_v23 }
 0x3ae   : > { %v1692_v45 = vpop.permute.xlu0 %1691 }
 0x3af   : > { %7980 = vmatprep.subr.msk.bf16.mxu1 %vm1627_vm3, %v1692_v45  ;;  %v1702_v47 = vsel %vm1627_vm3, %v1692_v45, 0 }
 0x3b0   : > { %7630 = vmatpush3.bf16.xpose.msra.mxu1 %v1702_v47 }
 0x3b6   : > { %v1694_v37 = vpop.permute.xlu1 %1693 }
 0x3b7   : > { %7981 = vmatprep.subr.msk.bf16.mxu1 %vm1627_vm3, %v1694_v37  ;;  %v1705_v43 = vsel %vm1627_vm3, %v1694_v37, 0 }
 0x3b8   : > { %7632 = vmatpush3.bf16.xpose.msra.mxu1 %v1705_v43 }
 0x3ba   : > { %v1626_v44 = vpop.permute.xlu1 %1625 }
 0x3bb   : > { %7979 = vmatprep.subr.msk.bf16.mxu0 %vm1627_vm3, %v1626_v44  ;;  %v1638_v50 = vsel %vm1627_vm3, %v1626_v44, 0 }
 0x3bc   : > { %7624 = vmatpush3.bf16.xpose.msra.mxu0 %v1638_v50 }
 0x3bd   : > { %7661 = vmatprep.subr.bf16.mxu0 %v9345_v24 }
 0x3be   : > { %v1759_v11 = vpop.permute.xlu0 %1758 }
 0x3bf   : > { %7634 = vmatmul.mubr.msk.bf16.vlgmr.msra.gmra.mrb[0].mxu1 %vm1627_vm3, %v9361_v19  ;;  %7982 = vmatprep.subr.msk.bf16.mxu1 %vm1627_vm3, %v1759_v11  ;;  %v1769_v51 = vsel %vm1627_vm3, %v1759_v11, 0 }
 0x3c0   : > { %7638 = vmatpush3.bf16.xpose.msra.mxu1 %v1769_v51  ;;  %7641 = vmatprep.mubr.msk.bf16.mxu1 %vm1627_vm3, %v9375_v42 }
 0x3c3   : > { %7626 = vmatmul.mubr.msk.bf16.vlgmr.msra.gmra.mrb[32].mxu0 %vm1627_vm3, %v9337_v62 }
 0x3c4   : > { %7662 = vmatpush3.bf16.msra.mxu0 %v9345_v24 }
 0x3c5   : > { %7663 = vmatprep.subr.bf16.mxu0 %v9359_v18 }
 0x3c6   : > { %v1761_v52 = vpop.permute.xlu1 %1760 }
 0x3c7   : > { %7983 = vmatprep.subr.msk.bf16.mxu1 %vm1627_vm3, %v1761_v52  ;;  %v1772_v53 = vsel %vm1627_vm3, %v1761_v52, 0 }
 0x3c8   : > { %7640 = vmatpush3.bf16.xpose.msra.mxu1 %v1772_v53  ;;  %7664 = vmatpush3.bf16.msra.mxu0 %v9359_v18 }
 0x3c9   : > { %7677 = vmatprep.subr.bf16.mxu0 %v9397_v56 }
 0x3ce   : > { %v1826_v54 = vpop.permute.xlu0 %1825 }
 0x3cf   : > { %7642 = vmatmul.mubr.msk.bf16.vlgmr.msra.gmra.mrb[4].mxu1 %vm1627_vm3, %v9387_v22  ;;  %7984 = vmatprep.subr.msk.bf16.mxu1 %vm1627_vm3, %v1826_v54  ;;  %v1836_v57 = vsel %vm1627_vm3, %v1826_v54, 0 }
 0x3d0   : > { %7646 = vmatpush3.bf16.xpose.msra.mxu1 %v1836_v57  ;;  %7649 = vmatprep.mubr.msk.bf16.mxu1 %vm1627_vm3, %v9399_v10 }
 0x3d6   : > { %v1828_v29 = vpop.permute.xlu1 %1827 }
 0x3d7   : > { %7985 = vmatprep.subr.msk.bf16.mxu1 %vm1627_vm3, %v1828_v29  ;;  %v1839_v39 = vsel %vm1627_vm3, %v1828_v29, 0 }
 0x3d8   : > { %7648 = vmatpush3.bf16.xpose.msra.mxu1 %v1839_v39 }
 0x3d9   : > { %7653 = vmatprep.subr.bf16.mxu1 %v9321_v12 }
 0x3df   : > { %7650 = vmatmul.mubr.msk.bf16.vlgmr.msra.gmra.mrb[8].mxu1 %vm1627_vm3, %v9411_v34 }
 0x3e0   : > { %7654 = vmatpush3.bf16.msra.mxu1 %v9321_v12 }
 0x3e1   : > { %7655 = vmatprep.subr.bf16.mxu1 %v9335_v55 }
 0x3e4   : > { %7656 = vmatpush3.bf16.msra.mxu1 %v9335_v55 }
 0x3e5   : > { %7669 = vmatprep.subr.bf16.mxu1 %v9373_v41 }
 0x492   : > { %v7635_v63 = vpop.f32.mrb[0].mxu1 }
 0x493   : > { %v1741_v40 = vpop.f32.mrb[1].mxu1  ;;  %v1896_v39 = vsel %vm1580_vm4, %v7635_v63, -1e+30 }
 0x494   : > { %v7636_v0 = vpop.f32.mrb[2].mxu1  ;;  %v9487_v35 = vsel %vm1580_vm4, %v1741_v40, -1e+30  ;;  %v1925_v40 = vsel %vm1906_vm5, %v1896_v39, -inf }
 0x495   : > { %v1744_v3 = vpop.f32.mrb[3].mxu1  ;;  %v9482_v26 = vsel %vm1580_vm4, %v7636_v0, -1e+30  ;;  %v1919_v43 = vsel %vm1906_vm5, %v9487_v35, -inf }
 0x496   : > { %v7627_v4 = vpop.f32.mrb[32].mxu0  ;;  %v9472_v28 = vsel %vm1580_vm4, %v1744_v3, -1e+30  ;;  %v1928_v47 = vsel %vm1906_vm5, %v9482_v26, -inf }
 0x497   : > { %v1892_v5 = vsel %vm1580_vm4, %v7627_v4, -1e+30  ;;  %v1674_v6 = vpop.f32.mrb[33].mxu0  ;;  %v1922_v25 = vsel %vm1906_vm5, %v9472_v28, -inf }
 0x498   : > { %v7628_v48 = vpop.f32.mrb[34].mxu0  ;;  %v1913_v13 = vsel %vm1906_vm5, %v1892_v5, -inf  ;;  %v9462_v14 = vsel %vm1580_vm4, %v1674_v6, -1e+30 }
 0x499   : > { %1914 = vmax.xlane.f32.xlu0 %v1913_v13  ;;  %v1677_v58 = vpop.f32.mrb[35].mxu0  ;;  %v1907_v17 = vsel %vm1906_vm5, %v9462_v14, -inf  ;;  %v1893_v20 = vsel %vm1580_vm4, %v7628_v48, -1e+30 }
 0x49a   : > { %v9466_v15 = vsel %vm1580_vm4, %v1677_v58, -1e+30  ;;  %v1916_v2 = vsel %vm1906_vm5, %v1893_v20, -inf }
 0x49b   : > { %v1910_v16 = vsel %vm1906_vm5, %v9466_v15, -inf }
 0x49c   : > { %1911 = vmax.xlane.f32.xlu1 %v1910_v16 }
 0x49d   : > { %1908 = vmax.xlane.f32.xlu0 %v1907_v17 }
 0x4a0   : > { %1923 = vmax.xlane.f32.xlu1 %v1922_v25 }
 0x4a1   : > { %1917 = vmax.xlane.f32.xlu0 %v1916_v2 }
 0x4a2   : > { %v7643_v23 = vpop.f32.mrb[4].mxu1 }
 0x4a3   : > { %v1808_v45 = vpop.f32.mrb[5].mxu1  ;;  %v9495_v44 = vsel %vm1580_vm4, %v7643_v23, -1e+30 }
 0x4a4   : > { %1929 = vmax.xlane.f32.xlu1 %v1928_v47  ;;  %v7644_v37 = vpop.f32.mrb[6].mxu1  ;;  %v1937_v53 = vsel %vm1906_vm5, %v9495_v44, -inf  ;;  %v9511_v54 = vsel %vm1580_vm4, %v1808_v45, -1e+30 }
 0x4a5   : > { %v9499_v50 = vsel %vm1580_vm4, %v7644_v37, -1e+30  ;;  %1920 = vmax.xlane.f32.xlu0 %v1919_v43  ;;  %v1811_v11 = vpop.f32.mrb[7].mxu1  ;;  %v1931_v29 = vsel %vm1906_vm5, %v9511_v54, -inf }
 0x4a6   : > { %v1940_v51 = vsel %vm1906_vm5, %v9499_v50, -inf  ;;  %v9505_v52 = vsel %vm1580_vm4, %v1811_v11, -1e+30 }
 0x4a7   : > { %v1934_v57 = vsel %vm1906_vm5, %v9505_v52, -inf }
 0x4a8   : > { %1941 = vmax.xlane.f32.xlu1 %v1940_v51 }
 0x4a9   : > { %1938 = vmax.xlane.f32.xlu0 %v1937_v53 }
 0x4ac   : > { %1935 = vmax.xlane.f32.xlu1 %v1934_v57 }
 0x4ad   : > { %1932 = vmax.xlane.f32.xlu0 %v1931_v29 }
 0x4b1   : > { %1926 = vmax.xlane.f32.xlu0 %v1925_v40 }
 0x4b2   : > { %v7651_v0 = vpop.f32.mrb[8].mxu1 }
 0x4b3   : > { %v1875_v3 = vpop.f32.mrb[9].mxu1  ;;  %v9532_v63 = vsel %vm1580_vm4, %v7651_v0, -1e+30 }
 0x4b4   : > { %v9522_v4 = vsel %vm1580_vm4, %v1875_v3, -1e+30  ;;  %v7652_v6 = vpop.f32.mrb[10].mxu1  ;;  %v1949_v25 = vsel %vm1906_vm5, %v9532_v63, -inf }
 0x4b5   : > { %v9526_v48 = vsel %vm1580_vm4, %v7652_v6, -1e+30  ;;  %v1878_v13 = vpop.f32.mrb[11].mxu1  ;;  %v1943_v58 = vsel %vm1906_vm5, %v9522_v4, -inf }
 0x4b6   : > { %1944 = vmax.xlane.f32.xlu0 %v1943_v58  ;;  %v1952_v16 = vsel %vm1906_vm5, %v9526_v48, -inf  ;;  %v9538_v17 = vsel %vm1580_vm4, %v1878_v13, -1e+30 }
 0x4b7   : > { %1953 = vmax.xlane.f32.xlu1 %v1952_v16  ;;  %v1946_v2 = vsel %vm1906_vm5, %v9538_v17, -inf }
 0x4ba   : > { %1950 = vmax.xlane.f32.xlu0 %v1949_v25 }
 0x4bb   : > { %1947 = vmax.xlane.f32.xlu1 %v1946_v2 }
 0x526   : > { %v1915_v23 = vpop.xlane.xlu0 %1914 }
 0x527   : > { %v1957_v45 = vsub.f32 %v1892_v5, %v1915_v23 }
 0x529   : > { %v1975_v47 = vmul.f32 1.442695, %v1957_v45  ;;  %v1912_v37 = vpop.xlane.xlu1 %1911 }
 0x52a   : > { %v1909_v43 = vpop.xlane.xlu0 %1908  ;;  %v1956_v51 = vsub.f32 %v9466_v15, %v1912_v37 }
 0x52b   : > { %8245 = vpow2.f32 %v1975_v47  ;;  %v1955_v11 = vsub.f32 %v9462_v14, %v1909_v43 }
 0x52c   : > { %v1973_v0 = vmul.f32 1.442695, %v1956_v51 }
 0x52d   : > { %v1971_v53 = vmul.f32 1.442695, %v1955_v11  ;;  %v1924_v57 = vpop.xlane.xlu1 %1923 }
 0x52e   : > { %v1918_v29 = vpop.xlane.xlu0 %1917  ;;  %v1960_v16 = vsub.f32 %v9472_v28, %v1924_v57 }
 0x52f   : > { %8247 = vpow2.f32 %v1971_v53  ;;  %v1958_v40 = vsub.f32 %v1893_v20, %v1918_v29 }
 0x530   : > { %v1981_v20 = vmul.f32 1.442695, %v1960_v16 }
 0x531   : > { %v1977_v3 = vmul.f32 1.442695, %v1958_v40  ;;  %v1930_v6 = vpop.xlane.xlu1 %1929 }
 0x532   : > { %v1962_v13 = vsub.f32 %v9482_v26, %v1930_v6  ;;  %v1921_v58 = vpop.xlane.xlu0 %1920 }
 0x533   : > { %8249 = vpow2.f32 %v1977_v3  ;;  %v1959_v28 = vsub.f32 %v9487_v35, %v1921_v58 }
 0x534   : > { %8251 = vpow2.f32 %v1973_v0  ;;  %v1985_v14 = vmul.f32 1.442695, %v1962_v13 }
 0x535   : > { %v9547_v5 = vpop.eup %8245  ;;  %v1979_v51 = vmul.f32 1.442695, %v1959_v28 }
 0x536   : > { %v1939_v25 = vpop.xlane.xlu0 %1938  ;;  %v2009_v15 = vsel %vm1906_vm5, %v9547_v5, 0.0  ;;  %8253 = vpow2.f32 %v1985_v14 }
 0x537   : > { %2010 = vadd.xlane.f32.xlu0 %v2009_v15  ;;  %8255 = vpow2.f32 %v1981_v20  ;;  %v1965_v53 = vsub.f32 %v9495_v44, %v1939_v25 }
 0x539   : > { %v9552_v2 = vpop.eup %8247  ;;  %v1991_v35 = vmul.f32 1.442695, %v1965_v53 }
 0x53a   : > { %v1933_v23 = vpop.xlane.xlu0 %1932  ;;  %v2003_v26 = vsel %vm1906_vm5, %v9552_v2, 0.0 }
 0x53b   : > { %2004 = vadd.xlane.f32.xlu0 %v2003_v26  ;;  %v1963_v0 = vsub.f32 %v9511_v54, %v1933_v23  ;;  %v1942_v23 = vpop.xlane.xlu1 %1941 }
 0x53c   : > { %v1966_v26 = vsub.f32 %v9499_v50, %v1942_v23 }
 0x53d   : > { %v9556_v45 = vpop.eup %8249  ;;  %v1987_v44 = vmul.f32 1.442695, %v1963_v0 }
 0x53e   : > { %v1927_v47 = vpop.xlane.xlu0 %1926  ;;  %v2012_v37 = vsel %vm1906_vm5, %v9556_v45, 0.0  ;;  %v9561_v43 = vpop.eup %8251 }
 0x53f   : > { %v1961_v11 = vsub.f32 %v1896_v39, %v1927_v47  ;;  %2013 = vadd.xlane.f32.xlu1 %v2012_v37  ;;  %v2006_v29 = vsel %vm1906_vm5, %v9561_v43, 0.0  ;;  %v1936_v28 = vpop.xlane.xlu1 %1935  ;;  %v1993_v37 = vmul.f32 1.442695, %v1966_v26 }
 0x540   : > { %v9566_v40 = vpop.eup %8253 }
 0x541   : > { %v1983_v57 = vmul.f32 1.442695, %v1961_v11  ;;  %v2024_v3 = vsel %vm1906_vm5, %v9566_v40, 0.0  ;;  %v9571_v39 = vpop.eup %8255  ;;  %v1964_v11 = vsub.f32 %v9505_v52, %v1936_v28 }
 0x542   : > { %v2018_v6 = vsel %vm1906_vm5, %v9571_v39, 0.0 }
 0x543   : > { %8257 = vpow2.f32 %v1983_v57  ;;  %2007 = vadd.xlane.f32.xlu1 %v2006_v29  ;;  %v1945_v47 = vpop.xlane.xlu0 %1944 }
 0x544   : > { %8259 = vpow2.f32 %v1979_v51  ;;  %v1989_v51 = vmul.f32 1.442695, %v1964_v11  ;;  %v1967_v29 = vsub.f32 %v9522_v4, %v1945_v47 }
 0x545   : > { %8261 = vpow2.f32 %v1991_v35 }
 0x546   : > { %8263 = vpow2.f32 %v1987_v44  ;;  %v1995_v50 = vmul.f32 1.442695, %v1967_v29 }
 0x547   : > { %2025 = vadd.xlane.f32.xlu1 %v2024_v3  ;;  %8265 = vpow2.f32 %v1993_v37  ;;  %v1951_v53 = vpop.xlane.xlu0 %1950 }
 0x548   : > { %8267 = vpow2.f32 %v1989_v51  ;;  %v1969_v57 = vsub.f32 %v9532_v63, %v1951_v53 }
 0x54a   : > { %v1999_v35 = vmul.f32 1.442695, %v1969_v57 }
 0x54b   : > { %2019 = vadd.xlane.f32.xlu1 %v2018_v6 }
 0x54c   : > { %8269 = vpow2.f32 %v1999_v35 }
 0x54d   : > { %v9575_v13 = vpop.eup %8257  ;;  %8271 = vpow2.f32 %v1995_v50 }
 0x54e   : > { %v2021_v58 = vsel %vm1906_vm5, %v9575_v13, 0.0  ;;  %v9579_v16 = vpop.eup %8259 }
 0x54f   : > { %2022 = vadd.xlane.f32.xlu0 %v2021_v58  ;;  %v2015_v54 = vsel %vm1906_vm5, %v9579_v16, 0.0  ;;  %v9583_v14 = vpop.eup %8261 }
 0x550   : > { %v2033_v25 = vsel %vm1906_vm5, %v9583_v14, 0.0  ;;  %v9587_v15 = vpop.eup %8263 }
 0x551   : > { %v2027_v20 = vsel %vm1906_vm5, %v9587_v15, 0.0  ;;  %v9601_v0 = vpop.eup %8265 }
 0x552   : > { %v2036_v3 = vsel %vm1906_vm5, %v9601_v0, 0.0  ;;  %v9605_v44 = vpop.eup %8267 }
 0x553   : > { %2016 = vadd.xlane.f32.xlu0 %v2015_v54  ;;  %v2030_v52 = vsel %vm1906_vm5, %v9605_v44, 0.0  ;;  %v1954_v54 = vpop.xlane.xlu1 %1953 }
 0x556   : > { %v9609_v6 = vpop.eup %8269 }
 0x557   : > { %2034 = vadd.xlane.f32.xlu0 %v2033_v25  ;;  %v2045_v4 = vsel %vm1906_vm5, %v9609_v6, 0.0  ;;  %v9613_v63 = vpop.eup %8271  ;;  %v1970_v25 = vsub.f32 %v9526_v48, %v1954_v54 }
 0x558   : > { %v2039_v58 = vsel %vm1906_vm5, %v9613_v63, 0.0 }
 0x559   : > { %v2001_v23 = vmul.f32 1.442695, %v1970_v25 }
 0x55b   : > { %2028 = vadd.xlane.f32.xlu0 %v2027_v20  ;;  %v1948_v20 = vpop.xlane.xlu1 %1947  ;;  %8273 = vpow2.f32 %v2001_v23 }
 0x55c   : > { %2319 = vrot.lane.b32.xlu1 %v9333_v61, %s8739_s30  ;;  %v1968_v26 = vsub.f32 %v9538_v17, %v1948_v20 }
 0x55e   : > { %v1997_v28 = vmul.f32 1.442695, %v1968_v26 }
 0x560   : > { %2313 = vrot.lane.b32.xlu1 %v9323_v49, %s8740_s18  ;;  %8275 = vpow2.f32 %v1997_v28 }
 0x565   : > { %v9629_v48 = vpop.eup %8273 }
 0x566   : > { %v2048_v17 = vsel %vm1906_vm5, %v9629_v48, 0.0 }
 0x56a   : > { %v9635_v47 = vpop.eup %8275 }
 0x56b   : > { %v2042_v37 = vsel %vm1906_vm5, %v9635_v47, 0.0 }
 0x571   : > { %2317 = vrot.lane.b32.xlu0 %v9319_v27, %s8739_s30 }
 0x584   : > { %2037 = vadd.xlane.f32.xlu1 %v2036_v3 }
 0x588   : > { %2031 = vadd.xlane.f32.xlu1 %v2030_v52 }
 0x590   : > { %2046 = vadd.xlane.f32.xlu0 %v2045_v4 }
 0x594   : > { %2040 = vadd.xlane.f32.xlu0 %v2039_v58 }
 0x599   : > { %2388 = vrot.lane.b32.xlu1 %v9343_v7, %s8739_s30 }
 0x5aa   : > { %2459 = vrot.lane.b32.xlu0 %v9371_v38, %s8739_s30 }
 0x5ae   : > { %2390 = vrot.lane.b32.xlu0 %v9357_v46, %s8739_s30 }
 0x5b2   : > { %2455 = vrot.lane.b32.xlu0 %v9375_v42, %s8740_s18 }
 0x5b6   : > { %2457 = vrot.lane.b32.xlu0 %v9387_v22, %s8740_s18 }
 0x5ba   : > { %2386 = vrot.lane.b32.xlu0 %v9361_v19, %s8740_s18 }
 0x5bd   : > { %2049 = vadd.xlane.f32.xlu1 %v2048_v17 }
 0x5be   : > { %2526 = vrot.lane.b32.xlu0 %v9399_v10, %s8740_s18 }
 0x5c1   : > { %2043 = vadd.xlane.f32.xlu1 %v2042_v37 }
 0x5c2   : > { %2797 = vrot.lane.b32.xlu0 %v9321_v12, %s8740_s18 }
 0x5c4   : > { %v2011_v11 = vpop.xlane.xlu0 %2010 }
 0x5c6   : > { %2923 = vrot.lane.b32.xlu0 %v9373_v41, %s8740_s18 }
 0x5c8   : > { %v2005_v51 = vpop.xlane.xlu0 %2004 }
 0x5ca   : > { %2860 = vrot.lane.b32.xlu0 %v9345_v24, %s8740_s18 }
 0x5cc   : > { %v2014_v53 = vpop.xlane.xlu1 %2013 }
 0x5cd   : > { %8277 = vrcp.f32 %v2014_v53 }
 0x5ce   : > { %3051 = vrot.lane.b32.xlu0 %v9319_v27, %s8741_s27  ;;  %8279 = vrcp.f32 %v2005_v51 }
 0x5cf   : > { %8281 = vrcp.f32 %v2011_v11 }
 0x5d0   : > { %v2008_v57 = vpop.xlane.xlu1 %2007 }
 0x5d1   : > { %8283 = vrcp.f32 %v2008_v57 }
 0x5d2   : > { %2315 = vrot.lane.b32.xlu1 %v9337_v62, %s8740_s18 }
 0x5d4   : > { %v2026_v29 = vpop.xlane.xlu1 %2025 }
 0x5d6   : > { %2461 = vrot.lane.b32.xlu1 %v9383_v59, %s8739_s30 }
 0x5d7   : > { %v8278_v35 = vpop.eup %8277 }
 0x5d8   : > { %v8280_v50 = vpop.eup %8279  ;;  %v2058_v4 = vmul.f32 %v8278_v35, %v9556_v45  ;;  %v2020_v58 = vpop.xlane.xlu1 %2019 }
 0x5d9   : > { %v8282_v3 = vpop.eup %8281  ;;  %v2052_v25 = vmul.f32 %v8280_v50, %v9552_v2 }
 0x5da   : > { %2384 = vrot.lane.b32.xlu1 %v9347_v8, %s8740_s18  ;;  %v2056_v23 = vmul.f32 %v8282_v3, %v9547_v5 }
 0x5db   : > { %v8284_v52 = vpop.eup %8283 }
 0x5dc   : > { %v2023_v54 = vpop.xlane.xlu0 %2022  ;;  %v2054_v20 = vmul.f32 %v8284_v52, %v9561_v43  ;;  %v2084_v28 = vpack.c.bf16 %v2058_v4, %v2056_v23 }
 0x5dd   : > { %8285 = vrcp.f32 %v2023_v54 }
 0x5de   : > { %2530 = vrot.lane.b32.xlu1 %v9395_v36, %s8739_s30  ;;  %v2083_v26 = vpack.c.bf16 %v2054_v20, %v2052_v25  ;;  %8287 = vrcp.f32 %v2020_v58 }
 0x5df   : > { %8289 = vrcp.f32 %v2026_v29 }
 0x5e0   : > { %7657 = vmatprep.mubr.msk.bf16.mxu1 %vm1906_vm5, %v2083_v26  ;;  %v2017_v17 = vpop.xlane.xlu0 %2016 }
 0x5e1   : > { %8291 = vrcp.f32 %v2017_v17  ;;  %7658 = vmatmul.mubr.msk.bf16.vlgmr.msra.gmra.mrb[12].mxu1 %vm1906_vm5, %v2084_v28 }
 0x5e2   : > { %7670 = vmatpush3.bf16.msra.mxu1 %v9373_v41  ;;  %2532 = vrot.lane.b32.xlu1 %v9407_v32, %s8739_s30 }
 0x5e3   : > { %7671 = vmatprep.subr.bf16.mxu1 %v9385_v60 }
 0x5e4   : > { %v2035_v5 = vpop.xlane.xlu0 %2034 }
 0x5e6   : > { %7672 = vmatpush3.bf16.msra.mxu1 %v9385_v60  ;;  %2528 = vrot.lane.b32.xlu1 %v9411_v34, %s8740_s18 }
 0x5e7   : > { %v8286_v2 = vpop.eup %8285 }
 0x5e8   : > { %v2029_v45 = vpop.xlane.xlu0 %2028  ;;  %v8288_v43 = vpop.eup %8287  ;;  %v2064_v51 = vmul.f32 %v8286_v2, %v9575_v13 }
 0x5e9   : > { %v8290_v37 = vpop.eup %8289  ;;  %v2062_v29 = vmul.f32 %v8288_v43, %v9571_v39 }
 0x5ea   : > { %2799 = vrot.lane.b32.xlu1 %v9335_v55, %s8740_s18  ;;  %v2066_v35 = vmul.f32 %v8290_v37, %v9566_v40  ;;  %v2320_v40 = vpop.permute.xlu1 %2319 }
 0x5eb   : > { %v8292_v11 = vpop.eup %8291 }
 0x5ec   : > { %v2318_v53 = vpop.permute.xlu0 %2317  ;;  %v2060_v57 = vmul.f32 %v8292_v11, %v9579_v16  ;;  %v2086_v3 = vpack.c.bf16 %v2066_v35, %v2064_v51 }
 0x5ed   : > { %7986 = vmatprep.subr.msk.bf16.mxu1 %vm1627_vm3, %v2318_v53 }
 0x5ee   : > { %2925 = vrot.lane.b32.xlu1 %v9385_v60, %s8740_s18  ;;  %v2085_v50 = vpack.c.bf16 %v2062_v29, %v2060_v57  ;;  %v2314_v39 = vpop.permute.xlu1 %2313 }
 0x5f0   : > { %7665 = vmatprep.mubr.msk.bf16.mxu0 %vm1906_vm5, %v2085_v50 }
 0x5f1   : > { %7666 = vmatmul.mubr.msk.bf16.vlgmr.msra.gmra.mrb[36].mxu0 %vm1906_vm5, %v2086_v3 }
 0x5f2   : > { %7678 = vmatpush3.bf16.msra.mxu0 %v9397_v56  ;;  %2862 = vrot.lane.b32.xlu1 %v9359_v18, %s8740_s18 }
 0x5f3   : > { %7679 = vmatprep.subr.bf16.mxu0 %v9409_v33 }
 0x5f6   : > { %7680 = vmatpush3.bf16.msra.mxu0 %v9409_v33  ;;  %2986 = vrot.lane.b32.xlu1 %v9397_v56, %s8740_s18 }
 0x611   : > { %v2038_v13 = vpop.xlane.xlu1 %2037 }
 0x612   : > { %8293 = vrcp.f32 %v2038_v13 }
 0x613   : > { %8295 = vrcp.f32 %v2029_v45  ;;  %v2328_v45 = vsel %vm1627_vm3, %v2318_v53, 0 }
 0x614   : > { %8297 = vrcp.f32 %v2035_v5 }
 0x615   : > { %v2032_v16 = vpop.xlane.xlu1 %2031 }
 0x616   : > { %8299 = vrcp.f32 %v2032_v16 }
 0x619   : > { %v2389_v52 = vpop.permute.xlu1 %2388 }
 0x61a   : > { %7988 = vmatprep.subr.msk.bf16.mxu0 %vm1627_vm3, %v2389_v52 }
 0x61c   : > { %v8294_v4 = vpop.eup %8293 }
 0x61d   : > { %v8296_v58 = vpop.eup %8295  ;;  %v2074_v20 = vmul.f32 %v8294_v4, %v9601_v0  ;;  %v2047_v17 = vpop.xlane.xlu0 %2046 }
 0x61e   : > { %v8298_v54 = vpop.eup %8297  ;;  %v2068_v23 = vmul.f32 %v8296_v58, %v9587_v15  ;;  %v2331_v15 = vsel %vm1627_vm3, %v2320_v40, 0 }
 0x61f   : > { %v2072_v28 = vmul.f32 %v8298_v54, %v9583_v14 }
 0x620   : > { %v8300_v25 = vpop.eup %8299 }
 0x621   : > { %v2070_v26 = vmul.f32 %v8300_v25, %v9605_v44  ;;  %v2088_v5 = vpack.c.bf16 %v2074_v20, %v2072_v28  ;;  %v2041_v0 = vpop.xlane.xlu0 %2040 }
 0x623   : > { %v2087_v2 = vpack.c.bf16 %v2070_v26, %v2068_v23 }
 0x625   : > { %7673 = vmatprep.mubr.msk.bf16.mxu1 %vm1906_vm5, %v2087_v2  ;;  %v2460_v44 = vpop.permute.xlu0 %2459 }
 0x626   : > { %7674 = vmatmul.mubr.msk.bf16.vlgmr.msra.gmra.mrb[16].mxu1 %vm1906_vm5, %v2088_v5  ;;  %v2470_v29 = vsel %vm1627_vm3, %v2460_v44, 0 }
 0x627   : > { %7686 = vmatpush3.bf16.xpose.msra.mxu1 %v2328_v45  ;;  %7689 = vmatprep.mubr.msk.bf16.mxu1 %vm1627_vm3, %v2314_v39 }
 0x628   : > { %7987 = vmatprep.subr.msk.bf16.mxu1 %vm1627_vm3, %v2320_v40 }
 0x629   : > { %v2391_v14 = vpop.permute.xlu0 %2390 }
 0x62d   : > { %v2456_v43 = vpop.permute.xlu0 %2455 }
 0x62f   : > { %7688 = vmatpush3.bf16.xpose.msra.mxu1 %v2331_v15 }
 0x630   : > { %7990 = vmatprep.subr.msk.bf16.mxu1 %vm1627_vm3, %v2460_v44 }
 0x631   : > { %v2458_v37 = vpop.permute.xlu0 %2457 }
 0x635   : > { %v2387_v53 = vpop.permute.xlu0 %2386 }
 0x639   : > { %v2527_v50 = vpop.permute.xlu0 %2526 }
 0x63d   : > { %v2798_v23 = vpop.permute.xlu0 %2797 }
 0x641   : > { %v9717_v5 = vpop.permute.xlu0 %2923 }
 0x64a   : > { %v2050_v11 = vpop.xlane.xlu1 %2049 }
 0x64b   : > { %8301 = vrcp.f32 %v2050_v11 }
 0x64c   : > { %8303 = vrcp.f32 %v2041_v0  ;;  %v2861_v0 = vpop.permute.xlu0 %2860 }
 0x64d   : > { %8305 = vrcp.f32 %v2047_v17 }
 0x64e   : > { %v2044_v51 = vpop.xlane.xlu1 %2043 }
 0x64f   : > { %8307 = vrcp.f32 %v2044_v51 }
 0x652   : > { %v2316_v57 = vpop.permute.xlu1 %2315 }
 0x653   : > { %7690 = vmatmul.mubr.msk.bf16.vlgmr.msra.gmra.mrb[20].mxu1 %vm1627_vm3, %v2316_v57 }
 0x654   : > { %7702 = vmatpush3.bf16.xpose.msra.mxu1 %v2470_v29  ;;  %7705 = vmatprep.mubr.msk.bf16.mxu1 %vm1627_vm3, %v2456_v43 }
 0x655   : > { %v8302_v35 = vpop.eup %8301 }
 0x656   : > { %v2462_v3 = vpop.permute.xlu1 %2461  ;;  %v8304_v40 = vpop.eup %8303  ;;  %v2082_v16 = vmul.f32 %v8302_v35, %v9629_v48  ;;  %v2399_v48 = vsel %vm1627_vm3, %v2389_v52, 0 }
 0x657   : > { %7991 = vmatprep.subr.msk.bf16.mxu1 %vm1627_vm3, %v2462_v3  ;;  %v8306_v39 = vpop.eup %8305  ;;  %v2076_v58 = vmul.f32 %v8304_v40, %v9613_v63  ;;  %v2473_v20 = vsel %vm1627_vm3, %v2462_v3, 0 }
 0x658   : > { %v2080_v25 = vmul.f32 %v8306_v39, %v9609_v6 }
 0x659   : > { %v8308_v13 = vpop.eup %8307 }
 0x65a   : > { %v2385_v4 = vpop.permute.xlu1 %2384  ;;  %v2078_v54 = vmul.f32 %v8308_v13, %v9635_v47  ;;  %v2090_v28 = vpack.c.bf16 %v2082_v16, %v2080_v25  ;;  %v2402_v47 = vsel %vm1627_vm3, %v2391_v14, 0 }
 0x65c   : > { %7704 = vmatpush3.bf16.xpose.msra.mxu1 %v2473_v20  ;;  %v2089_v26 = vpack.c.bf16 %v2078_v54, %v2076_v58 }
 0x65d   : > { %7717 = vmatprep.subr.bf16.mxu1 %v2798_v23 }
 0x65e   : > { %v2531_v17 = vpop.permute.xlu1 %2530  ;;  %7681 = vmatprep.mubr.msk.bf16.mxu0 %vm1906_vm5, %v2089_v26 }
 0x65f   : > { %7682 = vmatmul.mubr.msk.bf16.vlgmr.msra.gmra.mrb[40].mxu0 %vm1906_vm5, %v2090_v28  ;;  %v2541_v52 = vsel %vm1627_vm3, %v2531_v17, 0 }
 0x660   : > { %7694 = vmatpush3.bf16.xpose.msra.mxu0 %v2399_v48  ;;  %7697 = vmatprep.mubr.msk.bf16.mxu0 %vm1627_vm3, %v2385_v4 }
 0x661   : > { %7989 = vmatprep.subr.msk.bf16.mxu0 %vm1627_vm3, %v2391_v14 }
 0x662   : > { %v2533_v6 = vpop.permute.xlu1 %2532 }
 0x663   : > { %7706 = vmatmul.mubr.msk.bf16.vlgmr.msra.gmra.mrb[24].mxu1 %vm1627_vm3, %v2458_v37  ;;  %v2544_v45 = vsel %vm1627_vm3, %v2533_v6, 0 }
 0x664   : > { %7718 = vmatpush3.bf16.msra.mxu1 %v2798_v23 }
 0x666   : > { %v2529_v63 = vpop.permute.xlu1 %2528 }
 0x668   : > { %7696 = vmatpush3.bf16.xpose.msra.mxu0 %v2402_v47 }
 0x669   : > { %7992 = vmatprep.subr.msk.bf16.mxu0 %vm1627_vm3, %v2531_v17 }
 0x66a   : > { %v2800_v2 = vpop.permute.xlu1 %2799 }
 0x66b   : > { %7719 = vmatprep.subr.bf16.mxu1 %v2800_v2 }
 0x66c   : > { %7720 = vmatpush3.bf16.msra.mxu1 %v2800_v2 }
 0x66d   : > { %7733 = vmatprep.subr.bf16.mxu1 %v9717_v5 }
 0x66e   : > { %v9725_v15 = vpop.permute.xlu1 %2925 }
 0x66f   : > { %7698 = vmatmul.mubr.msk.bf16.vlgmr.msra.gmra.mrb[44].mxu0 %vm1627_vm3, %v2387_v53 }
 0x670   : > { %7710 = vmatpush3.bf16.xpose.msra.mxu0 %v2541_v52  ;;  %7713 = vmatprep.mubr.msk.bf16.mxu0 %vm1627_vm3, %v2527_v50 }
 0x671   : > { %7993 = vmatprep.subr.msk.bf16.mxu0 %vm1627_vm3, %v2533_v6 }
 0x672   : > { %v2863_v44 = vpop.permute.xlu1 %2862 }
 0x676   : > { %v9728_v14 = vpop.permute.xlu1 %2986 }
 0x678   : > { %7712 = vmatpush3.bf16.xpose.msra.mxu0 %v2544_v45 }
 0x679   : > { %7725 = vmatprep.subr.bf16.mxu0 %v2861_v0 }
 0x67f   : > { %7714 = vmatmul.mubr.msk.bf16.vlgmr.msra.gmra.mrb[48].mxu0 %vm1627_vm3, %v2529_v63 }
 0x680   : > { %7726 = vmatpush3.bf16.msra.mxu0 %v2861_v0 }
 0x681   : > { %7727 = vmatprep.subr.bf16.mxu0 %v2863_v44 }
 0x684   : > { %7728 = vmatpush3.bf16.msra.mxu0 %v2863_v44 }
 0x685   : > { %7741 = vmatprep.subr.bf16.mxu0 %v9728_v14 }
 0x6b4   : > { %v9731_v43 = vpop.f32.mrb[12].mxu1 }
 0x6b5   : > { %12394 = vst [vmem:[#allocation10_spill] sm:$0xff] %v9731_v43  ;;  %v9733_v37 = vpop.f32.mrb[13].mxu1 }
 0x6b6   : > { %12395 = vst [vmem:[#allocation11_spill] sm:$0xff] %v9733_v37  ;;  %v9735_v11 = vpop.f32.mrb[14].mxu1 }
 0x6b7   : > { %12396 = vst [vmem:[#allocation12_spill] sm:$0xff] %v9735_v11  ;;  %v9737_v51 = vpop.f32.mrb[15].mxu1 }
 0x6b8   : > { %12397 = vst [vmem:[#allocation13_spill] sm:$0xff] %v9737_v51 }
 0x6c4   : > { %v9739_v53 = vpop.f32.mrb[36].mxu0 }
 0x6c5   : > { %12398 = vst [vmem:[#allocation14_spill] sm:$0xff] %v9739_v53  ;;  %v9741_v57 = vpop.f32.mrb[37].mxu0 }
 0x6c6   : > { %12399 = vst [vmem:[#allocation15_spill] sm:$0xff] %v9741_v57  ;;  %v9743_v29 = vpop.f32.mrb[38].mxu0 }
 0x6c7   : > { %12400 = vst [vmem:[#allocation16_spill] sm:$0xff] %v9743_v29  ;;  %v9745_v35 = vpop.f32.mrb[39].mxu0 }
 0x6c8   : > { %12401 = vst [vmem:[#allocation17_spill] sm:$0xff] %v9745_v35 }
 0x6f9   : > { %v9747_v50 = vpop.f32.mrb[16].mxu1 }
 0x6fa   : > { %12402 = vst [vmem:[#allocation18_spill] sm:$0xff] %v9747_v50  ;;  %v9749_v3 = vpop.f32.mrb[17].mxu1 }
 0x6fb   : > { %12403 = vst [vmem:[#allocation19_spill] sm:$0xff] %v9749_v3  ;;  %v9751_v40 = vpop.f32.mrb[18].mxu1 }
 0x6fc   : > { %12404 = vst [vmem:[#allocation20_spill] sm:$0xff] %v9751_v40  ;;  %v9753_v39 = vpop.f32.mrb[19].mxu1 }
 0x6fd   : > { %12405 = vst [vmem:[#allocation21_spill] sm:$0xff] %v9753_v39 }
 0x726   : > { %v7691_v13 = vpop.f32.mrb[20].mxu1 }
 0x727   : > { %v9757_v16 = vsel %vm1580_vm4, %v7691_v13, -1e+30  ;;  %v2367_v4 = vpop.f32.mrb[21].mxu1 }
 0x728   : > { %v7692_v58 = vpop.f32.mrb[22].mxu1  ;;  %v2617_v54 = vsel %vm1906_vm5, %v9757_v16, -inf  ;;  %v9763_v25 = vsel %vm1580_vm4, %v2367_v4, -1e+30 }
 0x729   : > { %2618 = vmax.xlane.f32.xlu0 %v2617_v54  ;;  %v2370_v20 = vpop.f32.mrb[23].mxu1  ;;  %v2611_v28 = vsel %vm1906_vm5, %v9763_v25, -inf  ;;  %v9775_v17 = vsel %vm1580_vm4, %v7692_v58, -1e+30 }
 0x72a   : > { %v9767_v23 = vsel %vm1580_vm4, %v2370_v20, -1e+30  ;;  %v2620_v48 = vsel %vm1906_vm5, %v9775_v17, -inf }
 0x72b   : > { %v2614_v26 = vsel %vm1906_vm5, %v9767_v23, -inf }
 0x72c   : > { %2615 = vmax.xlane.f32.xlu1 %v2614_v26 }
 0x72d   : > { %2612 = vmax.xlane.f32.xlu0 %v2611_v28 }
 0x731   : > { %2621 = vmax.xlane.f32.xlu0 %v2620_v48 }
 0x732   : > { %v9779_v6 = vpop.f32.mrb[40].mxu0 }
 0x733   : > { %12406 = vst [vmem:[#allocation22_spill] sm:$0xff] %v9779_v6  ;;  %v9781_v63 = vpop.f32.mrb[41].mxu0 }
 0x734   : > { %12407 = vst [vmem:[#allocation23_spill] sm:$0xff] %v9781_v63  ;;  %v9783_v47 = vpop.f32.mrb[42].mxu0 }
 0x735   : > { %12408 = vst [vmem:[#allocation24_spill] sm:$0xff] %v9783_v47  ;;  %v9785_v2 = vpop.f32.mrb[43].mxu0 }
 0x736   : > { %12409 = vst [vmem:[#allocation25_spill] sm:$0xff] %v9785_v2  ;;  %v7707_v52 = vpop.f32.mrb[24].mxu1 }
 0x737   : > { %v9789_v45 = vsel %vm1580_vm4, %v7707_v52, -1e+30  ;;  %v2509_v0 = vpop.f32.mrb[25].mxu1 }
 0x738   : > { %v2641_v44 = vsel %vm1906_vm5, %v9789_v45, -inf  ;;  %v7708_v13 = vpop.f32.mrb[26].mxu1 }
 0x739   : > { %v9795_v4 = vsel %vm1580_vm4, %v7708_v13, -1e+30  ;;  %2642 = vmax.xlane.f32.xlu0 %v2641_v44  ;;  %v2512_v58 = vpop.f32.mrb[27].mxu1  ;;  %v9807_v13 = vsel %vm1580_vm4, %v2509_v0, -1e+30 }
 0x73a   : > { %v2644_v54 = vsel %vm1906_vm5, %v9795_v4, -inf  ;;  %v2635_v30 = vsel %vm1906_vm5, %v9807_v13, -inf }
 0x73b   : > { %2645 = vmax.xlane.f32.xlu1 %v2644_v54 }
 0x742   : > { %v7699_v20 = vpop.f32.mrb[44].mxu0 }
 0x743   : > { %v9801_v26 = vsel %vm1580_vm4, %v7699_v20, -1e+30  ;;  %v2438_v28 = vpop.f32.mrb[45].mxu0  ;;  %v9817_v20 = vsel %vm1580_vm4, %v2512_v58, -1e+30 }
 0x744   : > { %v2629_v48 = vsel %vm1906_vm5, %v9801_v26, -inf  ;;  %v7700_v52 = vpop.f32.mrb[46].mxu0  ;;  %v9823_v0 = vsel %vm1580_vm4, %v2438_v28, -1e+30 }
 0x745   : > { %v9811_v44 = vsel %vm1580_vm4, %v7700_v52, -1e+30  ;;  %2630 = vmax.xlane.f32.xlu0 %v2629_v48  ;;  %v2441_v54 = vpop.f32.mrb[47].mxu0  ;;  %v2638_v48 = vsel %vm1906_vm5, %v9817_v20, -inf  ;;  %v2623_v58 = vsel %vm1906_vm5, %v9823_v0, -inf }
 0x746   : > { %v2632_v1 = vsel %vm1906_vm5, %v9811_v44, -inf  ;;  %v9829_v52 = vsel %vm1580_vm4, %v2441_v54, -1e+30 }
 0x747   : > { %2633 = vmax.xlane.f32.xlu1 %v2632_v1  ;;  %v2626_v1 = vsel %vm1906_vm5, %v9829_v52, -inf }
 0x749   : > { %2636 = vmax.xlane.f32.xlu0 %v2635_v30 }
 0x74b   : > { %2639 = vmax.xlane.f32.xlu1 %v2638_v48 }
 0x74d   : > { %2624 = vmax.xlane.f32.xlu0 %v2623_v58 }
 0x74f   : > { %2627 = vmax.xlane.f32.xlu1 %v2626_v1 }
 0x752   : > { %v7715_v9 = vpop.f32.mrb[48].mxu0 }
 0x753   : > { %v9837_v30 = vsel %vm1580_vm4, %v7715_v9, -1e+30  ;;  %v2580_v28 = vpop.f32.mrb[49].mxu0 }
 0x754   : > { %v2653_v31 = vsel %vm1906_vm5, %v9837_v30, -inf  ;;  %v7716_v54 = vpop.f32.mrb[50].mxu0  ;;  %v9843_v48 = vsel %vm1580_vm4, %v2580_v28, -1e+30  ;;  %v9863_v28 = vpop.permute.xlu0 %3051 }
 0x755   : > { %2654 = vmax.xlane.f32.xlu0 %v2653_v31  ;;  %v2583_v58 = vpop.f32.mrb[51].mxu0  ;;  %v2647_v63 = vsel %vm1906_vm5, %v9843_v48, -inf  ;;  %v9853_v9 = vsel %vm1580_vm4, %v7716_v54, -1e+30 }
 0x756   : > { %v2656_v1 = vsel %vm1906_vm5, %v9853_v9, -inf  ;;  %v9859_v31 = vsel %vm1580_vm4, %v2583_v58, -1e+30 }
 0x759   : > { %2648 = vmax.xlane.f32.xlu0 %v2647_v63  ;;  %v2650_v63 = vsel %vm1906_vm5, %v9859_v31, -inf }
 0x760   : > { %3053 = vrot.lane.b32.xlu1 %v9333_v61, %s8741_s27 }
 0x76f   : > { %2988 = vrot.lane.b32.xlu0 %v9409_v33, %s8740_s18 }
 0x784   : > { %2657 = vmax.xlane.f32.xlu1 %v2656_v1 }
 0x788   : > { %2651 = vmax.xlane.f32.xlu1 %v2650_v63 }
 0x7b6   : > { %v2619_v2 = vpop.xlane.xlu0 %2618 }
 0x7b7   : > { %v2661_v6 = vsub.f32 %v9757_v16, %v2619_v2 }
 0x7b9   : > { %v2679_v47 = vmul.f32 1.442695, %v2661_v6  ;;  %v2616_v54 = vpop.xlane.xlu1 %2615 }
 0x7ba   : > { %v2613_v3 = vpop.xlane.xlu0 %2612  ;;  %v2660_v50 = vsub.f32 %v9767_v23, %v2616_v54 }
 0x7bb   : > { %8309 = vpow2.f32 %v2679_v47  ;;  %v2659_v39 = vsub.f32 %v9763_v25, %v2613_v3 }
 0x7bc   : > { %v2677_v57 = vmul.f32 1.442695, %v2660_v50 }
 0x7bd   : > { %v2675_v58 = vmul.f32 1.442695, %v2659_v39 }
 0x7be   : > { %v2622_v40 = vpop.xlane.xlu0 %2621 }
 0x7bf   : > { %8311 = vpow2.f32 %v2675_v58  ;;  %v2662_v1 = vsub.f32 %v9775_v17, %v2622_v40 }
 0x7c1   : > { %v2681_v63 = vmul.f32 1.442695, %v2662_v1 }
 0x7c3   : > { %8313 = vpow2.f32 %v2681_v63 }
 0x7c4   : > { %8315 = vpow2.f32 %v2677_v57 }
 0x7c5   : > { %v9869_v35 = vpop.eup %8309 }
 0x7c6   : > { %v2643_v16 = vpop.xlane.xlu0 %2642  ;;  %v2713_v6 = vsel %vm1906_vm5, %v9869_v35, 0.0 }
 0x7c7   : > { %v2669_v47 = vsub.f32 %v9789_v45, %v2643_v16  ;;  %2714 = vadd.xlane.f32.xlu0 %v2713_v6 }
 0x7c9   : > { %v9874_v3 = vpop.eup %8311  ;;  %v2695_v39 = vmul.f32 1.442695, %v2669_v47 }
 0x7ca   : > { %v2707_v25 = vsel %vm1906_vm5, %v9874_v3, 0.0 }
 0x7cb   : > { %8317 = vpow2.f32 %v2695_v39  ;;  %2708 = vadd.xlane.f32.xlu0 %v2707_v25 }
 0x7cd   : > { %v9878_v50 = vpop.eup %8313 }
 0x7ce   : > { %v2716_v57 = vsel %vm1906_vm5, %v9878_v50, 0.0  ;;  %v9882_v40 = vpop.eup %8315 }
 0x7cf   : > { %2717 = vadd.xlane.f32.xlu1 %v2716_v57  ;;  %v2710_v17 = vsel %vm1906_vm5, %v9882_v40, 0.0 }
 0x7d2   : > { %v2631_v23 = vpop.xlane.xlu0 %2630 }
 0x7d3   : > { %v2665_v2 = vsub.f32 %v9801_v26, %v2631_v23  ;;  %2711 = vadd.xlane.f32.xlu1 %v2710_v17  ;;  %v2646_v17 = vpop.xlane.xlu1 %2645 }
 0x7d5   : > { %v9887_v45 = vpop.eup %8317  ;;  %v2687_v54 = vmul.f32 1.442695, %v2665_v2 }
 0x7d6   : > { %v2637_v58 = vpop.xlane.xlu0 %2636  ;;  %v2737_v1 = vsel %vm1906_vm5, %v9887_v45, 0.0 }
 0x7d7   : > { %8319 = vpow2.f32 %v2687_v54  ;;  %v2667_v63 = vsub.f32 %v9807_v13, %v2637_v58  ;;  %2738 = vadd.xlane.f32.xlu0 %v2737_v1  ;;  %v2634_v2 = vpop.xlane.xlu1 %2633  ;;  %v2670_v54 = vsub.f32 %v9795_v4, %v2646_v17 }
 0x7d9   : > { %v2691_v16 = vmul.f32 1.442695, %v2667_v63  ;;  %v2697_v1 = vmul.f32 1.442695, %v2670_v54  ;;  %v2666_v63 = vsub.f32 %v9811_v44, %v2634_v2 }
 0x7da   : > { %v2625_v6 = vpop.xlane.xlu0 %2624 }
 0x7db   : > { %8321 = vpow2.f32 %v2691_v16  ;;  %v2663_v47 = vsub.f32 %v9823_v0, %v2625_v6  ;;  %v2640_v58 = vpop.xlane.xlu1 %2639  ;;  %v2689_v16 = vmul.f32 1.442695, %v2666_v63 }
 0x7dc   : > { %v2668_v6 = vsub.f32 %v9817_v20, %v2640_v58 }
 0x7dd   : > { %v2683_v39 = vmul.f32 1.442695, %v2663_v47 }
 0x7df   : > { %8323 = vpow2.f32 %v2683_v39  ;;  %v2628_v47 = vpop.xlane.xlu1 %2627 }
 0x7e0   : > { %8325 = vpow2.f32 %v2697_v1 }
 0x7e1   : > { %v9893_v26 = vpop.eup %8319  ;;  %8327 = vpow2.f32 %v2689_v16 }
 0x7e2   : > { %v2725_v25 = vsel %vm1906_vm5, %v9893_v26, 0.0  ;;  %v2655_v39 = vpop.xlane.xlu0 %2654 }
 0x7e3   : > { %2726 = vadd.xlane.f32.xlu0 %v2725_v25  ;;  %v2693_v25 = vmul.f32 1.442695, %v2668_v6 }
 0x7e4   : > { %3120 = vrot.lane.b32.xlu1 %v9343_v7, %s8741_s27 }
 0x7e5   : > { %v9899_v57 = vpop.eup %8321  ;;  %8329 = vpow2.f32 %v2693_v25 }
 0x7e6   : > { %v2731_v13 = vsel %vm1906_vm5, %v9899_v57, 0.0  ;;  %v2649_v17 = vpop.xlane.xlu0 %2648 }
 0x7e7   : > { %2732 = vadd.xlane.f32.xlu0 %v2731_v13  ;;  %v2664_v13 = vsub.f32 %v9829_v52, %v2628_v47  ;;  %v2671_v20 = vsub.f32 %v9843_v48, %v2649_v17 }
 0x7e9   : > { %v9903_v23 = vpop.eup %8323  ;;  %v2685_v4 = vmul.f32 1.442695, %v2664_v13  ;;  %v2699_v52 = vmul.f32 1.442695, %v2671_v20 }
 0x7ea   : > { %v2719_v0 = vsel %vm1906_vm5, %v9903_v23, 0.0  ;;  %v9914_v44 = vpop.eup %8325 }
 0x7eb   : > { %2720 = vadd.xlane.f32.xlu0 %v2719_v0  ;;  %v2673_v0 = vsub.f32 %v9837_v30, %v2655_v39  ;;  %8331 = vpow2.f32 %v2685_v4  ;;  %v2740_v54 = vsel %vm1906_vm5, %v9914_v44, 0.0  ;;  %v9919_v58 = vpop.eup %8327  ;;  %v9925_v30 = vpop.permute.xlu1 %3053 }
 0x7ec   : > { %v2728_v1 = vsel %vm1906_vm5, %v9919_v58, 0.0 }
 0x7ed   : > { %v2703_v2 = vmul.f32 1.442695, %v2673_v0 }
 0x7ef   : > { %8333 = vpow2.f32 %v2703_v2  ;;  %v9923_v63 = vpop.eup %8329 }
 0x7f0   : > { %8335 = vpow2.f32 %v2699_v52  ;;  %v2734_v48 = vsel %vm1906_vm5, %v9923_v63, 0.0 }
 0x7f5   : > { %v9929_v16 = vpop.eup %8331 }
 0x7f6   : > { %v2722_v39 = vsel %vm1906_vm5, %v9929_v16, 0.0 }
 0x7f9   : > { %v9934_v25 = vpop.eup %8333 }
 0x7fa   : > { %v2749_v17 = vsel %vm1906_vm5, %v9934_v25, 0.0  ;;  %v9939_v2 = vpop.eup %8335 }
 0x801   : > { %3047 = vrot.lane.b32.xlu0 %v9323_v49, %s8742_s25 }
 0x808   : > { %2741 = vadd.xlane.f32.xlu1 %v2740_v54 }
 0x80c   : > { %2729 = vadd.xlane.f32.xlu1 %v2728_v1 }
 0x810   : > { %2735 = vadd.xlane.f32.xlu1 %v2734_v48  ;;  %v9979_v48 = vpop.permute.xlu0 %2988 }
 0x811   : > { %v2658_v6 = vpop.xlane.xlu1 %2657 }
 0x812   : > { %v2674_v47 = vsub.f32 %v9853_v9, %v2658_v6  ;;  %v2743_v9 = vsel %vm1906_vm5, %v9939_v2, 0.0 }
 0x814   : > { %v2705_v13 = vmul.f32 1.442695, %v2674_v47  ;;  %2723 = vadd.xlane.f32.xlu1 %v2722_v39 }
 0x815   : > { %v2652_v4 = vpop.xlane.xlu1 %2651 }
 0x816   : > { %8337 = vpow2.f32 %v2705_v13  ;;  %v2672_v0 = vsub.f32 %v9859_v31, %v2652_v4 }
 0x818   : > { %v2701_v20 = vmul.f32 1.442695, %v2672_v0  ;;  %2750 = vadd.xlane.f32.xlu1 %v2749_v17 }
 0x81a   : > { %8339 = vpow2.f32 %v2701_v20 }
 0x81c   : > { %2744 = vadd.xlane.f32.xlu1 %v2743_v9 }
 0x820   : > { %v9943_v54 = vpop.eup %8337 }
 0x821   : > { %v2752_v52 = vsel %vm1906_vm5, %v9943_v54, 0.0 }
 0x822   : > { %2753 = vadd.xlane.f32.xlu1 %v2752_v52 }
 0x824   : > { %v9947_v1 = vpop.eup %8339 }
 0x825   : > { %v2746_v31 = vsel %vm1906_vm5, %v9947_v1, 0.0 }
 0x826   : > { %2747 = vadd.xlane.f32.xlu0 %v2746_v31 }
 0x833   : > { %3049 = vrot.lane.b32.xlu1 %v9337_v62, %s8742_s25 }
 0x837   : > { %3191 = vrot.lane.b32.xlu1 %v9383_v59, %s8741_s27 }
 0x83b   : > { %3116 = vrot.lane.b32.xlu1 %v9347_v8, %s8742_s25 }
 0x83c   : > { %3189 = vrot.lane.b32.xlu0 %v9371_v38, %s8741_s27 }
 0x83f   : > { %3258 = vrot.lane.b32.xlu1 %v9395_v36, %s8741_s27 }
 0x840   : > { %3122 = vrot.lane.b32.xlu0 %v9357_v46, %s8741_s27 }
 0x843   : > { %3260 = vrot.lane.b32.xlu1 %v9407_v32, %s8741_s27 }
 0x844   : > { %3185 = vrot.lane.b32.xlu0 %v9375_v42, %s8742_s25 }
 0x847   : > { %3256 = vrot.lane.b32.xlu1 %v9411_v34, %s8742_s25 }
 0x848   : > { %3187 = vrot.lane.b32.xlu0 %v9387_v22, %s8742_s25 }
 0x84b   : > { %3525 = vrot.lane.b32.xlu1 %v9335_v55, %s8742_s25 }
 0x84c   : > { %3118 = vrot.lane.b32.xlu0 %v9361_v19, %s8742_s25 }
 0x84f   : > { %3647 = vrot.lane.b32.xlu1 %v9385_v60, %s8742_s25 }
 0x850   : > { %3254 = vrot.lane.b32.xlu0 %v9399_v10, %s8742_s25 }
 0x853   : > { %3586 = vrot.lane.b32.xlu1 %v9359_v18, %s8742_s25 }
 0x854   : > { %3523 = vrot.lane.b32.xlu0 %v9321_v12, %s8742_s25  ;;  %v2715_v6 = vpop.xlane.xlu0 %2714 }
 0x857   : > { %3706 = vrot.lane.b32.xlu1 %v9397_v56, %s8742_s25 }
 0x858   : > { %3645 = vrot.lane.b32.xlu0 %v9373_v41, %s8742_s25  ;;  %v2709_v47 = vpop.xlane.xlu0 %2708 }
 0x85c   : > { %3584 = vrot.lane.b32.xlu0 %v9345_v24, %s8742_s25  ;;  %v2718_v39 = vpop.xlane.xlu1 %2717 }
 0x85d   : > { %8341 = vrcp.f32 %v2718_v39 }
 0x85e   : > { %8343 = vrcp.f32 %v2709_v47 }
 0x85f   : > { %8345 = vrcp.f32 %v2715_v6 }
 0x860   : > { %3771 = vrot.lane.b32.xlu0 %v9319_v27, %s8743_s21  ;;  %v2712_v13 = vpop.xlane.xlu1 %2711 }
 0x861   : > { %8347 = vrcp.f32 %v2712_v13 }
 0x864   : > { %v2739_v27 = vpop.xlane.xlu0 %2738 }
 0x867   : > { %v8342_v4 = vpop.eup %8341 }
 0x868   : > { %v8344_v0 = vpop.eup %8343  ;;  %v2762_v9 = vmul.f32 %v8342_v4, %v9878_v50 }
 0x869   : > { %v8346_v17 = vpop.eup %8345  ;;  %v2756_v52 = vmul.f32 %v8344_v0, %v9874_v3  ;;  %v10004_v3 = vpop.permute.xlu1 %3120 }
 0x86a   : > { %v2760_v39 = vmul.f32 %v8346_v17, %v9869_v35 }
 0x86b   : > { %v8348_v20 = vpop.eup %8347 }
 0x86c   : > { %v2758_v31 = vmul.f32 %v8348_v20, %v9882_v40  ;;  %v2788_v6 = vpack.c.bf16 %v2762_v9, %v2760_v39 }
 0x86e   : > { %v2787_v47 = vpack.c.bf16 %v2758_v31, %v2756_v52 }
 0x870   : > { %7721 = vmatprep.mubr.msk.bf16.mxu1 %vm1906_vm5, %v2787_v47  ;;  %v2727_v50 = vpop.xlane.xlu0 %2726 }
 0x871   : > { %7722 = vmatmul.mubr.msk.bf16.vlgmr.msra.gmra.mrb[28].mxu1 %vm1906_vm5, %v2788_v6 }
 0x872   : > { %7734 = vmatpush3.bf16.msra.mxu1 %v9717_v5 }
 0x873   : > { %7735 = vmatprep.subr.bf16.mxu1 %v9725_v15 }
 0x874   : > { %v2733_v40 = vpop.xlane.xlu0 %2732 }
 0x876   : > { %7736 = vmatpush3.bf16.msra.mxu1 %v9725_v15 }
 0x877   : > { %7994 = vmatprep.subr.msk.bf16.mxu1 %vm1627_vm3, %v9863_v28 }
 0x878   : > { %v2721_v4 = vpop.xlane.xlu0 %2720 }
 0x895   : > { %v2742_v35 = vpop.xlane.xlu1 %2741 }
 0x896   : > { %8349 = vrcp.f32 %v2742_v35 }
 0x897   : > { %8351 = vrcp.f32 %v2733_v40 }
 0x898   : > { %8353 = vrcp.f32 %v2739_v27 }
 0x899   : > { %v2730_v13 = vpop.xlane.xlu1 %2729 }
 0x89d   : > { %v2736_v0 = vpop.xlane.xlu1 %2735 }
 0x89e   : > { %8355 = vrcp.f32 %v2736_v0 }
 0x89f   : > { %8357 = vrcp.f32 %v2730_v13 }
 0x8a0   : > { %8359 = vrcp.f32 %v2721_v4  ;;  %v8350_v15 = vpop.eup %8349 }
 0x8a1   : > { %8361 = vrcp.f32 %v2727_v50  ;;  %v2724_v5 = vpop.xlane.xlu1 %2723  ;;  %v8352_v20 = vpop.eup %8351  ;;  %v2778_v31 = vmul.f32 %v8350_v15, %v9914_v44 }
 0x8a2   : > { %8363 = vrcp.f32 %v2724_v5  ;;  %v8354_v9 = vpop.eup %8353  ;;  %v2772_v6 = vmul.f32 %v8352_v20, %v9899_v57  ;;  %v3048_v57 = vpop.permute.xlu0 %3047 }
 0x8a3   : > { %v2776_v40 = vmul.f32 %v8354_v9, %v9887_v45  ;;  %v3062_v45 = vsel %vm1627_vm3, %v9863_v28, 0 }
 0x8a5   : > { %v2751_v17 = vpop.xlane.xlu1 %2750  ;;  %v2792_v5 = vpack.c.bf16 %v2778_v31, %v2776_v40 }
 0x8a8   : > { %v8356_v52 = vpop.eup %8355 }
 0x8a9   : > { %v8358_v39 = vpop.eup %8357  ;;  %v2745_v47 = vpop.xlane.xlu1 %2744  ;;  %v2774_v27 = vmul.f32 %v8356_v52, %v9923_v63 }
 0x8aa   : > { %v8360_v35 = vpop.eup %8359  ;;  %v2770_v0 = vmul.f32 %v8358_v39, %v9919_v58 }
 0x8ab   : > { %v8362_v13 = vpop.eup %8361  ;;  %v2791_v50 = vpack.c.bf16 %v2774_v27, %v2772_v6  ;;  %v2764_v53 = vmul.f32 %v8360_v35, %v9903_v23 }
 0x8ac   : > { %v8364_v4 = vpop.eup %8363  ;;  %v2768_v15 = vmul.f32 %v8362_v13, %v9893_v26 }
 0x8ad   : > { %7737 = vmatprep.mubr.msk.bf16.mxu1 %vm1906_vm5, %v2791_v50  ;;  %v2766_v44 = vmul.f32 %v8364_v4, %v9929_v16  ;;  %v3131_v4 = vsel %vm1627_vm3, %v10004_v3, 0 }
 0x8ae   : > { %7738 = vmatmul.mubr.msk.bf16.vlgmr.msra.gmra.mrb[32].mxu1 %vm1906_vm5, %v2792_v5  ;;  %v2790_v20 = vpack.c.bf16 %v2770_v0, %v2768_v15 }
 0x8af   : > { %v2754_v63 = vpop.xlane.xlu1 %2753  ;;  %7750 = vmatpush3.bf16.xpose.msra.mxu1 %v3062_v45  ;;  %7753 = vmatprep.mubr.msk.bf16.mxu1 %vm1627_vm3, %v3048_v57  ;;  %v2789_v58 = vpack.c.bf16 %v2766_v44, %v2764_v53  ;;  %v3065_v53 = vsel %vm1627_vm3, %v9925_v30, 0 }
 0x8b0   : > { %7995 = vmatprep.subr.msk.bf16.mxu1 %vm1627_vm3, %v9925_v30  ;;  %8365 = vrcp.f32 %v2754_v63 }
 0x8b1   : > { %7729 = vmatprep.mubr.msk.bf16.mxu0 %vm1906_vm5, %v2789_v58  ;;  %8367 = vrcp.f32 %v2745_v47 }
 0x8b2   : > { %7730 = vmatmul.mubr.msk.bf16.vlgmr.msra.gmra.mrb[52].mxu0 %vm1906_vm5, %v2790_v20  ;;  %8369 = vrcp.f32 %v2751_v17 }
 0x8b3   : > { %v3050_v26 = vpop.permute.xlu1 %3049  ;;  %7742 = vmatpush3.bf16.msra.mxu0 %v9728_v14  ;;  %v2748_v28 = vpop.xlane.xlu0 %2747 }
 0x8b4   : > { %8371 = vrcp.f32 %v2748_v28  ;;  %7743 = vmatprep.subr.bf16.mxu0 %v9979_v48 }
 0x8b7   : > { %v3192_v23 = vpop.permute.xlu1 %3191  ;;  %7744 = vmatpush3.bf16.msra.mxu0 %v9979_v48  ;;  %7752 = vmatpush3.bf16.xpose.msra.mxu1 %v3065_v53  ;;  %v3190_v16 = vpop.permute.xlu0 %3189 }
 0x8b8   : > { %7996 = vmatprep.subr.msk.bf16.mxu0 %vm1627_vm3, %v10004_v3  ;;  %7998 = vmatprep.subr.msk.bf16.mxu1 %vm1627_vm3, %v3190_v16  ;;  %v3200_v30 = vsel %vm1627_vm3, %v3190_v16, 0 }
 0x8ba   : > { %v8366_v17 = vpop.eup %8365 }
 0x8bb   : > { %v3117_v9 = vpop.permute.xlu1 %3116  ;;  %v3123_v14 = vpop.permute.xlu0 %3122  ;;  %v2786_v47 = vmul.f32 %v8366_v17, %v9943_v54 }
 0x8bc   : > { %v8368_v52 = vpop.eup %8367  ;;  %v3134_v44 = vsel %vm1627_vm3, %v3123_v14, 0 }
 0x8bd   : > { %v8370_v31 = vpop.eup %8369  ;;  %v2780_v27 = vmul.f32 %v8368_v52, %v9939_v2 }
 0x8be   : > { %v8372_v39 = vpop.eup %8371  ;;  %7754 = vmatmul.mubr.msk.bf16.vlgmr.msra.gmra.mrb[36].mxu1 %vm1627_vm3, %v3050_v26  ;;  %v2784_v40 = vmul.f32 %v8370_v31, %v9934_v25  ;;  %v3203_v25 = vsel %vm1627_vm3, %v3192_v23, 0 }
 0x8bf   : > { %v3259_v48 = vpop.permute.xlu1 %3258  ;;  %7766 = vmatpush3.bf16.xpose.msra.mxu1 %v3200_v30  ;;  %v3186_v6 = vpop.permute.xlu0 %3185  ;;  %v2782_v35 = vmul.f32 %v8372_v39, %v9947_v1 }
 0x8c0   : > { %7999 = vmatprep.subr.msk.bf16.mxu1 %vm1627_vm3, %v3192_v23  ;;  %7769 = vmatprep.mubr.msk.bf16.mxu1 %vm1627_vm3, %v3186_v6  ;;  %v2794_v50 = vpack.c.bf16 %v2786_v47, %v2784_v40  ;;  %v3269_v57 = vsel %vm1627_vm3, %v3259_v48, 0 }
 0x8c1   : > { %v2793_v13 = vpack.c.bf16 %v2782_v35, %v2780_v27 }
 0x8c3   : > { %7745 = vmatprep.mubr.msk.bf16.mxu0 %vm1906_vm5, %v2793_v13  ;;  %v3188_v54 = vpop.permute.xlu0 %3187  ;;  %v3261_v0 = vpop.permute.xlu1 %3260 }
 0x8c4   : > { %7746 = vmatmul.mubr.msk.bf16.vlgmr.msra.gmra.mrb[56].mxu0 %vm1906_vm5, %v2794_v50  ;;  %v3272_v63 = vsel %vm1627_vm3, %v3261_v0, 0 }
 0x8c5   : > { %7758 = vmatpush3.bf16.xpose.msra.mxu0 %v3131_v4  ;;  %7761 = vmatprep.mubr.msk.bf16.mxu0 %vm1627_vm3, %v3117_v9 }
 0x8c6   : > { %7997 = vmatprep.subr.msk.bf16.mxu0 %vm1627_vm3, %v3123_v14 }
 0x8c7   : > { %7768 = vmatpush3.bf16.xpose.msra.mxu1 %v3203_v25  ;;  %v3119_v2 = vpop.permute.xlu0 %3118  ;;  %v3257_v1 = vpop.permute.xlu1 %3256 }
 0x8cb   : > { %v3255_v5 = vpop.permute.xlu0 %3254  ;;  %v3526_v15 = vpop.permute.xlu1 %3525 }
 0x8cd   : > { %7760 = vmatpush3.bf16.xpose.msra.mxu0 %v3134_v44 }
 0x8ce   : > { %8000 = vmatprep.subr.msk.bf16.mxu0 %vm1627_vm3, %v3259_v48  ;;  %7770 = vmatmul.mubr.msk.bf16.vlgmr.msra.gmra.mrb[40].mxu1 %vm1627_vm3, %v3188_v54 }
 0x8cf   : > { %v3524_v3 = vpop.permute.xlu0 %3523  ;;  %v10057_v58 = vpop.permute.xlu1 %3647 }
 0x8d0   : > { %7781 = vmatprep.subr.bf16.mxu1 %v3524_v3 }
 0x8d1   : > { %7782 = vmatpush3.bf16.msra.mxu1 %v3524_v3 }
 0x8d2   : > { %7783 = vmatprep.subr.bf16.mxu1 %v3526_v15 }
 0x8d3   : > { %v10052_v45 = vpop.permute.xlu0 %3645  ;;  %v3587_v26 = vpop.permute.xlu1 %3586 }
 0x8d4   : > { %7762 = vmatmul.mubr.msk.bf16.vlgmr.msra.gmra.mrb[60].mxu0 %vm1627_vm3, %v3119_v2 }
 0x8d5   : > { %7774 = vmatpush3.bf16.xpose.msra.mxu0 %v3269_v57  ;;  %7777 = vmatprep.mubr.msk.bf16.mxu0 %vm1627_vm3, %v3255_v5 }
 0x8d6   : > { %8001 = vmatprep.subr.msk.bf16.mxu0 %vm1627_vm3, %v3261_v0  ;;  %7784 = vmatpush3.bf16.msra.mxu1 %v3526_v15 }
 0x8d7   : > { %7797 = vmatprep.subr.bf16.mxu1 %v10052_v45  ;;  %v3585_v20 = vpop.permute.xlu0 %3584  ;;  %v10060_v28 = vpop.permute.xlu1 %3706 }
 0x8dd   : > { %7776 = vmatpush3.bf16.xpose.msra.mxu0 %v3272_v63 }
 0x8de   : > { %7789 = vmatprep.subr.bf16.mxu0 %v3585_v20 }
 0x8e4   : > { %7778 = vmatmul.mubr.msk.bf16.vlgmr.msra.gmra.mrb[64].mxu0 %vm1627_vm3, %v3257_v1 }
 0x8e5   : > { %7790 = vmatpush3.bf16.msra.mxu0 %v3585_v20 }
 0x8e6   : > { %7791 = vmatprep.subr.bf16.mxu0 %v3587_v26 }
 0x8e9   : > { %7792 = vmatpush3.bf16.msra.mxu0 %v3587_v26 }
 0x8ea   : > { %7805 = vmatprep.subr.bf16.mxu0 %v10060_v28 }
 0x944   : > { %v10063_v53 = vpop.f32.mrb[28].mxu1 }
 0x945   : > { %v10065_v23 = vpop.f32.mrb[29].mxu1 }
 0x946   : > { %v10067_v16 = vpop.f32.mrb[30].mxu1 }
 0x947   : > { %v10071_v9 = vpop.f32.mrb[31].mxu1 }
 0x981   : > { %v10075_v52 = vpop.f32.mrb[32].mxu1 }
 0x982   : > { %12410 = vst [vmem:[#allocation26_spill] sm:$0xff] %v10075_v52  ;;  %v10077_v31 = vpop.f32.mrb[33].mxu1 }
 0x983   : > { %12411 = vst [vmem:[#allocation27_spill] sm:$0xff] %v10077_v31  ;;  %v10079_v39 = vpop.f32.mrb[34].mxu1 }
 0x984   : > { %12412 = vst [vmem:[#allocation28_spill] sm:$0xff] %v10079_v39  ;;  %v10083_v30 = vpop.f32.mrb[35].mxu1 }
 0x985   : > { %12413 = vst [vmem:[#allocation29_spill] sm:$0xff] %v10083_v30  ;;  %v10087_v6 = vpop.f32.mrb[52].mxu0 }
 0x986   : > { %v10089_v27 = vpop.f32.mrb[53].mxu0 }
 0x987   : > { %v10091_v35 = vpop.f32.mrb[54].mxu0 }
 0x988   : > { %v10095_v13 = vpop.f32.mrb[55].mxu0 }
 0x991   : > { %v7755_v54 = vpop.f32.mrb[36].mxu1 }
 0x992   : > { %v10101_v4 = vsel %vm1580_vm4, %v7755_v54, -1e+30  ;;  %v3101_v0 = vpop.f32.mrb[37].mxu1 }
 0x993   : > { %v3345_v25 = vsel %vm1906_vm5, %v10101_v4, -inf  ;;  %v7756_v2 = vpop.f32.mrb[38].mxu1  ;;  %v10107_v1 = vsel %vm1580_vm4, %v3101_v0, -1e+30 }
 0x994   : > { %3346 = vmax.xlane.f32.xlu0 %v3345_v25  ;;  %v3104_v5 = vpop.f32.mrb[39].mxu1  ;;  %v3339_v15 = vsel %vm1906_vm5, %v10107_v1, -inf  ;;  %v10121_v63 = vsel %vm1580_vm4, %v7756_v2, -1e+30 }
 0x995   : > { %v10111_v44 = vsel %vm1580_vm4, %v3104_v5, -1e+30  ;;  %v3348_v25 = vsel %vm1906_vm5, %v10121_v63, -inf }
 0x996   : > { %v3342_v3 = vsel %vm1906_vm5, %v10111_v44, -inf }
 0x997   : > { %3343 = vmax.xlane.f32.xlu1 %v3342_v3  ;;  %v10117_v57 = vpop.f32.mrb[56].mxu0 }
 0x998   : > { %12414 = vst [vmem:[#allocation30_spill] sm:$0xff] %v10117_v57  ;;  %3340 = vmax.xlane.f32.xlu0 %v3339_v15  ;;  %v10123_v20 = vpop.f32.mrb[57].mxu0 }
 0x999   : > { %12415 = vst [vmem:[#allocation31_spill] sm:$0xff] %v10123_v20  ;;  %v10125_v26 = vpop.f32.mrb[58].mxu0 }
 0x99a   : > { %12416 = vst [vmem:[#allocation32_spill] sm:$0xff] %v10125_v26  ;;  %v10129_v0 = vpop.f32.mrb[59].mxu0 }
 0x99b   : > { %12417 = vst [vmem:[#allocation33_spill] sm:$0xff] %v10129_v0 }
 0x99c   : > { %3349 = vmax.xlane.f32.xlu0 %v3348_v25 }
 0x9a1   : > { %v7771_v3 = vpop.f32.mrb[40].mxu1 }
 0x9a2   : > { %v10137_v2 = vsel %vm1580_vm4, %v7771_v3, -1e+30  ;;  %v3239_v15 = vpop.f32.mrb[41].mxu1 }
 0x9a3   : > { %v3369_v48 = vsel %vm1906_vm5, %v10137_v2, -inf  ;;  %v7772_v47 = vpop.f32.mrb[42].mxu1 }
 0x9a4   : > { %v10143_v54 = vsel %vm1580_vm4, %v7772_v47, -1e+30  ;;  %3370 = vmax.xlane.f32.xlu0 %v3369_v48  ;;  %v3242_v50 = vpop.f32.mrb[43].mxu1  ;;  %v10155_v47 = vsel %vm1580_vm4, %v3239_v15, -1e+30 }
 0x9a5   : > { %v3372_v5 = vsel %vm1906_vm5, %v10143_v54, -inf  ;;  %v3363_v20 = vsel %vm1906_vm5, %v10155_v47, -inf }
 0x9a6   : > { %3373 = vmax.xlane.f32.xlu1 %v3372_v5 }
 0x9a7   : > { %v7763_v25 = vpop.f32.mrb[60].mxu0 }
 0x9a8   : > { %v10149_v3 = vsel %vm1580_vm4, %v7763_v25, -1e+30  ;;  %v3170_v40 = vpop.f32.mrb[61].mxu0  ;;  %v10165_v25 = vsel %vm1580_vm4, %v3242_v50, -1e+30 }
 0x9a9   : > { %v3357_v17 = vsel %vm1906_vm5, %v10149_v3, -inf  ;;  %v7764_v14 = vpop.f32.mrb[62].mxu0  ;;  %v10171_v15 = vsel %vm1580_vm4, %v3170_v40, -1e+30 }
 0x9aa   : > { %v10159_v48 = vsel %vm1580_vm4, %v7764_v14, -1e+30  ;;  %3358 = vmax.xlane.f32.xlu0 %v3357_v17  ;;  %v3173_v5 = vpop.f32.mrb[63].mxu0  ;;  %v3366_v17 = vsel %vm1906_vm5, %v10165_v25, -inf  ;;  %v3351_v50 = vsel %vm1906_vm5, %v10171_v15, -inf }
 0x9ab   : > { %v3360_v29 = vsel %vm1906_vm5, %v10159_v48, -inf  ;;  %v10177_v14 = vsel %vm1580_vm4, %v3173_v5, -1e+30 }
 0x9ac   : > { %3361 = vmax.xlane.f32.xlu1 %v3360_v29  ;;  %v3354_v29 = vsel %vm1906_vm5, %v10177_v14, -inf }
 0x9ae   : > { %3364 = vmax.xlane.f32.xlu0 %v3363_v20 }
 0x9b0   : > { %3367 = vmax.xlane.f32.xlu1 %v3366_v17 }
 0x9b2   : > { %3352 = vmax.xlane.f32.xlu0 %v3351_v50 }
 0x9b4   : > { %3355 = vmax.xlane.f32.xlu1 %v3354_v29 }
 0x9b7   : > { %v7779_v0 = vpop.f32.mrb[64].mxu0 }
 0x9b8   : > { %v10185_v40 = vsel %vm1580_vm4, %v7779_v0, -1e+30  ;;  %v3308_v20 = vpop.f32.mrb[65].mxu0 }
 0x9b9   : > { %v3381_v57 = vsel %vm1906_vm5, %v10185_v40, -inf  ;;  %v7780_v5 = vpop.f32.mrb[66].mxu0  ;;  %v10191_v17 = vsel %vm1580_vm4, %v3308_v20, -1e+30 }
 0x9ba   : > { %v10195_v50 = vsel %vm1580_vm4, %v7780_v5, -1e+30  ;;  %3382 = vmax.xlane.f32.xlu0 %v3381_v57  ;;  %v3311_v29 = vpop.f32.mrb[67].mxu0  ;;  %v3375_v43 = vsel %vm1906_vm5, %v10191_v17, -inf  ;;  %v10211_v57 = vpop.permute.xlu0 %3771 }
 0x9bb   : > { %v3384_v26 = vsel %vm1906_vm5, %v10195_v50, -inf  ;;  %v10201_v0 = vsel %vm1580_vm4, %v3311_v29, -1e+30 }
 0x9bc   : > { %3385 = vmax.xlane.f32.xlu1 %v3384_v26  ;;  %v3378_v20 = vsel %vm1906_vm5, %v10201_v0, -inf }
 0x9be   : > { %3376 = vmax.xlane.f32.xlu0 %v3375_v43 }
 0x9c0   : > { %3379 = vmax.xlane.f32.xlu1 %v3378_v20 }
 0x9d1   : > { %3773 = vrot.lane.b32.xlu1 %v9333_v61, %s8743_s21 }
 0x9d4   : > { %3708 = vrot.lane.b32.xlu0 %v9409_v33, %s8742_s25  ;;  %s12474_s25 = scalar_lea.vmem %s12308_s11, %s8881_s3 }
 0xa21   : > { %v3347_v5 = vpop.xlane.xlu0 %3346 }
 0xa22   : > { %v3389_v29 = vsub.f32 %v10101_v4, %v3347_v5 }
 0xa24   : > { %v3407_v26 = vmul.f32 1.442695, %v3389_v29  ;;  %v3344_v11 = vpop.xlane.xlu1 %3343 }
 0xa25   : > { %v3341_v37 = vpop.xlane.xlu0 %3340  ;;  %v3388_v51 = vsub.f32 %v10111_v44, %v3344_v11 }
 0xa26   : > { %8373 = vpow2.f32 %v3407_v26  ;;  %v3387_v43 = vsub.f32 %v10107_v1, %v3341_v37 }
 0xa27   : > { %v3405_v30 = vmul.f32 1.442695, %v3388_v51 }
 0xa28   : > { %v3403_v20 = vmul.f32 1.442695, %v3387_v43 }
 0xa29   : > { %v3350_v31 = vpop.xlane.xlu0 %3349 }
 0xa2a   : > { %8375 = vpow2.f32 %v3403_v20  ;;  %v3390_v61 = vsub.f32 %v10121_v63, %v3350_v31 }
 0xa2c   : > { %v3409_v52 = vmul.f32 1.442695, %v3390_v61 }
 0xa2e   : > { %8377 = vpow2.f32 %v3409_v52 }
 0xa2f   : > { %8379 = vpow2.f32 %v3405_v30 }
 0xa30   : > { %v10217_v39 = vpop.eup %8373 }
 0xa31   : > { %v3371_v4 = vpop.xlane.xlu0 %3370  ;;  %v3441_v5 = vsel %vm1906_vm5, %v10217_v39, 0.0 }
 0xa32   : > { %v3397_v29 = vsub.f32 %v10137_v2, %v3371_v4  ;;  %3442 = vadd.xlane.f32.xlu0 %v3441_v5 }
 0xa33   : > { %v3374_v37 = vpop.xlane.xlu1 %3373 }
 0xa34   : > { %v10222_v11 = vpop.eup %8375  ;;  %v3423_v1 = vmul.f32 1.442695, %v3397_v29  ;;  %v3398_v44 = vsub.f32 %v10143_v54, %v3374_v37 }
 0xa35   : > { %v3435_v51 = vsel %vm1906_vm5, %v10222_v11, 0.0 }
 0xa36   : > { %8381 = vpow2.f32 %v3423_v1  ;;  %v3425_v52 = vmul.f32 1.442695, %v3398_v44  ;;  %3436 = vadd.xlane.f32.xlu0 %v3435_v51 }
 0xa37   : > { %v3359_v31 = vpop.xlane.xlu0 %3358 }
 0xa38   : > { %v10227_v30 = vpop.eup %8377  ;;  %8383 = vpow2.f32 %v3425_v52  ;;  %v3393_v63 = vsub.f32 %v10149_v3, %v3359_v31 }
 0xa39   : > { %v3362_v2 = vpop.xlane.xlu1 %3361  ;;  %v3444_v26 = vsel %vm1906_vm5, %v10227_v30, 0.0  ;;  %v10232_v43 = vpop.eup %8379 }
 0xa3a   : > { %v3415_v20 = vmul.f32 1.442695, %v3393_v63  ;;  %v3394_v54 = vsub.f32 %v10159_v48, %v3362_v2  ;;  %3445 = vadd.xlane.f32.xlu1 %v3444_v26  ;;  %v3438_v37 = vsel %vm1906_vm5, %v10232_v43, 0.0 }
 0xa3b   : > { %v3365_v61 = vpop.xlane.xlu0 %3364 }
 0xa3c   : > { %8385 = vpow2.f32 %v3415_v20  ;;  %v3417_v4 = vmul.f32 1.442695, %v3394_v54  ;;  %v3395_v5 = vsub.f32 %v10155_v47, %v3365_v61 }
 0xa3d   : > { %v3368_v29 = vpop.xlane.xlu1 %3367 }
 0xa3e   : > { %8387 = vpow2.f32 %v3417_v4  ;;  %v3419_v3 = vmul.f32 1.442695, %v3395_v5  ;;  %v3396_v1 = vsub.f32 %v10165_v25, %v3368_v29  ;;  %3439 = vadd.xlane.f32.xlu1 %v3438_v37 }
 0xa3f   : > { %v3353_v44 = vpop.xlane.xlu0 %3352 }
 0xa40   : > { %v10239_v51 = vpop.eup %8381  ;;  %8389 = vpow2.f32 %v3419_v3  ;;  %v3421_v48 = vmul.f32 1.442695, %v3396_v1  ;;  %v3391_v52 = vsub.f32 %v10171_v15, %v3353_v44 }
 0xa41   : > { %v3356_v31 = vpop.xlane.xlu1 %3355  ;;  %v3465_v47 = vsel %vm1906_vm5, %v10239_v51, 0.0 }
 0xa42   : > { %v10244_v63 = vpop.eup %8383  ;;  %8391 = vpow2.f32 %v3421_v48  ;;  %v3411_v2 = vmul.f32 1.442695, %v3391_v52  ;;  %v3392_v26 = vsub.f32 %v10177_v14, %v3356_v31  ;;  %3466 = vadd.xlane.f32.xlu0 %v3465_v47 }
 0xa43   : > { %v3468_v25 = vsel %vm1906_vm5, %v10244_v63, 0.0 }
 0xa44   : > { %8393 = vpow2.f32 %v3411_v2  ;;  %v3413_v20 = vmul.f32 1.442695, %v3392_v26  ;;  %3469 = vadd.xlane.f32.xlu1 %v3468_v25 }
 0xa46   : > { %v10249_v54 = vpop.eup %8385  ;;  %8395 = vpow2.f32 %v3413_v20 }
 0xa47   : > { %v3453_v15 = vsel %vm1906_vm5, %v10249_v54, 0.0  ;;  %v3383_v31 = vpop.xlane.xlu0 %3382 }
 0xa48   : > { %v10253_v61 = vpop.eup %8387  ;;  %3454 = vadd.xlane.f32.xlu0 %v3453_v15  ;;  %v3401_v26 = vsub.f32 %v10185_v40, %v3383_v31 }
 0xa49   : > { %v3456_v4 = vsel %vm1906_vm5, %v10253_v61, 0.0  ;;  %v3386_v52 = vpop.xlane.xlu1 %3385 }
 0xa4a   : > { %v10257_v14 = vpop.eup %8389  ;;  %3457 = vadd.xlane.f32.xlu1 %v3456_v4  ;;  %v3431_v15 = vmul.f32 1.442695, %v3401_v26 }
 0xa4b   : > { %v3459_v5 = vsel %vm1906_vm5, %v10257_v14, 0.0  ;;  %v3377_v25 = vpop.xlane.xlu0 %3376 }
 0xa4c   : > { %v10261_v29 = vpop.eup %8391  ;;  %3460 = vadd.xlane.f32.xlu0 %v3459_v5  ;;  %v3399_v4 = vsub.f32 %v10191_v17, %v3377_v25  ;;  %v3402_v5 = vsub.f32 %v10195_v50, %v3386_v52 }
 0xa4d   : > { %v3462_v37 = vsel %vm1906_vm5, %v10261_v29, 0.0  ;;  %v3380_v47 = vpop.xlane.xlu1 %3379 }
 0xa4e   : > { %v10265_v3 = vpop.eup %8393  ;;  %3463 = vadd.xlane.f32.xlu1 %v3462_v37  ;;  %v3400_v2 = vsub.f32 %v10201_v0, %v3380_v47  ;;  %v3433_v37 = vmul.f32 1.442695, %v3402_v5 }
 0xa4f   : > { %v3447_v1 = vsel %vm1906_vm5, %v10265_v3, 0.0 }
 0xa50   : > { %v10269_v44 = vpop.eup %8395  ;;  %3448 = vadd.xlane.f32.xlu0 %v3447_v1  ;;  %v3429_v20 = vmul.f32 1.442695, %v3400_v2 }
 0xa51   : > { %v3450_v48 = vsel %vm1906_vm5, %v10269_v44, 0.0 }
 0xa52   : > { %3451 = vadd.xlane.f32.xlu1 %v3450_v48  ;;  %8397 = vpow2.f32 %v3429_v20 }
 0xa53   : > { %8399 = vpow2.f32 %v3431_v15 }
 0xa5c   : > { %v10281_v1 = vpop.eup %8397 }
 0xa5d   : > { %v3474_v40 = vsel %vm1906_vm5, %v10281_v1, 0.0 }
 0xa63   : > { %3769 = vrot.lane.b32.xlu1 %v9337_v62, %s8744_s20  ;;  %v3427_v62 = vmul.f32 1.442695, %v3399_v4 }
 0xa65   : > { %8401 = vpow2.f32 %v3427_v62 }
 0xa66   : > { %3767 = vrot.lane.b32.xlu0 %v9323_v49, %s8744_s20  ;;  %8403 = vpow2.f32 %v3433_v37  ;;  %v10283_v49 = vpop.eup %8399 }
 0xa67   : > { %v3477_v0 = vsel %vm1906_vm5, %v10283_v49, 0.0 }
 0xa6f   : > { %v10289_v17 = vpop.eup %8401 }
 0xa70   : > { %v3471_v50 = vsel %vm1906_vm5, %v10289_v17, 0.0  ;;  %v10293_v48 = vpop.eup %8403 }
 0xa71   : > { %v3480_v52 = vsel %vm1906_vm5, %v10293_v48, 0.0 }
 0xa85   : > { %3475 = vadd.xlane.f32.xlu0 %v3474_v40 }
 0xa87   : > { %3478 = vadd.xlane.f32.xlu1 %v3477_v0 }
 0xa8b   : > { %3472 = vadd.xlane.f32.xlu1 %v3471_v50 }
 0xa8f   : > { %3481 = vadd.xlane.f32.xlu1 %v3480_v52 }
 0xa9b   : > { %3840 = vrot.lane.b32.xlu0 %v9343_v7, %s8743_s21  ;;  %v10321_v7 = vpop.permute.xlu0 %3708 }
 0xa9f   : > { %3836 = vrot.lane.b32.xlu0 %v9347_v8, %s8744_s20 }
 0xaa0   : > { %3842 = vrot.lane.b32.xlu1 %v9357_v46, %s8743_s21  ;;  %v10323_v46 = vpop.permute.xlu1 %3773 }
 0xaa3   : > { %3909 = vrot.lane.b32.xlu0 %v9371_v38, %s8743_s21 }
 0xaa4   : > { %3838 = vrot.lane.b32.xlu1 %v9361_v19, %s8744_s20 }
 0xaa7   : > { %3905 = vrot.lane.b32.xlu0 %v9375_v42, %s8744_s20 }
 0xaa8   : > { %3911 = vrot.lane.b32.xlu1 %v9383_v59, %s8743_s21 }
 0xaab   : > { %3978 = vrot.lane.b32.xlu0 %v9395_v36, %s8743_s21 }
 0xaac   : > { %3907 = vrot.lane.b32.xlu1 %v9387_v22, %s8744_s20 }
 0xaaf   : > { %3974 = vrot.lane.b32.xlu0 %v9399_v10, %s8744_s20 }
 0xab0   : > { %3980 = vrot.lane.b32.xlu1 %v9407_v32, %s8743_s21 }
 0xab4   : > { %3976 = vrot.lane.b32.xlu1 %v9411_v34, %s8744_s20 }
 0xabf   : > { %v3443_v8 = vpop.xlane.xlu0 %3442 }
 0xac3   : > { %v3437_v19 = vpop.xlane.xlu0 %3436 }
 0xac7   : > { %v3446_v38 = vpop.xlane.xlu1 %3445 }
 0xac8   : > { %8405 = vrcp.f32 %v3446_v38 }
 0xac9   : > { %8407 = vrcp.f32 %v3437_v19 }
 0xaca   : > { %8409 = vrcp.f32 %v3443_v8 }
 0xacb   : > { %v3440_v42 = vpop.xlane.xlu1 %3439 }
 0xacc   : > { %8411 = vrcp.f32 %v3440_v42 }
 0xacf   : > { %v3467_v59 = vpop.xlane.xlu0 %3466 }
 0xad1   : > { %v3470_v22 = vpop.xlane.xlu1 %3469 }
 0xad2   : > { %v8406_v36 = vpop.eup %8405  ;;  %8413 = vrcp.f32 %v3470_v22 }
 0xad3   : > { %v8408_v10 = vpop.eup %8407  ;;  %v3490_v34 = vmul.f32 %v8406_v36, %v10227_v30 }
 0xad4   : > { %v8410_v32 = vpop.eup %8409  ;;  %v3484_v26 = vmul.f32 %v8408_v10, %v10222_v11 }
 0xad5   : > { %v3455_v31 = vpop.xlane.xlu0 %3454  ;;  %v3488_v20 = vmul.f32 %v8410_v32, %v10217_v39 }
 0xad6   : > { %v8412_v47 = vpop.eup %8411 }
 0xad7   : > { %v3458_v2 = vpop.xlane.xlu1 %3457  ;;  %v3486_v25 = vmul.f32 %v8412_v47, %v10232_v43  ;;  %v3516_v5 = vpack.c.bf16 %v3490_v34, %v3488_v20 }
 0xad9   : > { %v3461_v15 = vpop.xlane.xlu0 %3460  ;;  %v3515_v4 = vpack.c.bf16 %v3486_v25, %v3484_v26 }
 0xada   : > { %8415 = vrcp.f32 %v3461_v15 }
 0xadb   : > { %8417 = vrcp.f32 %v3467_v59  ;;  %v3464_v62 = vpop.xlane.xlu1 %3463  ;;  %7785 = vmatprep.mubr.msk.bf16.mxu1 %vm1906_vm5, %v3515_v4 }
 0xadc   : > { %8419 = vrcp.f32 %v3464_v62  ;;  %7786 = vmatmul.mubr.msk.bf16.vlgmr.msra.gmra.mrb[44].mxu1 %vm1906_vm5, %v3516_v5  ;;  %v8414_v30 = vpop.eup %8413 }
 0xadd   : > { %8421 = vrcp.f32 %v3458_v2  ;;  %7798 = vmatpush3.bf16.msra.mxu1 %v10052_v45  ;;  %v3449_v11 = vpop.xlane.xlu0 %3448  ;;  %v3506_v0 = vmul.f32 %v8414_v30, %v10244_v63 }
 0xade   : > { %8423 = vrcp.f32 %v3449_v11  ;;  %7799 = vmatprep.subr.bf16.mxu1 %v10057_v58 }
 0xadf   : > { %8425 = vrcp.f32 %v3455_v31  ;;  %v3452_v39 = vpop.xlane.xlu1 %3451 }
 0xae0   : > { %8427 = vrcp.f32 %v3452_v39 }
 0xae1   : > { %7800 = vmatpush3.bf16.msra.mxu1 %v10057_v58 }
 0xae2   : > { %8002 = vmatprep.subr.msk.bf16.mxu1 %vm1627_vm3, %v10211_v57 }
 0xae4   : > { %v8416_v43 = vpop.eup %8415 }
 0xae5   : > { %v8418_v37 = vpop.eup %8417  ;;  %v3500_v45 = vmul.f32 %v8416_v43, %v10257_v14  ;;  %v3768_v14 = vpop.permute.xlu0 %3767 }
 0xae6   : > { %v8420_v40 = vpop.eup %8419  ;;  %v3504_v19 = vmul.f32 %v8418_v37, %v10239_v51  ;;  %v3782_v51 = vsel %vm1627_vm3, %v10211_v57, 0  ;;  %v3770_v57 = vpop.permute.xlu1 %3769 }
 0xae7   : > { %v8422_v50 = vpop.eup %8421  ;;  %v3502_v52 = vmul.f32 %v8420_v40, %v10261_v29 }
 0xae8   : > { %v8424_v8 = vpop.eup %8423  ;;  %v3498_v59 = vmul.f32 %v8422_v50, %v10253_v61  ;;  %v3520_v22 = vpack.c.bf16 %v3506_v0, %v3504_v19 }
 0xae9   : > { %v8426_v38 = vpop.eup %8425  ;;  %v3519_v42 = vpack.c.bf16 %v3502_v52, %v3500_v45  ;;  %v3492_v36 = vmul.f32 %v8424_v8, %v10265_v3 }
 0xaea   : > { %v8428_v58 = vpop.eup %8427  ;;  %v3496_v10 = vmul.f32 %v8426_v38, %v10249_v54  ;;  %v3785_v54 = vsel %vm1627_vm3, %v10323_v46, 0 }
 0xaeb   : > { %7801 = vmatprep.mubr.msk.bf16.mxu1 %vm1906_vm5, %v3519_v42  ;;  %v3494_v63 = vmul.f32 %v8428_v58, %v10269_v44 }
 0xaec   : > { %7802 = vmatmul.mubr.msk.bf16.vlgmr.msra.gmra.mrb[48].mxu1 %vm1906_vm5, %v3520_v22  ;;  %v3518_v61 = vpack.c.bf16 %v3498_v59, %v3496_v10 }
 0xaed   : > { %7814 = vmatpush3.bf16.xpose.msra.mxu1 %v3782_v51  ;;  %7817 = vmatprep.mubr.msk.bf16.mxu1 %vm1627_vm3, %v3768_v14  ;;  %v3517_v29 = vpack.c.bf16 %v3494_v63, %v3492_v36 }
 0xaee   : > { %8003 = vmatprep.subr.msk.bf16.mxu1 %vm1627_vm3, %v10323_v46 }
 0xaef   : > { %7793 = vmatprep.mubr.msk.bf16.mxu0 %vm1906_vm5, %v3517_v29 }
 0xaf0   : > { %7794 = vmatmul.mubr.msk.bf16.vlgmr.msra.gmra.mrb[68].mxu0 %vm1906_vm5, %v3518_v61 }
 0xaf1   : > { %7806 = vmatpush3.bf16.msra.mxu0 %v10060_v28 }
 0xaf2   : > { %7807 = vmatprep.subr.bf16.mxu0 %v10321_v7 }
 0xaf5   : > { %7808 = vmatpush3.bf16.msra.mxu0 %v10321_v7  ;;  %7816 = vmatpush3.bf16.xpose.msra.mxu1 %v3785_v54 }
 0xafc   : > { %7818 = vmatmul.mubr.msk.bf16.vlgmr.msra.gmra.mrb[52].mxu1 %vm1627_vm3, %v3770_v57 }
 0xb12   : > { %v3476_v3 = vpop.xlane.xlu0 %3475 }
 0xb13   : > { %8429 = vrcp.f32 %v3476_v3 }
 0xb14   : > { %v3479_v44 = vpop.xlane.xlu1 %3478 }
 0xb16   : > { %v3841_v32 = vpop.permute.xlu0 %3840 }
 0xb17   : > { %8004 = vmatprep.subr.msk.bf16.mxu0 %vm1627_vm3, %v3841_v32 }
 0xb18   : > { %v3473_v31 = vpop.xlane.xlu1 %3472 }
 0xb19   : > { %8431 = vrcp.f32 %v3473_v31 }
 0xb1a   : > { %v3837_v28 = vpop.permute.xlu0 %3836  ;;  %8433 = vrcp.f32 %v3479_v44 }
 0xb1c   : > { %v3482_v47 = vpop.xlane.xlu1 %3481 }
 0xb1d   : > { %8435 = vrcp.f32 %v3482_v47  ;;  %v8430_v2 = vpop.eup %8429 }
 0xb1e   : > { %v3910_v34 = vpop.permute.xlu0 %3909  ;;  %v3510_v4 = vmul.f32 %v8430_v2, %v10281_v1  ;;  %v3851_v1 = vsel %vm1627_vm3, %v3841_v32, 0 }
 0xb1f   : > { %8006 = vmatprep.subr.msk.bf16.mxu1 %vm1627_vm3, %v3910_v34  ;;  %v3920_v7 = vsel %vm1627_vm3, %v3910_v34, 0 }
 0xb20   : > { %v3843_v46 = vpop.permute.xlu1 %3842  ;;  %7830 = vmatpush3.bf16.xpose.msra.mxu1 %v3920_v7 }
 0xb22   : > { %v3906_v26 = vpop.permute.xlu0 %3905 }
 0xb23   : > { %v8432_v25 = vpop.eup %8431  ;;  %7833 = vmatprep.mubr.msk.bf16.mxu1 %vm1627_vm3, %v3906_v26 }
 0xb24   : > { %v3839_v20 = vpop.permute.xlu1 %3838  ;;  %v3508_v15 = vmul.f32 %v8432_v25, %v10289_v17  ;;  %v8434_v5 = vpop.eup %8433  ;;  %v3854_v17 = vsel %vm1627_vm3, %v3843_v46, 0 }
 0xb25   : > { %v3512_v39 = vmul.f32 %v8434_v5, %v10283_v49 }
 0xb26   : > { %v3521_v62 = vpack.c.bf16 %v3510_v4, %v3508_v15 }
 0xb27   : > { %v8436_v11 = vpop.eup %8435 }
 0xb28   : > { %v3514_v30 = vmul.f32 %v8436_v11, %v10293_v48  ;;  %v3912_v43 = vpop.permute.xlu1 %3911  ;;  %7809 = vmatprep.mubr.msk.bf16.mxu0 %vm1906_vm5, %v3521_v62  ;;  %v3979_v48 = vpop.permute.xlu0 %3978 }
 0xb29   : > { %8007 = vmatprep.subr.msk.bf16.mxu1 %vm1627_vm3, %v3912_v43  ;;  %v3923_v37 = vsel %vm1627_vm3, %v3912_v43, 0  ;;  %v3989_v50 = vsel %vm1627_vm3, %v3979_v48, 0 }
 0xb2a   : > { %7832 = vmatpush3.bf16.xpose.msra.mxu1 %v3923_v37  ;;  %v3522_v40 = vpack.c.bf16 %v3514_v30, %v3512_v39 }
 0xb2c   : > { %7810 = vmatmul.mubr.msk.bf16.vlgmr.msra.gmra.mrb[72].mxu0 %vm1906_vm5, %v3522_v40  ;;  %v3908_v49 = vpop.permute.xlu1 %3907  ;;  %v3975_v0 = vpop.permute.xlu0 %3974 }
 0xb2d   : > { %7822 = vmatpush3.bf16.xpose.msra.mxu0 %v3851_v1  ;;  %7825 = vmatprep.mubr.msk.bf16.mxu0 %vm1627_vm3, %v3837_v28 }
 0xb2e   : > { %8005 = vmatprep.subr.msk.bf16.mxu0 %vm1627_vm3, %v3843_v46 }
 0xb30   : > { %v3981_v45 = vpop.permute.xlu1 %3980 }
 0xb31   : > { %7834 = vmatmul.mubr.msk.bf16.vlgmr.msra.gmra.mrb[56].mxu1 %vm1627_vm3, %v3908_v49  ;;  %v3992_v52 = vsel %vm1627_vm3, %v3981_v45, 0 }
 0xb34   : > { %v3977_v8 = vpop.permute.xlu1 %3976 }
 0xb35   : > { %7824 = vmatpush3.bf16.xpose.msra.mxu0 %v3854_v17 }
 0xb36   : > { %8008 = vmatprep.subr.msk.bf16.mxu0 %vm1627_vm3, %v3979_v48 }
 0xb3c   : > { %7826 = vmatmul.mubr.msk.bf16.vlgmr.msra.gmra.mrb[76].mxu0 %vm1627_vm3, %v3839_v20 }
 0xb3d   : > { %7838 = vmatpush3.bf16.xpose.msra.mxu0 %v3989_v50  ;;  %7841 = vmatprep.mubr.msk.bf16.mxu0 %vm1627_vm3, %v3975_v0 }
 0xb3e   : > { %8009 = vmatprep.subr.msk.bf16.mxu0 %vm1627_vm3, %v3981_v45 }
 0xb45   : > { %7840 = vmatpush3.bf16.xpose.msra.mxu0 %v3992_v52 }
 0xb4c   : > { %7842 = vmatmul.mubr.msk.bf16.vlgmr.msra.gmra.mrb[80].mxu0 %vm1627_vm3, %v3977_v8 }
 0xbaf   : > { %v10383_v19 = vpop.f32.mrb[44].mxu1 }
 0xbb0   : > { %v10385_v38 = vpop.f32.mrb[45].mxu1 }
 0xbb1   : > { %v10387_v42 = vpop.f32.mrb[46].mxu1 }
 0xbb2   : > { %v8064_v58 = vpack.i.bf16 %v10387_v42, %v10383_v19  ;;  %v10391_v59 = vpop.f32.mrb[47].mxu1 }
 0xbb3   : > { %v8059_v22 = vpack.i.bf16 %v10391_v59, %v10385_v38 }
 0xbbf   : > { %v10395_v36 = vpop.f32.mrb[48].mxu1 }
 0xbc0   : > { %v10397_v63 = vpop.f32.mrb[49].mxu1 }
 0xbc1   : > { %v10399_v10 = vpop.f32.mrb[50].mxu1 }
 0xbc2   : > { %v10403_v51 = vpop.f32.mrb[51].mxu1 }
 0xbc3   : > { %v10407_v61 = vpop.f32.mrb[68].mxu0 }
 0xbc4   : > { %v10409_v54 = vpop.f32.mrb[69].mxu0 }
 0xbc5   : > { %v10411_v57 = vpop.f32.mrb[70].mxu0 }
 0xbc6   : > { %v8094_v3 = vpack.i.bf16 %v10411_v57, %v10407_v61  ;;  %v10415_v44 = vpop.f32.mrb[71].mxu0  ;;  %v12424_v57 = vld [vmem:[#allocation28_spill] sm:$0xff] }
 0xbcf   : > { %v7819_v31 = vpop.f32.mrb[52].mxu1 }
 0xbd0   : > { %v10421_v28 = vsel %vm1580_vm4, %v7819_v31, -1e+30  ;;  %v3821_v47 = vpop.f32.mrb[53].mxu1 }
 0xbd1   : > { %v4065_v34 = vsel %vm1906_vm5, %v10421_v28, -inf  ;;  %v7820_v7 = vpop.f32.mrb[54].mxu1  ;;  %v10427_v46 = vsel %vm1580_vm4, %v3821_v47, -1e+30 }
 0xbd2   : > { %4066 = vmax.xlane.f32.xlu0 %v4065_v34  ;;  %v3824_v2 = vpop.f32.mrb[55].mxu1  ;;  %v4059_v20 = vsel %vm1906_vm5, %v10427_v46, -inf  ;;  %v10439_v15 = vsel %vm1580_vm4, %v7820_v7, -1e+30 }
 0xbd3   : > { %v10431_v26 = vsel %vm1580_vm4, %v3824_v2, -1e+30  ;;  %v4068_v4 = vsel %vm1906_vm5, %v10439_v15, -inf }
 0xbd4   : > { %v4062_v25 = vsel %vm1906_vm5, %v10431_v26, -inf }
 0xbd5   : > { %4063 = vmax.xlane.f32.xlu1 %v4062_v25 }
 0xbd6   : > { %4060 = vmax.xlane.f32.xlu0 %v4059_v20 }
 0xbda   : > { %4069 = vmax.xlane.f32.xlu0 %v4068_v4 }
 0xbff   : > { %v10443_v5 = vpop.f32.mrb[72].mxu0 }
 0xc00   : > { %v10445_v62 = vpop.f32.mrb[73].mxu0 }
 0xc01   : > { %v10447_v11 = vpop.f32.mrb[74].mxu0 }
 0xc02   : > { %v10451_v30 = vpop.f32.mrb[75].mxu0 }
 0xc04   : > { %v7835_v37 = vpop.f32.mrb[56].mxu1 }
 0xc05   : > { %v3959_v40 = vpop.f32.mrb[57].mxu1  ;;  %v10463_v52 = vsel %vm1580_vm4, %v7835_v37, -1e+30 }
 0xc06   : > { %v7836_v1 = vpop.f32.mrb[58].mxu1  ;;  %v4089_v7 = vsel %vm1906_vm5, %v10463_v52, -inf }
 0xc07   : > { %v3962_v49 = vpop.f32.mrb[59].mxu1  ;;  %v10473_v34 = vsel %vm1580_vm4, %v7836_v1, -1e+30 }
 0xc08   : > { %v4092_v25 = vsel %vm1906_vm5, %v10473_v34, -inf }
 0xc0f   : > { %v7827_v17 = vpop.f32.mrb[76].mxu0 }
 0xc10   : > { %v10457_v48 = vsel %vm1580_vm4, %v7827_v17, -1e+30  ;;  %v3890_v0 = vpop.f32.mrb[77].mxu0 }
 0xc11   : > { %v4077_v50 = vsel %vm1906_vm5, %v10457_v48, -inf  ;;  %v7828_v45 = vpop.f32.mrb[78].mxu0  ;;  %v10479_v2 = vsel %vm1580_vm4, %v3890_v0, -1e+30 }
 0xc12   : > { %v10467_v8 = vsel %vm1580_vm4, %v7828_v45, -1e+30  ;;  %4078 = vmax.xlane.f32.xlu0 %v4077_v50  ;;  %v3893_v31 = vpop.f32.mrb[79].mxu0  ;;  %v4071_v4 = vsel %vm1906_vm5, %v10479_v2, -inf  ;;  %v10497_v45 = vsel %vm1580_vm4, %v3959_v40, -1e+30 }
 0xc13   : > { %v4080_v47 = vsel %vm1906_vm5, %v10467_v8, -inf  ;;  %v10485_v20 = vsel %vm1580_vm4, %v3893_v31, -1e+30  ;;  %v10501_v31 = vsel %vm1580_vm4, %v3962_v49, -1e+30 }
 0xc14   : > { %4081 = vmax.xlane.f32.xlu1 %v4080_v47  ;;  %v4074_v37 = vsel %vm1906_vm5, %v10485_v20, -inf  ;;  %v4083_v47 = vsel %vm1906_vm5, %v10497_v45, -inf }
 0xc16   : > { %4090 = vmax.xlane.f32.xlu0 %v4089_v7 }
 0xc18   : > { %4093 = vmax.xlane.f32.xlu1 %v4092_v25 }
 0xc1a   : > { %4072 = vmax.xlane.f32.xlu0 %v4071_v4 }
 0xc1c   : > { %4075 = vmax.xlane.f32.xlu1 %v4074_v37 }
 0xc1f   : > { %v7843_v1 = vpop.f32.mrb[80].mxu0 }
 0xc20   : > { %v4028_v17 = vpop.f32.mrb[81].mxu0  ;;  %v10507_v7 = vsel %vm1580_vm4, %v7843_v1, -1e+30 }
 0xc21   : > { %v7844_v0 = vpop.f32.mrb[82].mxu0  ;;  %v4101_v40 = vsel %vm1906_vm5, %v10507_v7, -inf  ;;  %v10519_v49 = vsel %vm1580_vm4, %v4028_v17, -1e+30 }
 0xc22   : > { %v4031_v50 = vpop.f32.mrb[83].mxu0  ;;  %v4095_v37 = vsel %vm1906_vm5, %v10519_v49, -inf }
 0xc23   : > { %v10525_v4 = vsel %vm1580_vm4, %v4031_v50, -1e+30 }
 0xc24   : > { %v4098_v1 = vsel %vm1906_vm5, %v10525_v4, -inf }
 0xc2d   : > { %4245 = vrot.lane.b32.xlu1 %v9335_v55, %s8744_s20  ;;  %v4086_v55 = vsel %vm1906_vm5, %v10501_v31, -inf }
 0xc30   : > { %4243 = vrot.lane.b32.xlu0 %v9321_v12, %s8744_s20  ;;  %v10513_v12 = vsel %vm1580_vm4, %v7844_v0, -1e+30 }
 0xc31   : > { %v4104_v25 = vsel %vm1906_vm5, %v10513_v12, -inf }
 0xc4f   : > { %4084 = vmax.xlane.f32.xlu0 %v4083_v47 }
 0xc51   : > { %4087 = vmax.xlane.f32.xlu1 %v4086_v55 }
 0xc53   : > { %4102 = vmax.xlane.f32.xlu0 %v4101_v40 }
 0xc55   : > { %4105 = vmax.xlane.f32.xlu1 %v4104_v25 }
 0xc57   : > { %4096 = vmax.xlane.f32.xlu0 %v4095_v37 }
 0xc59   : > { %4099 = vmax.xlane.f32.xlu1 %v4098_v1 }
 0xc5f   : > { %v4067_v0 = vpop.xlane.xlu0 %4066 }
 0xc60   : > { %v4109_v50 = vsub.f32 %v10421_v28, %v4067_v0 }
 0xc62   : > { %v4064_v40 = vpop.xlane.xlu1 %4063  ;;  %v4127_v25 = vmul.f32 1.442695, %v4109_v50 }
 0xc63   : > { %v4061_v17 = vpop.xlane.xlu0 %4060  ;;  %v4108_v43 = vsub.f32 %v10431_v26, %v4064_v40 }
 0xc64   : > { %v4107_v37 = vsub.f32 %v10427_v46, %v4061_v17  ;;  %8437 = vpow2.f32 %v4127_v25 }
 0xc65   : > { %v4125_v29 = vmul.f32 1.442695, %v4108_v43 }
 0xc66   : > { %v4123_v39 = vmul.f32 1.442695, %v4107_v37 }
 0xc67   : > { %v4070_v47 = vpop.xlane.xlu0 %4069 }
 0xc68   : > { %v4110_v55 = vsub.f32 %v10439_v15, %v4070_v47 }
 0xc6a   : > { %4306 = vrot.lane.b32.xlu1 %v9359_v18, %s8744_s20  ;;  %v4129_v1 = vmul.f32 1.442695, %v4110_v55 }
 0xc6c   : > { %8439 = vpow2.f32 %v4129_v1 }
 0xc6d   : > { %4304 = vrot.lane.b32.xlu0 %v9345_v24, %s8744_s20  ;;  %8441 = vpow2.f32 %v4123_v39 }
 0xc6e   : > { %8443 = vpow2.f32 %v4125_v29  ;;  %v10539_v24 = vpop.eup %8437 }
 0xc6f   : > { %v4161_v28 = vsel %vm1906_vm5, %v10539_v24, 0.0 }
 0xc76   : > { %v10541_v18 = vpop.eup %8439 }
 0xc77   : > { %v10545_v15 = vpop.eup %8441  ;;  %v4164_v46 = vsel %vm1906_vm5, %v10541_v18, 0.0 }
 0xc78   : > { %v10549_v26 = vpop.eup %8443  ;;  %v4155_v39 = vsel %vm1906_vm5, %v10545_v15, 0.0 }
 0xc79   : > { %v4158_v29 = vsel %vm1906_vm5, %v10549_v26, 0.0 }
 0xc8c   : > { %4162 = vadd.xlane.f32.xlu0 %v4161_v28 }
 0xc8e   : > { %4165 = vadd.xlane.f32.xlu1 %v4164_v46 }
 0xc90   : > { %4156 = vadd.xlane.f32.xlu0 %v4155_v39 }
 0xc92   : > { %4159 = vadd.xlane.f32.xlu1 %v4158_v29 }
 0xc9f   : > { %v4079_v43 = vpop.xlane.xlu0 %4078 }
 0xca0   : > { %v4113_v0 = vsub.f32 %v10457_v48, %v4079_v43 }
 0xca1   : > { %v4082_v17 = vpop.xlane.xlu1 %4081 }
 0xca2   : > { %v4135_v47 = vmul.f32 1.442695, %v4113_v0 }
 0xca3   : > { %v4091_v50 = vpop.xlane.xlu0 %4090 }
 0xca4   : > { %8445 = vpow2.f32 %v4135_v47  ;;  %v4117_v55 = vsub.f32 %v10463_v52, %v4091_v50  ;;  %v4114_v50 = vsub.f32 %v10467_v8, %v4082_v17 }
 0xca5   : > { %v4094_v40 = vpop.xlane.xlu1 %4093 }
 0xca6   : > { %v4143_v25 = vmul.f32 1.442695, %v4117_v55 }
 0xca7   : > { %v4073_v37 = vpop.xlane.xlu0 %4072 }
 0xca8   : > { %8447 = vpow2.f32 %v4143_v25  ;;  %v4111_v1 = vsub.f32 %v10479_v2, %v4073_v37  ;;  %v4137_v37 = vmul.f32 1.442695, %v4114_v50 }
 0xca9   : > { %v4076_v28 = vpop.xlane.xlu1 %4075 }
 0xcaa   : > { %v4131_v46 = vmul.f32 1.442695, %v4111_v1 }
 0xcab   : > { %v4244_v39 = vpop.permute.xlu0 %4243 }
 0xcac   : > { %8449 = vpow2.f32 %v4131_v46  ;;  %7845 = vmatprep.subr.bf16.mxu1 %v4244_v39  ;;  %v4118_v46 = vsub.f32 %v10473_v34, %v4094_v40 }
 0xcad   : > { %v4246_v29 = vpop.permute.xlu1 %4245  ;;  %7846 = vmatpush3.bf16.msra.mxu1 %v4244_v39 }
 0xcae   : > { %v10558_v48 = vpop.eup %8445  ;;  %7847 = vmatprep.subr.bf16.mxu1 %v4246_v29  ;;  %v4145_v8 = vmul.f32 1.442695, %v4118_v46 }
 0xcaf   : > { %v4173_v43 = vsel %vm1906_vm5, %v10558_v48, 0.0 }
 0xcb0   : > { %4174 = vadd.xlane.f32.xlu0 %v4173_v43 }
 0xcb1   : > { %7848 = vmatpush3.bf16.msra.mxu1 %v4246_v29 }
 0xcb2   : > { %v10562_v52 = vpop.eup %8447 }
 0xcb3   : > { %v4185_v2 = vsel %vm1906_vm5, %v10562_v52, 0.0 }
 0xcb4   : > { %4186 = vadd.xlane.f32.xlu0 %v4185_v2 }
 0xcb6   : > { %v10566_v0 = vpop.eup %8449 }
 0xcb7   : > { %v4167_v47 = vsel %vm1906_vm5, %v10566_v0, 0.0 }
 0xcb8   : > { %4168 = vadd.xlane.f32.xlu0 %v4167_v47  ;;  %v4112_v47 = vsub.f32 %v10485_v20, %v4076_v28 }
 0xcba   : > { %v4133_v50 = vmul.f32 1.442695, %v4112_v47 }
 0xcdc   : > { %v4085_v55 = vpop.xlane.xlu0 %4084 }
 0xcdd   : > { %v4115_v25 = vsub.f32 %v10497_v45, %v4085_v55 }
 0xcde   : > { %v4088_v1 = vpop.xlane.xlu1 %4087 }
 0xcdf   : > { %v4139_v39 = vmul.f32 1.442695, %v4115_v25  ;;  %v4116_v29 = vsub.f32 %v10501_v31, %v4088_v1 }
 0xce0   : > { %v4103_v43 = vpop.xlane.xlu0 %4102 }
 0xce1   : > { %8451 = vpow2.f32 %v4139_v39  ;;  %v4141_v2 = vmul.f32 1.442695, %v4116_v29  ;;  %v4121_v14 = vsub.f32 %v10507_v7, %v4103_v43 }
 0xce2   : > { %8453 = vpow2.f32 %v4137_v37  ;;  %v4106_v32 = vpop.xlane.xlu1 %4105 }
 0xce3   : > { %8455 = vpow2.f32 %v4141_v2  ;;  %v4151_v17 = vmul.f32 1.442695, %v4121_v14  ;;  %v4122_v28 = vsub.f32 %v10513_v12, %v4106_v32 }
 0xce4   : > { %v4097_v45 = vpop.xlane.xlu0 %4096 }
 0xce5   : > { %8457 = vpow2.f32 %v4151_v17  ;;  %v4119_v34 = vsub.f32 %v10519_v49, %v4097_v45  ;;  %v4153_v39 = vmul.f32 1.442695, %v4122_v28 }
 0xce6   : > { %v4100_v55 = vpop.xlane.xlu1 %4099  ;;  %8459 = vpow2.f32 %v4145_v8 }
 0xce7   : > { %v4120_v31 = vsub.f32 %v10525_v4, %v4100_v55  ;;  %8461 = vpow2.f32 %v4133_v50  ;;  %v4147_v14 = vmul.f32 1.442695, %v4119_v34 }
 0xce8   : > { %v4305_v40 = vpop.permute.xlu0 %4304 }
 0xce9   : > { %v4149_v25 = vmul.f32 1.442695, %v4120_v31  ;;  %7853 = vmatprep.subr.bf16.mxu0 %v4305_v40  ;;  %v12418_v31 = vpack.i.bf16 %v10071_v9, %v10065_v23 }
 0xcea   : > { %v4307_v7 = vpop.permute.xlu1 %4306  ;;  %7854 = vmatpush3.bf16.msra.mxu0 %v4305_v40 }
 0xceb   : > { %v10578_v20 = vpop.eup %8451  ;;  %8463 = vpow2.f32 %v4149_v25  ;;  %7855 = vmatprep.subr.bf16.mxu0 %v4307_v7 }
 0xcec   : > { %v10581_v37 = vpop.eup %8453  ;;  %v4179_v49 = vsel %vm1906_vm5, %v10578_v20, 0.0  ;;  %8465 = vpow2.f32 %v4147_v14 }
 0xced   : > { %v10585_v1 = vpop.eup %8455  ;;  %4180 = vadd.xlane.f32.xlu1 %v4179_v49  ;;  %v4176_v32 = vsel %vm1906_vm5, %v10581_v37, 0.0  ;;  %8467 = vpow2.f32 %v4153_v39 }
 0xcee   : > { %7856 = vmatpush3.bf16.msra.mxu0 %v4307_v7  ;;  %v4182_v4 = vsel %vm1906_vm5, %v10585_v1, 0.0 }
 0xcef   : > { %v10589_v46 = vpop.eup %8457  ;;  %4183 = vadd.xlane.f32.xlu0 %v4182_v4 }
 0xcf0   : > { %v10593_v12 = vpop.eup %8459  ;;  %v4197_v29 = vsel %vm1906_vm5, %v10589_v46, 0.0 }
 0xcf1   : > { %4177 = vadd.xlane.f32.xlu1 %v4176_v32  ;;  %v10597_v43 = vpop.eup %8461  ;;  %v4188_v2 = vsel %vm1906_vm5, %v10593_v12, 0.0 }
 0xcf2   : > { %v4170_v17 = vsel %vm1906_vm5, %v10597_v43, 0.0 }
 0xcf3   : > { %4198 = vadd.xlane.f32.xlu0 %v4197_v29 }
 0xcf5   : > { %v10601_v47 = vpop.eup %8463  ;;  %4189 = vadd.xlane.f32.xlu1 %v4188_v2 }
 0xcf6   : > { %v4194_v8 = vsel %vm1906_vm5, %v10601_v47, 0.0  ;;  %v10607_v45 = vpop.eup %8465 }
 0xcf7   : > { %4195 = vadd.xlane.f32.xlu0 %v4194_v8  ;;  %v4191_v50 = vsel %vm1906_vm5, %v10607_v45, 0.0  ;;  %v10611_v55 = vpop.eup %8467 }
 0xcf8   : > { %v4200_v34 = vsel %vm1906_vm5, %v10611_v55, 0.0 }
 0xcf9   : > { %4171 = vadd.xlane.f32.xlu1 %v4170_v17 }
 0xcfd   : > { %4192 = vadd.xlane.f32.xlu1 %v4191_v50 }
 0xd01   : > { %4201 = vadd.xlane.f32.xlu1 %v4200_v34 }
 0xd0d   : > { %4365 = vrot.lane.b32.xlu0 %v9373_v41, %s8744_s20 }
 0xd11   : > { %8050 = vrot.lane.b32.xlu0 %v12418_v31, %s8743_s21 }
 0xd12   : > { %4367 = vrot.lane.b32.xlu1 %v9385_v60, %s8744_s20  ;;  %v12419_v60 = vpack.i.bf16 %v10067_v16, %v10063_v53 }
 0xd15   : > { %8060 = vrot.lane.b32.xlu0 %v8059_v22, %s8741_s27 }
 0xd16   : > { %4426 = vrot.lane.b32.xlu1 %v9397_v56, %s8744_s20 }
 0xd19   : > { %v4163_v40 = vpop.xlane.xlu0 %4162 }
 0xd1a   : > { %4428 = vrot.lane.b32.xlu1 %v9409_v33, %s8744_s20 }
 0xd1b   : > { %v4166_v41 = vpop.xlane.xlu1 %4165 }
 0xd1c   : > { %8469 = vrcp.f32 %v4166_v41 }
 0xd1d   : > { %v4157_v25 = vpop.xlane.xlu0 %4156 }
 0xd1e   : > { %8471 = vrcp.f32 %v4157_v25  ;;  %8055 = vrot.lane.b32.xlu1 %v12419_v60, %s8743_s21 }
 0xd1f   : > { %8473 = vrcp.f32 %v4163_v40  ;;  %v4160_v23 = vpop.xlane.xlu1 %4159 }
 0xd20   : > { %8475 = vrcp.f32 %v4160_v23 }
 0xd22   : > { %8065 = vrot.lane.b32.xlu1 %v8064_v58, %s8741_s27 }
 0xd26   : > { %v8470_v56 = vpop.eup %8469 }
 0xd27   : > { %v4210_v59 = vmul.f32 %v8470_v56, %v10541_v18 }
 0xd28   : > { %v8472_v9 = vpop.eup %8471 }
 0xd29   : > { %v8474_v33 = vpop.eup %8473  ;;  %v4204_v22 = vmul.f32 %v8472_v9, %v10545_v15 }
 0xd2a   : > { %v8476_v38 = vpop.eup %8475  ;;  %v4208_v53 = vmul.f32 %v8474_v33, %v10539_v24 }
 0xd2b   : > { %v4206_v7 = vmul.f32 %v8476_v38, %v10549_v26 }
 0xd2c   : > { %v4236_v28 = vpack.c.bf16 %v4210_v59, %v4208_v53 }
 0xd2d   : > { %v4235_v16 = vpack.c.bf16 %v4206_v7, %v4204_v22 }
 0xd2f   : > { %7849 = vmatprep.mubr.msk.bf16.mxu1 %vm1906_vm5, %v4235_v16 }
 0xd30   : > { %7850 = vmatmul.mubr.msk.bf16.vlgmr.msra.gmra.mrb[60].mxu1 %vm1906_vm5, %v4236_v28 }
 0xd3d   : > { %v4175_v19 = vpop.xlane.xlu0 %4174 }
 0xd41   : > { %v4187_v42 = vpop.xlane.xlu0 %4186 }
 0xd45   : > { %v4169_v58 = vpop.xlane.xlu0 %4168 }
 0xd7a   : > { %v4181_v14 = vpop.xlane.xlu1 %4180 }
 0xd7b   : > { %8477 = vrcp.f32 %v4181_v14  ;;  %v8181_v14 = vld [vmem:[%s8911_s22] sm:$0xff]  }
 0xd7c   : > { %v4184_v49 = vpop.xlane.xlu0 %4183 }
 0xd7d   : > { %8479 = vrcp.f32 %v4184_v49  ;;  %v8182_v49 = vld [vmem:[%s8911_s22 + $0x8] sm:$0xff]  }
 0xd7e   : > { %v4178_v18 = vpop.xlane.xlu1 %4177  ;;  %8481 = vrcp.f32 %v4175_v19 }
 0xd7f   : > { %8483 = vrcp.f32 %v4178_v18 }
 0xd80   : > { %v4199_v4 = vpop.xlane.xlu0 %4198 }
 0xd82   : > { %v4190_v15 = vpop.xlane.xlu1 %4189 }
 0xd83   : > { %8485 = vrcp.f32 %v4190_v15 }
 0xd84   : > { %v4196_v24 = vpop.xlane.xlu0 %4195  ;;  %8487 = vrcp.f32 %v4169_v58 }
 0xd85   : > { %v8478_v26 = vpop.eup %8477  ;;  %8489 = vrcp.f32 %v4187_v42 }
 0xd86   : > { %v4172_v39 = vpop.xlane.xlu1 %4171  ;;  %v4220_v2 = vmul.f32 %v8478_v26, %v10578_v20 }
 0xd87   : > { %v8480_v32 = vpop.eup %8479  ;;  %8491 = vrcp.f32 %v4172_v39 }
 0xd88   : > { %v4366_v29 = vpop.permute.xlu0 %4365  ;;  %v4222_v8 = vmul.f32 %v8480_v32, %v10585_v1  ;;  %8493 = vrcp.f32 %v4196_v24  ;;  %v8482_v34 = vpop.eup %8481  ;;  %v12421_v32 = vpack.i.bf16 %v10091_v35, %v10087_v6 }
 0xd89   : > { %7861 = vmatprep.subr.bf16.mxu1 %v4366_v29  ;;  %v8484_v31 = vpop.eup %8483  ;;  %v4216_v59 = vmul.f32 %v8482_v34, %v10558_v48 }
 0xd8a   : > { %v4193_v17 = vpop.xlane.xlu1 %4192  ;;  %7862 = vmatpush3.bf16.msra.mxu1 %v4366_v29  ;;  %v4239_v50 = vpack.c.bf16 %v4222_v8, %v4220_v2  ;;  %v4218_v20 = vmul.f32 %v8484_v31, %v10581_v37  ;;  %v12422_v29 = vpack.i.bf16 %v10095_v13, %v10089_v27  ;;  %v12423_v2 = vpack.i.bf16 %v10415_v44, %v10409_v54 }
 0xd8b   : > { %8495 = vrcp.f32 %v4193_v17 }
 0xd8c   : > { %7865 = vmatprep.mubr.msk.bf16.mxu1 %vm1906_vm5, %v4239_v50  ;;  %8497 = vrcp.f32 %v4199_v4  ;;  %v4238_v16 = vpack.c.bf16 %v4218_v20, %v4216_v59  ;;  %v8051_v61 = vpop.permute.xlu0 %8050  ;;  %v12427_v20 = vld [vmem:[#allocation29_spill] sm:$0xff] }
 0xd8d   : > { %v8486_v40 = vpop.eup %8485  ;;  %v8052_v59 = vunpack.i.l.bf16 %v8051_v61 }
 0xd8e   : > { %v4202_v41 = vpop.xlane.xlu1 %4201  ;;  %v8488_v25 = vpop.eup %8487  ;;  %v4226_v1 = vmul.f32 %v8486_v40, %v10593_v12 }
 0xd8f   : > { %8499 = vrcp.f32 %v4202_v41  ;;  %v8490_v60 = vpop.eup %8489  ;;  %v4212_v9 = vmul.f32 %v8488_v25, %v10566_v0 }
 0xd90   : > { %v4224_v22 = vmul.f32 %v8490_v60, %v10562_v52 }
 0xd91   : > { %v8492_v23 = vpop.eup %8491 }
 0xd92   : > { %v4368_v56 = vpop.permute.xlu1 %4367  ;;  %v4214_v33 = vmul.f32 %v8492_v23, %v10597_v43  ;;  %v8494_v38 = vpop.eup %8493  ;;  %v4240_v28 = vpack.c.bf16 %v4226_v1, %v4224_v22  ;;  %v12428_v1 = vld [vmem:[#allocation27_spill] sm:$0xff] }
 0xd93   : > { %7863 = vmatprep.subr.bf16.mxu1 %v4368_v56  ;;  %v4230_v0 = vmul.f32 %v8494_v38, %v10601_v47  ;;  %v8053_v38 = vunpack.i.h.bf16 %v8051_v61  ;;  %v8061_v22 = vpop.permute.xlu0 %8060 }
 0xd94   : > { %7864 = vmatpush3.bf16.msra.mxu1 %v4368_v56  ;;  %v4237_v7 = vpack.c.bf16 %v4214_v33, %v4212_v9  ;;  %v12429_v56 = vpack.i.bf16 %v12427_v20, %v12428_v1 }
 0xd95   : > { %v8496_v53 = vpop.eup %8495  ;;  %7877 = vmatprep.subr.bf16.mxu1 %v8181_v14 }
 0xd96   : > { %v4427_v19 = vpop.permute.xlu1 %4426  ;;  %7857 = vmatprep.mubr.msk.bf16.mxu0 %vm1906_vm5, %v4237_v7  ;;  %v4228_v37 = vmul.f32 %v8496_v53, %v10607_v45  ;;  %v8498_v12 = vpop.eup %8497  ;;  %v12420_v45 = vmov 0  }
 0xd97   : > { %7858 = vmatmul.mubr.msk.bf16.vlgmr.msra.gmra.mrb[84].mxu0 %vm1906_vm5, %v4238_v16  ;;  %7866 = vmatmul.mubr.msk.bf16.vlgmr.msra.gmra.mrb[64].mxu1 %vm1906_vm5, %v4240_v28  ;;  %v4232_v43 = vmul.f32 %v8498_v12, %v10589_v46  ;;  %v8183_v46 = vld [vmem:[%s8911_s22 + $0x10] sm:$0xff]  }
 0xd98   : > { %7869 = vmatprep.subr.bf16.mxu0 %v4427_v19  ;;  %v4241_v48 = vpack.c.bf16 %v4230_v0, %v4228_v37  ;;  %7878 = vmatpush3.bf16.msra.mxu1 %v8181_v14  ;;  %v12430_v37 = vpack.i.bf16 %v10399_v10, %v10395_v36  ;;  %v12435_v10 = vld [vmem:[#allocation10_spill] sm:$0xff] }
 0xd99   : > { %v8500_v52 = vpop.eup %8499  ;;  %7870 = vmatpush3.bf16.msra.mxu0 %v4427_v19  ;;  %7879 = vmatprep.subr.bf16.mxu1 %v8182_v49 }
 0xd9a   : > { %v4234_v42 = vmul.f32 %v8500_v52, %v10611_v55  ;;  %v4429_v58 = vpop.permute.xlu1 %4428  ;;  %7873 = vmatprep.mubr.msk.bf16.mxu0 %vm1906_vm5, %v4241_v48  ;;  %v8184_v55 = vld [vmem:[%s8911_s22 + $0x18] sm:$0xff]   ;;  %v12431_v48 = vpack.i.bf16 %v10403_v51, %v10397_v63  ;;  %v8063_v52 = vunpack.i.h.bf16 %v8061_v22  ;;  %s12500_s22 = scalar_lea.vmem %s12313_s16, %s8881_s3 }
 0xd9b   : > { %7871 = vmatprep.subr.bf16.mxu0 %v4429_v58 }
 0xd9c   : > { %v4242_v47 = vpack.c.bf16 %v4234_v42, %v4232_v43  ;;  %7880 = vmatpush3.bf16.msra.mxu1 %v8182_v49  ;;  %v8062_v43 = vunpack.i.l.bf16 %v8061_v22  ;;  %v12432_v42 = vld [vmem:[#allocation13_spill] sm:$0xff] }
 0xd9d   : > { %7872 = vmatpush3.bf16.msra.mxu0 %v4429_v58  ;;  %7881 = vmatprep.subr.bf16.mxu1 %v8183_v46  ;;  %v4680_v58 = vsel %vm1627_vm3, %v12432_v42, %v8053_v38 }
 0xd9e   : > { %v8056_v60 = vpop.permute.xlu1 %8055 }
 0xd9f   : > { %v8058_v16 = vunpack.i.h.bf16 %v8056_v60  ;;  %v8057_v28 = vunpack.i.l.bf16 %v8056_v60 }
 0xda0   : > { %7874 = vmatmul.mubr.msk.bf16.vlgmr.msra.gmra.mrb[88].mxu0 %vm1906_vm5, %v4242_v47  ;;  %7882 = vmatpush3.bf16.msra.mxu1 %v8183_v46  ;;  %v12433_v47 = vld [vmem:[#allocation11_spill] sm:$0xff]  ;;  %v12434_v46 = vld [vmem:[#allocation12_spill] sm:$0xff] }
 0xda1   : > { %5313 = vmatprep.mubr.bf16.mxu0 %v12420_v45  ;;  %7883 = vmatprep.subr.bf16.mxu1 %v8184_v55  ;;  %v4679_v14 = vsel %vm1627_vm3, %v12433_v47, %v8052_v59  ;;  %v4682_v36 = vsel %vm1627_vm3, %v12434_v46, %v8058_v16  ;;  %v12446_v59 = vld [vmem:[#allocation17_spill] sm:$0xff] }
 0xda2   : > { %v8066_v9 = vpop.permute.xlu1 %8065 }
 0xda3   : > { %v8068_v0 = vunpack.i.h.bf16 %v8066_v9  ;;  %v8067_v12 = vunpack.i.l.bf16 %v8066_v9  ;;  %v12444_v9 = vld [vmem:[#allocation16_spill] sm:$0xff] }
 0xda4   : > { %7884 = vmatpush3.bf16.msra.mxu1 %v8184_v55  ;;  %v4681_v55 = vsel %vm1627_vm3, %v12435_v10, %v8057_v28 }
 0xda5   : > { %v4697_v51 = vsel %vm1906_vm5, %v4681_v55, %v8067_v12 }
 0xe03   : > { %v7851_v18 = vpop.f32.mrb[60].mxu1 }
 0xe04   : > { %v4289_v4 = vpop.f32.mrb[61].mxu1 }
 0xe05   : > { %v7852_v15 = vpop.f32.mrb[62].mxu1 }
 0xe06   : > { %v8074_v24 = vpack.i.bf16 %v7852_v15, %v7851_v18  ;;  %v4292_v26 = vpop.f32.mrb[63].mxu1  ;;  %v4698_v15 = vsel %vm1906_vm5, %v4682_v36, %v8068_v0 }
 0xe07   : > { %v8069_v39 = vpack.i.bf16 %v4292_v26, %v4289_v4 }
 0xe08   : > { %8075 = vrot.lane.b32.xlu1 %v8074_v24, %s8739_s30 }
 0xe09   : > { %8070 = vrot.lane.b32.xlu0 %v8069_v39, %s8739_s30  ;;  %v4695_v39 = vsel %vm1906_vm5, %v4679_v14, %v8062_v43 }
 0xe0c   : > { %8085 = vrot.lane.b32.xlu1 %v12421_v32, %s8743_s21  ;;  %v4696_v32 = vsel %vm1906_vm5, %v4680_v58, %v8063_v52 }
 0xe0d   : > { %8080 = vrot.lane.b32.xlu0 %v12422_v29, %s8743_s21 }
 0xe10   : > { %8095 = vrot.lane.b32.xlu1 %v8094_v3, %s8741_s27  ;;  %v12425_v3 = vld [vmem:[#allocation26_spill] sm:$0xff] }
 0xe11   : > { %8090 = vrot.lane.b32.xlu0 %v12423_v2, %s8741_s27  ;;  %v12426_v44 = vpack.i.bf16 %v12424_v57, %v12425_v3 }
 0xe6a   : > { %v7859_v8 = vpop.f32.mrb[84].mxu0  ;;  %v7867_v17 = vpop.f32.mrb[64].mxu1 }
 0xe6b   : > { %v4350_v50 = vpop.f32.mrb[85].mxu0  ;;  %v4411_v6 = vpop.f32.mrb[65].mxu1 }
 0xe6c   : > { %v7860_v35 = vpop.f32.mrb[86].mxu0  ;;  %v7868_v34 = vpop.f32.mrb[66].mxu1 }
 0xe6d   : > { %v8104_v31 = vpack.i.bf16 %v7860_v35, %v7859_v8  ;;  %v8134_v40 = vpack.i.bf16 %v7868_v34, %v7867_v17  ;;  %v4353_v27 = vpop.f32.mrb[87].mxu0  ;;  %v4414_v13 = vpop.f32.mrb[67].mxu1  ;;  %v12436_v35 = vld [vmem:[#allocation32_spill] sm:$0xff]  ;;  %v12437_v34 = vld [vmem:[#allocation30_spill] sm:$0xff] }
 0xe6e   : > { %v8099_v41 = vpack.i.bf16 %v4353_v27, %v4350_v50  ;;  %v8129_v25 = vpack.i.bf16 %v4414_v13, %v4411_v6  ;;  %v12440_v27 = vld [vmem:[#allocation31_spill] sm:$0xff] }
 0xe6f   : > { %8105 = vrot.lane.b32.xlu1 %v8104_v31, %s8739_s30  ;;  %v12438_v31 = vpack.i.bf16 %v12436_v35, %v12437_v34  ;;  %v12451_v34 = vld [vmem:[#allocation19_spill] sm:$0xff] }
 0xe70   : > { %8100 = vrot.lane.b32.xlu0 %v8099_v41, %s8739_s30  ;;  %v12442_v41 = vpack.i.bf16 %v10447_v11, %v10443_v5 }
 0xe73   : > { %v7875_v54 = vpop.f32.mrb[88].mxu0  ;;  %8115 = vrot.lane.b32.xlu1 %v12426_v44, %s8743_s21 }
 0xe74   : > { %v4472_v23 = vpop.f32.mrb[89].mxu0  ;;  %8110 = vrot.lane.b32.xlu0 %v12429_v56, %s8743_s21 }
 0xe75   : > { %v7876_v33 = vpop.f32.mrb[90].mxu0 }
 0xe76   : > { %v8164_v7 = vpack.i.bf16 %v7876_v33, %v7875_v54  ;;  %v4475_v53 = vpop.f32.mrb[91].mxu0 }
 0xe77   : > { %v8159_v19 = vpack.i.bf16 %v4475_v53, %v4472_v23  ;;  %8125 = vrot.lane.b32.xlu1 %v12430_v37, %s8741_s27 }
 0xe78   : > { %8120 = vrot.lane.b32.xlu0 %v12431_v48, %s8741_s27 }
 0xe7a   : > { %v8076_v49 = vpop.permute.xlu1 %8075 }
 0xe7b   : > { %v8078_v18 = vunpack.i.h.bf16 %v8076_v49  ;;  %v8077_v4 = vunpack.i.l.bf16 %v8076_v49  ;;  %8135 = vrot.lane.b32.xlu1 %v8134_v40, %s8739_s30  ;;  %v8071_v63 = vpop.permute.xlu0 %8070  ;;  %v12439_v40 = vld [vmem:[#allocation33_spill] sm:$0xff] }
 0xe7c   : > { %v8073_v24 = vunpack.i.h.bf16 %v8071_v63  ;;  %v8072_v26 = vunpack.i.l.bf16 %v8071_v63  ;;  %8130 = vrot.lane.b32.xlu0 %v8129_v25, %s8739_s30  ;;  %v12441_v13 = vpack.i.bf16 %v12439_v40, %v12440_v27  ;;  %v12443_v25 = vpack.i.bf16 %v10451_v30, %v10445_v62  ;;  %v12445_v30 = vld [vmem:[#allocation14_spill] sm:$0xff] }
 0xe7d   : > { %v4715_v29 = vsel %vm4711_vm6, %v4698_v15, %v8078_v18  ;;  %v4714_v2 = vsel %vm4711_vm6, %v4697_v51, %v8077_v4 }
 0xe7e   : > { %v4729_v8 = vpack.c.bf16 %v4715_v29, %v4714_v2  ;;  %v4712_v17 = vsel %vm4711_vm6, %v4695_v39, %v8072_v26  ;;  %v4713_v50 = vsel %vm4711_vm6, %v4696_v32, %v8073_v24  ;;  %v8086_v60 = vpop.permute.xlu1 %8085  ;;  %v12448_v29 = vld [vmem:[#allocation20_spill] sm:$0xff] }
 0xe7f   : > { %v4728_v6 = vpack.c.bf16 %v4713_v50, %v4712_v17  ;;  %8145 = vrot.lane.b32.xlu1 %v12438_v31, %s8743_s21  ;;  %v8081_v61 = vpop.permute.xlu0 %8080  ;;  %v8088_v57 = vunpack.i.h.bf16 %v8086_v60  ;;  %v8087_v3 = vunpack.i.l.bf16 %v8086_v60 }
 0xe80   : > { %8140 = vrot.lane.b32.xlu0 %v12441_v13, %s8743_s21  ;;  %v8083_v23 = vunpack.i.h.bf16 %v8081_v61  ;;  %v8082_v20 = vunpack.i.l.bf16 %v8081_v61 }
 0xe81   : > { %7885 = vmatprep.mubr.msk.bf16.mxu1 %vm1119_vm2, %v4728_v6  ;;  %v4686_v62 = vsel %vm1627_vm3, %v12444_v9, %v8088_v57  ;;  %v4685_v33 = vsel %vm1627_vm3, %v12445_v30, %v8087_v3  ;;  %v12450_v6 = vld [vmem:[#allocation21_spill] sm:$0xff] }
 0xe82   : > { %7886 = vmatmul.mubr.msk.bf16.vlgmr.msra.gmra.mrb[68].mxu1 %vm1119_vm2, %v4729_v8  ;;  %v8096_v54 = vpop.permute.xlu1 %8095  ;;  %v4684_v22 = vsel %vm1627_vm3, %v12446_v59, %v8083_v23  ;;  %v12449_v8 = vld [vmem:[#allocation18_spill] sm:$0xff] }
 0xe83   : > { %8155 = vrot.lane.b32.xlu1 %v12442_v41, %s8741_s27  ;;  %v8091_v44 = vpop.permute.xlu0 %8090  ;;  %v8098_v1 = vunpack.i.h.bf16 %v8096_v54  ;;  %v8097_v5 = vunpack.i.l.bf16 %v8096_v54 }
 0xe84   : > { %8150 = vrot.lane.b32.xlu0 %v12443_v25, %s8741_s27  ;;  %v8093_v11 = vunpack.i.h.bf16 %v8091_v44  ;;  %v8092_v56 = vunpack.i.l.bf16 %v8091_v44 }
 0xe85   : > { %v4701_v37 = vsel %vm1906_vm5, %v4685_v33, %v8097_v5  ;;  %v4702_v0 = vsel %vm1906_vm5, %v4686_v62, %v8098_v1 }
 0xe86   : > { %v4700_v43 = vsel %vm1906_vm5, %v4684_v22, %v8093_v11 }
 0xe87   : > { %8165 = vrot.lane.b32.xlu1 %v8164_v7, %s8739_s30  ;;  %v12447_v7 = vld [vmem:[#allocation15_spill] sm:$0xff] }
 0xe88   : > { %8160 = vrot.lane.b32.xlu0 %v8159_v19, %s8739_s30  ;;  %v4683_v53 = vsel %vm1627_vm3, %v12447_v7, %v8082_v20  ;;  %s12473_s30 = scalar_lea.vmem %s12307_s10, %s8881_s3 }
 0xe89   : > { %v4699_v52 = vsel %vm1906_vm5, %v4683_v53, %v8092_v56 }
 0xee1   : > { %v8106_v38 = vpop.permute.xlu1 %8105 }
 0xee2   : > { %v8108_v16 = vunpack.i.h.bf16 %v8106_v38  ;;  %v8107_v28 = vunpack.i.l.bf16 %v8106_v38  ;;  %v8101_v19 = vpop.permute.xlu0 %8100 }
 0xee3   : > { %v8103_v12 = vunpack.i.h.bf16 %v8101_v19  ;;  %v8102_v48 = vunpack.i.l.bf16 %v8101_v19 }
 0xee4   : > { %v4719_v42 = vsel %vm4711_vm6, %v4702_v0, %v8108_v16  ;;  %v4718_v58 = vsel %vm4711_vm6, %v4701_v37, %v8107_v28  ;;  %v12452_v28 = vld [vmem:[#allocation24_spill] sm:$0xff]  ;;  %v12453_v37 = vld [vmem:[#allocation22_spill] sm:$0xff] }
 0xee5   : > { %v4731_v47 = vpack.c.bf16 %v4719_v42, %v4718_v58  ;;  %v4716_v14 = vsel %vm4711_vm6, %v4699_v52, %v8102_v48  ;;  %v4717_v49 = vsel %vm4711_vm6, %v4700_v43, %v8103_v12  ;;  %v8116_v46 = vpop.permute.xlu1 %8115  ;;  %v12454_v48 = vld [vmem:[#allocation25_spill] sm:$0xff]  ;;  %v12455_v43 = vld [vmem:[#allocation23_spill] sm:$0xff] }
 0xee6   : > { %v4730_v36 = vpack.c.bf16 %v4717_v49, %v4716_v14  ;;  %v8111_v10 = vpop.permute.xlu0 %8110  ;;  %v8118_v55 = vunpack.i.h.bf16 %v8116_v46  ;;  %v8117_v18 = vunpack.i.l.bf16 %v8116_v46 }
 0xee7   : > { %v8113_v63 = vunpack.i.h.bf16 %v8111_v10  ;;  %v8112_v51 = vunpack.i.l.bf16 %v8111_v10 }
 0xee8   : > { %7889 = vmatprep.mubr.msk.bf16.mxu1 %vm1119_vm2, %v4730_v36  ;;  %v4690_v2 = vsel %vm1627_vm3, %v12448_v29, %v8118_v55  ;;  %v4689_v17 = vsel %vm1627_vm3, %v12449_v8, %v8117_v18 }
 0xee9   : > { %v8126_v4 = vpop.permute.xlu1 %8125  ;;  %7890 = vmatmul.mubr.msk.bf16.gmra.mrb[72].mxu1 %vm1119_vm2, %v4731_v47  ;;  %v4688_v35 = vsel %vm1627_vm3, %v12450_v6, %v8113_v63  ;;  %v4687_v31 = vsel %vm1627_vm3, %v12451_v34, %v8112_v51 }
 0xeea   : > { %v8121_v15 = vpop.permute.xlu0 %8120  ;;  %v8128_v24 = vunpack.i.h.bf16 %v8126_v4  ;;  %v8127_v26 = vunpack.i.l.bf16 %v8126_v4 }
 0xeeb   : > { %v8123_v39 = vunpack.i.h.bf16 %v8121_v15  ;;  %v8122_v32 = vunpack.i.l.bf16 %v8121_v15 }
 0xeec   : > { %v4705_v41 = vsel %vm1906_vm5, %v4689_v17, %v8127_v26  ;;  %v4706_v25 = vsel %vm1906_vm5, %v4690_v2, %v8128_v24  ;;  %v10809_v2 = vld [vmem:[%s12456_s24] ss:$0 sm:$0xff] }
 0xeed   : > { %v8136_v50 = vpop.permute.xlu1 %8135  ;;  %v4703_v54 = vsel %vm1906_vm5, %v4687_v31, %v8122_v32  ;;  %v4704_v57 = vsel %vm1906_vm5, %v4688_v35, %v8123_v39  ;;  %v10801_v39 = vld [vmem:[%s859_s4] ss:$0 sm:$0xff] }
 0xeee   : > { %v8138_v40 = vunpack.i.h.bf16 %v8136_v50  ;;  %v8137_v27 = vunpack.i.l.bf16 %v8136_v50  ;;  %v8131_v13 = vpop.permute.xlu0 %8130 }
 0xeef   : > { %v8133_v60 = vunpack.i.h.bf16 %v8131_v13  ;;  %v8132_v61 = vunpack.i.l.bf16 %v8131_v13 }
 0xef0   : > { %v4723_v3 = vsel %vm4711_vm6, %v4706_v25, %v8138_v40  ;;  %v4722_v44 = vsel %vm4711_vm6, %v4705_v41, %v8137_v27  ;;  %v8661_v27 = vld [vmem:[#allocation2] sm:$0xff]  ;;  %v8662_v25 = vld [vmem:[#allocation2 + $0x10] sm:$0xff] }
 0xef1   : > { %v4733_v23 = vpack.c.bf16 %v4723_v3, %v4722_v44  ;;  %v4720_v20 = vsel %vm4711_vm6, %v4703_v54, %v8132_v61  ;;  %v4721_v1 = vsel %vm4711_vm6, %v4704_v57, %v8133_v60  ;;  %v8146_v5 = vpop.permute.xlu1 %8145  ;;  %v8663_v54 = vld [vmem:[#allocation2 + $0x8] sm:$0xff] }
 0xef2   : > { %v4732_v11 = vpack.c.bf16 %v4721_v1, %v4720_v20  ;;  %v8141_v56 = vpop.permute.xlu0 %8140  ;;  %v8148_v9 = vunpack.i.h.bf16 %v8146_v5  ;;  %v8147_v62 = vunpack.i.l.bf16 %v8146_v5 }
 0xef3   : > { %v8143_v33 = vunpack.i.h.bf16 %v8141_v56  ;;  %v8142_v38 = vunpack.i.l.bf16 %v8141_v56 }
 0xef4   : > { %7893 = vmatprep.mubr.msk.bf16.mxu1 %vm1119_vm2, %v4732_v11  ;;  %v4694_v19 = vsel %vm1627_vm3, %v12452_v28, %v8148_v9  ;;  %v4693_v0 = vsel %vm1627_vm3, %v12453_v37, %v8147_v62  ;;  %v8666_v37 = vld [vmem:[#allocation2 + $0x30] sm:$0xff] }
 0xef5   : > { %v8156_v30 = vpop.permute.xlu1 %8155  ;;  %7894 = vmatmul.mubr.msk.bf16.gmra.mrb[76].mxu1 %vm1119_vm2, %v4733_v23  ;;  %v4692_v52 = vsel %vm1627_vm3, %v12454_v48, %v8143_v33  ;;  %v4691_v42 = vsel %vm1627_vm3, %v12455_v43, %v8142_v38  ;;  %v8664_v23 = vld [vmem:[#allocation2 + $0x18] sm:$0xff] }
 0xef6   : > { %v8151_v59 = vpop.permute.xlu0 %8150  ;;  %v8158_v22 = vunpack.i.h.bf16 %v8156_v30  ;;  %v8157_v7 = vunpack.i.l.bf16 %v8156_v30  ;;  %v8668_v43 = vld [vmem:[#allocation2 + $0x38] sm:$0xff] }
 0xef7   : > { %v8153_v53 = vunpack.i.h.bf16 %v8151_v59  ;;  %v8152_v16 = vunpack.i.l.bf16 %v8151_v59 }
 0xef8   : > { %v4709_v49 = vsel %vm1906_vm5, %v4693_v0, %v8157_v7  ;;  %v4710_v46 = vsel %vm1906_vm5, %v4694_v19, %v8158_v22 }
 0xef9   : > { %v8166_v12 = vpop.permute.xlu1 %8165  ;;  %v4707_v55 = vsel %vm1906_vm5, %v4691_v42, %v8152_v16  ;;  %v4708_v18 = vsel %vm1906_vm5, %v4692_v52, %v8153_v53  ;;  %v8665_v53 = vld [vmem:[#allocation2 + $0x20] sm:$0xff] }
 0xefa   : > { %v8168_v58 = vunpack.i.h.bf16 %v8166_v12  ;;  %v8167_v47 = vunpack.i.l.bf16 %v8166_v12  ;;  %v8161_v14 = vpop.permute.xlu0 %8160  ;;  %v8667_v12 = vld [vmem:[#allocation2 + $0x28] sm:$0xff] }
 0xefb   : > { %v8163_v36 = vunpack.i.h.bf16 %v8161_v14  ;;  %v8162_v10 = vunpack.i.l.bf16 %v8161_v14 }
 0xefc   : > { %v4726_v4 = vsel %vm4711_vm6, %v4709_v49, %v8167_v47  ;;  %v4727_v63 = vsel %vm4711_vm6, %v4710_v46, %v8168_v58 }
 0xefd   : > { %v4735_v51 = vpack.c.bf16 %v4727_v63, %v4726_v4  ;;  %v4724_v15 = vsel %vm4711_vm6, %v4707_v55, %v8162_v10  ;;  %v4725_v24 = vsel %vm4711_vm6, %v4708_v18, %v8163_v36 }
 0xefe   : > { %v4734_v26 = vpack.c.bf16 %v4725_v24, %v4724_v15  ;;  %v8669_v24 = vld [vmem:[#allocation2 + $0x40] sm:$0xff] }
 0xf00   : > { %7897 = vmatprep.mubr.msk.bf16.mxu1 %vm1119_vm2, %v4734_v26 }
 0xf01   : > { %7898 = vmatmul.mubr.msk.bf16.gmra.mrb[80].mxu1 %vm1119_vm2, %v4735_v51 }
 0xf55   : > { %v7887_v32 = vpop.f32.mrb[68].mxu1 }
 0xf56   : > { %v4842_v29 = vadd.f32 %v7887_v32, %v10801_v39  ;;  %v4833_v8 = vpop.f32.mrb[69].mxu1 }
 0xf57   : > { %v4834_v17 = vadd.f32 %v10801_v39, %v4833_v8  ;;  %v7888_v50 = vpop.f32.mrb[70].mxu1  ;;  %v8670_v8 = vld [vmem:[#allocation2 + $0x50] sm:$0xff] }
 0xf58   : > { %v4836_v6 = vpop.f32.mrb[71].mxu1  ;;  %v4905_v35 = vmul.f32 %v10809_v2, %v4842_v29  ;;  %v4845_v31 = vadd.f32 %v7888_v50, %v10801_v39  ;;  %v8671_v50 = vld [vmem:[#allocation2 + $0x48] sm:$0xff] }
 0xf59   : > { %v4903_v34 = vmul.f32 %v10809_v2, %v4834_v17  ;;  %v4837_v40 = vadd.f32 %v10801_v39, %v4836_v6 }
 0xf5a   : > { %v10819_v60 = vadd.f32 %v8662_v25, %v4905_v35  ;;  %v4906_v61 = vmul.f32 %v10809_v2, %v4845_v31 }
 0xf5b   : > { %v10816_v13 = vadd.f32 %v8661_v27, %v4903_v34  ;;  %v4904_v41 = vmul.f32 %v10809_v2, %v4837_v40  ;;  %v8672_v34 = vld [vmem:[#allocation2 + $0x58] sm:$0xff] }
 0xf5c   : > { %12458 = vst [vmem:[#allocation26_spill] sm:$0xff] %v10819_v60  ;;  %v10828_v20 = vadd.f32 %v8664_v23, %v4906_v61  ;;  %v4943_v1 = vsel %vm1119_vm2, %v10819_v60, 0.0 }
 0xf5d   : > { %12457 = vst [vmem:[#allocation28_spill] sm:$0xff] %v10816_v13  ;;  %v10822_v57 = vadd.f32 %v8663_v54, %v4904_v41  ;;  %v4937_v3 = vsel %vm1119_vm2, %v10816_v13, 0.0 }
 0xf5e   : > { %4938 = vadd.xlane.f32.xlu0 %v4937_v3  ;;  %12460 = vst [vmem:[#allocation27_spill] sm:$0xff] %v10828_v20  ;;  %v4946_v5 = vsel %vm1119_vm2, %v10828_v20, 0.0 }
 0xf5f   : > { %12459 = vst [vmem:[#allocation29_spill] sm:$0xff] %v10822_v57  ;;  %v4940_v44 = vsel %vm1119_vm2, %v10822_v57, 0.0 }
 0xf60   : > { %4941 = vadd.xlane.f32.xlu1 %v4940_v44 }
 0xf62   : > { %4944 = vadd.xlane.f32.xlu0 %v4943_v1 }
 0xf66   : > { %4947 = vadd.xlane.f32.xlu0 %v4946_v5 }
 0xfbc   : > { %v7891_v11 = vpop.f32.mrb[72].mxu1 }
 0xfbd   : > { %v4858_v56 = vadd.f32 %v7891_v11, %v10801_v39  ;;  %v4849_v9 = vpop.f32.mrb[73].mxu1 }
 0xfbe   : > { %v4850_v62 = vadd.f32 %v10801_v39, %v4849_v9  ;;  %v7892_v30 = vpop.f32.mrb[74].mxu1  ;;  %v8673_v9 = vld [vmem:[#allocation2 + $0x60] sm:$0xff] }
 0xfbf   : > { %v4861_v33 = vadd.f32 %v7892_v30, %v10801_v39  ;;  %v4852_v38 = vpop.f32.mrb[75].mxu1  ;;  %v4909_v59 = vmul.f32 %v10809_v2, %v4858_v56 }
 0xfc0   : > { %v4907_v22 = vmul.f32 %v10809_v2, %v4850_v62  ;;  %v4853_v7 = vadd.f32 %v10801_v39, %v4852_v38  ;;  %v8674_v38 = vld [vmem:[#allocation2 + $0x70] sm:$0xff] }
 0xfc1   : > { %v4910_v28 = vmul.f32 %v10809_v2, %v4861_v33  ;;  %v10844_v0 = vadd.f32 %v8666_v37, %v4909_v59 }
 0xfc2   : > { %v10840_v16 = vadd.f32 %v8665_v53, %v4907_v22  ;;  %v4908_v19 = vmul.f32 %v10809_v2, %v4853_v7  ;;  %v8675_v22 = vld [vmem:[#allocation2 + $0x68] sm:$0xff] }
 0xfc3   : > { %12462 = vst [vmem:[#allocation11_spill] sm:$0xff] %v10844_v0  ;;  %v10850_v42 = vadd.f32 %v8668_v43, %v4910_v28  ;;  %v4955_v14 = vsel %vm1119_vm2, %v10844_v0, 0.0  ;;  %v8676_v28 = vld [vmem:[#allocation2 + $0x78] sm:$0xff] }
 0xfc4   : > { %12461 = vst [vmem:[#allocation13_spill] sm:$0xff] %v10840_v16  ;;  %v10846_v48 = vadd.f32 %v8667_v12, %v4908_v19  ;;  %v4949_v52 = vsel %vm1119_vm2, %v10840_v16, 0.0 }
 0xfc5   : > { %4950 = vadd.xlane.f32.xlu0 %v4949_v52  ;;  %12464 = vst [vmem:[#allocation10_spill] sm:$0xff] %v10850_v42  ;;  %v4958_v55 = vsel %vm1119_vm2, %v10850_v42, 0.0 }
 0xfc6   : > { %12463 = vst [vmem:[#allocation12_spill] sm:$0xff] %v10846_v48  ;;  %v4952_v58 = vsel %vm1119_vm2, %v10846_v48, 0.0 }
 0xfc7   : > { %4953 = vadd.xlane.f32.xlu1 %v4952_v58 }
 0xfc8   : > { %v7895_v47 = vpop.f32.mrb[76].mxu1 }
 0xfc9   : > { %v4874_v49 = vadd.f32 %v7895_v47, %v10801_v39  ;;  %v4865_v46 = vpop.f32.mrb[77].mxu1  ;;  %4956 = vadd.xlane.f32.xlu0 %v4955_v14 }
 0xfca   : > { %v4866_v36 = vadd.f32 %v10801_v39, %v4865_v46  ;;  %v7896_v10 = vpop.f32.mrb[78].mxu1 }
 0xfcb   : > { %v4877_v18 = vadd.f32 %v7896_v10, %v10801_v39  ;;  %v4868_v4 = vpop.f32.mrb[79].mxu1  ;;  %4959 = vadd.xlane.f32.xlu1 %v4958_v55  ;;  %v4913_v63 = vmul.f32 %v10809_v2, %v4874_v49 }
 0xfcc   : > { %v4911_v51 = vmul.f32 %v10809_v2, %v4866_v36  ;;  %v4869_v15 = vadd.f32 %v10801_v39, %v4868_v4 }
 0xfcd   : > { %v4914_v32 = vmul.f32 %v10809_v2, %v4877_v18  ;;  %v10868_v17 = vadd.f32 %v8670_v8, %v4913_v63 }
 0xfce   : > { %v10864_v26 = vadd.f32 %v8669_v24, %v4911_v51  ;;  %v4912_v29 = vmul.f32 %v10809_v2, %v4869_v15 }
 0xfcf   : > { %12466 = vst [vmem:[#allocation30_spill] sm:$0xff] %v10868_v17  ;;  %v10874_v31 = vadd.f32 %v8672_v34, %v4914_v32  ;;  %v4967_v41 = vsel %vm1119_vm2, %v10868_v17, 0.0  ;;  %v8190_v34 = vld [vmem:[%s8928_s0 + $0x14] ss:$8 sps:$4 sm:$0xff]  }
 0xfd0   : > { %12465 = vst [vmem:[#allocation32_spill] sm:$0xff] %v10864_v26  ;;  %v10870_v6 = vadd.f32 %v8671_v50, %v4912_v29  ;;  %v4961_v35 = vsel %vm1119_vm2, %v10864_v26, 0.0  ;;  %v8187_v50 = vld [vmem:[%s8928_s0 + $0x4] ss:$8 sps:$4 sm:$0xff]  }
 0xfd1   : > { %4962 = vadd.xlane.f32.xlu0 %v4961_v35  ;;  %12468 = vst [vmem:[#allocation31_spill] sm:$0xff] %v10874_v31  ;;  %v4970_v44 = vsel %vm1119_vm2, %v10874_v31, 0.0  ;;  %v8185_v35 = vld [vmem:[%s8928_s0] ss:$8 sps:$4 sm:$0xff]   ;;  %5281 = vmatprep.subr.bf16.mxu0 %v8187_v50 }
 0xfd2   : > { %12467 = vst [vmem:[#allocation33_spill] sm:$0xff] %v10870_v6  ;;  %v4964_v40 = vsel %vm1119_vm2, %v10870_v6, 0.0  ;;  %5282 = vmatpush1.bf16.msra.mxu0 %v8185_v35 }
 0xfd3   : > { %4965 = vadd.xlane.f32.xlu1 %v4964_v40  ;;  %v8188_v40 = vld [vmem:[%s8928_s0 + $0x10] ss:$8 sps:$4 sm:$0xff]   ;;  %5283 = vmatprep.subr.bf16.mxu0 %v8190_v34 }
 0xfd4   : > { %v7899_v27 = vpop.f32.mrb[80].mxu1 }
 0xfd5   : > { %v4890_v25 = vadd.f32 %v7899_v27, %v10801_v39  ;;  %v4881_v61 = vpop.f32.mrb[81].mxu1  ;;  %4968 = vadd.xlane.f32.xlu0 %v4967_v41  ;;  %v8193_v27 = vld [vmem:[%s8928_s0 + $0x24] ss:$8 sps:$4 sm:$0xff]   ;;  %v8191_v41 = vld [vmem:[%s8928_s0 + $0x20] ss:$8 sps:$4 sm:$0xff]  }
 0xfd6   : > { %v4882_v54 = vadd.f32 %v10801_v39, %v4881_v61  ;;  %v7900_v3 = vpop.f32.mrb[82].mxu1  ;;  %5284 = vmatpush1.bf16.msra.mxu0 %v8188_v40  ;;  %v8194_v61 = vld [vmem:[%s8928_s0 + $0x30] ss:$8 sps:$4 sm:$0xff]  }
 0xfd7   : > { %v4893_v23 = vadd.f32 %v7900_v3, %v10801_v39  ;;  %v4884_v1 = vpop.f32.mrb[83].mxu1  ;;  %4971 = vadd.xlane.f32.xlu1 %v4970_v44  ;;  %v4917_v5 = vmul.f32 %v10809_v2, %v4890_v25  ;;  %5285 = vmatprep.subr.bf16.mxu0 %v8193_v27  ;;  %v8196_v25 = vld [vmem:[%s8928_s0 + $0x34] ss:$8 sps:$4 sm:$0xff]  }
 0xfd8   : > { %v4915_v11 = vmul.f32 %v10809_v2, %v4882_v54  ;;  %v4885_v56 = vadd.f32 %v10801_v39, %v4884_v1 }
 0xfd9   : > { %v4918_v30 = vmul.f32 %v10809_v2, %v4893_v23  ;;  %v10892_v59 = vadd.f32 %v8674_v38, %v4917_v5 }
 0xfda   : > { %v10888_v62 = vadd.f32 %v8673_v9, %v4915_v11  ;;  %v4916_v33 = vmul.f32 %v10809_v2, %v4885_v56  ;;  %5286 = vmatpush1.bf16.msra.mxu0 %v8191_v41 }
 0xfdb   : > { %12470 = vst [vmem:[#allocation14_spill] sm:$0xff] %v10892_v59  ;;  %v10898_v19 = vadd.f32 %v8676_v28, %v4918_v30  ;;  %v4979_v2 = vsel %vm1119_vm2, %v10892_v59, 0.0  ;;  %5287 = vmatprep.subr.bf16.mxu0 %v8196_v25 }
 0xfdc   : > { %12469 = vst [vmem:[#allocation16_spill] sm:$0xff] %v10888_v62  ;;  %v10894_v7 = vadd.f32 %v8675_v22, %v4916_v33  ;;  %v4973_v53 = vsel %vm1119_vm2, %v10888_v62, 0.0 }
 0xfdd   : > { %4974 = vadd.xlane.f32.xlu0 %v4973_v53  ;;  %12472 = vst [vmem:[#allocation15_spill] sm:$0xff] %v10898_v19  ;;  %v4982_v37 = vsel %vm1119_vm2, %v10898_v19, 0.0 }
 0xfde   : > { %12471 = vst [vmem:[#allocation17_spill] sm:$0xff] %v10894_v7  ;;  %v4976_v39 = vsel %vm1119_vm2, %v10894_v7, 0.0  ;;  %5288 = vmatpush1.bf16.msra.mxu0 %v8194_v61 }
 0xfdf   : > { %4977 = vadd.xlane.f32.xlu1 %v4976_v39 }
 0xfe1   : > { %4980 = vadd.xlane.f32.xlu0 %v4979_v2 }
 0xfe3   : > { %4983 = vadd.xlane.f32.xlu1 %v4982_v37 }
 0xfeb   : > { %v4939_v12 = vpop.xlane.xlu0 %4938 }
 0xfec   : > { %v4985_v52 = vmul.f32 0.015625, %v4939_v12 }
 0xfed   : > { %v4942_v43 = vpop.xlane.xlu1 %4941 }
 0xfee   : > { %v10907_v58 = vsub.f32 %v10816_v13, %v4985_v52  ;;  %v4986_v47 = vmul.f32 0.015625, %v4942_v43 }
 0xfef   : > { %v4945_v14 = vpop.xlane.xlu0 %4944 }
 0xff0   : > { %v10910_v49 = vsub.f32 %v10822_v57, %v4986_v47  ;;  %v4987_v46 = vmul.f32 0.015625, %v4945_v14  ;;  %v5017_v36 = vmul.f32 %v10907_v58, %v10907_v58 }
 0xff2   : > { %v10915_v10 = vsub.f32 %v10819_v60, %v4987_v46  ;;  %v5033_v55 = vsel %vm1119_vm2, %v5017_v36, 0.0  ;;  %v5018_v18 = vmul.f32 %v10910_v49, %v10910_v49 }
 0xff3   : > { %5034 = vadd.xlane.f32.xlu0 %v5033_v55  ;;  %v4948_v4 = vpop.xlane.xlu0 %4947 }
 0xff4   : > { %v4988_v63 = vmul.f32 0.015625, %v4948_v4  ;;  %v5036_v51 = vsel %vm1119_vm2, %v5018_v18, 0.0  ;;  %v5019_v15 = vmul.f32 %v10915_v10, %v10915_v10 }
 0xff5   : > { %5037 = vadd.xlane.f32.xlu1 %v5036_v51 }
 0xff6   : > { %v10924_v24 = vsub.f32 %v10828_v20, %v4988_v63  ;;  %v5039_v32 = vsel %vm1119_vm2, %v5019_v15, 0.0 }
 0xff7   : > { %5040 = vadd.xlane.f32.xlu0 %v5039_v32 }
 0xff8   : > { %v5020_v29 = vmul.f32 %v10924_v24, %v10924_v24 }
 0xffa   : > { %v5042_v8 = vsel %vm1119_vm2, %v5020_v29, 0.0 }
 0xffb   : > { %5043 = vadd.xlane.f32.xlu1 %v5042_v8 }
0x1052   : > { %v4951_v54 = vpop.xlane.xlu0 %4950 }
0x1053   : > { %v4989_v3 = vmul.f32 0.015625, %v4951_v54 }
0x1054   : > { %v4954_v44 = vpop.xlane.xlu1 %4953 }
0x1055   : > { %v10939_v23 = vsub.f32 %v10840_v16, %v4989_v3  ;;  %v4990_v1 = vmul.f32 0.015625, %v4954_v44 }
0x1056   : > { %v4957_v5 = vpop.xlane.xlu0 %4956 }
0x1057   : > { %v10942_v11 = vsub.f32 %v10846_v48, %v4990_v1  ;;  %v4991_v56 = vmul.f32 0.015625, %v4957_v5  ;;  %v5021_v9 = vmul.f32 %v10939_v23, %v10939_v23 }
0x1058   : > { %v4960_v30 = vpop.xlane.xlu1 %4959 }
0x1059   : > { %v10947_v33 = vsub.f32 %v10844_v0, %v4991_v56  ;;  %v4992_v38 = vmul.f32 0.015625, %v4960_v30  ;;  %v5045_v22 = vsel %vm1119_vm2, %v5021_v9, 0.0  ;;  %v5022_v53 = vmul.f32 %v10942_v11, %v10942_v11 }
0x105a   : > { %5046 = vadd.xlane.f32.xlu0 %v5045_v22 }
0x105b   : > { %v10953_v28 = vsub.f32 %v10850_v42, %v4992_v38  ;;  %v5048_v39 = vsel %vm1119_vm2, %v5022_v53, 0.0  ;;  %v5023_v2 = vmul.f32 %v10947_v33, %v10947_v33 }
0x105c   : > { %5049 = vadd.xlane.f32.xlu1 %v5048_v39 }
0x105d   : > { %v5051_v37 = vsel %vm1119_vm2, %v5023_v2, 0.0  ;;  %v5024_v12 = vmul.f32 %v10953_v28, %v10953_v28 }
0x105e   : > { %5052 = vadd.xlane.f32.xlu0 %v5051_v37  ;;  %v4963_v52 = vpop.xlane.xlu0 %4962 }
0x105f   : > { %v4993_v43 = vmul.f32 0.015625, %v4963_v52  ;;  %v5054_v47 = vsel %vm1119_vm2, %v5024_v12, 0.0 }
0x1060   : > { %v4966_v14 = vpop.xlane.xlu1 %4965  ;;  %5055 = vadd.xlane.f32.xlu1 %v5054_v47 }
0x1061   : > { %v10963_v46 = vsub.f32 %v10864_v26, %v4993_v43  ;;  %v4994_v36 = vmul.f32 0.015625, %v4966_v14 }
0x1062   : > { %v4969_v55 = vpop.xlane.xlu0 %4968 }
0x1063   : > { %v10966_v18 = vsub.f32 %v10870_v6, %v4994_v36  ;;  %v4995_v4 = vmul.f32 0.015625, %v4969_v55  ;;  %v5025_v63 = vmul.f32 %v10963_v46, %v10963_v46 }
0x1064   : > { %v4972_v51 = vpop.xlane.xlu1 %4971 }
0x1065   : > { %v10971_v15 = vsub.f32 %v10868_v17, %v4995_v4  ;;  %v4996_v32 = vmul.f32 0.015625, %v4972_v51  ;;  %v5057_v29 = vsel %vm1119_vm2, %v5025_v63, 0.0  ;;  %v5026_v8 = vmul.f32 %v10966_v18, %v10966_v18 }
0x1066   : > { %5058 = vadd.xlane.f32.xlu0 %v5057_v29 }
0x1067   : > { %v10977_v50 = vsub.f32 %v10874_v31, %v4996_v32  ;;  %v5060_v35 = vsel %vm1119_vm2, %v5026_v8, 0.0  ;;  %v5027_v34 = vmul.f32 %v10971_v15, %v10971_v15 }
0x1068   : > { %5061 = vadd.xlane.f32.xlu1 %v5060_v35 }
0x1069   : > { %v5063_v40 = vsel %vm1119_vm2, %v5027_v34, 0.0  ;;  %v5028_v27 = vmul.f32 %v10977_v50, %v10977_v50 }
0x106a   : > { %5064 = vadd.xlane.f32.xlu0 %v5063_v40  ;;  %v4975_v41 = vpop.xlane.xlu0 %4974 }
0x106b   : > { %v4997_v25 = vmul.f32 0.015625, %v4975_v41  ;;  %v5066_v61 = vsel %vm1119_vm2, %v5028_v27, 0.0  ;;  %v11015_v41 = vld [vmem:[%s12473_s30] ss:$0 sm:$0xff]  ;;  %s12518_s30 = sld [smem:[#allocation42_spill]] (!%p7344_p6) }
0x106c   : > { %v4978_v54 = vpop.xlane.xlu1 %4977  ;;  %5067 = vadd.xlane.f32.xlu1 %v5066_v61 }
0x106d   : > { %v10987_v3 = vsub.f32 %v10888_v62, %v4997_v25  ;;  %v4998_v44 = vmul.f32 0.015625, %v4978_v54 }
0x106e   : > { %v4981_v1 = vpop.xlane.xlu0 %4980 }
0x106f   : > { %v10990_v5 = vsub.f32 %v10894_v7, %v4998_v44  ;;  %v4999_v56 = vmul.f32 0.015625, %v4981_v1  ;;  %v5029_v9 = vmul.f32 %v10987_v3, %v10987_v3 }
0x1070   : > { %v4984_v30 = vpop.xlane.xlu1 %4983 }
0x1071   : > { %v10995_v38 = vsub.f32 %v10892_v59, %v4999_v56  ;;  %v5000_v22 = vmul.f32 0.015625, %v4984_v30  ;;  %v5069_v53 = vsel %vm1119_vm2, %v5029_v9, 0.0  ;;  %v5030_v39 = vmul.f32 %v10990_v5, %v10990_v5  ;;  %v11025_v56 = vld [vmem:[%s12474_s25] ss:$0 sm:$0xff]  ;;  %s12519_s25 = sld [smem:[#allocation43_spill]] (!%p7344_p6) }
0x1072   : > { %5070 = vadd.xlane.f32.xlu0 %v5069_v53 }
0x1073   : > { %v11001_v2 = vsub.f32 %v10898_v19, %v5000_v22  ;;  %v5072_v37 = vsel %vm1119_vm2, %v5030_v39, 0.0  ;;  %v5031_v12 = vmul.f32 %v10995_v38, %v10995_v38 }
0x1074   : > { %5073 = vadd.xlane.f32.xlu1 %v5072_v37 }
0x1075   : > { %v5075_v52 = vsel %vm1119_vm2, %v5031_v12, 0.0  ;;  %v5032_v43 = vmul.f32 %v11001_v2, %v11001_v2 }
0x1076   : > { %5076 = vadd.xlane.f32.xlu0 %v5075_v52 }
0x1077   : > { %v5078_v47 = vsel %vm1119_vm2, %v5032_v43, 0.0 }
0x1078   : > { %5079 = vadd.xlane.f32.xlu1 %v5078_v47 }
0x1080   : > { %v5035_v14 = vpop.xlane.xlu0 %5034 }
0x1081   : > { %v5081_v36 = vmul.f32 0.015625, %v5035_v14 }
0x1082   : > { %v5038_v55 = vpop.xlane.xlu1 %5037 }
0x1083   : > { %v5097_v4 = vadd.f32 1e-06, %v5081_v36  ;;  %v5082_v63 = vmul.f32 0.015625, %v5038_v55 }
0x1084   : > { %v5041_v51 = vpop.xlane.xlu0 %5040 }
0x1085   : > { %8501 = vrsqrt.f32 %v5097_v4  ;;  %v5098_v32 = vadd.f32 1e-06, %v5082_v63  ;;  %v5083_v29 = vmul.f32 0.015625, %v5041_v51 }
0x1087   : > { %8503 = vrsqrt.f32 %v5098_v32  ;;  %v5099_v8 = vadd.f32 1e-06, %v5083_v29 }
0x1088   : > { %v5044_v35 = vpop.xlane.xlu1 %5043 }
0x1089   : > { %8505 = vrsqrt.f32 %v5099_v8  ;;  %v5084_v34 = vmul.f32 0.015625, %v5044_v35 }
0x108b   : > { %v5100_v40 = vadd.f32 1e-06, %v5084_v34 }
0x108d   : > { %8507 = vrsqrt.f32 %v5100_v40 }
0x108f   : > { %v8502_v27 = vpop.eup %8501 }
0x1090   : > { %v5129_v25 = vmul.f32 %v8502_v27, %v10907_v58 }
0x1091   : > { %v8504_v61 = vpop.eup %8503 }
0x1092   : > { %v5151_v54 = vmul.f32 %v11015_v41, %v5129_v25  ;;  %v5130_v44 = vmul.f32 %v8504_v61, %v10910_v49 }
0x1093   : > { %v8506_v1 = vpop.eup %8505 }
0x1094   : > { %v5152_v9 = vmul.f32 %v11015_v41, %v5130_v44  ;;  %v5131_v30 = vmul.f32 %v8506_v1, %v10915_v10  ;;  %v5173_v22 = vadd.f32 %v11025_v56, %v5151_v54 }
0x1096   : > { %v5174_v58 = vadd.f32 %v11025_v56, %v5152_v9  ;;  %v5153_v49 = vmul.f32 %v11015_v41, %v5131_v30 }
0x1097   : > { %v8508_v53 = vpop.eup %8507 }
0x1098   : > { %v5132_v39 = vmul.f32 %v8508_v53, %v10924_v24  ;;  %v5189_v37 = vpack.c.bf16 %v5174_v58, %v5173_v22  ;;  %v5175_v10 = vadd.f32 %v11025_v56, %v5153_v49 }
0x109a   : > { %7318 = vmatmul.mubr.msk.bf16.vlgmr.msra.gmra.mrb[92].mxu0 %vm1119_vm2, %v5189_v37  ;;  %v5154_v12 = vmul.f32 %v11015_v41, %v5132_v39 }
0x109b   : > { %5323 = vmatprep.mubr.bf16.mxu0 %v12420_v45 }
0x109c   : > { %v5176_v52 = vadd.f32 %v11025_v56, %v5154_v12 }
0x109e   : > { %v5190_v43 = vpack.c.bf16 %v5176_v52, %v5175_v10 }
0x10a2   : > { %7319 = vmatmul.mubr.msk.bf16.gmra.mrb[96].mxu0 %vm1119_vm2, %v5190_v43 }
0x10a3   : > { %5333 = vmatprep.mubr.bf16.mxu0 %v12420_v45 }
0x10e7   : > { %v5047_v47 = vpop.xlane.xlu0 %5046 }
0x10e8   : > { %v5085_v24 = vmul.f32 0.015625, %v5047_v47 }
0x10e9   : > { %v5050_v14 = vpop.xlane.xlu1 %5049 }
0x10ea   : > { %v5101_v36 = vadd.f32 1e-06, %v5085_v24  ;;  %v5086_v55 = vmul.f32 0.015625, %v5050_v14 }
0x10eb   : > { %v5053_v4 = vpop.xlane.xlu0 %5052 }
0x10ec   : > { %8509 = vrsqrt.f32 %v5101_v36  ;;  %v5102_v63 = vadd.f32 1e-06, %v5086_v55  ;;  %v5087_v51 = vmul.f32 0.015625, %v5053_v4 }
0x10ed   : > { %v5056_v32 = vpop.xlane.xlu1 %5055 }
0x10ee   : > { %8511 = vrsqrt.f32 %v5102_v63  ;;  %v5103_v29 = vadd.f32 1e-06, %v5087_v51  ;;  %v5088_v8 = vmul.f32 0.015625, %v5056_v32 }
0x10f0   : > { %8513 = vrsqrt.f32 %v5103_v29  ;;  %v5104_v35 = vadd.f32 1e-06, %v5088_v8 }
0x10f2   : > { %8515 = vrsqrt.f32 %v5104_v35 }
0x10f3   : > { %v5059_v34 = vpop.xlane.xlu0 %5058 }
0x10f4   : > { %v5089_v40 = vmul.f32 0.015625, %v5059_v34 }
0x10f5   : > { %v5062_v27 = vpop.xlane.xlu1 %5061 }
0x10f6   : > { %v8510_v25 = vpop.eup %8509  ;;  %v5105_v61 = vadd.f32 1e-06, %v5089_v40  ;;  %v5090_v54 = vmul.f32 0.015625, %v5062_v27 }
0x10f7   : > { %v5133_v44 = vmul.f32 %v8510_v25, %v10939_v23  ;;  %v5065_v1 = vpop.xlane.xlu0 %5064 }
0x10f8   : > { %v8512_v9 = vpop.eup %8511  ;;  %8517 = vrsqrt.f32 %v5105_v61  ;;  %v5106_v30 = vadd.f32 1e-06, %v5090_v54  ;;  %v5091_v22 = vmul.f32 0.015625, %v5065_v1 }
0x10f9   : > { %v5134_v58 = vmul.f32 %v8512_v9, %v10942_v11  ;;  %v5068_v53 = vpop.xlane.xlu1 %5067  ;;  %v5155_v39 = vmul.f32 %v11015_v41, %v5133_v44 }
0x10fa   : > { %v8514_v37 = vpop.eup %8513  ;;  %8519 = vrsqrt.f32 %v5106_v30  ;;  %v5092_v49 = vmul.f32 0.015625, %v5068_v53  ;;  %v5107_v10 = vadd.f32 1e-06, %v5091_v22 }
0x10fb   : > { %v5156_v12 = vmul.f32 %v11015_v41, %v5134_v58  ;;  %v5135_v23 = vmul.f32 %v8514_v37, %v10947_v33  ;;  %v5177_v24 = vadd.f32 %v11025_v56, %v5155_v39 }
0x10fc   : > { %v8516_v52 = vpop.eup %8515  ;;  %v5108_v43 = vadd.f32 1e-06, %v5092_v49 }
0x10fd   : > { %v5136_v47 = vmul.f32 %v8516_v52, %v10953_v28  ;;  %v5178_v14 = vadd.f32 %v11025_v56, %v5156_v12  ;;  %v5157_v51 = vmul.f32 %v11015_v41, %v5135_v23  ;;  %v8198_v23 = vld [vmem:[%s8943_s6] sm:$0xff]  }
0x10fe   : > { %8521 = vrsqrt.f32 %v5108_v43 }
0x10ff   : > { %v5071_v11 = vpop.xlane.xlu0 %5070  ;;  %v5191_v36 = vpack.c.bf16 %v5178_v14, %v5177_v24  ;;  %v5158_v55 = vmul.f32 %v11015_v41, %v5136_v47  ;;  %8523 = vrsqrt.f32 %v5107_v10  ;;  %v5179_v61 = vadd.f32 %v11025_v56, %v5157_v51  ;;  %v8197_v10 = vld [vmem:[%s8943_s6 + $0x40] sm:$0xff]   ;;  %v8199_v14 = vld [vmem:[%s8943_s6 + $0x48] sm:$0xff]   ;;  %v8201_v51 = vld [vmem:[%s8943_s6 + $0x50] sm:$0xff]  }
0x1100   : > { %v5093_v4 = vmul.f32 0.015625, %v5071_v11  ;;  %7513 = vmatprep.subr.bf16.mxu1 %v8197_v10  ;;  %v8200_v11 = vld [vmem:[%s8943_s6 + $0x8] sm:$0xff]  }
0x1101   : > { %v5074_v63 = vpop.xlane.xlu1 %5073  ;;  %7320 = vmatmul.mubr.msk.bf16.gmra.mrb[100].mxu0 %vm1119_vm2, %v5191_v36  ;;  %v5180_v28 = vadd.f32 %v11025_v56, %v5158_v55  ;;  %7514 = vmatpush3.bf16.msra.mxu1 %v8198_v23 }
0x1102   : > { %v8518_v32 = vpop.eup %8517  ;;  %v5094_v33 = vmul.f32 0.015625, %v5074_v63  ;;  %5343 = vmatprep.mubr.bf16.mxu0 %v12420_v45  ;;  %v5109_v8 = vadd.f32 1e-06, %v5093_v4  ;;  %7515 = vmatprep.subr.bf16.mxu1 %v8199_v14 }
0x1103   : > { %v5137_v34 = vmul.f32 %v8518_v32, %v10963_v46  ;;  %v5077_v27 = vpop.xlane.xlu0 %5076  ;;  %v5192_v44 = vpack.c.bf16 %v5180_v28, %v5179_v61  ;;  %v8205_v61 = vld [vmem:[%s8943_s6 + $0x60] sm:$0xff]  }
0x1104   : > { %v8520_v29 = vpop.eup %8519  ;;  %v5110_v35 = vadd.f32 1e-06, %v5094_v33  ;;  %v5095_v30 = vmul.f32 0.015625, %v5077_v27  ;;  %v8202_v33 = vld [vmem:[%s8943_s6 + $0x10] sm:$0xff]  }
0x1105   : > { %v5138_v40 = vmul.f32 %v8520_v29, %v10966_v18  ;;  %v5080_v25 = vpop.xlane.xlu1 %5079  ;;  %v5159_v46 = vmul.f32 %v11015_v41, %v5137_v34  ;;  %7516 = vmatpush3.bf16.msra.mxu1 %v8200_v11 }
0x1106   : > { %8525 = vrsqrt.f32 %v5110_v35  ;;  %v5096_v54 = vmul.f32 0.015625, %v5080_v25  ;;  %v5111_v39 = vadd.f32 1e-06, %v5095_v30  ;;  %7517 = vmatprep.subr.bf16.mxu1 %v8201_v51  ;;  %v8204_v35 = vld [vmem:[%s8943_s6 + $0x18] sm:$0xff]  }
0x1107   : > { %v5160_v1 = vmul.f32 %v11015_v41, %v5138_v40  ;;  %8527 = vrsqrt.f32 %v5109_v8  ;;  %v5181_v49 = vadd.f32 %v11025_v56, %v5159_v46  ;;  %v8203_v8 = vld [vmem:[%s8943_s6 + $0x58] sm:$0xff]   ;;  %v8209_v46 = vld [vmem:[%s8943_s6 + $0x70] sm:$0xff]  }
0x1108   : > { %v8522_v9 = vpop.eup %8521  ;;  %v5112_v18 = vadd.f32 1e-06, %v5096_v54  ;;  %v8206_v54 = vld [vmem:[%s8943_s6 + $0x20] sm:$0xff]  }
0x1109   : > { %7321 = vmatmul.mubr.msk.bf16.gmra.mrb[104].mxu0 %vm1119_vm2, %v5192_v44  ;;  %v8524_v22 = vpop.eup %8523  ;;  %v5140_v58 = vmul.f32 %v8522_v9, %v10977_v50  ;;  %v5182_v53 = vadd.f32 %v11025_v56, %v5160_v1  ;;  %7518 = vmatpush3.bf16.msra.mxu1 %v8202_v33  ;;  %v8207_v44 = vld [vmem:[%s8943_s6 + $0x68] sm:$0xff]  }
0x110a   : > { %5353 = vmatprep.mubr.bf16.mxu0 %v12420_v45  ;;  %v5139_v37 = vmul.f32 %v8524_v22, %v10971_v15  ;;  %8529 = vrsqrt.f32 %v5112_v18  ;;  %7519 = vmatprep.subr.bf16.mxu1 %v8203_v8  ;;  %v8208_v1 = vld [vmem:[%s8943_s6 + $0x28] sm:$0xff]   ;;  %v8210_v22 = vld [vmem:[%s8943_s6 + $0x30] sm:$0xff]   ;;  %v8212_v18 = vld [vmem:[%s8943_s6 + $0x38] sm:$0xff]  }
0x110b   : > { %v5193_v12 = vpack.c.bf16 %v5182_v53, %v5181_v49  ;;  %v5162_v52 = vmul.f32 %v11015_v41, %v5140_v58  ;;  %8531 = vrsqrt.f32 %v5111_v39  ;;  %v12475_v58 = vld [vmem:[#allocation8_spill] sm:$0xff] }
0x110c   : > { %v5161_v50 = vmul.f32 %v11015_v41, %v5139_v37  ;;  %v12476_v53 = vsub.s32 0, %v12475_v58 }
0x110d   : > { %v5184_v24 = vadd.f32 %v11025_v56, %v5162_v52  ;;  %7520 = vmatpush3.bf16.msra.mxu1 %v8204_v35 }
0x110e   : > { %v5183_v55 = vadd.f32 %v11025_v56, %v5161_v50  ;;  %7521 = vmatprep.subr.bf16.mxu1 %v8205_v61 }
0x1110   : > { %v8526_v43 = vpop.eup %8525  ;;  %v5194_v4 = vpack.c.bf16 %v5184_v24, %v5183_v55 }
0x1111   : > { %7322 = vmatmul.mubr.msk.bf16.gmra.mrb[108].mxu0 %vm1119_vm2, %v5193_v12  ;;  %v8528_v15 = vpop.eup %8527  ;;  %v5142_v47 = vmul.f32 %v8526_v43, %v10990_v5  ;;  %7522 = vmatpush3.bf16.msra.mxu1 %v8206_v54 }
0x1112   : > { %5363 = vmatprep.mubr.bf16.mxu0 %v12420_v45  ;;  %v5141_v36 = vmul.f32 %v8528_v15, %v10987_v3  ;;  %7523 = vmatprep.subr.bf16.mxu1 %v8207_v44 }
0x1113   : > { %v5164_v63 = vmul.f32 %v11015_v41, %v5142_v47 }
0x1114   : > { %v8530_v32 = vpop.eup %8529  ;;  %v5163_v5 = vmul.f32 %v11015_v41, %v5141_v36 }
0x1115   : > { %v8532_v3 = vpop.eup %8531  ;;  %v5144_v28 = vmul.f32 %v8530_v32, %v11001_v2  ;;  %v5186_v29 = vadd.f32 %v11025_v56, %v5164_v63  ;;  %7524 = vmatpush3.bf16.msra.mxu1 %v8208_v1 }
0x1116   : > { %v5143_v34 = vmul.f32 %v8532_v3, %v10995_v38  ;;  %v5185_v40 = vadd.f32 %v11025_v56, %v5163_v5  ;;  %7525 = vmatprep.subr.bf16.mxu1 %v8209_v46 }
0x1117   : > { %v5166_v25 = vmul.f32 %v11015_v41, %v5144_v28 }
0x1118   : > { %v5195_v27 = vpack.c.bf16 %v5186_v29, %v5185_v40  ;;  %v5165_v2 = vmul.f32 %v11015_v41, %v5143_v34  ;;  %v8211_v41 = vld [vmem:[%s8943_s6 + $0x78] sm:$0xff]  }
0x1119   : > { %7323 = vmatmul.mubr.msk.bf16.gmra.mrb[112].mxu0 %vm1119_vm2, %v5194_v4  ;;  %v5188_v38 = vadd.f32 %v11025_v56, %v5166_v25  ;;  %7526 = vmatpush3.bf16.msra.mxu1 %v8210_v22 }
0x111a   : > { %5373 = vmatprep.mubr.bf16.mxu0 %v12420_v45  ;;  %v5187_v9 = vadd.f32 %v11025_v56, %v5165_v2  ;;  %7527 = vmatprep.subr.bf16.mxu1 %v8211_v41  ;;  %v12477_v56 = vsub.s32 1, %v12475_v58 }
0x111c   : > { %v5196_v30 = vpack.c.bf16 %v5188_v38, %v5187_v9 }
0x111d   : > { %7528 = vmatpush3.bf16.msra.mxu1 %v8212_v18 }
0x1121   : > { %7324 = vmatmul.mubr.msk.bf16.gmra.mrb[116].mxu0 %vm1119_vm2, %v5195_v27 }
0x1122   : > { %5383 = vmatprep.mubr.bf16.mxu0 %v12420_v45  ;;  %v5205_v45 = vld [vmem:[%s8933_s5] sm:$0x3] }
0x1123   : > { %v11106_v39 = vrot.slane %v5205_v45, %v12476_v53  ;;  %v11110_v37 = vrot.slane %v5205_v45, %v12477_v56 }
0x1129   : > { %7325 = vmatmul.mubr.msk.bf16.gmra.mrb[120].mxu0 %vm1119_vm2, %v5196_v30 }
0x116d   : > { %v5315_v49 = vpop.f32.mrb[92].mxu0 }
0x116e   : > { %v5316_v12 = vadd.f32 %v5315_v49, %v11106_v39  ;;  %v5317_v52 = vpop.f32.mrb[93].mxu0 }
0x116f   : > { %v11114_v10 = vadd.f32 %v5317_v52, %v11110_v37  ;;  %v5319_v43 = vpop.f32.mrb[94].mxu0 }
0x1170   : > { %v11116_v23 = vmul.f32 0.70710677, %v5316_v12  ;;  %v11119_v50 = vadd.f32 %v5319_v43, %v11106_v39  ;;  %v5321_v15 = vpop.f32.mrb[95].mxu0  ;;  %v11161_v49 = vmul.f32 0.5, %v5316_v12 }
0x1171   : > { %v11122_v47 = vmul.f32 0.70710677, %v11114_v10  ;;  %v11125_v24 = vadd.f32 %v5321_v15, %v11110_v37 }
0x1172   : > { %v5426_v14 = vand.u32 2147483647, %v11116_v23  ;;  %v11129_v11 = vmul.f32 0.70710677, %v11119_v50  ;;  %vm6066_vm7 = vcmp.ge.f32.partialorder %v11116_v23, 0.0 }
0x1173   : > { %v5427_v36 = vand.u32 2147483647, %v11122_v47  ;;  %v11133_v55 = vmul.f32 0.70710677, %v11125_v24  ;;  %vm6067_vm8 = vcmp.ge.f32.partialorder %v11122_v47, 0.0 }
0x1174   : > { %v5458_v4 = vmul.f32 0.3275911, %v5426_v14  ;;  %v5428_v63 = vand.u32 2147483647, %v11129_v11  ;;  %v5874_v44 = vsub.f32 0.0, %v5426_v14  ;;  %vm6068_vm9 = vcmp.ge.f32.partialorder %v11129_v11, 0.0 }
0x1175   : > { %v5459_v51 = vmul.f32 0.3275911, %v5427_v36  ;;  %v5429_v32 = vand.u32 2147483647, %v11133_v55  ;;  %v5325_v3 = vpop.f32.mrb[96].mxu0  ;;  %v5875_v30 = vsub.f32 0.0, %v5427_v36 }
0x1176   : > { %v5490_v33 = vadd.f32 1.0, %v5458_v4  ;;  %v5460_v5 = vmul.f32 0.3275911, %v5428_v63  ;;  %v5327_v8 = vpop.f32.mrb[97].mxu0  ;;  %v11138_v25 = vadd.f32 %v5325_v3, %v11106_v39  ;;  %v5876_v41 = vsub.f32 0.0, %v5428_v63 }
0x1177   : > { %v5491_v28 = vadd.f32 1.0, %v5459_v51  ;;  %v5461_v29 = vmul.f32 0.3275911, %v5429_v32  ;;  %v5329_v34 = vpop.f32.mrb[98].mxu0  ;;  %v11141_v61 = vadd.f32 %v5327_v8, %v11110_v37  ;;  %v5877_v18 = vsub.f32 0.0, %v5429_v32 }
0x1178   : > { %8533 = vrcp.f32 %v5490_v33  ;;  %v5492_v35 = vadd.f32 1.0, %v5460_v5  ;;  %v5331_v40 = vpop.f32.mrb[99].mxu0  ;;  %v11144_v54 = vadd.f32 %v5329_v34, %v11106_v39  ;;  %v11147_v2 = vmul.f32 0.70710677, %v11138_v25 }
0x1179   : > { %8535 = vrcp.f32 %v5491_v28  ;;  %v5493_v27 = vadd.f32 1.0, %v5461_v29  ;;  %v11150_v38 = vmul.f32 0.70710677, %v11141_v61  ;;  %v11156_v9 = vadd.f32 %v5331_v40, %v11110_v37 }
0x117a   : > { %8537 = vrcp.f32 %v5492_v35  ;;  %v11153_v1 = vmul.f32 0.70710677, %v11144_v54  ;;  %v5430_v46 = vand.u32 2147483647, %v11147_v2  ;;  %v5906_v56 = vmul.f32 %v5874_v44, %v5426_v14 }
0x117b   : > { %8539 = vrcp.f32 %v5493_v27  ;;  %v5431_v22 = vand.u32 2147483647, %v11150_v38  ;;  %v11164_v43 = vmul.f32 0.70710677, %v11156_v9  ;;  %v5907_v4 = vmul.f32 %v5875_v30, %v5427_v36 }
0x117c   : > { %v5432_v45 = vand.u32 2147483647, %v11153_v1  ;;  %v5462_v58 = vmul.f32 0.3275911, %v5430_v46  ;;  %v5878_v33 = vsub.f32 0.0, %v5430_v46  ;;  %v5908_v29 = vmul.f32 %v5876_v41, %v5428_v63 }
0x117d   : > { %v5463_v53 = vmul.f32 0.3275911, %v5431_v22  ;;  %v5909_v8 = vmul.f32 %v5877_v18, %v5429_v32  ;;  %v5433_v14 = vand.u32 2147483647, %v11164_v43  ;;  %v5879_v35 = vsub.f32 0.0, %v5431_v22 }
0x117e   : > { %v5464_v52 = vmul.f32 0.3275911, %v5432_v45  ;;  %v5494_v51 = vadd.f32 1.0, %v5462_v58  ;;  %v5938_v27 = vmul.f32 1.442695, %v5906_v56  ;;  %v5880_v21 = vsub.f32 0.0, %v5432_v45 }
0x117f   : > { %v5495_v5 = vadd.f32 1.0, %v5463_v53  ;;  %v5465_v36 = vmul.f32 0.3275911, %v5433_v14  ;;  %v5940_v58 = vmul.f32 1.442695, %v5907_v4  ;;  %v5910_v53 = vmul.f32 %v5878_v33, %v5430_v46 }
0x1180   : > { %8541 = vrcp.f32 %v5494_v51  ;;  %v5496_v34 = vadd.f32 1.0, %v5464_v52  ;;  %v5942_v41 = vmul.f32 1.442695, %v5908_v29  ;;  %v5944_v51 = vmul.f32 1.442695, %v5909_v8 }
0x1181   : > { %8543 = vrcp.f32 %v5495_v5  ;;  %v5497_v18 = vadd.f32 1.0, %v5465_v36  ;;  %v5911_v56 = vmul.f32 %v5879_v35, %v5431_v22  ;;  %v5946_v33 = vmul.f32 1.442695, %v5910_v53 }
0x1182   : > { %v11166_v15 = vpop.eup %8533  ;;  %8545 = vrcp.f32 %v5496_v34  ;;  %v5881_v8 = vsub.f32 0.0, %v5433_v14  ;;  %vm6069_vm10 = vcmp.ge.f32.partialorder %v11133_v55, 0.0  ;;  %vm6070_vm11 = vcmp.ge.f32.partialorder %v11147_v2, 0.0 }
0x1183   : > { %v11168_v3 = vpop.eup %8535  ;;  %v5586_v28 = vmul.f32 1.0614054, %v11166_v15  ;;  %8547 = vpow2.f32 %v5938_v27  ;;  %v5948_v22 = vmul.f32 1.442695, %v5911_v56  ;;  %vm6072_vm12 = vcmp.ge.f32.partialorder %v11153_v1, 0.0 }
0x1184   : > { %v5587_v12 = vmul.f32 1.0614054, %v11168_v3  ;;  %v11173_v44 = vpop.eup %8537  ;;  %8549 = vrcp.f32 %v5497_v18  ;;  %vm6071_vm13 = vcmp.ge.f32.partialorder %v11150_v38, 0.0  ;;  %vm6073_vm14 = vcmp.ge.f32.partialorder %v11164_v43, 0.0 }
0x1185   : > { %v5618_v40 = vadd.f32 -1.4531521, %v5586_v28  ;;  %v5588_v32 = vmul.f32 1.0614054, %v11173_v44  ;;  %v11177_v19 = vpop.eup %8539  ;;  %8551 = vpow2.f32 %v5940_v58  ;;  %v6167_v1 = vmul.f32 0.5, %v11141_v61 }
0x1186   : > { %v5619_v30 = vadd.f32 -1.4531521, %v5587_v12  ;;  %v5589_v4 = vmul.f32 1.0614054, %v11177_v19  ;;  %v5912_v12 = vmul.f32 %v5880_v21, %v5432_v45  ;;  %8553 = vpow2.f32 %v5942_v41 }
0x1187   : > { %v5650_v63 = vmul.f32 %v11166_v15, %v5618_v40  ;;  %v5620_v28 = vadd.f32 -1.4531521, %v5588_v32  ;;  %8555 = vpow2.f32 %v5944_v51  ;;  %v11188_v45 = vmul.f32 0.5, %v11114_v10 }
0x1188   : > { %v5651_v52 = vmul.f32 %v11168_v3, %v5619_v30  ;;  %v5621_v36 = vadd.f32 -1.4531521, %v5589_v4  ;;  %8557 = vpow2.f32 %v5946_v33  ;;  %v5950_v58 = vmul.f32 1.442695, %v5912_v12 }
0x1189   : > { %v5682_v5 = vadd.f32 1.4214138, %v5650_v63  ;;  %v5652_v29 = vmul.f32 %v11173_v44, %v5620_v28  ;;  %8559 = vpow2.f32 %v5948_v22 }
0x118a   : > { %v5683_v46 = vadd.f32 1.4214138, %v5651_v52  ;;  %v5653_v27 = vmul.f32 %v11177_v19, %v5621_v36  ;;  %v11185_v63 = vpop.eup %8541  ;;  %8561 = vpow2.f32 %v5950_v58 }
0x118b   : > { %v5714_v40 = vmul.f32 %v11166_v15, %v5682_v5  ;;  %v5684_v34 = vadd.f32 1.4214138, %v5652_v29  ;;  %v11190_v53 = vpop.eup %8543  ;;  %v5590_v52 = vmul.f32 1.0614054, %v11185_v63  ;;  %v5913_v5 = vmul.f32 %v5881_v8, %v5433_v14 }
0x118c   : > { %v5715_v30 = vmul.f32 %v11168_v3, %v5683_v46  ;;  %v5685_v18 = vadd.f32 1.4214138, %v5653_v27  ;;  %v5591_v51 = vmul.f32 1.0614054, %v11190_v53  ;;  %v11198_v33 = vpop.eup %8545 }
0x118d   : > { %v5746_v35 = vadd.f32 -0.28449672, %v5714_v40  ;;  %v5716_v41 = vmul.f32 %v11173_v44, %v5684_v34  ;;  %v5622_v46 = vadd.f32 -1.4531521, %v5590_v52  ;;  %v11202_v40 = vmul.f32 0.5, %v11119_v50  ;;  %v8548_v36 = vpop.eup %8547 }
0x118e   : > { %v5747_v21 = vadd.f32 -0.28449672, %v5715_v30  ;;  %v5717_v4 = vmul.f32 %v11177_v19, %v5685_v18  ;;  %v5623_v29 = vadd.f32 -1.4531521, %v5591_v51  ;;  %v5592_v50 = vmul.f32 1.0614054, %v11198_v33 }
0x118f   : > { %v5778_v32 = vmul.f32 %v11166_v15, %v5746_v35  ;;  %v5748_v10 = vadd.f32 -0.28449672, %v5716_v41  ;;  %v5654_v8 = vmul.f32 %v11185_v63, %v5622_v46  ;;  %v11208_v35 = vpop.eup %8549 }
0x1190   : > { %v5779_v56 = vmul.f32 %v11168_v3, %v5747_v21  ;;  %v5749_v22 = vadd.f32 -0.28449672, %v5717_v4  ;;  %v5655_v27 = vmul.f32 %v11190_v53, %v5623_v29  ;;  %v5952_v21 = vmul.f32 1.442695, %v5913_v5  ;;  %v8552_v58 = vpop.eup %8551 }
0x1191   : > { %v5810_v28 = vadd.f32 0.2548296, %v5778_v32  ;;  %v5780_v14 = vmul.f32 %v11173_v44, %v5748_v10  ;;  %v5686_v18 = vadd.f32 1.4214138, %v5654_v8  ;;  %v8554_v52 = vpop.eup %8553  ;;  %v5593_v10 = vmul.f32 1.0614054, %v11208_v35 }
0x1192   : > { %v5811_v12 = vadd.f32 0.2548296, %v5779_v56  ;;  %v5687_v51 = vadd.f32 1.4214138, %v5655_v27  ;;  %8563 = vpow2.f32 %v5952_v21  ;;  %v6165_v21 = vmul.f32 0.5, %v11125_v24 }
0x1193   : > { %v5842_v30 = vmul.f32 %v11166_v15, %v5810_v28  ;;  %v5812_v41 = vadd.f32 0.2548296, %v5780_v14  ;;  %v5781_v15 = vmul.f32 %v11177_v19, %v5749_v22  ;;  %v5624_v28 = vadd.f32 -1.4531521, %v5592_v50 }
0x1194   : > { %v5843_v34 = vmul.f32 %v11168_v3, %v5811_v12  ;;  %v8556_v3 = vpop.eup %8555  ;;  %v5718_v5 = vmul.f32 %v11185_v63, %v5686_v18  ;;  %v5625_v22 = vadd.f32 -1.4531521, %v5593_v10 }
0x1195   : > { %v6002_v32 = vmul.f32 %v8548_v36, %v5842_v30  ;;  %v5844_v46 = vmul.f32 %v11173_v44, %v5812_v41  ;;  %v5813_v12 = vadd.f32 0.2548296, %v5781_v15  ;;  %v8558_v29 = vpop.eup %8557  ;;  %v5719_v30 = vmul.f32 %v11190_v53, %v5687_v51 }
0x1196   : > { %v6003_v56 = vmul.f32 %v8552_v58, %v5843_v34  ;;  %v5656_v14 = vmul.f32 %v11198_v33, %v5624_v28  ;;  %v5750_v50 = vadd.f32 -0.28449672, %v5718_v5  ;;  %v8560_v58 = vpop.eup %8559  ;;  %v5657_v44 = vmul.f32 %v11208_v35, %v5625_v22 }
0x1197   : > { %v6034_v4 = vsub.f32 1.0, %v6002_v32  ;;  %v6004_v34 = vmul.f32 %v8554_v52, %v5844_v46  ;;  %v5845_v27 = vmul.f32 %v11177_v19, %v5813_v12  ;;  %v5751_v32 = vadd.f32 -0.28449672, %v5719_v30  ;;  %v8562_v51 = vpop.eup %8561 }
0x1198   : > { %v6035_v36 = vsub.f32 1.0, %v6003_v56  ;;  %v5688_v7 = vadd.f32 1.4214138, %v5656_v14  ;;  %v5782_v56 = vmul.f32 %v11185_v63, %v5750_v50  ;;  %v5689_v30 = vadd.f32 1.4214138, %v5657_v44 }
0x1199   : > { %v6098_v8 = vsub.f32 0.0, %v6034_v4  ;;  %v6036_v15 = vsub.f32 1.0, %v6004_v34  ;;  %v6005_v18 = vmul.f32 %v8556_v3, %v5845_v27  ;;  %v5783_v19 = vmul.f32 %v11190_v53, %v5751_v32 }
0x119a   : > { %v6099_v59 = vsub.f32 0.0, %v6035_v36  ;;  %v5720_v28 = vmul.f32 %v11198_v33, %v5688_v7  ;;  %v5814_v5 = vadd.f32 0.2548296, %v5782_v56 }
0x119b   : > { %v6130_v41 = vsel %vm6066_vm7, %v6034_v4, %v6098_v8  ;;  %v6100_v46 = vsub.f32 0.0, %v6036_v15  ;;  %v6037_v12 = vsub.f32 1.0, %v6005_v18  ;;  %v5815_v23 = vadd.f32 0.2548296, %v5783_v19 }
0x119c   : > { %v6131_v52 = vsel %vm6067_vm8, %v6035_v36, %v6099_v59  ;;  %v6194_v10 = vadd.f32 1.0, %v6130_v41  ;;  %v5752_v4 = vadd.f32 -0.28449672, %v5720_v28  ;;  %v5846_v59 = vmul.f32 %v11185_v63, %v5814_v5 }
0x119d   : > { %v6195_v3 = vadd.f32 1.0, %v6131_v52  ;;  %v6132_v14 = vsel %vm6068_vm9, %v6036_v15, %v6100_v46  ;;  %v6101_v47 = vsub.f32 0.0, %v6037_v12  ;;  %v5847_v22 = vmul.f32 %v11190_v53, %v5815_v23 }
0x119e   : > { %v6196_v36 = vadd.f32 1.0, %v6132_v14  ;;  %v5784_v7 = vmul.f32 %v11198_v33, %v5752_v4  ;;  %v5721_v8 = vmul.f32 %v11208_v35, %v5689_v30  ;;  %v6226_v34 = vmul.f32 %v6194_v10, %v11161_v49 }
0x119f   : > { %v6133_v27 = vsel %vm6069_vm10, %v6037_v12, %v6101_v47  ;;  %v6006_v50 = vmul.f32 %v8558_v29, %v5846_v59  ;;  %v6007_v44 = vmul.f32 %v8560_v58, %v5847_v22  ;;  %v6227_v53 = vmul.f32 %v6195_v3, %v11188_v45  ;;  %v8564_v29 = vpop.eup %8563 }
0x11a0   : > { %v6228_v11 = vmul.f32 %v6196_v36, %v11202_v40  ;;  %v6197_v32 = vadd.f32 1.0, %v6133_v27  ;;  %v5816_v63 = vadd.f32 0.2548296, %v5784_v7  ;;  %v5753_v15 = vadd.f32 -0.28449672, %v5721_v8 }
0x11a1   : > { %v6038_v41 = vsub.f32 1.0, %v6006_v50  ;;  %v6039_v19 = vsub.f32 1.0, %v6007_v44  ;;  %v6166_v23 = vmul.f32 0.5, %v11138_v25  ;;  %v6168_v4 = vmul.f32 0.5, %v11144_v54 }
0x11a2   : > { %v6258_v18 = vpack.c.bf16 %v6228_v11, %v6226_v34  ;;  %v6229_v56 = vmul.f32 %v6197_v32, %v6165_v21  ;;  %v5848_v52 = vmul.f32 %v11198_v33, %v5816_v63  ;;  %v5785_v55 = vmul.f32 %v11208_v35, %v5753_v15 }
0x11a3   : > { %v6102_v49 = vsub.f32 0.0, %v6038_v41  ;;  %v6103_v46 = vsub.f32 0.0, %v6039_v19  ;;  %v6169_v25 = vmul.f32 0.5, %v11156_v9 }
0x11a4   : > { %v6008_v28 = vmul.f32 %v8562_v51, %v5848_v52  ;;  %v6259_v24 = vpack.c.bf16 %v6229_v56, %v6227_v53  ;;  %v5817_v40 = vadd.f32 0.2548296, %v5785_v55 }
0x11a5   : > { %v6134_v58 = vsel %vm6070_vm11, %v6038_v41, %v6102_v49  ;;  %v6135_v2 = vsel %vm6071_vm13, %v6039_v19, %v6103_v46 }
0x11a6   : > { %v6040_v10 = vsub.f32 1.0, %v6008_v28  ;;  %6441 = vmatprep.mubr.bf16.mxu1 %v6259_v24  ;;  %v5849_v45 = vmul.f32 %v11208_v35, %v5817_v40  ;;  %v6198_v5 = vadd.f32 1.0, %v6134_v58  ;;  %v6199_v35 = vadd.f32 1.0, %v6135_v2 }
0x11a7   : > { %6442 = vmatmul.mubr.bf16.vlgmr.msra.gmra.mrb[84].mxu1 %v6258_v18 }
0x11a8   : > { %v6104_v12 = vsub.f32 0.0, %v6040_v10  ;;  %v6009_v33 = vmul.f32 %v8564_v29, %v5849_v45  ;;  %v6230_v14 = vmul.f32 %v6198_v5, %v6166_v23  ;;  %v6231_v38 = vmul.f32 %v6199_v35, %v6167_v1 }
0x11aa   : > { %v6136_v51 = vsel %vm6072_vm12, %v6040_v10, %v6104_v12  ;;  %v6041_v3 = vsub.f32 1.0, %v6009_v33 }
0x11ab   : > { %v6200_v30 = vadd.f32 1.0, %v6136_v51 }
0x11ac   : > { %v6105_v59 = vsub.f32 0.0, %v6041_v3 }
0x11ad   : > { %v6232_v47 = vmul.f32 %v6200_v30, %v6168_v4 }
0x11ae   : > { %v6137_v36 = vsel %vm6073_vm14, %v6041_v3, %v6105_v59 }
0x11af   : > { %v6260_v22 = vpack.c.bf16 %v6232_v47, %v6230_v14  ;;  %v6201_v7 = vadd.f32 1.0, %v6137_v36 }
0x11b1   : > { %v6233_v8 = vmul.f32 %v6201_v7, %v6169_v25 }
0x11b3   : > { %v6261_v34 = vpack.c.bf16 %v6233_v8, %v6231_v38 }
0x11b5   : > { %6449 = vmatprep.mubr.bf16.mxu1 %v6261_v34 }
0x11b6   : > { %6450 = vmatmul.mubr.bf16.gmra.mrb[88].mxu1 %v6260_v22 }
0x11d4   : > { %v5335_v54 = vpop.f32.mrb[100].mxu0 }
0x11d5   : > { %v11254_v27 = vadd.f32 %v5335_v54, %v11106_v39  ;;  %v5337_v21 = vpop.f32.mrb[101].mxu0 }
0x11d6   : > { %v11257_v50 = vadd.f32 %v5337_v21, %v11110_v37  ;;  %v5339_v43 = vpop.f32.mrb[102].mxu0 }
0x11d7   : > { %v11260_v11 = vmul.f32 0.70710677, %v11254_v27  ;;  %v11263_v61 = vadd.f32 %v5339_v43, %v11106_v39  ;;  %v5341_v9 = vpop.f32.mrb[103].mxu0 }
0x11d8   : > { %v11266_v32 = vmul.f32 0.70710677, %v11257_v50  ;;  %v11269_v44 = vadd.f32 %v5341_v9, %v11110_v37 }
0x11d9   : > { %v5434_v63 = vand.u32 2147483647, %v11260_v11  ;;  %v11273_v41 = vmul.f32 0.70710677, %v11263_v61  ;;  %vm6074_vm15 = vcmp.ge.f32.partialorder %v11260_v11, 0.0 }
0x11da   : > { %v11276_v15 = vand.u32 2147483647, %v11266_v32  ;;  %v11279_v53 = vmul.f32 0.70710677, %v11269_v44  ;;  %vm6075_vm0 = vcmp.ge.f32.partialorder %v11266_v32, 0.0 }
0x11db   : > { %v5466_v18 = vmul.f32 0.3275911, %v5434_v63  ;;  %v11282_v56 = vand.u32 2147483647, %v11273_v41  ;;  %v5882_v38 = vsub.f32 0.0, %v5434_v63  ;;  %vm6076_vm1 = vcmp.ge.f32.partialorder %v11273_v41, 0.0 }
0x11dc   : > { %v5467_v52 = vmul.f32 0.3275911, %v11276_v15  ;;  %v11286_v49 = vand.u32 2147483647, %v11279_v53  ;;  %v5345_v28 = vpop.f32.mrb[104].mxu0  ;;  %vm6077_vm3 = vcmp.ge.f32.partialorder %v11279_v53, 0.0 }
0x11dd   : > { %v5498_v19 = vadd.f32 1.0, %v5466_v18  ;;  %v5468_v55 = vmul.f32 0.3275911, %v11282_v56  ;;  %v5347_v29 = vpop.f32.mrb[105].mxu0  ;;  %v11291_v12 = vadd.f32 %v5345_v28, %v11106_v39 }
0x11de   : > { %v5499_v24 = vadd.f32 1.0, %v5467_v52  ;;  %v5469_v40 = vmul.f32 0.3275911, %v11286_v49  ;;  %v5349_v10 = vpop.f32.mrb[106].mxu0  ;;  %v11294_v5 = vadd.f32 %v5347_v29, %v11110_v37  ;;  %v5883_v52 = vsub.f32 0.0, %v11276_v15 }
0x11df   : > { %8565 = vrcp.f32 %v5498_v19  ;;  %v5500_v58 = vadd.f32 1.0, %v5468_v55  ;;  %v5351_v46 = vpop.f32.mrb[107].mxu0  ;;  %v11297_v33 = vadd.f32 %v5349_v10, %v11106_v39  ;;  %v11300_v23 = vmul.f32 0.70710677, %v11291_v12 }
0x11e0   : > { %8567 = vrcp.f32 %v5499_v24  ;;  %v5501_v45 = vadd.f32 1.0, %v5469_v40  ;;  %v11303_v51 = vmul.f32 0.70710677, %v11294_v5  ;;  %v11309_v4 = vadd.f32 %v5351_v46, %v11110_v37 }
0x11e1   : > { %8569 = vrcp.f32 %v5500_v58  ;;  %v11306_v2 = vmul.f32 0.70710677, %v11297_v33  ;;  %v11312_v3 = vand.u32 2147483647, %v11300_v23  ;;  %v5914_v40 = vmul.f32 %v5882_v38, %v5434_v63 }
0x11e2   : > { %8571 = vrcp.f32 %v5501_v45  ;;  %v11315_v14 = vand.u32 2147483647, %v11303_v51  ;;  %v11328_v25 = vmul.f32 0.70710677, %v11309_v4  ;;  %v5884_v45 = vsub.f32 0.0, %v11282_v56 }
0x11e3   : > { %v11320_v59 = vand.u32 2147483647, %v11306_v2  ;;  %v5470_v36 = vmul.f32 0.3275911, %v11312_v3  ;;  %vm6078_vm4 = vcmp.ge.f32.partialorder %v11300_v23, 0.0  ;;  %vm6079_vm5 = vcmp.ge.f32.partialorder %v11303_v51, 0.0 }
0x11e4   : > { %v5355_v30 = vpop.f32.mrb[108].mxu0  ;;  %v5471_v22 = vmul.f32 0.3275911, %v11315_v14  ;;  %v11338_v9 = vand.u32 2147483647, %v11328_v25  ;;  %vm6080_vm6 = vcmp.ge.f32.partialorder %v11306_v2, 0.0 }
0x11e5   : > { %v11317_v47 = vpop.f32.mrb[109].mxu0  ;;  %v5472_v1 = vmul.f32 0.3275911, %v11320_v59  ;;  %v5502_v8 = vadd.f32 1.0, %v5470_v36  ;;  %v11357_v63 = vadd.f32 %v5355_v30, %v11106_v39  ;;  %vm6081_vm7 = vcmp.ge.f32.partialorder %v11328_v25, 0.0 }
0x11e6   : > { %v11322_v35 = vpop.f32.mrb[110].mxu0  ;;  %v5503_v34 = vadd.f32 1.0, %v5471_v22  ;;  %v5473_v28 = vmul.f32 0.3275911, %v11338_v9 }
0x11e7   : > { %v11332_v54 = vpop.f32.mrb[111].mxu0  ;;  %8573 = vrcp.f32 %v5502_v8  ;;  %v5504_v19 = vadd.f32 1.0, %v5472_v1  ;;  %v11364_v31 = vmul.f32 0.70710677, %v11357_v63 }
0x11e8   : > { %8575 = vrcp.f32 %v5503_v34  ;;  %v5505_v36 = vadd.f32 1.0, %v5473_v28  ;;  %v5915_v34 = vmul.f32 %v5883_v52, %v11276_v15  ;;  %v5885_v28 = vsub.f32 0.0, %v11286_v49 }
0x11e9   : > { %v11330_v7 = vpop.eup %8565  ;;  %8577 = vrcp.f32 %v5504_v19  ;;  %12478 = vst [vmem:[#allocation20_spill] sm:$0xff] %v11364_v31  ;;  %v5954_v19 = vmul.f32 1.442695, %v5914_v40  ;;  %v11372_v17 = vand.u32 2147483647, %v11364_v31 }
0x11ea   : > { %v11334_v21 = vpop.eup %8567  ;;  %v5594_v43 = vmul.f32 1.0614054, %v11330_v7  ;;  %8579 = vrcp.f32 %v5505_v36  ;;  %v5916_v36 = vmul.f32 %v5884_v45, %v11282_v56 }
0x11eb   : > { %v5595_v18 = vmul.f32 1.0614054, %v11334_v21  ;;  %v11343_v24 = vpop.eup %8569  ;;  %v5474_v40 = vmul.f32 0.3275911, %v11372_v17  ;;  %8581 = vpow2.f32 %v5954_v19 }
0x11ec   : > { %v5626_v55 = vadd.f32 -1.4531521, %v5594_v43  ;;  %v11345_v58 = vpop.f32.mrb[112].mxu0  ;;  %v5596_v46 = vmul.f32 1.0614054, %v11343_v24  ;;  %v11352_v1 = vpop.eup %8571 }
0x11ed   : > { %v5627_v29 = vadd.f32 -1.4531521, %v5595_v18  ;;  %v11350_v22 = vpop.f32.mrb[113].mxu0 }
0x11ee   : > { %v5658_v10 = vmul.f32 %v11330_v7, %v5626_v55  ;;  %v11359_v38 = vpop.f32.mrb[114].mxu0  ;;  %v5628_v18 = vadd.f32 -1.4531521, %v5596_v46  ;;  %v5597_v55 = vmul.f32 1.0614054, %v11352_v1 }
0x11ef   : > { %v5659_v8 = vmul.f32 %v11334_v21, %v5627_v29  ;;  %v11368_v30 = vpop.f32.mrb[115].mxu0  ;;  %v5956_v46 = vmul.f32 1.442695, %v5915_v34  ;;  %v11558_v23 = vadd.f32 %v11359_v38, %v11106_v39 }
0x11f0   : > { %v5690_v43 = vadd.f32 1.4214138, %v5658_v10  ;;  %v5660_v15 = vmul.f32 %v11343_v24, %v5628_v18  ;;  %v5629_v52 = vadd.f32 -1.4531521, %v5597_v55  ;;  %v5917_v55 = vmul.f32 %v5885_v28, %v11286_v49 }
0x11f1   : > { %v5691_v62 = vadd.f32 1.4214138, %v5659_v8  ;;  %v5958_v49 = vmul.f32 1.442695, %v5916_v36  ;;  %8583 = vpow2.f32 %v5956_v46  ;;  %v11593_v2 = vadd.f32 %v11368_v30, %v11110_v37 }
0x11f2   : > { %v5722_v29 = vmul.f32 %v11330_v7, %v5690_v43  ;;  %v5692_v6 = vadd.f32 1.4214138, %v5660_v15  ;;  %v5661_v26 = vmul.f32 %v11352_v1, %v5629_v52  ;;  %v11378_v43 = vpop.eup %8573 }
0x11f3   : > { %v5723_v10 = vmul.f32 %v11334_v21, %v5691_v62  ;;  %v11384_v34 = vpop.eup %8575  ;;  %v5598_v56 = vmul.f32 1.0614054, %v11378_v43 }
0x11f4   : > { %v5754_v8 = vadd.f32 -0.28449672, %v5722_v29  ;;  %v11376_v42 = vpop.f32.mrb[116].mxu0  ;;  %v5693_v15 = vadd.f32 1.4214138, %v5661_v26  ;;  %v5724_v52 = vmul.f32 %v11343_v24, %v5692_v6  ;;  %v11395_v20 = vpop.eup %8577 }
0x11f5   : > { %v5755_v18 = vadd.f32 -0.28449672, %v5723_v10  ;;  %v11382_v62 = vpop.f32.mrb[117].mxu0  ;;  %v5599_v0 = vmul.f32 1.0614054, %v11384_v34  ;;  %v5506_v10 = vadd.f32 1.0, %v5474_v40 }
0x11f6   : > { %12479 = vst [vmem:[#allocation18_spill] sm:$0xff] %v11382_v62  ;;  %v5786_v29 = vmul.f32 %v11330_v7, %v5754_v8  ;;  %v11388_v45 = vpop.f32.mrb[118].mxu0  ;;  %v5725_v28 = vmul.f32 %v11352_v1, %v5693_v15  ;;  %v5630_v16 = vadd.f32 -1.4531521, %v5598_v56  ;;  %v5960_v26 = vmul.f32 1.442695, %v5917_v55 }
0x11f7   : > { %12480 = vst [vmem:[#allocation21_spill] sm:$0xff] %v11388_v45  ;;  %v11392_v48 = vpop.f32.mrb[119].mxu0  ;;  %v5886_v8 = vsub.f32 0.0, %v11312_v3  ;;  %v5631_v60 = vadd.f32 -1.4531521, %v5599_v0  ;;  %v5787_v6 = vmul.f32 %v11334_v21, %v5755_v18  ;;  %v5887_v40 = vsub.f32 0.0, %v11315_v14 }
0x11f8   : > { %12481 = vst [vmem:[#allocation19_spill] sm:$0xff] %v11392_v48  ;;  %v5818_v57 = vadd.f32 0.2548296, %v5786_v29  ;;  %v5662_v13 = vmul.f32 %v11378_v43, %v5630_v16  ;;  %v11401_v48 = vpop.eup %8579  ;;  %v5756_v19 = vadd.f32 -0.28449672, %v5724_v52  ;;  %8585 = vrcp.f32 %v5506_v10 }
0x11f9   : > { %v5663_v36 = vmul.f32 %v11384_v34, %v5631_v60  ;;  %v5600_v15 = vmul.f32 1.0614054, %v11395_v20  ;;  %v5757_v46 = vadd.f32 -0.28449672, %v5725_v28  ;;  %v5888_v56 = vsub.f32 0.0, %v11320_v59 }
0x11fa   : > { %v5694_v55 = vadd.f32 1.4214138, %v5662_v13  ;;  %v5918_v18 = vmul.f32 %v5886_v8, %v11312_v3  ;;  %v5601_v45 = vmul.f32 1.0614054, %v11401_v48  ;;  %v5850_v62 = vmul.f32 %v11330_v7, %v5818_v57 }
0x11fb   : > { %v5695_v29 = vadd.f32 1.4214138, %v5663_v36  ;;  %v5632_v16 = vadd.f32 -1.4531521, %v5600_v15  ;;  %v5819_v52 = vadd.f32 0.2548296, %v5787_v6  ;;  %v5919_v31 = vmul.f32 %v5887_v40, %v11315_v14  ;;  %v8582_v15 = vpop.eup %8581 }
0x11fc   : > { %v11406_v0 = vpop.f32.mrb[120].mxu0  ;;  %v5726_v60 = vmul.f32 %v11378_v43, %v5694_v55  ;;  %v5788_v13 = vmul.f32 %v11343_v24, %v5756_v19  ;;  %v5633_v3 = vadd.f32 -1.4531521, %v5601_v45  ;;  %8587 = vpow2.f32 %v5958_v49 }
0x11fd   : > { %12482 = vst [vmem:[#allocation24_spill] sm:$0xff] %v11406_v0  ;;  %v11413_v10 = vpop.f32.mrb[121].mxu0  ;;  %v5727_v28 = vmul.f32 %v11384_v34, %v5695_v29  ;;  %v5664_v0 = vmul.f32 %v11395_v20, %v5632_v16  ;;  %v5789_v36 = vmul.f32 %v11352_v1, %v5757_v46  ;;  %8589 = vpow2.f32 %v5960_v26  ;;  %v8584_v16 = vpop.eup %8583 }
0x11fe   : > { %12483 = vst [vmem:[#allocation22_spill] sm:$0xff] %v11413_v10  ;;  %v11418_v8 = vpop.f32.mrb[122].mxu0  ;;  %v5758_v57 = vadd.f32 -0.28449672, %v5726_v60  ;;  %v5962_v6 = vmul.f32 1.442695, %v5918_v18  ;;  %v5851_v19 = vmul.f32 %v11334_v21, %v5819_v52  ;;  %v5920_v29 = vmul.f32 %v5888_v56, %v11320_v59 }
0x11ff   : > { %v11421_v7 = vpop.f32.mrb[123].mxu0  ;;  %v5759_v14 = vadd.f32 -0.28449672, %v5727_v28  ;;  %v5696_v40 = vadd.f32 1.4214138, %v5664_v0  ;;  %v6010_v45 = vmul.f32 %v8582_v15, %v5850_v62  ;;  %v5665_v46 = vmul.f32 %v11401_v48, %v5633_v3 }
0x1200   : > { %12484 = vst [vmem:[#allocation25_spill] sm:$0xff] %v11421_v7  ;;  %v5964_v55 = vmul.f32 1.442695, %v5919_v31  ;;  %v5820_v10 = vadd.f32 0.2548296, %v5788_v13  ;;  %v5790_v7 = vmul.f32 %v11378_v43, %v5758_v57  ;;  %v11430_v26 = vadd.f32 %v11317_v47, %v11110_v37 }
0x1201   : > { %v5728_v49 = vmul.f32 %v11395_v20, %v5696_v40  ;;  %v5821_v60 = vadd.f32 0.2548296, %v5789_v36  ;;  %v11435_v31 = vmul.f32 0.5, %v11254_v27  ;;  %8591 = vpow2.f32 %v5962_v6 }
0x1202   : > { %v11432_v0 = vpop.eup %8585  ;;  %v5791_v59 = vmul.f32 %v11384_v34, %v5759_v14  ;;  %v5889_v21 = vsub.f32 0.0, %v11338_v9  ;;  %v6011_v62 = vmul.f32 %v8584_v16, %v5851_v19  ;;  %v11440_v56 = vmul.f32 0.5, %v11257_v50 }
0x1203   : > { %8593 = vpow2.f32 %v5964_v55  ;;  %v5966_v18 = vmul.f32 1.442695, %v5920_v29  ;;  %v6042_v52 = vsub.f32 1.0, %v6010_v45  ;;  %v5852_v47 = vmul.f32 %v11343_v24, %v5820_v10 }
0x1204   : > { %v5760_v13 = vadd.f32 -0.28449672, %v5728_v49  ;;  %v5697_v28 = vadd.f32 1.4214138, %v5665_v46  ;;  %v5853_v27 = vmul.f32 %v11352_v1, %v5821_v60  ;;  %v5822_v3 = vadd.f32 0.2548296, %v5790_v7 }
0x1205   : > { %v5602_v36 = vmul.f32 1.0614054, %v11432_v0  ;;  %v11447_v57 = vmul.f32 0.70710677, %v11430_v26  ;;  %v11450_v50 = vmul.f32 0.5, %v11263_v61  ;;  %v11453_v6 = vmul.f32 0.5, %v11269_v44 }
0x1206   : > { %v5823_v14 = vadd.f32 0.2548296, %v5791_v59  ;;  %v5921_v40 = vmul.f32 %v5889_v21, %v11338_v9  ;;  %v8588_v24 = vpop.eup %8587  ;;  %8595 = vpow2.f32 %v5966_v18  ;;  %v5890_v10 = vsub.f32 0.0, %v11372_v17 }
0x1207   : > { %v5634_v1 = vadd.f32 -1.4531521, %v5602_v36  ;;  %v11460_v7 = vadd.f32 %v11322_v35, %v11106_v39  ;;  %v8590_v15 = vpop.eup %8589  ;;  %v6043_v61 = vsub.f32 1.0, %v6011_v62  ;;  %v5792_v19 = vmul.f32 %v11395_v20, %v5760_v13 }
0x1208   : > { %v5729_v44 = vmul.f32 %v11401_v48, %v5697_v28  ;;  %v11465_v55 = vand.u32 2147483647, %v11447_v57  ;;  %v6106_v9 = vsub.f32 0.0, %v6042_v52  ;;  %v6012_v29 = vmul.f32 %v8588_v24, %v5852_v47 }
0x1209   : > { %v6013_v16 = vmul.f32 %v8590_v15, %v5853_v27  ;;  %v5854_v45 = vmul.f32 %v11378_v43, %v5822_v3  ;;  %v11469_v49 = vmul.f32 0.5, %v11291_v12  ;;  %v5855_v35 = vmul.f32 %v11384_v34, %v5823_v14 }
0x120a   : > { %v5666_v46 = vmul.f32 %v11432_v0, %v5634_v1  ;;  %v5475_v60 = vmul.f32 0.3275911, %v11465_v55  ;;  %v11475_v59 = vmul.f32 0.5, %v11294_v5  ;;  %v5968_v21 = vmul.f32 1.442695, %v5921_v40 }
0x120b   : > { %v5922_v62 = vmul.f32 %v5890_v10, %v11372_v17  ;;  %v11479_v18 = vmul.f32 0.70710677, %v11460_v7  ;;  %v8592_v47 = vpop.eup %8591  ;;  %v6107_v43 = vsub.f32 0.0, %v6043_v61  ;;  %v5824_v12 = vadd.f32 0.2548296, %v5792_v19 }
0x120c   : > { %v5761_v13 = vadd.f32 -0.28449672, %v5729_v44  ;;  %v5507_v34 = vadd.f32 1.0, %v5475_v60  ;;  %v6138_v27 = vsel %vm6074_vm15, %v6042_v52, %v6106_v9  ;;  %v6044_v3 = vsub.f32 1.0, %v6012_v29 }
0x120d   : > { %v8594_v28 = vpop.eup %8593  ;;  %v6045_v5 = vsub.f32 1.0, %v6013_v16  ;;  %v6014_v36 = vmul.f32 %v8592_v47, %v5854_v45  ;;  %v5698_v14 = vadd.f32 1.4214138, %v5666_v46  ;;  %v11486_v40 = vand.u32 2147483647, %v11479_v18 }
0x120e   : > { %v6015_v17 = vmul.f32 %v8594_v28, %v5855_v35  ;;  %8597 = vrcp.f32 %v5507_v34  ;;  %v11489_v24 = vmul.f32 0.5, %v11297_v33  ;;  %v11492_v1 = vmul.f32 0.5, %v11309_v4 }
0x120f   : > { %8599 = vpow2.f32 %v5968_v21  ;;  %v5970_v11 = vmul.f32 1.442695, %v5922_v62  ;;  %v6139_v52 = vsel %vm6075_vm0, %v6043_v61, %v6107_v43  ;;  %v5856_v10 = vmul.f32 %v11395_v20, %v5824_v12 }
0x1210   : > { %v5793_v15 = vmul.f32 %v11401_v48, %v5761_v13  ;;  %v5476_v19 = vmul.f32 0.3275911, %v11486_v40  ;;  %v8596_v44 = vpop.eup %8595  ;;  %v6202_v9 = vadd.f32 1.0, %v6138_v27  ;;  %v6108_v33 = vsub.f32 0.0, %v6044_v3 }
0x1211   : > { %v6109_v29 = vsub.f32 0.0, %v6045_v5  ;;  %v6046_v16 = vsub.f32 1.0, %v6014_v36  ;;  %v6047_v4 = vsub.f32 1.0, %v6015_v17  ;;  %v5730_v45 = vmul.f32 %v11432_v0, %v5698_v14 }
0x1212   : > { %v5508_v32 = vadd.f32 1.0, %v5476_v19  ;;  %v11504_v61 = vadd.f32 %v11332_v54, %v11110_v37  ;;  %v6203_v20 = vadd.f32 1.0, %v6139_v52  ;;  %8601 = vpow2.f32 %v5970_v11 }
0x1213   : > { %v11507_v35 = vmul.f32 0.5, %v11357_v63  ;;  %v11511_v46 = vadd.f32 %v11345_v58, %v11106_v39  ;;  %v6016_v60 = vmul.f32 %v8596_v44, %v5856_v10  ;;  %v5825_v21 = vadd.f32 0.2548296, %v5793_v15 }
0x1214   : > { %8603 = vrcp.f32 %v5508_v32  ;;  %v11514_v62 = vmul.f32 0.70710677, %v11504_v61  ;;  %v11517_v47 = vmul.f32 %v6202_v9, %v11435_v31  ;;  %v6140_v54 = vsel %vm6076_vm1, %v6044_v3, %v6108_v33 }
0x1215   : > { %v6110_v43 = vsub.f32 0.0, %v6046_v16  ;;  %v11522_v63 = vmul.f32 0.70710677, %v11511_v46  ;;  %v6141_v58 = vsel %vm6077_vm3, %v6045_v5, %v6109_v29  ;;  %v6111_v12 = vsub.f32 0.0, %v6047_v4 }
0x1216   : > { %v5762_v13 = vadd.f32 -0.28449672, %v5730_v45  ;;  %v11527_v34 = vand.u32 2147483647, %v11514_v62  ;;  %v11530_v28 = vmul.f32 %v6203_v20, %v11440_v56  ;;  %v5891_v41 = vsub.f32 0.0, %v11465_v55 }
0x1217   : > { %v11535_v31 = vand.u32 2147483647, %v11522_v63  ;;  %v11539_v27 = vadd.f32 %v11350_v22, %v11110_v37  ;;  %v6204_v3 = vadd.f32 1.0, %v6140_v54  ;;  %v6048_v5 = vsub.f32 1.0, %v6016_v60 }
0x1218   : > { %v11541_v53 = vpop.eup %8597  ;;  %v5857_v36 = vmul.f32 %v11401_v48, %v5825_v21  ;;  %v5477_v56 = vmul.f32 0.3275911, %v11527_v34  ;;  %v6205_v14 = vadd.f32 1.0, %v6141_v58  ;;  %v6142_v11 = vsel %vm6078_vm4, %v6046_v16, %v6110_v43 }
0x1219   : > { %v8600_v17 = vpop.eup %8599  ;;  %v5603_v52 = vmul.f32 1.0614054, %v11541_v53  ;;  %v5478_v10 = vmul.f32 0.3275911, %v11535_v31  ;;  %v6143_v22 = vsel %vm6079_vm5, %v6047_v4, %v6111_v12  ;;  %v5794_v15 = vmul.f32 %v11432_v0, %v5762_v13 }
0x121a   : > { %v5509_v19 = vadd.f32 1.0, %v5477_v56  ;;  %v11553_v44 = vmul.f32 0.70710677, %v11539_v27  ;;  %v5923_v9 = vmul.f32 %v5891_v41, %v11465_v55  ;;  %v6112_v29 = vsub.f32 0.0, %v6048_v5 }
0x121b   : > { %v5635_v48 = vadd.f32 -1.4531521, %v5603_v52  ;;  %v5510_v33 = vadd.f32 1.0, %v5478_v10  ;;  %v6017_v16 = vmul.f32 %v8600_v17, %v5857_v36  ;;  %v11564_v45 = vmul.f32 %v6204_v3, %v11450_v50 }
0x121c   : > { %8605 = vrcp.f32 %v5509_v19  ;;  %v11561_v51 = vand.u32 2147483647, %v11553_v44  ;;  %v8602_v4 = vpop.eup %8601  ;;  %v6206_v32 = vadd.f32 1.0, %v6142_v11  ;;  %v6207_v60 = vadd.f32 1.0, %v6143_v22 }
0x121d   : > { %v5667_v20 = vmul.f32 %v11541_v53, %v5635_v48  ;;  %8607 = vrcp.f32 %v5510_v33  ;;  %v5826_v21 = vadd.f32 0.2548296, %v5794_v15  ;;  %v11570_v38 = vmul.f32 0.5, %v11430_v26 }
0x121e   : > { %v11567_v55 = vpop.eup %8603  ;;  %v5479_v54 = vmul.f32 0.3275911, %v11561_v51  ;;  %v11574_v43 = vmul.f32 %v6205_v14, %v11453_v6  ;;  %v5972_v58 = vmul.f32 1.442695, %v5923_v9  ;;  %v11578_v12 = vmul.f32 0.70710677, %v11558_v23 }
0x121f   : > { %v5604_v50 = vmul.f32 1.0614054, %v11567_v55  ;;  %v6144_v13 = vsel %vm6080_vm6, %v6048_v5, %v6112_v29  ;;  %v6049_v41 = vsub.f32 1.0, %v6017_v16  ;;  %v5892_v3 = vsub.f32 0.0, %v11486_v40 }
0x1220   : > { %v5511_v36 = vadd.f32 1.0, %v5479_v54  ;;  %v11584_v26 = vmul.f32 %v6206_v32, %v11469_v49  ;;  %v5699_v6 = vadd.f32 1.4214138, %v5667_v20  ;;  %v11588_v17 = vand.u32 2147483647, %v11578_v12 }
0x1221   : > { %v5636_v56 = vadd.f32 -1.4531521, %v5604_v50  ;;  %v5858_v14 = vmul.f32 %v11432_v0, %v5826_v21  ;;  %v11597_v5 = vadd.f32 %v11376_v42, %v11106_v39  ;;  %v11600_v49 = vmul.f32 %v6207_v60, %v11475_v59 }
0x1222   : > { %12485 = vst [vmem:[#allocation23_spill] sm:$0xff] %v11584_v26  ;;  %8609 = vrcp.f32 %v5511_v36  ;;  %v6208_v11 = vadd.f32 1.0, %v6144_v13  ;;  %v5480_v10 = vmul.f32 0.3275911, %v11588_v17  ;;  %v5924_v0 = vmul.f32 %v5892_v3, %v11486_v40 }
0x1223   : > { %v5668_v52 = vmul.f32 %v11567_v55, %v5636_v56  ;;  %8611 = vpow2.f32 %v5972_v58  ;;  %v11606_v22 = vmul.f32 0.70710677, %v11593_v2  ;;  %v11609_v30 = vmul.f32 0.70710677, %v11597_v5 }
0x1224   : > { %v5731_v42 = vmul.f32 %v11541_v53, %v5699_v6  ;;  %v11613_v59 = vmul.f32 0.5, %v11460_v7  ;;  %v5512_v19 = vadd.f32 1.0, %v5480_v10  ;;  %v6113_v9 = vsub.f32 0.0, %v6049_v41 }
0x1225   : > { %v5700_v15 = vadd.f32 1.4214138, %v5668_v52  ;;  %v11617_v33 = vmul.f32 %v8602_v4, %v5858_v14  ;;  %v11620_v40 = vand.u32 2147483647, %v11606_v22  ;;  %v11623_v29 = vand.u32 2147483647, %v11609_v30 }
0x1226   : > { %v11615_v48 = vpop.eup %8605  ;;  %v5893_v7 = vsub.f32 0.0, %v11527_v34  ;;  %8613 = vrcp.f32 %v5512_v19  ;;  %v11631_v60 = vmul.f32 %v6208_v11, %v11489_v24  ;;  %v5974_v4 = vmul.f32 1.442695, %v5924_v0 }
0x1227   : > { %v11625_v16 = vpop.eup %8607  ;;  %v5732_v32 = vmul.f32 %v11567_v55, %v5700_v15  ;;  %v5605_v20 = vmul.f32 1.0614054, %v11615_v48  ;;  %v5481_v54 = vmul.f32 0.3275911, %v11620_v40  ;;  %v5763_v58 = vadd.f32 -0.28449672, %v5731_v42 }
0x1228   : > { %12486 = vst [vmem:[#allocation34_spill] sm:$0xff] %v11631_v60  ;;  %v5606_v21 = vmul.f32 1.0614054, %v11625_v16  ;;  %v11636_v13 = vmul.f32 0.5, %v11504_v61  ;;  %v5894_v3 = vsub.f32 0.0, %v11535_v31  ;;  %v6145_v36 = vsel %vm6081_vm7, %v6049_v41, %v6113_v9  ;;  %v12487_v61 = vld [vmem:[#allocation20_spill] sm:$0xff] }
0x1229   : > { %v5637_v50 = vadd.f32 -1.4531521, %v5605_v20  ;;  %v5513_v56 = vadd.f32 1.0, %v5481_v54  ;;  %v5482_v24 = vmul.f32 0.3275911, %v11623_v29  ;;  %v6050_v14 = vsub.f32 1.0, %v11617_v33 }
0x122a   : > { %v5638_v6 = vadd.f32 -1.4531521, %v5606_v21  ;;  %v5764_v11 = vadd.f32 -0.28449672, %v5732_v32  ;;  %v5925_v10 = vmul.f32 %v5893_v7, %v11527_v34  ;;  %vm6082_vm8 = vcmp.ge.f32.partialorder %v12487_v61, 0.0  ;;  %v12488_v41 = vld [vmem:[#allocation18_spill] sm:$0xff] }
0x122b   : > { %v5669_v52 = vmul.f32 %v11615_v48, %v5637_v50  ;;  %8615 = vrcp.f32 %v5513_v56  ;;  %v5514_v25 = vadd.f32 1.0, %v5482_v24  ;;  %v11651_v15 = vadd.f32 %v12488_v41, %v11110_v37 }
0x122c   : > { %v11645_v0 = vpop.eup %8609  ;;  %v5670_v42 = vmul.f32 %v11625_v16, %v5638_v6  ;;  %v5926_v9 = vmul.f32 %v5894_v3, %v11535_v31  ;;  %v11655_v33 = vmul.f32 0.5, %v11511_v46  ;;  %v5895_v34 = vsub.f32 0.0, %v11561_v51 }
0x122d   : > { %12489 = vst [vmem:[#allocation20_spill] sm:$0xff] %v11651_v15  ;;  %v5701_v19 = vadd.f32 1.4214138, %v5669_v52  ;;  %v8612_v32 = vpop.eup %8611  ;;  %v5795_v20 = vmul.f32 %v11541_v53, %v5763_v58  ;;  %v5607_v21 = vmul.f32 1.0614054, %v11645_v0  ;;  %8617 = vrcp.f32 %v5514_v25 }
0x122e   : > { %v5702_v7 = vadd.f32 1.4214138, %v5670_v42  ;;  %v5796_v54 = vmul.f32 %v11567_v55, %v5764_v11  ;;  %8619 = vpow2.f32 %v5974_v4  ;;  %v5976_v6 = vmul.f32 1.442695, %v5925_v10 }
0x122f   : > { %v5733_v50 = vmul.f32 %v11615_v48, %v5701_v19  ;;  %v6114_v56 = vsub.f32 0.0, %v6050_v14  ;;  %v5639_v46 = vadd.f32 -1.4531521, %v5607_v21  ;;  %v11664_v3 = vmul.f32 0.70710677, %v11651_v15 }
0x1230   : > { %v5734_v31 = vmul.f32 %v11625_v16, %v5702_v7  ;;  %v11666_v24 = vpop.eup %8613  ;;  %v5978_v52 = vmul.f32 1.442695, %v5926_v9  ;;  %v5927_v42 = vmul.f32 %v5895_v34, %v11561_v51  ;;  %v5896_v25 = vsub.f32 0.0, %v11588_v17 }
0x1231   : > { %12490 = vst [vmem:[#allocation18_spill] sm:$0xff] %v11664_v3  ;;  %v5765_v58 = vadd.f32 -0.28449672, %v5733_v50  ;;  %v5827_v11 = vadd.f32 0.2548296, %v5795_v20  ;;  %v5671_v41 = vmul.f32 %v11645_v0, %v5639_v46  ;;  %8621 = vpow2.f32 %v5976_v6 }
0x1232   : > { %v5766_v4 = vadd.f32 -0.28449672, %v5734_v31  ;;  %v5608_v10 = vmul.f32 1.0614054, %v11666_v24  ;;  %v5828_v19 = vadd.f32 0.2548296, %v5796_v54  ;;  %v6146_v20 = vsel %vm6082_vm8, %v6050_v14, %v6114_v56 }
0x1233   : > { %v5897_v7 = vsub.f32 0.0, %v11620_v40  ;;  %v11674_v21 = vand.u32 2147483647, %v11664_v3  ;;  %v5797_v50 = vmul.f32 %v11615_v48, %v5765_v58  ;;  %v5703_v51 = vadd.f32 1.4214138, %v5671_v41 }
0x1234   : > { %v5798_v9 = vmul.f32 %v11625_v16, %v5766_v4  ;;  %v5640_v34 = vadd.f32 -1.4531521, %v5608_v10  ;;  %v6209_v15 = vadd.f32 1.0, %v6145_v36  ;;  %8623 = vpow2.f32 %v5978_v52 }
0x1235   : > { %v5483_v31 = vmul.f32 0.3275911, %v11674_v21  ;;  %v11681_v54 = vpop.eup %8615  ;;  %v5735_v6 = vmul.f32 %v11645_v0, %v5703_v51  ;;  %v5980_v46 = vmul.f32 1.442695, %v5927_v42  ;;  %v5928_v58 = vmul.f32 %v5896_v25, %v11588_v17 }
0x1236   : > { %v5672_v3 = vmul.f32 %v11666_v24, %v5640_v34  ;;  %v5859_v4 = vmul.f32 %v11541_v53, %v5827_v11  ;;  %v5860_v41 = vmul.f32 %v11567_v55, %v5828_v19  ;;  %v5609_v36 = vmul.f32 1.0614054, %v11681_v54 }
0x1237   : > { %v5515_v61 = vadd.f32 1.0, %v5483_v31  ;;  %v11689_v14 = vpop.eup %8617  ;;  %v5829_v56 = vadd.f32 0.2548296, %v5797_v50  ;;  %v5830_v52 = vadd.f32 0.2548296, %v5798_v9  ;;  %v5929_v60 = vmul.f32 %v5897_v7, %v11620_v40 }
0x1238   : > { %v5704_v10 = vadd.f32 1.4214138, %v5672_v3  ;;  %v8620_v51 = vpop.eup %8619  ;;  %v5767_v42 = vadd.f32 -0.28449672, %v5735_v6  ;;  %v5641_v26 = vadd.f32 -1.4531521, %v5609_v36  ;;  %v11694_v53 = vmul.f32 %v6209_v15, %v11492_v1 }
0x1239   : > { %v5610_v34 = vmul.f32 1.0614054, %v11689_v14  ;;  %8625 = vrcp.f32 %v5515_v61  ;;  %v6210_v55 = vadd.f32 1.0, %v6146_v20  ;;  %v5982_v25 = vmul.f32 1.442695, %v5928_v58 }
0x123a   : > { %v5736_v17 = vmul.f32 %v11666_v24, %v5704_v10  ;;  %v6019_v11 = vmul.f32 %v8612_v32, %v5859_v4  ;;  %v6020_v19 = vmul.f32 %v8620_v51, %v5860_v41  ;;  %v5673_v50 = vmul.f32 %v11681_v54, %v5641_v26 }
0x123b   : > { %v5642_v3 = vadd.f32 -1.4531521, %v5610_v34  ;;  %v5861_v40 = vmul.f32 %v11615_v48, %v5829_v56  ;;  %v5862_v7 = vmul.f32 %v11625_v16, %v5830_v52  ;;  %v5984_v31 = vmul.f32 1.442695, %v5929_v60  ;;  %v8622_v6 = vpop.eup %8621  ;;  %v12491_v16 = vld [vmem:[#allocation21_spill] sm:$0xff] }
0x123c   : > { %v5768_v9 = vadd.f32 -0.28449672, %v5736_v17  ;;  %v5799_v36 = vmul.f32 %v11645_v0, %v5767_v42  ;;  %8627 = vpow2.f32 %v5980_v46  ;;  %v5705_v1 = vadd.f32 1.4214138, %v5673_v50 }
0x123d   : > { %v5674_v15 = vmul.f32 %v11689_v14, %v5642_v3  ;;  %vm6083_vm9 = vcmp.ge.f32.partialorder %v11447_v57, 0.0  ;;  %vm6084_vm10 = vcmp.ge.f32.partialorder %v11479_v18, 0.0  ;;  %8629 = vpow2.f32 %v5982_v25 }
0x123e   : > { %v5800_v26 = vmul.f32 %v11666_v24, %v5768_v9  ;;  %v5898_v48 = vsub.f32 0.0, %v11623_v29  ;;  %v11708_v32 = vadd.f32 %v12491_v16, %v11106_v39  ;;  %v8624_v60 = vpop.eup %8623  ;;  %v6051_v20 = vsub.f32 1.0, %v6019_v11 }
0x123f   : > { %v6052_v58 = vsub.f32 1.0, %v6020_v19  ;;  %v5737_v46 = vmul.f32 %v11681_v54, %v5705_v1  ;;  %v5706_v4 = vadd.f32 1.4214138, %v5674_v15  ;;  %v6021_v41 = vmul.f32 %v8622_v6, %v5861_v40 }
0x1240   : > { %v6022_v61 = vmul.f32 %v8624_v60, %v5862_v7  ;;  %v11712_v56 = vmul.f32 0.5, %v11539_v27  ;;  %8631 = vpow2.f32 %v5984_v31  ;;  %v5831_v52 = vadd.f32 0.2548296, %v5799_v36 }
0x1241   : > { %v5769_v10 = vadd.f32 -0.28449672, %v5737_v46  ;;  %v5738_v51 = vmul.f32 %v11689_v14, %v5706_v4  ;;  %v11716_v42 = vmul.f32 0.70710677, %v11708_v32  ;;  %v11719_v34 = vmul.f32 %v6210_v55, %v11507_v35 }
0x1242   : > { %v5832_v17 = vadd.f32 0.2548296, %v5800_v26  ;;  %v11722_v25 = vmul.f32 0.5, %v11558_v23  ;;  %v5930_v11 = vmul.f32 %v5898_v48, %v11623_v29  ;;  %v6115_v27 = vsub.f32 0.0, %v6051_v20  ;;  %v12492_v26 = vld [vmem:[#allocation19_spill] sm:$0xff] }
0x1243   : > { %v11725_v19 = vpop.eup %8625  ;;  %v6116_v50 = vsub.f32 0.0, %v6052_v58  ;;  %v5801_v3 = vmul.f32 %v11681_v54, %v5769_v10  ;;  %v11729_v40 = vand.u32 2147483647, %v11716_v42  ;;  %v6053_v7 = vsub.f32 1.0, %v6021_v41 }
0x1244   : > { %vm6085_vm11 = vcmp.ge.f32.partialorder %v11514_v62, 0.0  ;;  %v6054_v35 = vsub.f32 1.0, %v6022_v61  ;;  %vm6086_vm12 = vcmp.ge.f32.partialorder %v11522_v63, 0.0  ;;  %v5611_v23 = vmul.f32 1.0614054, %v11725_v19 }
0x1245   : > { %v5899_v55 = vsub.f32 0.0, %v11674_v21  ;;  %v5863_v29 = vmul.f32 %v11645_v0, %v5831_v52  ;;  %v5833_v9 = vadd.f32 0.2548296, %v5801_v3  ;;  %v5770_v31 = vadd.f32 -0.28449672, %v5738_v51 }
0x1246   : > { %v5484_v6 = vmul.f32 0.3275911, %v11729_v40  ;;  %v5864_v36 = vmul.f32 %v11666_v24, %v5832_v17  ;;  %v5986_v1 = vmul.f32 1.442695, %v5930_v11  ;;  %v5643_v15 = vadd.f32 -1.4531521, %v5611_v23  ;;  %v8628_v16 = vpop.eup %8627 }
0x1247   : > { %v11740_v48 = vadd.f32 %v12492_v26, %v11110_v37  ;;  %v6147_v60 = vsel %vm6083_vm9, %v6051_v20, %v6115_v27  ;;  %v6148_v46 = vsel %vm6084_vm10, %v6052_v58, %v6116_v50  ;;  %v5865_v0 = vmul.f32 %v11681_v54, %v5833_v9  ;;  %v8630_v41 = vpop.eup %8629 }
0x1248   : > { %v5516_v4 = vadd.f32 1.0, %v5484_v6  ;;  %v6117_v61 = vsub.f32 0.0, %v6053_v7  ;;  %v5675_v24 = vmul.f32 %v11725_v19, %v5643_v15  ;;  %v5931_v52 = vmul.f32 %v5899_v55, %v11674_v21  ;;  %v12493_v15 = vld [vmem:[#allocation24_spill] sm:$0xff] }
0x1249   : > { %v11750_v10 = vmul.f32 0.70710677, %v11740_v48  ;;  %v6118_v51 = vsub.f32 0.0, %v6054_v35  ;;  %v6023_v17 = vmul.f32 %v8628_v16, %v5863_v29  ;;  %v5802_v57 = vmul.f32 %v11689_v14, %v5770_v31 }
0x124a   : > { %8633 = vrcp.f32 %v5516_v4  ;;  %v8632_v20 = vpop.eup %8631  ;;  %v6024_v18 = vmul.f32 %v8630_v41, %v5864_v36  ;;  %v5707_v58 = vadd.f32 1.4214138, %v5675_v24  ;;  %v6211_v11 = vadd.f32 1.0, %v6147_v60 }
0x124b   : > { %8635 = vpow2.f32 %v5986_v1  ;;  %v5453_v54 = vand.u32 2147483647, %v11750_v10  ;;  %v6212_v27 = vadd.f32 1.0, %v6148_v46  ;;  %v6025_v50 = vmul.f32 %v8632_v20, %v5865_v0 }
0x124c   : > { %v11755_v3 = vmul.f32 0.5, %v11593_v2  ;;  %vm6087_vm13 = vcmp.ge.f32.partialorder %v11553_v44, 0.0  ;;  %v11759_v21 = vmul.f32 0.5, %v11597_v5  ;;  %v5739_v23 = vmul.f32 %v11725_v19, %v5707_v58 }
0x124d   : > { %v5988_v55 = vmul.f32 1.442695, %v5931_v52  ;;  %v5485_v29 = vmul.f32 0.3275911, %v5453_v54  ;;  %v6149_v9 = vsel %vm6085_vm11, %v6053_v7, %v6117_v61  ;;  %v6150_v31 = vsel %vm6086_vm12, %v6054_v35, %v6118_v51  ;;  %v12494_v35 = vld [vmem:[#allocation22_spill] sm:$0xff] }
0x124e   : > { %v6055_v6 = vsub.f32 1.0, %v6023_v17  ;;  %vm6088_vm14 = vcmp.ge.f32.partialorder %v11578_v12, 0.0  ;;  %v5834_v2 = vadd.f32 0.2548296, %v5802_v57  ;;  %v6056_v36 = vsub.f32 1.0, %v6024_v18 }
0x124f   : > { %vm6089_vm15 = vcmp.ge.f32.partialorder %v11606_v22, 0.0  ;;  %v5900_v5 = vsub.f32 0.0, %v11729_v40  ;;  %v5517_v1 = vadd.f32 1.0, %v5485_v29  ;;  %v11771_v26 = vadd.f32 %v12493_v15, %v11106_v39 }
0x1250   : > { %v11774_v62 = vmul.f32 %v6211_v11, %v11570_v38  ;;  %v11777_v63 = vmul.f32 %v6212_v27, %v11613_v59  ;;  %v6057_v7 = vsub.f32 1.0, %v6025_v50  ;;  %v11781_v16 = vadd.f32 %v12494_v35, %v11110_v37  ;;  %v12495_v35 = vld [vmem:[#allocation25_spill] sm:$0xff] }
0x1251   : > { %v6213_v60 = vadd.f32 1.0, %v6149_v9  ;;  %v6214_v46 = vadd.f32 1.0, %v6150_v31  ;;  %v5771_v0 = vadd.f32 -0.28449672, %v5739_v23  ;;  %8637 = vrcp.f32 %v5517_v1 }
0x1252   : > { %v6119_v4 = vsub.f32 0.0, %v6055_v6  ;;  %v5866_v41 = vmul.f32 %v11689_v14, %v5834_v2  ;;  %v11785_v61 = vmul.f32 0.70710677, %v11771_v26  ;;  %v11788_v38 = vmul.f32 0.70710677, %v11781_v16 }
0x1253   : > { %v6120_v59 = vsub.f32 0.0, %v6056_v36  ;;  %8639 = vpow2.f32 %v5988_v55  ;;  %v5932_v24 = vmul.f32 %v5900_v5, %v11729_v40  ;;  %v11793_v52 = vadd.f32 %v11418_v8, %v11106_v39 }
0x1254   : > { %v11795_v51 = vpop.eup %8633  ;;  %v6121_v17 = vsub.f32 0.0, %v6057_v7  ;;  %v5901_v57 = vsub.f32 0.0, %v5453_v54  ;;  %v5454_v14 = vand.u32 2147483647, %v11785_v61  ;;  %v5455_v20 = vand.u32 2147483647, %v11788_v38 }
0x1255   : > { %v8636_v18 = vpop.eup %8635  ;;  %v11800_v58 = vmul.f32 %v6213_v60, %v11636_v13  ;;  %v11803_v11 = vmul.f32 %v6214_v46, %v11655_v33  ;;  %v5803_v40 = vmul.f32 %v11725_v19, %v5771_v0  ;;  %v5612_v39 = vmul.f32 1.0614054, %v11795_v51 }
0x1256   : > { %v6151_v8 = vsel %vm6087_vm13, %v6055_v6, %v6119_v4  ;;  %v11809_v27 = vmul.f32 %v8636_v18, %v5866_v41  ;;  %v5486_v50 = vmul.f32 0.3275911, %v5454_v14  ;;  %v5487_v23 = vmul.f32 0.3275911, %v5455_v20 }
0x1257   : > { %v6152_v55 = vsel %vm6088_vm14, %v6056_v36, %v6120_v59  ;;  %v5644_v29 = vadd.f32 -1.4531521, %v5612_v39  ;;  %v5990_v13 = vmul.f32 1.442695, %v5932_v24  ;;  %v11814_v9 = vmul.f32 0.70710677, %v11793_v52 }
0x1258   : > { %v6153_v33 = vsel %vm6089_vm15, %v6057_v7, %v6121_v17  ;;  %v5933_v31 = vmul.f32 %v5901_v57, %v5453_v54  ;;  %v5518_v2 = vadd.f32 1.0, %v5486_v50  ;;  %v5519_v5 = vadd.f32 1.0, %v5487_v23 }
0x1259   : > { %v6215_v44 = vadd.f32 1.0, %v6151_v8  ;;  %v5835_v6 = vadd.f32 0.2548296, %v5803_v40  ;;  %v5676_v1 = vmul.f32 %v11795_v51, %v5644_v29  ;;  %v11820_v15 = vand.u32 2147483647, %v11814_v9 }
0x125a   : > { %v6216_v12 = vadd.f32 1.0, %v6152_v55  ;;  %v6058_v36 = vsub.f32 1.0, %v11809_v27  ;;  %8641 = vrcp.f32 %v5518_v2  ;;  %v11825_v60 = vadd.f32 %v12495_v35, %v11110_v37 }
0x125b   : > { %v11827_v22 = vpop.eup %8637  ;;  %v6217_v54 = vadd.f32 1.0, %v6153_v33  ;;  %v5708_v7 = vadd.f32 1.4214138, %v5676_v1  ;;  %8643 = vrcp.f32 %v5519_v5  ;;  %v5488_v46 = vmul.f32 0.3275911, %v11820_v15  ;;  %v12496_v1 = vld [vmem:[#allocation23_spill] sm:$0xff] }
0x125c   : > { %8645 = vpow2.f32 %v5990_v13  ;;  %v5613_v0 = vmul.f32 1.0614054, %v11827_v22  ;;  %v5992_v4 = vmul.f32 1.442695, %v5933_v31  ;;  %v11832_v41 = vmul.f32 0.70710677, %v11825_v60 }
0x125d   : > { %v8640_v59 = vpop.eup %8639  ;;  %v11835_v24 = vmul.f32 %v6215_v44, %v11712_v56  ;;  %vm6090_vm0 = vcmp.ge.f32.partialorder %v11609_v30, 0.0  ;;  %v5867_v37 = vmul.f32 %v11725_v19, %v5835_v6  ;;  %v5740_v17 = vmul.f32 %v11795_v51, %v5708_v7 }
0x125e   : > { %v5520_v57 = vadd.f32 1.0, %v5488_v46  ;;  %v11841_v18 = vmul.f32 %v6216_v12, %v11722_v25  ;;  %v5645_v40 = vadd.f32 -1.4531521, %v5613_v0  ;;  %v5902_v39 = vsub.f32 0.0, %v5454_v14  ;;  %v12497_v12 = vld [vmem:[#allocation34_spill] sm:$0xff] }
0x125f   : > { %v11844_v8 = vand.u32 2147483647, %v11832_v41  ;;  %v6122_v27 = vsub.f32 0.0, %v6058_v36  ;;  %v5772_v50 = vadd.f32 -0.28449672, %v5740_v17  ;;  %v5903_v23 = vsub.f32 0.0, %v5455_v20 }
0x1260   : > { %8647 = vrcp.f32 %v5520_v57  ;;  %v11847_v56 = vmul.f32 %v6217_v54, %v11755_v3  ;;  %v5677_v19 = vmul.f32 %v11827_v22, %v5645_v40  ;;  %v11851_v29 = vmul.f32 %v8640_v59, %v5867_v37  ;;  %v12498_v46 = vld [vmem:[#allocation18_spill] sm:$0xff] }
0x1261   : > { %8649 = vpow2.f32 %v5992_v4  ;;  %v5489_v55 = vmul.f32 0.3275911, %v11844_v8  ;;  %v5804_v25 = vmul.f32 %v11795_v51, %v5772_v50  ;;  %v6263_v13 = vpack.c.bf16 %v11574_v43, %v11530_v28 }
0x1262   : > { %v6262_v33 = vpack.c.bf16 %v11564_v45, %v11517_v47  ;;  %v5709_v31 = vadd.f32 1.4214138, %v5677_v19  ;;  %v5934_v2 = vmul.f32 %v5902_v39, %v5454_v14  ;;  %v6265_v3 = vpack.c.bf16 %v11694_v53, %v11600_v49 }
0x1263   : > { %v5521_v5 = vadd.f32 1.0, %v5489_v55  ;;  %v5836_v44 = vadd.f32 0.2548296, %v5804_v25  ;;  %v5935_v6 = vmul.f32 %v5903_v23, %v5455_v20  ;;  %6457 = vmatprep.mubr.bf16.mxu1 %v6263_v13  ;;  %v6264_v35 = vpack.c.bf16 %v12497_v12, %v12496_v1 }
0x1264   : > { %v6267_v54 = vpack.c.bf16 %v11800_v58, %v11774_v62  ;;  %v11864_v7 = vpop.eup %8641  ;;  %v5741_v28 = vmul.f32 %v11827_v22, %v5709_v31  ;;  %6458 = vmatmul.mubr.bf16.gmra.mrb[92].mxu1 %v6262_v33  ;;  %v6266_v47 = vpack.c.bf16 %v11777_v63, %v11719_v34  ;;  %v6269_v45 = vpack.c.bf16 %v11847_v56, %v11835_v24 }
0x1265   : > { %8651 = vrcp.f32 %v5521_v5  ;;  %v11871_v43 = vpop.eup %8643  ;;  %v5868_v49 = vmul.f32 %v11795_v51, %v5836_v44  ;;  %v5614_v53 = vmul.f32 1.0614054, %v11864_v7  ;;  %v5904_v62 = vsub.f32 0.0, %v11820_v15  ;;  %6465 = vmatprep.mubr.bf16.mxu1 %v6265_v3 }
0x1266   : > { %v6268_v14 = vpack.c.bf16 %v11841_v18, %v11803_v11  ;;  %v8646_v20 = vpop.eup %8645  ;;  %v6154_v58 = vsel %vm6090_vm0, %v6058_v36, %v6122_v27  ;;  %vm6091_vm1 = vcmp.ge.f32.partialorder %v12498_v46, 0.0  ;;  %v6188_v0 = vmul.f32 0.5, %v11708_v32 }
0x1267   : > { %v5773_v4 = vadd.f32 -0.28449672, %v5741_v28  ;;  %v5615_v59 = vmul.f32 1.0614054, %v11871_v43  ;;  %v6059_v51 = vsub.f32 1.0, %v11851_v29  ;;  %v6028_v37 = vmul.f32 %v8646_v20, %v5868_v49 }
0x1268   : > { %v5646_v17 = vadd.f32 -1.4531521, %v5614_v53  ;;  %v5994_v57 = vmul.f32 1.442695, %v5934_v2  ;;  %vm6092_vm3 = vcmp.ge.f32.partialorder %v11716_v42, 0.0  ;;  %v5936_v32 = vmul.f32 %v5904_v62, %v11820_v15 }
0x1269   : > { %v5805_v40 = vmul.f32 %v11827_v22, %v5773_v4  ;;  %v5647_v39 = vadd.f32 -1.4531521, %v5615_v59  ;;  %v5996_v50 = vmul.f32 1.442695, %v5935_v6  ;;  %v6060_v36 = vsub.f32 1.0, %v6028_v37 }
0x126a   : > { %v11886_v30 = vpop.eup %8647  ;;  %v5678_v27 = vmul.f32 %v11864_v7, %v5646_v17  ;;  %v5905_v23 = vsub.f32 0.0, %v11844_v8  ;;  %v6218_v55 = vadd.f32 1.0, %v6154_v58  ;;  %v6123_v33 = vsub.f32 0.0, %v6059_v51 }
0x126b   : > { %v8650_v19 = vpop.eup %8649  ;;  %v5837_v29 = vadd.f32 0.2548296, %v5805_v40  ;;  %v5679_v25 = vmul.f32 %v11871_v43, %v5647_v39  ;;  %v5616_v13 = vmul.f32 1.0614054, %v11886_v30  ;;  %v6124_v31 = vsub.f32 0.0, %v6060_v36 }
0x126c   : > { %v5710_v2 = vadd.f32 1.4214138, %v5678_v27  ;;  %8653 = vpow2.f32 %v5994_v57  ;;  %6466 = vmatmul.mubr.bf16.gmra.mrb[96].mxu1 %v6264_v35  ;;  %v5998_v1 = vmul.f32 1.442695, %v5936_v32  ;;  %v5937_v12 = vmul.f32 %v5905_v23, %v11844_v8 }
0x126d   : > { %v5869_v5 = vmul.f32 %v11827_v22, %v5837_v29  ;;  %v5711_v3 = vadd.f32 1.4214138, %v5679_v25  ;;  %8655 = vpow2.f32 %v5996_v50  ;;  %v5648_v44 = vadd.f32 -1.4531521, %v5616_v13  ;;  %6473 = vmatprep.mubr.bf16.mxu1 %v6267_v54 }
0x126e   : > { %v6156_v15 = vsel %vm6092_vm3, %v6060_v36, %v6124_v31  ;;  %v5742_v6 = vmul.f32 %v11864_v7, %v5710_v2  ;;  %v11903_v20 = vmul.f32 %v6218_v55, %v11759_v21  ;;  %v6155_v42 = vsel %vm6091_vm1, %v6059_v51, %v6123_v33  ;;  %v12499_v36 = vld [vmem:[#allocation20_spill] sm:$0xff] }
0x126f   : > { %v11898_v28 = vpop.eup %8651  ;;  %v6220_v49 = vadd.f32 1.0, %v6156_v15  ;;  %v6029_v53 = vmul.f32 %v8650_v19, %v5869_v5  ;;  %v5743_v62 = vmul.f32 %v11871_v43, %v5711_v3  ;;  %v5680_v22 = vmul.f32 %v11886_v30, %v5648_v44 }
0x1270   : > { %v5774_v35 = vadd.f32 -0.28449672, %v5742_v6  ;;  %v5617_v58 = vmul.f32 1.0614054, %v11898_v28  ;;  %8657 = vpow2.f32 %v5998_v1  ;;  %v6000_v57 = vmul.f32 1.442695, %v5937_v12 }
0x1271   : > { %v11908_v4 = vmul.f32 %v6220_v49, %v6188_v0  ;;  %v6061_v8 = vsub.f32 1.0, %v6029_v53  ;;  %v5775_v54 = vadd.f32 -0.28449672, %v5743_v62  ;;  %v5712_v59 = vadd.f32 1.4214138, %v5680_v22 }
0x1272   : > { %v5806_v37 = vmul.f32 %v11864_v7, %v5774_v35  ;;  %v5649_v17 = vadd.f32 -1.4531521, %v5617_v58  ;;  %v6219_v51 = vadd.f32 1.0, %v6155_v42  ;;  %vm6093_vm4 = vcmp.ge.f32.partialorder %v11750_v10, 0.0  ;;  %v11936_v12 = vld [vmem:[%s885_s28] ss:$0 sm:$0xff] }
0x1273   : > { %v6125_v40 = vsub.f32 0.0, %v6061_v8  ;;  %v5807_v21 = vmul.f32 %v11871_v43, %v5775_v54  ;;  %v5744_v39 = vmul.f32 %v11886_v30, %v5712_v59  ;;  %v6270_v46 = vpack.c.bf16 %v11908_v4, %v11903_v20  ;;  %v11947_v42 = vld [vmem:[%s12500_s22] ss:$0 sm:$0xff]  ;;  %s12517_s28 = sld [smem:[#allocation44_spill]] (!%p7344_p6)  ;;  %s12522_s22 = sld [smem:[#allocation45_spill]] (!%p7344_p6) }
0x1274   : > { %v5838_v0 = vadd.f32 0.2548296, %v5806_v37  ;;  %v5681_v50 = vmul.f32 %v11898_v28, %v5649_v17  ;;  %v6187_v27 = vmul.f32 0.5, %v12499_v36  ;;  %6474 = vmatmul.mubr.bf16.gmra.mrb[100].mxu1 %v6266_v47  ;;  %v6189_v29 = vmul.f32 0.5, %v11740_v48 }
0x1275   : > { %v6157_v32 = vsel %vm6093_vm4, %v6061_v8, %v6125_v40  ;;  %v5839_v23 = vadd.f32 0.2548296, %v5807_v21  ;;  %v5776_v19 = vadd.f32 -0.28449672, %v5744_v39  ;;  %6481 = vmatprep.mubr.bf16.mxu1 %v6269_v45  ;;  %8659 = vpow2.f32 %v6000_v57 }
0x1276   : > { %v8654_v55 = vpop.eup %8653  ;;  %v6221_v25 = vadd.f32 1.0, %v6157_v32  ;;  %v5870_v13 = vmul.f32 %v11864_v7, %v5838_v0  ;;  %v5713_v33 = vadd.f32 1.4214138, %v5681_v50  ;;  %v6251_v34 = vmul.f32 %v6219_v51, %v6187_v27  ;;  %v12501_v0 = vld [vmem:[#allocation28_spill] sm:$0xff] }
0x1277   : > { %v8656_v10 = vpop.eup %8655  ;;  %v5871_v31 = vmul.f32 %v11871_v43, %v5839_v23  ;;  %v5808_v2 = vmul.f32 %v11886_v30, %v5776_v19  ;;  %vm6094_vm5 = vcmp.ge.f32.partialorder %v11785_v61, 0.0  ;;  %v6190_v61 = vmul.f32 0.5, %v11771_v26  ;;  %v12502_v23 = vld [vmem:[#allocation29_spill] sm:$0xff] }
0x1278   : > { %v6253_v63 = vmul.f32 %v6221_v25, %v6189_v29  ;;  %v6030_v47 = vmul.f32 %v8654_v55, %v5870_v13  ;;  %v5745_v48 = vmul.f32 %v11898_v28, %v5713_v33  ;;  %vm6096_vm6 = vcmp.ge.f32.partialorder %v11814_v9, 0.0 }
0x1279   : > { %v6031_v5 = vmul.f32 %v8656_v10, %v5871_v31  ;;  %v5840_v3 = vadd.f32 0.2548296, %v5808_v2  ;;  %vm6095_vm7 = vcmp.ge.f32.partialorder %v11788_v38, 0.0  ;;  %v6192_v51 = vmul.f32 0.5, %v11793_v52 }
0x127a   : > { %v6062_v7 = vsub.f32 1.0, %v6030_v47  ;;  %v5777_v44 = vadd.f32 -0.28449672, %v5745_v48  ;;  %v6271_v15 = vpack.c.bf16 %v6253_v63, %v6251_v34  ;;  %v7529_v56 = vpop.f32.mrb[84].mxu1  ;;  %v8658_v45 = vpop.eup %8657  ;;  %vm6097_vm8 = vcmp.ge.f32.partialorder %v11832_v41, 0.0 }
0x127b   : > { %v5872_v24 = vmul.f32 %v11886_v30, %v5840_v3  ;;  %v6063_v6 = vsub.f32 1.0, %v6031_v5  ;;  %v7530_v49 = vpop.f32.mrb[85].mxu1  ;;  %v6191_v20 = vmul.f32 0.5, %v11781_v16  ;;  %v6193_v4 = vmul.f32 0.5, %v11825_v60  ;;  %v12503_v5 = vld [vmem:[#allocation26_spill] sm:$0xff] }
0x127c   : > { %v6126_v43 = vsub.f32 0.0, %v6062_v7  ;;  %v5809_v1 = vmul.f32 %v11898_v28, %v5777_v44  ;;  %6482 = vmatmul.mubr.bf16.gmra.mrb[104].mxu1 %v6268_v14  ;;  %v7531_v62 = vadd.f32 %v7530_v49, %v7529_v56  ;;  %v7532_v30 = vpop.f32.mrb[86].mxu1  ;;  %vm8746_vm9 = vmmov (!%p7344_p6), 0  }
0x127d   : > { %v6032_v53 = vmul.f32 %v8658_v45, %v5872_v24  ;;  %6489 = vmatprep.mubr.bf16.mxu1 %v6271_v15  ;;  %v7533_v35 = vpop.f32.mrb[87].mxu1  ;;  %v6127_v59 = vsub.f32 0.0, %v6063_v6 }
0x127e   : > { %v5841_v22 = vadd.f32 0.2548296, %v5809_v1  ;;  %v6158_v58 = vsel %vm6094_vm5, %v6062_v7, %v6126_v43  ;;  %v6444_v54 = vadd.f32 %v7531_v62, %v11936_v12  ;;  %v7534_v18 = vadd.f32 %v7533_v35, %v7532_v30  ;;  %v12504_v7 = vld [vmem:[#allocation27_spill] sm:$0xff]  ;;  %v12505_v62 = vld [vmem:[#allocation13_spill] sm:$0xff] }
0x127f   : > { %v6064_v8 = vsub.f32 1.0, %v6032_v53  ;;  %v8660_v14 = vpop.eup %8659  ;;  %v6222_v57 = vadd.f32 1.0, %v6158_v58  ;;  %v6159_v50 = vsel %vm6095_vm7, %v6063_v6, %v6127_v59 }
0x1280   : > { %v5873_v11 = vmul.f32 %v11898_v28, %v5841_v22  ;;  %v6513_v17 = vmul.f32 %v11947_v42, %v6444_v54  ;;  %v6447_v21 = vadd.f32 %v7534_v18, %v11936_v12  ;;  %v6223_v19 = vadd.f32 1.0, %v6159_v50 }
0x1281   : > { %v6128_v37 = vsub.f32 0.0, %v6064_v8  ;;  %v6254_v9 = vmul.f32 %v6222_v57, %v6190_v61  ;;  %v12507_v57 = vld [vmem:[#allocation11_spill] sm:$0xff] }
0x1282   : > { %v6033_v40 = vmul.f32 %v8660_v14, %v5873_v11  ;;  %v11958_v28 = vadd.f32 %v6513_v17, %v12501_v0  ;;  %v6514_v27 = vmul.f32 %v11947_v42, %v6447_v21  ;;  %v6255_v25 = vmul.f32 %v6223_v19, %v6191_v20  ;;  %v12508_v0 = vld [vmem:[#allocation10_spill] sm:$0xff]  ;;  %v12509_v19 = vld [vmem:[#allocation32_spill] sm:$0xff] }
0x1283   : > { %v6160_v39 = vsel %vm6096_vm6, %v6064_v8, %v6128_v37  ;;  %v12506_v8 = vld [vmem:[#allocation12_spill] sm:$0xff] }
0x1284   : > { %v6224_v36 = vadd.f32 1.0, %v6160_v39  ;;  %v6065_v26 = vsub.f32 1.0, %v6033_v40  ;;  %6490 = vmatmul.mubr.bf16.gmra.mrb[108].mxu1 %v6270_v46  ;;  %6545 = vst.msk [vmem:[#allocation2] sm:$0xff] %vm1119_vm2, %v11958_v28  ;;  %v11967_v52 = vadd.f32 %v6514_v27, %v12502_v23 }
0x1286   : > { %v6256_v38 = vmul.f32 %v6224_v36, %v6192_v51  ;;  %v6129_v32 = vsub.f32 0.0, %v6065_v26  ;;  %6546 = vst.msk [vmem:[#allocation2 + $0x8] sm:$0xff] %vm1119_vm2, %v11967_v52 }
0x1288   : > { %v6161_v55 = vsel %vm6097_vm8, %v6065_v26, %v6129_v32  ;;  %v6272_v29 = vpack.c.bf16 %v6256_v38, %v6254_v9 }
0x1289   : > { %v6225_v46 = vadd.f32 1.0, %v6161_v55  ;;  %v7535_v33 = vpop.f32.mrb[88].mxu1 }
0x128a   : > { %v7536_v10 = vpop.f32.mrb[89].mxu1 }
0x128b   : > { %v6257_v13 = vmul.f32 %v6225_v46, %v6193_v4  ;;  %v7537_v2 = vadd.f32 %v7536_v10, %v7535_v33  ;;  %v7538_v34 = vpop.f32.mrb[90].mxu1  ;;  %v12510_v46 = vld [vmem:[#allocation33_spill] sm:$0xff] }
0x128c   : > { %v7539_v63 = vpop.f32.mrb[91].mxu1 }
0x128d   : > { %v6273_v31 = vpack.c.bf16 %v6257_v13, %v6255_v25  ;;  %v6452_v41 = vadd.f32 %v7537_v2, %v11936_v12  ;;  %v7540_v47 = vadd.f32 %v7539_v63, %v7538_v34 }
0x128f   : > { %6497 = vmatprep.mubr.bf16.mxu1 %v6273_v31  ;;  %v6515_v48 = vmul.f32 %v11947_v42, %v6452_v41  ;;  %v6455_v16 = vadd.f32 %v7540_v47, %v11936_v12  ;;  %v12511_v41 = vld [vmem:[#allocation30_spill] sm:$0xff] }
0x1290   : > { %6498 = vmatmul.mubr.bf16.gmra.mrb[112].mxu1 %v6272_v29 }
0x1291   : > { %v11978_v60 = vadd.f32 %v6515_v48, %v12503_v5  ;;  %v6516_v3 = vmul.f32 %v11947_v42, %v6455_v16 }
0x1293   : > { %6547 = vst.msk [vmem:[#allocation2 + $0x10] sm:$0xff] %vm1119_vm2, %v11978_v60  ;;  %v11984_v44 = vadd.f32 %v6516_v3, %v12504_v7  ;;  %v12512_v3 = vld [vmem:[#allocation31_spill] sm:$0xff] }
0x1295   : > { %6548 = vst.msk [vmem:[#allocation2 + $0x18] sm:$0xff] %vm1119_vm2, %v11984_v44 }
0x1337   : > { %v7541_v15 = vpop.f32.mrb[92].mxu1 }
0x1338   : > { %v7542_v24 = vpop.f32.mrb[93].mxu1 }
0x1339   : > { %v7543_v56 = vadd.f32 %v7542_v24, %v7541_v15  ;;  %v7544_v45 = vpop.f32.mrb[94].mxu1 }
0x133a   : > { %v7545_v43 = vpop.f32.mrb[95].mxu1 }
0x133b   : > { %v6460_v6 = vadd.f32 %v7543_v56, %v11936_v12  ;;  %v7546_v1 = vadd.f32 %v7545_v43, %v7544_v45 }
0x133d   : > { %v6517_v49 = vmul.f32 %v11947_v42, %v6460_v6  ;;  %v6463_v53 = vadd.f32 %v7546_v1, %v11936_v12 }
0x133f   : > { %v11992_v30 = vadd.f32 %v6517_v49, %v12505_v62  ;;  %v6518_v22 = vmul.f32 %v11947_v42, %v6463_v53  ;;  %v7547_v35 = vpop.f32.mrb[96].mxu1  ;;  %v12513_v49 = vld [vmem:[#allocation16_spill] sm:$0xff] }
0x1340   : > { %v7548_v58 = vpop.f32.mrb[97].mxu1 }
0x1341   : > { %6549 = vst.msk [vmem:[#allocation2 + $0x20] sm:$0xff] %vm1119_vm2, %v11992_v30  ;;  %v11998_v54 = vadd.f32 %v6518_v22, %v12506_v8  ;;  %v7549_v59 = vadd.f32 %v7548_v58, %v7547_v35  ;;  %v7550_v11 = vpop.f32.mrb[98].mxu1  ;;  %v12514_v22 = vld [vmem:[#allocation17_spill] sm:$0xff] }
0x1342   : > { %v7551_v18 = vpop.f32.mrb[99].mxu1 }
0x1343   : > { %6550 = vst.msk [vmem:[#allocation2 + $0x28] sm:$0xff] %vm1119_vm2, %v11998_v54  ;;  %v6468_v14 = vadd.f32 %v7549_v59, %v11936_v12  ;;  %v7552_v61 = vadd.f32 %v7551_v18, %v7550_v11 }
0x1345   : > { %v6519_v37 = vmul.f32 %v11947_v42, %v6468_v14  ;;  %v6471_v17 = vadd.f32 %v7552_v61, %v11936_v12 }
0x1347   : > { %v12006_v40 = vadd.f32 %v6519_v37, %v12507_v57  ;;  %v6520_v21 = vmul.f32 %v11947_v42, %v6471_v17  ;;  %v7553_v39 = vpop.f32.mrb[100].mxu1  ;;  %v12515_v57 = vld [vmem:[#allocation14_spill] sm:$0xff] }
0x1348   : > { %v7554_v51 = vpop.f32.mrb[101].mxu1 }
0x1349   : > { %6551 = vst.msk [vmem:[#allocation2 + $0x30] sm:$0xff] %vm1119_vm2, %v12006_v40  ;;  %v12012_v50 = vadd.f32 %v6520_v21, %v12508_v0  ;;  %v7555_v36 = vadd.f32 %v7554_v51, %v7553_v39  ;;  %v7556_v26 = vpop.f32.mrb[102].mxu1  ;;  %v12516_v51 = vld [vmem:[#allocation15_spill] sm:$0xff] }
0x134a   : > { %v7557_v27 = vpop.f32.mrb[103].mxu1 }
0x134b   : > { %6552 = vst.msk [vmem:[#allocation2 + $0x38] sm:$0xff] %vm1119_vm2, %v12012_v50  ;;  %v6476_v9 = vadd.f32 %v7555_v36, %v11936_v12  ;;  %v7558_v38 = vadd.f32 %v7557_v27, %v7556_v26  ;;  %v6573_v36 = vsel (!%p7344_p6), %vm1119_vm2, %v11978_v60, 0.0  ;;  %v6576_v26 = vsel (!%p7344_p6), %vm1119_vm2, %v11984_v44, 0.0 }
0x134c   : > { %6574 = vadd.xlane.f32.xlu1 (!%p7344_p6), %v6573_v36  ;;  %v6579_v27 = vsel (!%p7344_p6), %vm1119_vm2, %v11992_v30, 0.0 }
0x134d   : > { %v6521_v32 = vmul.f32 %v11947_v42, %v6476_v9  ;;  %v6479_v23 = vadd.f32 %v7558_v38, %v11936_v12  ;;  %v6582_v9 = vsel (!%p7344_p6), %vm1119_vm2, %v11998_v54, 0.0  ;;  %v6585_v38 = vsel (!%p7344_p6), %vm1119_vm2, %v12006_v40, 0.0 }
0x134f   : > { %v12020_v55 = vadd.f32 %v6521_v32, %v12509_v19  ;;  %v6522_v29 = vmul.f32 %v11947_v42, %v6479_v23  ;;  %v7559_v20 = vpop.f32.mrb[104].mxu1  ;;  %v6588_v32 = vsel (!%p7344_p6), %vm1119_vm2, %v12012_v50, 0.0 }
0x1350   : > { %v7560_v4 = vpop.f32.mrb[105].mxu1  ;;  %6577 = vadd.xlane.f32.xlu1 (!%p7344_p6), %v6576_v26 }
0x1351   : > { %6553 = vst.msk [vmem:[#allocation2 + $0x40] sm:$0xff] %vm1119_vm2, %v12020_v55  ;;  %v12026_v25 = vadd.f32 %v6522_v29, %v12510_v46  ;;  %v7561_v13 = vadd.f32 %v7560_v4, %v7559_v20  ;;  %v7562_v33 = vpop.f32.mrb[106].mxu1  ;;  %v6591_v23 = vsel (!%p7344_p6), %vm1119_vm2, %v12020_v55, 0.0 }
0x1352   : > { %v7563_v10 = vpop.f32.mrb[107].mxu1 }
0x1353   : > { %6554 = vst.msk [vmem:[#allocation2 + $0x48] sm:$0xff] %vm1119_vm2, %v12026_v25  ;;  %v6484_v31 = vadd.f32 %v7561_v13, %v11936_v12  ;;  %v7564_v2 = vadd.f32 %v7563_v10, %v7562_v33  ;;  %v6594_v19 = vsel (!%p7344_p6), %vm1119_vm2, %v12026_v25, 0.0 }
0x1354   : > { %6583 = vadd.xlane.f32.xlu1 (!%p7344_p6), %v6582_v9 }
0x1355   : > { %v6523_v34 = vmul.f32 %v11947_v42, %v6484_v31  ;;  %v6487_v63 = vadd.f32 %v7564_v2, %v11936_v12 }
0x1357   : > { %v12034_v47 = vadd.f32 %v6523_v34, %v12511_v41  ;;  %v6524_v48 = vmul.f32 %v11947_v42, %v6487_v63  ;;  %v7565_v16 = vpop.f32.mrb[108].mxu1 }
0x1358   : > { %v7566_v5 = vpop.f32.mrb[109].mxu1  ;;  %6589 = vadd.xlane.f32.xlu1 (!%p7344_p6), %v6588_v32 }
0x1359   : > { %6555 = vst.msk [vmem:[#allocation2 + $0x50] sm:$0xff] %vm1119_vm2, %v12034_v47  ;;  %v12040_v7 = vadd.f32 %v6524_v48, %v12512_v3  ;;  %v7567_v15 = vadd.f32 %v7566_v5, %v7565_v16  ;;  %v7568_v24 = vpop.f32.mrb[110].mxu1  ;;  %v6597_v29 = vsel (!%p7344_p6), %vm1119_vm2, %v12034_v47, 0.0 }
0x135a   : > { %v7569_v56 = vpop.f32.mrb[111].mxu1 }
0x135b   : > { %6556 = vst.msk [vmem:[#allocation2 + $0x58] sm:$0xff] %vm1119_vm2, %v12040_v7  ;;  %v6492_v45 = vadd.f32 %v7567_v15, %v11936_v12  ;;  %v7570_v43 = vadd.f32 %v7569_v56, %v7568_v24  ;;  %v6600_v20 = vsel (!%p7344_p6), %vm1119_vm2, %v12040_v7, 0.0 }
0x135c   : > { %6595 = vadd.xlane.f32.xlu1 (!%p7344_p6), %v6594_v19 }
0x135d   : > { %v6525_v6 = vmul.f32 %v11947_v42, %v6492_v45  ;;  %v6495_v1 = vadd.f32 %v7570_v43, %v11936_v12 }
0x135f   : > { %v12048_v53 = vadd.f32 %v6525_v6, %v12513_v49  ;;  %v6526_v62 = vmul.f32 %v11947_v42, %v6495_v1 }
0x1360   : > { %6601 = vadd.xlane.f32.xlu1 (!%p7344_p6), %v6600_v20 }
0x1361   : > { %6557 = vst.msk [vmem:[#allocation2 + $0x60] sm:$0xff] %vm1119_vm2, %v12048_v53  ;;  %v12054_v35 = vadd.f32 %v6526_v62, %v12514_v22  ;;  %v6603_v4 = vsel (!%p7344_p6), %vm1119_vm2, %v12048_v53, 0.0 }
0x1363   : > { %v7571_v58 = vpop.f32.mrb[112].mxu1  ;;  %6558 = vst.msk [vmem:[#allocation2 + $0x68] sm:$0xff] %vm1119_vm2, %v12054_v35  ;;  %v6606_v46 = vsel (!%p7344_p6), %vm1119_vm2, %v12054_v35, 0.0 }
0x1364   : > { %v7572_v8 = vpop.f32.mrb[113].mxu1  ;;  %6607 = vadd.xlane.f32.xlu1 (!%p7344_p6), %v6606_v46 }
0x1365   : > { %v7573_v59 = vadd.f32 %v7572_v8, %v7571_v58  ;;  %v7574_v11 = vpop.f32.mrb[114].mxu1 }
0x1366   : > { %v7575_v18 = vpop.f32.mrb[115].mxu1 }
0x1367   : > { %v6500_v14 = vadd.f32 %v7573_v59, %v11936_v12  ;;  %v7576_v61 = vadd.f32 %v7575_v18, %v7574_v11 }
0x1369   : > { %v6527_v37 = vmul.f32 %v11947_v42, %v6500_v14  ;;  %v6503_v17 = vadd.f32 %v7576_v61, %v11936_v12  ;;  %6564 = sbr.rel (%p7344_p6) target bundleno = 5748 (0x1674), region = 112  ;;  %v6567_v12 = vsel (!%p7344_p6), %vm1119_vm2, %v11958_v28, 0.0 }
0x136a   : > { %6568 = vadd.xlane.f32.xlu0 (!%p7344_p6), %v6567_v12 }
0x136b   : > { %v12062_v21 = vadd.f32 %v6527_v37, %v12515_v57  ;;  %v6528_v39 = vmul.f32 %v11947_v42, %v6503_v17  ;;  %v6570_v42 = vsel (!%p7344_p6), %vm1119_vm2, %v11967_v52, 0.0 }
0x136d   : > { %6559 = vst.msk [vmem:[#allocation2 + $0x70] sm:$0xff] %vm1119_vm2, %v12062_v21  ;;  %v12068_v0 = vadd.f32 %v6528_v39, %v12516_v51  ;;  %v6609_v13 = vsel (!%p7344_p6), %vm1119_vm2, %v12062_v21, 0.0 }
0x136e   : > { %6571 = vadd.xlane.f32.xlu0 (!%p7344_p6), %v6570_v42 }
0x136f   : > { %6560 = vst.msk [vmem:[#allocation2 + $0x78] sm:$0xff] %vm1119_vm2, %v12068_v0  ;;  %v6612_v33 = vsel (!%p7344_p6), %vm1119_vm2, %v12068_v0, 0.0 }
0x1370   : > { %6613 = vadd.xlane.f32.xlu1 %v6612_v33 }
0x1372   : > { %6580 = vadd.xlane.f32.xlu0 %v6579_v27 }
0x1376   : > { %6586 = vadd.xlane.f32.xlu0 %v6585_v38 }
0x137a   : > { %6592 = vadd.xlane.f32.xlu0 %v6591_v23 }
0x137e   : > { %6598 = vadd.xlane.f32.xlu0 %v6597_v29 }
0x1382   : > { %6604 = vadd.xlane.f32.xlu0 %v6603_v4 }
0x1386   : > { %6610 = vadd.xlane.f32.xlu0 %v6609_v13 }
0x13d9   : > { %v6575_v31 = vpop.xlane.xlu1 %6574 }
0x13da   : > { %v6617_v34 = vmul.f32 0.015625, %v6575_v31 }
0x13dc   : > { %v12109_v41 = vsub.f32 %v11978_v60, %v6617_v34 }
0x13dd   : > { %v6578_v16 = vpop.xlane.xlu1 %6577 }
0x13de   : > { %v6618_v3 = vmul.f32 0.015625, %v6578_v16  ;;  %v6649_v24 = vmul.f32 %v12109_v41, %v12109_v41 }
0x13e0   : > { %v12119_v45 = vsub.f32 %v11984_v44, %v6618_v3  ;;  %v6669_v6 = vsel %vm1119_vm2, %v6649_v24, 0.0 }
0x13e1   : > { %v6584_v43 = vpop.xlane.xlu1 %6583 }
0x13e2   : > { %v6620_v49 = vmul.f32 0.015625, %v6584_v43  ;;  %v6650_v22 = vmul.f32 %v12119_v45, %v12119_v45 }
0x13e4   : > { %v12131_v44 = vsub.f32 %v11998_v54, %v6620_v49  ;;  %v6672_v11 = vsel %vm1119_vm2, %v6650_v22, 0.0  ;;  %v8747_v22 = vmov 0.0  }
0x13e5   : > { %v6590_v59 = vpop.xlane.xlu1 %6589  ;;  %7933 = vmatprep.mubr.msk.f32.mxu0 %vm8746_vm9, %v8747_v22  ;;  %7936 = vmatprep.subr.bf16.mxu1 %v8747_v22 }
0x13e6   : > { %v6622_v14 = vmul.f32 0.015625, %v6590_v59  ;;  %7944 = vmatprep.mubr.msk.bf16.mxu1 %vm8746_vm9, %v8747_v22  ;;  %v8679_v59 = vld [vmem:[%s12517_s28 + $0x10] sm:$0xff]  }
0x13e8   : > { %v12143_v54 = vsub.f32 %v12012_v50, %v6622_v14 }
0x13e9   : > { %v6596_v39 = vpop.xlane.xlu1 %6595 }
0x13ea   : > { %v6624_v36 = vmul.f32 0.015625, %v6596_v39 }
0x13ec   : > { %v12155_v50 = vsub.f32 %v12026_v25, %v6624_v36 }
0x13ed   : > { %v6602_v38 = vpop.xlane.xlu1 %6601 }
0x13ee   : > { %v6626_v19 = vmul.f32 0.015625, %v6602_v38 }
0x13f0   : > { %v12167_v25 = vsub.f32 %v12040_v7, %v6626_v19 }
0x13f1   : > { %v6608_v13 = vpop.xlane.xlu1 %6607 }
0x13f2   : > { %v6628_v31 = vmul.f32 0.015625, %v6608_v13 }
0x13f4   : > { %v12179_v7 = vsub.f32 %v12054_v35, %v6628_v31 }
0x13f7   : > { %v6569_v10 = vpop.xlane.xlu0 %6568 }
0x13f8   : > { %v6615_v2 = vmul.f32 0.015625, %v6569_v10 }
0x13fa   : > { %v12106_v63 = vsub.f32 %v11958_v28, %v6615_v2 }
0x13fb   : > { %v6572_v48 = vpop.xlane.xlu0 %6571 }
0x13fc   : > { %v6616_v5 = vmul.f32 0.015625, %v6572_v48  ;;  %v6647_v15 = vmul.f32 %v12106_v63, %v12106_v63 }
0x13fe   : > { %v12116_v56 = vsub.f32 %v11967_v52, %v6616_v5  ;;  %v6663_v28 = vsel %vm1119_vm2, %v6647_v15, 0.0  ;;  %v6614_v5 = vpop.xlane.xlu1 %6613 }
0x13ff   : > { %6664 = vadd.xlane.f32.xlu0 %v6663_v28  ;;  %v6581_v60 = vpop.xlane.xlu0 %6580  ;;  %v6630_v24 = vmul.f32 0.015625, %v6614_v5 }
0x1400   : > { %v6619_v1 = vmul.f32 0.015625, %v6581_v60  ;;  %v6648_v62 = vmul.f32 %v12116_v56, %v12116_v56 }
0x1401   : > { %v12191_v35 = vsub.f32 %v12068_v0, %v6630_v24  ;;  %v8745_v0 = vmov 0.0|0.0  }
0x1402   : > { %v12128_v52 = vsub.f32 %v11992_v30, %v6619_v1  ;;  %v6666_v58 = vsel %vm1119_vm2, %v6648_v62, 0.0  ;;  %v6652_v30 = vmul.f32 %v12131_v44, %v12131_v44  ;;  %7948 = vmatprep.subr.bf16.mxu0 %v8745_v0 }
0x1403   : > { %6670 = vadd.xlane.f32.xlu0 %v6669_v6  ;;  %6667 = vadd.xlane.f32.xlu1 %v6666_v58  ;;  %v6587_v8 = vpop.xlane.xlu0 %6586  ;;  %v6662_v49 = vmul.f32 %v12191_v35, %v12191_v35  ;;  %v8677_v58 = vld [vmem:[%s12517_s28] sm:$0xff]  }
0x1404   : > { %v6621_v18 = vmul.f32 0.015625, %v6587_v8  ;;  %v6651_v61 = vmul.f32 %v12128_v52, %v12128_v52  ;;  %v6678_v51 = vsel %vm1119_vm2, %v6652_v30, 0.0  ;;  %7937 = vmatpush3.bf16.msra.mxu1 %v8677_v58  ;;  %v8678_v8 = vld [vmem:[%s12517_s28 + $0x8] sm:$0xff]  }
0x1405   : > { %7938 = vmatprep.subr.bf16.mxu1 %v8747_v22 }
0x1406   : > { %v12140_v37 = vsub.f32 %v12006_v40, %v6621_v18  ;;  %v6675_v17 = vsel %vm1119_vm2, %v6651_v61, 0.0  ;;  %v6654_v40 = vmul.f32 %v12143_v54, %v12143_v54 }
0x1407   : > { %6673 = vadd.xlane.f32.xlu1 %v6672_v11  ;;  %6676 = vadd.xlane.f32.xlu0 %v6675_v17  ;;  %v6593_v57 = vpop.xlane.xlu0 %6592 }
0x1408   : > { %v6623_v12 = vmul.f32 0.015625, %v6593_v57  ;;  %v6653_v42 = vmul.f32 %v12140_v37, %v12140_v37  ;;  %v6684_v32 = vsel %vm1119_vm2, %v6654_v40, 0.0  ;;  %7939 = vmatpush3.bf16.msra.mxu1 %v8678_v8 }
0x1409   : > { %7940 = vmatprep.subr.bf16.mxu1 %v8747_v22 }
0x140a   : > { %v12152_v26 = vsub.f32 %v12020_v55, %v6623_v12  ;;  %v6681_v27 = vsel %vm1119_vm2, %v6653_v42, 0.0  ;;  %v6656_v55 = vmul.f32 %v12155_v50, %v12155_v50 }
0x140b   : > { %6679 = vadd.xlane.f32.xlu1 %v6678_v51  ;;  %6682 = vadd.xlane.f32.xlu0 %v6681_v27  ;;  %v6599_v9 = vpop.xlane.xlu0 %6598 }
0x140c   : > { %v6625_v23 = vmul.f32 0.015625, %v6599_v9  ;;  %v6655_v29 = vmul.f32 %v12152_v26, %v12152_v26  ;;  %v6690_v33 = vsel %vm1119_vm2, %v6656_v55, 0.0  ;;  %7941 = vmatpush3.bf16.msra.mxu1 %v8679_v59 }
0x140d   : > { %7942 = vmatprep.subr.bf16.mxu1 %v8747_v22 }
0x140e   : > { %v12164_v20 = vsub.f32 %v12034_v47, %v6625_v23  ;;  %v6687_v4 = vsel %vm1119_vm2, %v6655_v29, 0.0  ;;  %v6658_v47 = vmul.f32 %v12167_v25, %v12167_v25 }
0x140f   : > { %6685 = vadd.xlane.f32.xlu1 %v6684_v32  ;;  %6688 = vadd.xlane.f32.xlu0 %v6687_v4  ;;  %v6605_v46 = vpop.xlane.xlu0 %6604 }
0x1410   : > { %v6627_v10 = vmul.f32 0.015625, %v6605_v46  ;;  %v6657_v2 = vmul.f32 %v12164_v20, %v12164_v20  ;;  %v6696_v3 = vsel %vm1119_vm2, %v6658_v47, 0.0 }
0x1412   : > { %v12176_v34 = vsub.f32 %v12048_v53, %v6627_v10  ;;  %v6693_v48 = vsel %vm1119_vm2, %v6657_v2, 0.0  ;;  %v6660_v53 = vmul.f32 %v12179_v7, %v12179_v7  ;;  %v12215_v2 = vld [vmem:[%s12518_s30] ss:$0 sm:$0xff] }
0x1413   : > { %6691 = vadd.xlane.f32.xlu1 %v6690_v33  ;;  %6694 = vadd.xlane.f32.xlu0 %v6693_v48  ;;  %v6611_v16 = vpop.xlane.xlu0 %6610 }
0x1414   : > { %v6629_v15 = vmul.f32 0.015625, %v6611_v16  ;;  %v6659_v28 = vmul.f32 %v12176_v34, %v12176_v34  ;;  %v6702_v6 = vsel %vm1119_vm2, %v6660_v53, 0.0 }
0x1416   : > { %v12188_v60 = vsub.f32 %v12062_v21, %v6629_v15  ;;  %v6699_v43 = vsel %vm1119_vm2, %v6659_v28, 0.0  ;;  %v6708_v21 = vsel %vm1119_vm2, %v6662_v49, 0.0 }
0x1417   : > { %6697 = vadd.xlane.f32.xlu1 %v6696_v3  ;;  %6700 = vadd.xlane.f32.xlu0 %v6699_v43  ;;  %v12222_v43 = vld [vmem:[%s12519_s25] ss:$0 sm:$0xff] }
0x1418   : > { %v6661_v1 = vmul.f32 %v12188_v60, %v12188_v60 }
0x141a   : > { %v6705_v62 = vsel %vm1119_vm2, %v6661_v1, 0.0 }
0x141b   : > { %6703 = vadd.xlane.f32.xlu1 %v6702_v6  ;;  %6706 = vadd.xlane.f32.xlu0 %v6705_v62 }
0x141f   : > { %6709 = vadd.xlane.f32.xlu1 %v6708_v21 }
0x148c   : > { %v6665_v11 = vpop.xlane.xlu0 %6664 }
0x148d   : > { %v6711_v18 = vmul.f32 0.015625, %v6665_v11 }
0x148f   : > { %v6727_v14 = vadd.f32 1e-06, %v6711_v18 }
0x1490   : > { %v6668_v61 = vpop.xlane.xlu1 %6667  ;;  %v6671_v30 = vpop.xlane.xlu0 %6670 }
0x1491   : > { %8681 = vrsqrt.f32 %v6727_v14  ;;  %v6712_v17 = vmul.f32 0.015625, %v6668_v61  ;;  %v6713_v57 = vmul.f32 0.015625, %v6671_v30 }
0x1493   : > { %v6728_v39 = vadd.f32 1e-06, %v6712_v17  ;;  %v6729_v51 = vadd.f32 1e-06, %v6713_v57 }
0x1494   : > { %v6674_v12 = vpop.xlane.xlu1 %6673  ;;  %v6677_v36 = vpop.xlane.xlu0 %6676 }
0x1495   : > { %8683 = vrsqrt.f32 %v6728_v39  ;;  %v6714_v42 = vmul.f32 0.015625, %v6674_v12  ;;  %v6715_v40 = vmul.f32 0.015625, %v6677_v36 }
0x1496   : > { %8685 = vrsqrt.f32 %v6729_v51 }
0x1497   : > { %v6730_v27 = vadd.f32 1e-06, %v6714_v42  ;;  %v6731_v9 = vadd.f32 1e-06, %v6715_v40 }
0x1498   : > { %v6680_v38 = vpop.xlane.xlu1 %6679  ;;  %v6683_v32 = vpop.xlane.xlu0 %6682 }
0x1499   : > { %8687 = vrsqrt.f32 %v6730_v27  ;;  %v6716_v23 = vmul.f32 0.015625, %v6680_v38  ;;  %v6717_v19 = vmul.f32 0.015625, %v6683_v32 }
0x149a   : > { %8689 = vrsqrt.f32 %v6731_v9 }
0x149b   : > { %v8682_v29 = vpop.eup %8681  ;;  %v6732_v55 = vadd.f32 1e-06, %v6716_v23  ;;  %v6733_v4 = vadd.f32 1e-06, %v6717_v19 }
0x149c   : > { %v6686_v46 = vpop.xlane.xlu1 %6685  ;;  %v6689_v13 = vpop.xlane.xlu0 %6688  ;;  %v6759_v33 = vmul.f32 %v8682_v29, %v12106_v63 }
0x149d   : > { %8691 = vrsqrt.f32 %v6732_v55  ;;  %v6718_v10 = vmul.f32 0.015625, %v6686_v46  ;;  %v6719_v31 = vmul.f32 0.015625, %v6689_v13 }
0x149e   : > { %8693 = vrsqrt.f32 %v6733_v4  ;;  %v6781_v28 = vmul.f32 %v12215_v2, %v6759_v33 }
0x149f   : > { %v8684_v47 = vpop.eup %8683  ;;  %v6734_v48 = vadd.f32 1e-06, %v6718_v10  ;;  %v6735_v16 = vadd.f32 1e-06, %v6719_v31 }
0x14a0   : > { %v8686_v5 = vpop.eup %8685  ;;  %v6692_v3 = vpop.xlane.xlu1 %6691  ;;  %v6760_v24 = vmul.f32 %v8684_v47, %v12116_v56  ;;  %v6803_v8 = vadd.f32 %v12222_v43, %v6781_v28 }
0x14a1   : > { %v6695_v15 = vpop.xlane.xlu0 %6694  ;;  %8695 = vrsqrt.f32 %v6734_v48  ;;  %v6720_v63 = vmul.f32 0.015625, %v6692_v3  ;;  %v6761_v6 = vmul.f32 %v8686_v5, %v12109_v41 }
0x14a2   : > { %v6721_v53 = vmul.f32 0.015625, %v6695_v15  ;;  %8697 = vrsqrt.f32 %v6735_v16  ;;  %v6782_v1 = vmul.f32 %v12215_v2, %v6760_v24 }
0x14a3   : > { %v8688_v49 = vpop.eup %8687  ;;  %v6736_v62 = vadd.f32 1e-06, %v6720_v63  ;;  %v6783_v18 = vmul.f32 %v12215_v2, %v6761_v6 }
0x14a4   : > { %v6737_v21 = vadd.f32 1e-06, %v6721_v53  ;;  %v8690_v22 = vpop.eup %8689  ;;  %v6698_v56 = vpop.xlane.xlu1 %6697  ;;  %v6804_v59 = vadd.f32 %v12222_v43, %v6782_v1  ;;  %v6762_v11 = vmul.f32 %v8688_v49, %v12119_v45 }
0x14a5   : > { %v6701_v58 = vpop.xlane.xlu0 %6700  ;;  %8699 = vrsqrt.f32 %v6736_v62  ;;  %v6722_v14 = vmul.f32 0.015625, %v6698_v56  ;;  %v6763_v17 = vmul.f32 %v8690_v22, %v12128_v52  ;;  %v6805_v45 = vadd.f32 %v12222_v43, %v6783_v18 }
0x14a6   : > { %v6723_v41 = vmul.f32 0.015625, %v6701_v58  ;;  %8701 = vrsqrt.f32 %v6737_v21  ;;  %v7949_v61 = vpack.c.bf16 %v6804_v59, %v6803_v8  ;;  %v6784_v30 = vmul.f32 %v12215_v2, %v6762_v11 }
0x14a7   : > { %v8692_v57 = vpop.eup %8691  ;;  %v6738_v39 = vadd.f32 1e-06, %v6722_v14  ;;  %v6785_v9 = vmul.f32 %v12215_v2, %v6763_v17 }
0x14a8   : > { %v6739_v51 = vadd.f32 1e-06, %v6723_v41  ;;  %v8694_v12 = vpop.eup %8693  ;;  %v6704_v36 = vpop.xlane.xlu1 %6703  ;;  %7950 = vmatpush3.bf16.msra.mxu0 %v7949_v61  ;;  %v6806_v40 = vadd.f32 %v12222_v43, %v6784_v30  ;;  %v6764_v27 = vmul.f32 %v8692_v57, %v12131_v44 }
0x14a9   : > { %v6707_v42 = vpop.xlane.xlu0 %6706  ;;  %8703 = vrsqrt.f32 %v6738_v39  ;;  %v6724_v38 = vmul.f32 0.015625, %v6704_v36  ;;  %7951 = vmatprep.subr.bf16.mxu0 %v8745_v0  ;;  %v6765_v52 = vmul.f32 %v8694_v12, %v12140_v37  ;;  %v6807_v44 = vadd.f32 %v12222_v43, %v6785_v9  ;;  %v8680_v9 = vld [vmem:[%s12517_s28 + $0x18] sm:$0xff]  }
0x14aa   : > { %v6725_v32 = vmul.f32 0.015625, %v6707_v42  ;;  %8705 = vrsqrt.f32 %v6739_v51  ;;  %v7952_v23 = vpack.c.bf16 %v6806_v40, %v6805_v45  ;;  %v6786_v19 = vmul.f32 %v12215_v2, %v6764_v27  ;;  %v12520_v42 = vld [vmem:[#allocation8_spill] sm:$0xff]  ;;  %v12521_v27 = vld [vmem:[#allocation9_spill] sm:$0xff]  ;;  %7943 = vmatpush3.bf16.msra.mxu1 %v8680_v9 }
0x14ab   : > { %v8696_v29 = vpop.eup %8695  ;;  %v6740_v55 = vadd.f32 1e-06, %v6724_v38  ;;  %v6787_v31 = vmul.f32 %v12215_v2, %v6765_v52  ;;  %v6821_v45 = vmul.u32 32, %v12520_v42 }
0x14ac   : > { %v6741_v4 = vadd.f32 1e-06, %v6725_v32  ;;  %v8698_v46 = vpop.eup %8697  ;;  %v6710_v13 = vpop.xlane.xlu1 %6709  ;;  %7953 = vmatpush3.bf16.msra.mxu0 %v7952_v23  ;;  %v6808_v33 = vadd.f32 %v12222_v43, %v6786_v19  ;;  %v6766_v10 = vmul.f32 %v8696_v29, %v12143_v54 }
0x14ad   : > { %8707 = vrsqrt.f32 %v6740_v55  ;;  %v6726_v37 = vmul.f32 0.015625, %v6710_v13  ;;  %7954 = vmatprep.subr.bf16.mxu0 %v8745_v0  ;;  %v6767_v47 = vmul.f32 %v8698_v46, %v12152_v26  ;;  %v6809_v24 = vadd.f32 %v12222_v43, %v6787_v31 }
0x14ae   : > { %8709 = vrsqrt.f32 %v6741_v4  ;;  %v7955_v48 = vpack.c.bf16 %v6808_v33, %v6807_v44  ;;  %v6788_v16 = vmul.f32 %v12215_v2, %v6766_v10  ;;  %vm6822_vm10 = vcmp.eq.s32.totalorder %v12521_v27, %v6821_v45 }
0x14af   : > { %v8700_v5 = vpop.eup %8699  ;;  %v6742_v3 = vadd.f32 1e-06, %v6726_v37  ;;  %v6789_v63 = vmul.f32 %v12215_v2, %v6767_v47 }
0x14b0   : > { %v8702_v15 = vpop.eup %8701  ;;  %7956 = vmatpush3.bf16.msra.mxu0 %v7955_v48  ;;  %v6810_v54 = vadd.f32 %v12222_v43, %v6788_v16  ;;  %v6768_v28 = vmul.f32 %v8700_v5, %v12155_v50 }
0x14b1   : > { %8711 = vrsqrt.f32 %v6742_v3  ;;  %7957 = vmatprep.subr.bf16.mxu0 %v8745_v0  ;;  %v6769_v26 = vmul.f32 %v8702_v15, %v12164_v20  ;;  %v6811_v62 = vadd.f32 %v12222_v43, %v6789_v63 }
0x14b2   : > { %v7958_v53 = vpack.c.bf16 %v6810_v54, %v6809_v24  ;;  %v6790_v6 = vmul.f32 %v12215_v2, %v6768_v28 }
0x14b3   : > { %v8704_v1 = vpop.eup %8703  ;;  %v6791_v50 = vmul.f32 %v12215_v2, %v6769_v26 }
0x14b4   : > { %v8706_v49 = vpop.eup %8705  ;;  %7959 = vmatpush3.bf16.msra.mxu0 %v7958_v53  ;;  %v6812_v21 = vadd.f32 %v12222_v43, %v6790_v6  ;;  %v6770_v22 = vmul.f32 %v8704_v1, %v12167_v25 }
0x14b5   : > { %7960 = vmatprep.subr.bf16.mxu0 %v8745_v0  ;;  %v6771_v56 = vmul.f32 %v8706_v49, %v12176_v34  ;;  %v6813_v11 = vadd.f32 %v12222_v43, %v6791_v50 }
0x14b6   : > { %v7961_v58 = vpack.c.bf16 %v6812_v21, %v6811_v62  ;;  %v6792_v20 = vmul.f32 %v12215_v2, %v6770_v22 }
0x14b7   : > { %v8708_v8 = vpop.eup %8707  ;;  %v6793_v25 = vmul.f32 %v12215_v2, %v6771_v56 }
0x14b8   : > { %v8710_v59 = vpop.eup %8709  ;;  %7962 = vmatpush3.bf16.msra.mxu0 %v7961_v58  ;;  %v6814_v18 = vadd.f32 %v12222_v43, %v6792_v20  ;;  %v6772_v14 = vmul.f32 %v8708_v8, %v12179_v7 }
0x14b9   : > { %7963 = vmatprep.subr.bf16.mxu0 %v8745_v0  ;;  %v6773_v41 = vmul.f32 %v8710_v59, %v12188_v60  ;;  %v6815_v17 = vadd.f32 %v12222_v43, %v6793_v25 }
0x14ba   : > { %v7964_v61 = vpack.c.bf16 %v6814_v18, %v6813_v11  ;;  %v6794_v34 = vmul.f32 %v12215_v2, %v6772_v14 }
0x14bb   : > { %v8712_v30 = vpop.eup %8711  ;;  %v6795_v51 = vmul.f32 %v12215_v2, %v6773_v41 }
0x14bc   : > { %7965 = vmatpush3.bf16.msra.mxu0 %v7964_v61  ;;  %v6816_v57 = vadd.f32 %v12222_v43, %v6794_v34  ;;  %v6774_v39 = vmul.f32 %v8712_v30, %v12191_v35  ;;  %v8748_v35 = vmov 1.0  }
0x14bd   : > { %7966 = vmatprep.subr.bf16.mxu0 %v8745_v0  ;;  %v6817_v60 = vadd.f32 %v12222_v43, %v6795_v51 }
0x14be   : > { %v7967_v7 = vpack.c.bf16 %v6816_v57, %v6815_v17  ;;  %v6796_v12 = vmul.f32 %v12215_v2, %v6774_v39 }
0x14c0   : > { %7968 = vmatpush3.bf16.msra.mxu0 %v7967_v7  ;;  %v6818_v36 = vadd.f32 %v12222_v43, %v6796_v12 }
0x14c1   : > { %7969 = vmatprep.subr.bf16.mxu0 %v8745_v0  ;;  %v7349_v0 = vld [vmem:[%s12522_s22] ss:$0 sm:$0xff] }
0x14c2   : > { %v7970_v40 = vpack.c.bf16 %v6818_v36, %v6817_v60 }
0x14c4   : > { %7971 = vmatpush3.bf16.msra.mxu0 %v7970_v40 }
0x14c7   : > { %7934 = vmatmul.mubr.msk.f32.vlgmr.msra.gmra.mrb[0].mxu0 %vm6822_vm10, %v8748_v35 }
0x159a   : > { %v6891_v2 = vpop.f32.mrb[0].mxu0 }
0x159b   : > { %v6895_v38 = vpack.c.bf16 %v6891_v2, %v6891_v2  ;;  %v7935_v32 = vpop.f32.mrb[1].mxu0 }
0x159d   : > { %7945 = vmatmul.mubr.msk.bf16.vlgmr.msra.gmra.mrb[0].mxu1 %vm1119_vm2, %v6895_v38 }
0x1670   : > { %v6972_v43 = vpop.f32.mrb[0].mxu1 }
0x1671   : > { %v6973_v52 = vadd.f32 %v7349_v0, %v6972_v43  ;;  %v7946_v23 = vpop.f32.mrb[1].mxu1 }
0x1672   : > { %v6975_v19 = vpop.f32.mrb[2].mxu1 }
0x1673   : > { %6978 = vst [vmem:[%s12523_s23] sm:$0xf] %v6973_v52  ;;  %v7947_v29 = vpop.f32.mrb[3].mxu1 }
0x1674 PF: > { %s12524_s29 = sld [smem:[#allocation4_spill]]  ;;  %s12525_s2 = sld [smem:[#allocation3_spill]] }
0x1675   : > { %s12526_s25 = sld [smem:[#allocation5_spill]] }
0x167a   : > { %s31_s26 = sadd.s32 1, %s12524_s29  }
0x167b   : > { %p28_p7 = scmp.ge.s32.totalorder %s31_s26, 4  }
0x167d   :  { %30 = sbr.rel (!%p28_p7) target bundleno = 13 (0xd), region = 184 }

</bundles_post_ra>
